<compile_context>
chip_gen: v6e
topology: v6e:2x2x1
jax: 0.10.0
libtpu: 0.0.40
codegen_flags: <defaults>
</compile_context>

<pallas_src>
import functools

import jax
import jax.numpy as jnp
from jax.experimental import pallas as pl
from jax.experimental.pallas import tpu as pltpu

ENVMAX = [1, 4]
OVERLAY_CNT = 1
IN_FEATURES = 408          # 1 * 24 * 17
HID1 = 4096
HID2 = 128
OUT_PAD = 128              # lane-dense packed output, sliced in the wrapper
OUT_DIMS = (ENVMAX[1], 1)  # policy head, value head
MAX_BATCH_TILE = 64


# ---------------------------------------------------------------------------
# Kernel
# ---------------------------------------------------------------------------
def _mlp_kernel(num_heads, x_ref, w1q_ref, s1_ref, b1_ref, w2q_ref, s2_ref,
                b2_ref, w3_ref, b3_ref, o_ref, w1f_ref, w2f_ref):
    """Fused (1 or 2)-head MLP. Weights resident across the batch-tile grid."""
    # Dequantize int8 weights -> bf16 into VMEM scratch once per call.
    @pl.when(pl.program_id(0) == 0)
    def _():
        w1f_ref[...] = w1q_ref[...].astype(jnp.bfloat16)
        w2f_ref[...] = w2q_ref[...].astype(jnp.bfloat16)

    x = x_ref[...]                                                # (TB, 408) bf16

    # Layer 1, both heads fused along the (num_heads*4096)-wide hidden dim.
    # Per-column int8 scales fold into the f32 output columns.
    h1 = jnp.dot(x, w1f_ref[...], preferred_element_type=jnp.float32)
    h1 = jnp.maximum(h1 * s1_ref[...] + b1_ref[...], 0.0)        # (TB, H) f32
    h1 = h1.astype(jnp.bfloat16)

    s2 = s2_ref[...]                                              # (nh, 128) f32
    b2 = b2_ref[...]                                              # (nh, 128) f32
    h2_parts = []
    for h in range(num_heads):                                    # static unroll
        h1_h = h1[:, h * HID1:(h + 1) * HID1]                     # (TB, 4096) bf16
        w2_h = w2f_ref[pl.ds(h * HID1, HID1), :]                  # (4096, 128) bf16
        h2 = jnp.dot(h1_h, w2_h, preferred_element_type=jnp.float32)
        h2 = jnp.maximum(h2 * s2[h:h + 1, :] + b2[h:h + 1, :], 0.0)
        h2_parts.append(h2)
    h2 = jnp.concatenate(h2_parts, axis=-1)                       # (TB, nh*128) f32

    # Final tiny layer(s), f32: one lane-dense (TB, 128) store for all heads.
    o_ref[...] = jnp.dot(h2, w3_ref[...],
                         preferred_element_type=jnp.float32) + b3_ref[...]


# ---------------------------------------------------------------------------
# pallas_call wrapper
# ---------------------------------------------------------------------------
def _batch_tile(batch):
    if batch >= MAX_BATCH_TILE:
        return MAX_BATCH_TILE
    return max(8, ((batch + 7) // 8) * 8)


@functools.partial(jax.jit, static_argnames=("num_heads",))
def _mlp_forward(x_flat, w1q, s1, b1, w2q, s2, b2, w3, b3, *, num_heads):
    batch = x_flat.shape[0]
    tb = _batch_tile(batch)
    batch_pad = ((batch + tb - 1) // tb) * tb
    hdim = num_heads * HID1

    x = x_flat.astype(jnp.bfloat16)
    if batch_pad != batch:
        x = jnp.pad(x, ((0, batch_pad - batch), (0, 0)))

    weight_bytes = int(w1q.size + w2q.size
                       + 4 * (s1.size + b1.size + s2.size + b2.size
                              + w3.size + b3.size))
    cost = pl.CostEstimate(
        flops=int(2 * batch_pad * (IN_FEATURES * hdim + hdim * HID2
                                   + num_heads * HID2 * OUT_PAD)),
        transcendentals=0,
        bytes_accessed=int(weight_bytes + 2 * batch_pad * IN_FEATURES
                           + 4 * batch_pad * OUT_PAD))

    const = lambda b: (0, 0)
    out = pl.pallas_call(
        functools.partial(_mlp_kernel, num_heads),
        out_shape=jax.ShapeDtypeStruct((batch_pad, OUT_PAD), jnp.float32),
        grid_spec=pltpu.PrefetchScalarGridSpec(
            num_scalar_prefetch=0,
            grid=(batch_pad // tb,),
            in_specs=[
                pl.BlockSpec((tb, IN_FEATURES), lambda b: (b, 0)),   # x
                pl.BlockSpec((IN_FEATURES, hdim), const),            # w1q (int8)
                pl.BlockSpec((1, hdim), const),                      # s1
                pl.BlockSpec((1, hdim), const),                      # b1
                pl.BlockSpec((hdim, HID2), const),                   # w2q (int8)
                pl.BlockSpec((num_heads, HID2), const),              # s2
                pl.BlockSpec((num_heads, HID2), const),              # b2
                pl.BlockSpec((num_heads * HID2, OUT_PAD), const),    # w3 (f32)
                pl.BlockSpec((1, OUT_PAD), const),                   # b3
            ],
            out_specs=pl.BlockSpec((tb, OUT_PAD), lambda b: (b, 0)),
            scratch_shapes=[
                pltpu.VMEM((IN_FEATURES, hdim), jnp.bfloat16),       # dequant W1
                pltpu.VMEM((hdim, HID2), jnp.bfloat16),              # dequant W2
            ],
        ),
        compiler_params=pltpu.CompilerParams(
            # "arbitrary": the scratch dequant at program_id==0 must run before
            # later batch tiles, so this axis cannot be megacore-sharded.
            dimension_semantics=("arbitrary",),
            vmem_limit_bytes=40 << 20),
        cost_estimate=cost,
    )(x, w1q, s1, b1, w2q, s2, b2, w3, b3)
    return out[:batch]


# ---------------------------------------------------------------------------
# Parameters (nn.Linear-style init) and int8 packing
# ---------------------------------------------------------------------------
def _init_linear(key, fan_in, fan_out):
    kw, kb = jax.random.split(key)
    bound = 1.0 / jnp.sqrt(jnp.float32(fan_in))
    w = jax.random.uniform(kw, (fan_in, fan_out), jnp.float32, -bound, bound)
    b = jax.random.uniform(kb, (fan_out,), jnp.float32, -bound, bound)
    return w, b


def make_raw_params(key):
    heads = []
    for head_out in OUT_DIMS:
        key, k1, k2, k3 = jax.random.split(key, 4)
        w1, b1 = _init_linear(k1, IN_FEATURES, HID1)
        w2, b2 = _init_linear(k2, HID1, HID2)
        w3, b3 = _init_linear(k3, HID2, head_out)
        heads.append(dict(w1=w1, b1=b1, w2=w2, b2=b2, w3=w3, b3=b3))
    return heads


def _quantize_cols(w):
    """Symmetric int8 quantization with one f32 scale per output column."""
    amax = jnp.max(jnp.abs(w), axis=0, keepdims=True)
    scale = jnp.maximum(amax, 1e-8) / 127.0
    wq = jnp.clip(jnp.round(w / scale), -127.0, 127.0).astype(jnp.int8)
    return wq, scale.astype(jnp.float32)


def pack_heads(heads):
    """Pack 1 or 2 heads into the fused int8 kernel layout."""
    n = len(heads)
    w1q, s1 = _quantize_cols(jnp.concatenate([h["w1"] for h in heads], axis=1))
    b1 = jnp.concatenate([h["b1"] for h in heads]).reshape(1, n * HID1)
    w2q_parts, s2_parts = zip(*[_quantize_cols(h["w2"]) for h in heads])
    w2q = jnp.concatenate(w2q_parts, axis=0)                      # (n*4096, 128)
    s2 = jnp.concatenate(s2_parts, axis=0)                        # (n, 128)
    b2 = jnp.stack([h["b2"] for h in heads], axis=0)              # (n, 128)
    # W3: block layout (n*128, 128); head h occupies rows h*128:(h+1)*128 and
    # its own contiguous output columns (pad columns are exactly zero).
    w3 = jnp.zeros((n * HID2, OUT_PAD), jnp.float32)
    b3 = jnp.zeros((1, OUT_PAD), jnp.float32)
    col_offsets, col = [], 0
    for h, hd in enumerate(heads):
        od = hd["w3"].shape[1]
        w3 = w3.at[h * HID2:(h + 1) * HID2, col:col + od].set(hd["w3"])
        b3 = b3.at[0, col:col + od].set(hd["b3"])
        col_offsets.append(col)
        col += od
    return dict(num_heads=n,
                col_offsets=tuple(col_offsets),
                out_dims=tuple(hd["w3"].shape[1] for hd in heads),
                arrays=dict(w1q=w1q, s1=s1, b1=b1, w2q=w2q, s2=s2, b2=b2,
                            w3=w3, b3=b3))


# ---------------------------------------------------------------------------
# Net-level forward paths
# ---------------------------------------------------------------------------
def _flatten(x_nchw):
    b = x_nchw.shape[0]
    x = x_nchw.reshape(b, -1)
    assert x.shape[1] == IN_FEATURES, x.shape
    return x


def _run(packed, x_flat):
    a = packed["arrays"]
    return _mlp_forward(x_flat, a["w1q"], a["s1"], a["b1"], a["w2q"], a["s2"],
                        a["b2"], a["w3"], a["b3"],
                        num_heads=packed["num_heads"])


class SnakeNet:
    """Pallas equivalent of NET: per-head (forward) and fused (forward_both)."""

    def __init__(self, key):
        self.heads = make_raw_params(key)
        self.packed_dual = pack_heads(self.heads)
        self.packed_single = [pack_heads([h]) for h in self.heads]

    def forward(self, x_nchw, k):
        # NET.forward(x, k): flatten NCHW and run head k.
        # TODO(synk): self.conv exists in the module but is never used in
        # forward(), so it is intentionally not implemented.
        packed = self.packed_single[k]
        out = _run(packed, _flatten(x_nchw))
        off = packed["col_offsets"][0]
        return out[:, off:off + packed["out_dims"][0]]

    def forward_both(self, x_nchw):
        # Fused policy+value on the same x (preferred A2C path): one weight
        # stream, one kernel launch.
        packed = self.packed_dual
        out = _run(packed, _flatten(x_nchw))
        return tuple(out[:, off:off + od]
                     for off, od in zip(packed["col_offsets"],
                                        packed["out_dims"]))


# ---------------------------------------------------------------------------
# Plain-JAX reference (f32 activations, same dequantized weights)
# ---------------------------------------------------------------------------
def _reference(packed_single_k, x_nchw):
    p = packed_single_k["arrays"]
    od = packed_single_k["out_dims"][0]
    x = x_nchw.reshape(x_nchw.shape[0], -1).astype(jnp.float32)
    w1 = p["w1q"].astype(jnp.float32) * p["s1"]
    h1 = jnp.maximum(x @ w1 + p["b1"], 0.0)
    w2 = p["w2q"].astype(jnp.float32) * p["s2"]
    h2 = jnp.maximum(h1 @ w2 + p["b2"], 0.0)
    o = h2 @ p["w3"] + p["b3"]
    return o[:, :od]


if __name__ == "__main__":
    root = jax.random.PRNGKey(0)
    k_params, k_x = jax.random.split(root)
    net = SnakeNet(k_params)

    # NCHW input, flattens to 1*24*17 = 408 features per sample.
    x = jax.random.normal(k_x, (2, OVERLAY_CNT, 24, 17), jnp.float32)

    # Single-head path (matches NET.forward(x, k)).
    out_policy = net.forward(x, 0)            # (2, 4)
    out_value = net.forward(x, 1)             # (2, 1)

    # Fused dual-head path.
    fused_policy, fused_value = net.forward_both(x)
    jax.block_until_ready((out_policy, out_value, fused_policy, fused_value))

    assert out_policy.shape == (2, ENVMAX[1])
    assert out_value.shape == (2, 1)
    assert fused_policy.shape == (2, ENVMAX[1])
    assert fused_value.shape == (2, 1)
    assert jnp.all(jnp.isfinite(out_policy)) and jnp.all(jnp.isfinite(out_value))

    # Fused and per-head kernels run identical quantized math -> tight agreement.
    assert jnp.allclose(out_policy, fused_policy, rtol=1e-4, atol=1e-4)
    assert jnp.allclose(out_value, fused_value, rtol=1e-4, atol=1e-4)

    # Vs plain-JAX f32 reference on the same dequantized weights: differences
    # come only from the intentional bf16 activations inside the kernel.
    ref_policy = _reference(net.packed_single[0], x)
    ref_value = _reference(net.packed_single[1], x)
    assert jnp.allclose(out_policy, ref_policy, rtol=5e-2, atol=5e-2)
    assert jnp.allclose(out_value, ref_value, rtol=5e-2, atol=5e-2)

    # Exercise the batch-amortized path (multi-tile grid, resident weights,
    # non-multiple-of-tile batch).
    xb = jax.random.normal(jax.random.PRNGKey(1), (130, OVERLAY_CNT, 24, 17),
                           jnp.float32)
    pb, vb = net.forward_both(xb)
    jax.block_until_ready((pb, vb))
    assert pb.shape == (130, ENVMAX[1]) and vb.shape == (130, 1)
    assert jnp.allclose(pb, _reference(net.packed_single[0], xb),
                        rtol=5e-2, atol=5e-2)
    assert jnp.allclose(vb, _reference(net.packed_single[1], xb),
                        rtol=5e-2, atol=5e-2)

    print("KERNEL_OK")
</pallas_src>

<mosaic_0001>
module attributes {stable_mosaic.version = 11 : i64} {
  func.func @_mlp_kernel(%arg0: i32, %arg1: memref<8x408xbf16, #tpu.memory_space<vmem>>, %arg2: memref<408x4096xi8, #tpu.memory_space<vmem>>, %arg3: memref<1x4096xf32, #tpu.memory_space<vmem>>, %arg4: memref<1x4096xf32, #tpu.memory_space<vmem>>, %arg5: memref<4096x128xi8, #tpu.memory_space<vmem>>, %arg6: memref<1x128xf32, #tpu.memory_space<vmem>>, %arg7: memref<1x128xf32, #tpu.memory_space<vmem>>, %arg8: memref<128x128xf32, #tpu.memory_space<vmem>>, %arg9: memref<1x128xf32, #tpu.memory_space<vmem>>, %arg10: memref<8x128xf32, #tpu.memory_space<vmem>>, %arg11: memref<408x4096xbf16, #tpu.memory_space<vmem>>, %arg12: memref<4096x128xbf16, #tpu.memory_space<vmem>>) attributes {dimension_semantics = [#tpu.dimension_semantics<arbitrary>], iteration_bounds = array<i64: 1>, scalar_prefetch = 0 : i64, scratch_operands = 2 : i64, tpu.core_type = #tpu.core_type<tc>, window_params = [{transform_indices = @transform_0, window_bounds = array<i64: 8, 408>}, {pipeline_mode = #tpu.pipeline_mode<synchronous>, transform_indices = @transform_1, window_bounds = array<i64: 408, 4096>}, {pipeline_mode = #tpu.pipeline_mode<synchronous>, transform_indices = @transform_2, window_bounds = array<i64: 1, 4096>}, {pipeline_mode = #tpu.pipeline_mode<synchronous>, transform_indices = @transform_3, window_bounds = array<i64: 1, 4096>}, {pipeline_mode = #tpu.pipeline_mode<synchronous>, transform_indices = @transform_4, window_bounds = array<i64: 4096, 128>}, {pipeline_mode = #tpu.pipeline_mode<synchronous>, transform_indices = @transform_5, window_bounds = array<i64: 1, 128>}, {pipeline_mode = #tpu.pipeline_mode<synchronous>, transform_indices = @transform_6, window_bounds = array<i64: 1, 128>}, {pipeline_mode = #tpu.pipeline_mode<synchronous>, transform_indices = @transform_7, window_bounds = array<i64: 128, 128>}, {pipeline_mode = #tpu.pipeline_mode<synchronous>, transform_indices = @transform_8, window_bounds = array<i64: 1, 128>}, {transform_indices = @transform_9, window_bounds = array<i64: 8, 128>}]} {
    %c0_i32 = arith.constant 0 : i32
    %0 = arith.cmpi eq, %arg0, %c0_i32 : i32
    %1 = arith.extui %0 : i1 to i32
    %c0_i32_0 = arith.constant 0 : i32
    %2 = arith.cmpi ne, %1, %c0_i32_0 : i32
    scf.if %2 {
      %c0_24 = arith.constant 0 : index
      %c0_25 = arith.constant 0 : index
      %31 = vector.load %arg2[%c0_24, %c0_25] : memref<408x4096xi8, #tpu.memory_space<vmem>>, vector<408x4096xi8>
      %32 = arith.sitofp %31 : vector<408x4096xi8> to vector<408x4096xbf16>
      %c0_26 = arith.constant 0 : index
      %c0_27 = arith.constant 0 : index
      %33 = vector.load %arg11[%c0_26, %c0_27] : memref<408x4096xbf16, #tpu.memory_space<vmem>>, vector<408x4096xbf16>
      tpu.vector_store %arg11[%c0_26, %c0_27], %32 {strides = array<i32>} : memref<408x4096xbf16, #tpu.memory_space<vmem>>, vector<408x4096xbf16>,
      %c0_28 = arith.constant 0 : index
      %c0_29 = arith.constant 0 : index
      %34 = vector.load %arg5[%c0_28, %c0_29] : memref<4096x128xi8, #tpu.memory_space<vmem>>, vector<4096x128xi8>
      %35 = arith.sitofp %34 : vector<4096x128xi8> to vector<4096x128xbf16>
      %c0_30 = arith.constant 0 : index
      %c0_31 = arith.constant 0 : index
      %36 = vector.load %arg12[%c0_30, %c0_31] : memref<4096x128xbf16, #tpu.memory_space<vmem>>, vector<4096x128xbf16>
      tpu.vector_store %arg12[%c0_30, %c0_31], %35 {strides = array<i32>} : memref<4096x128xbf16, #tpu.memory_space<vmem>>, vector<4096x128xbf16>,
    } else {
    }
    %c0 = arith.constant 0 : index
    %c0_1 = arith.constant 0 : index
    %3 = vector.load %arg1[%c0, %c0_1] : memref<8x408xbf16, #tpu.memory_space<vmem>>, vector<8x408xbf16>
    %c0_2 = arith.constant 0 : index
    %c0_3 = arith.constant 0 : index
    %4 = vector.load %arg11[%c0_2, %c0_3] : memref<408x4096xbf16, #tpu.memory_space<vmem>>, vector<408x4096xbf16>
    %cst = arith.constant dense<0.000000e+00> : vector<8x4096xf32>
    %5 = tpu.matmul %3, %4, %cst {dimension_numbers = #tpu.dot_dimension_numbers<[1], [0], [0], [1], [0, 0, 1, 1], [], []>} : vector<8x408xbf16>, vector<408x4096xbf16>, vector<8x4096xf32> -> vector<8x4096xf32>
    %c0_4 = arith.constant 0 : index
    %c0_5 = arith.constant 0 : index
    %6 = vector.load %arg3[%c0_4, %c0_5] : memref<1x4096xf32, #tpu.memory_space<vmem>>, vector<1x4096xf32>
    %7 = vector.broadcast %6 : vector<1x4096xf32> to vector<8x4096xf32>
    %8 = arith.mulf %5, %7 : vector<8x4096xf32>
    %c0_6 = arith.constant 0 : index
    %c0_7 = arith.constant 0 : index
    %9 = vector.load %arg4[%c0_6, %c0_7] : memref<1x4096xf32, #tpu.memory_space<vmem>>, vector<1x4096xf32>
    %10 = vector.broadcast %9 : vector<1x4096xf32> to vector<8x4096xf32>
    %11 = arith.addf %8, %10 : vector<8x4096xf32>
    %cst_8 = arith.constant 0.000000e+00 : f32
    %12 = vector.broadcast %cst_8 : f32 to vector<8x4096xf32>
    %13 = arith.maximumf %11, %12 : vector<8x4096xf32>
    %14 = arith.truncf %13 : vector<8x4096xf32> to vector<8x4096xbf16>
    %c0_9 = arith.constant 0 : index
    %c0_10 = arith.constant 0 : index
    %15 = vector.load %arg6[%c0_9, %c0_10] : memref<1x128xf32, #tpu.memory_space<vmem>>, vector<1x128xf32>
    %c0_11 = arith.constant 0 : index
    %c0_12 = arith.constant 0 : index
    %16 = vector.load %arg7[%c0_11, %c0_12] : memref<1x128xf32, #tpu.memory_space<vmem>>, vector<1x128xf32>
    %c0_13 = arith.constant 0 : index
    %c0_14 = arith.constant 0 : index
    %17 = vector.load %arg12[%c0_13, %c0_14] : memref<4096x128xbf16, #tpu.memory_space<vmem>>, vector<4096x128xbf16>
    %cst_15 = arith.constant dense<0.000000e+00> : vector<8x128xf32>
    %18 = tpu.matmul %14, %17, %cst_15 {dimension_numbers = #tpu.dot_dimension_numbers<[1], [0], [0], [1], [0, 0, 1, 1], [], []>} : vector<8x4096xbf16>, vector<4096x128xbf16>, vector<8x128xf32> -> vector<8x128xf32>
    %19 = vector.broadcast %15 : vector<1x128xf32> to vector<8x128xf32>
    %20 = arith.mulf %18, %19 : vector<8x128xf32>
    %21 = vector.broadcast %16 : vector<1x128xf32> to vector<8x128xf32>
    %22 = arith.addf %20, %21 : vector<8x128xf32>
    %cst_16 = arith.constant 0.000000e+00 : f32
    %23 = vector.broadcast %cst_16 : f32 to vector<8x128xf32>
    %24 = arith.maximumf %22, %23 : vector<8x128xf32>
    %c0_17 = arith.constant 0 : index
    %c0_18 = arith.constant 0 : index
    %25 = vector.load %arg8[%c0_17, %c0_18] : memref<128x128xf32, #tpu.memory_space<vmem>>, vector<128x128xf32>
    %cst_19 = arith.constant dense<0.000000e+00> : vector<8x128xf32>
    %26 = tpu.matmul %24, %25, %cst_19 {dimension_numbers = #tpu.dot_dimension_numbers<[1], [0], [0], [1], [0, 0, 1, 1], [], []>} : vector<8x128xf32>, vector<128x128xf32>, vector<8x128xf32> -> vector<8x128xf32>
    %c0_20 = arith.constant 0 : index
    %c0_21 = arith.constant 0 : index
    %27 = vector.load %arg9[%c0_20, %c0_21] : memref<1x128xf32, #tpu.memory_space<vmem>>, vector<1x128xf32>
    %28 = vector.broadcast %27 : vector<1x128xf32> to vector<8x128xf32>
    %29 = arith.addf %26, %28 : vector<8x128xf32>
    %c0_22 = arith.constant 0 : index
    %c0_23 = arith.constant 0 : index
    %30 = vector.load %arg10[%c0_22, %c0_23] : memref<8x128xf32, #tpu.memory_space<vmem>>, vector<8x128xf32>
    tpu.vector_store %arg10[%c0_22, %c0_23], %29 {strides = array<i32>} : memref<8x128xf32, #tpu.memory_space<vmem>>, vector<8x128xf32>,
    return
  }
  func.func @transform_0(%arg0: i32) -> (i32, i32) {
    %c0_i32 = arith.constant 0 : i32
    %c0_i32_0 = arith.constant 0 : i32
    return %arg0, %c0_i32 : i32, i32
  }
  func.func @transform_1(%arg0: i32) -> (i32, i32) {
    %c0_i32 = arith.constant 0 : i32
    %c0_i32_0 = arith.constant 0 : i32
    %c0_i32_1 = arith.constant 0 : i32
    return %c0_i32, %c0_i32_0 : i32, i32
  }
  func.func @transform_2(%arg0: i32) -> (i32, i32) {
    %c0_i32 = arith.constant 0 : i32
    %c0_i32_0 = arith.constant 0 : i32
    %c0_i32_1 = arith.constant 0 : i32
    return %c0_i32, %c0_i32_0 : i32, i32
  }
  func.func @transform_3(%arg0: i32) -> (i32, i32) {
    %c0_i32 = arith.constant 0 : i32
    %c0_i32_0 = arith.constant 0 : i32
    %c0_i32_1 = arith.constant 0 : i32
    return %c0_i32, %c0_i32_0 : i32, i32
  }
  func.func @transform_4(%arg0: i32) -> (i32, i32) {
    %c0_i32 = arith.constant 0 : i32
    %c0_i32_0 = arith.constant 0 : i32
    %c0_i32_1 = arith.constant 0 : i32
    return %c0_i32, %c0_i32_0 : i32, i32
  }
  func.func @transform_5(%arg0: i32) -> (i32, i32) {
    %c0_i32 = arith.constant 0 : i32
    %c0_i32_0 = arith.constant 0 : i32
    %c0_i32_1 = arith.constant 0 : i32
    return %c0_i32, %c0_i32_0 : i32, i32
  }
  func.func @transform_6(%arg0: i32) -> (i32, i32) {
    %c0_i32 = arith.constant 0 : i32
    %c0_i32_0 = arith.constant 0 : i32
    %c0_i32_1 = arith.constant 0 : i32
    return %c0_i32, %c0_i32_0 : i32, i32
  }
  func.func @transform_7(%arg0: i32) -> (i32, i32) {
    %c0_i32 = arith.constant 0 : i32
    %c0_i32_0 = arith.constant 0 : i32
    %c0_i32_1 = arith.constant 0 : i32
    return %c0_i32, %c0_i32_0 : i32, i32
  }
  func.func @transform_8(%arg0: i32) -> (i32, i32) {
    %c0_i32 = arith.constant 0 : i32
    %c0_i32_0 = arith.constant 0 : i32
    %c0_i32_1 = arith.constant 0 : i32
    return %c0_i32, %c0_i32_0 : i32, i32
  }
  func.func @transform_9(%arg0: i32) -> (i32, i32) {
    %c0_i32 = arith.constant 0 : i32
    %c0_i32_0 = arith.constant 0 : i32
    return %arg0, %c0_i32 : i32, i32
  }
}

</mosaic_0001>

<bundles_post_ra>
// kernel: _mlp_forward.1
= control target key start
LH: loop header
LB: loop body
LE: loop exit
PB: predicated region body
PF: predicated region fallthrough
CT: control target
= control target key end

     0   :  { %14 = vsyncpa [#allocation5], 0  ;;  %s19891_s0 = inlined_call_operand.vmem [shape: bf16[8,408], index: 0, kind: input, shape index: {}]   ;;  %s19892_s1 = inlined_call_operand.hbm [shape: s8[408,4096], index: 1, kind: input, shape index: {}]   ;;  %s19893_s2 = inlined_call_operand.hbm [shape: f32[1,4096], index: 2, kind: input, shape index: {}]   ;;  %s19894_s3 = inlined_call_operand.hbm [shape: f32[1,4096], index: 3, kind: input, shape index: {}]   ;;  %s19895_s4 = inlined_call_operand.hbm [shape: s8[4096,128], index: 4, kind: input, shape index: {}]   ;;  %s19896_s5 = inlined_call_operand.hbm [shape: f32[1,128], index: 5, kind: input, shape index: {}]   ;;  %s19897_s6 = inlined_call_operand.hbm [shape: f32[1,128], index: 6, kind: input, shape index: {}]   ;;  %s19898_s7 = inlined_call_operand.hbm [shape: f32[128,128], index: 7, kind: input, shape index: {}]   ;;  %s19899_s8 = inlined_call_operand.hbm [shape: f32[1,128], index: 8, kind: input, shape index: {}]   ;;  %s19900_s9 = inlined_call_operand.vmem [shape: f32[8,128], index: 9, kind: output, shape index: {}]  }
   0x1   :  { %15 = vsyncpa [#allocation7], 0 }
   0x2   :  { %16 = vsyncpa [#allocation10], 0 }
   0x3   :  { %17 = vsyncpa [#allocation13], 0 }
   0x4   :  { %18 = vsyncpa [#allocation16], 0  ;;  %s16990_s30 = smov [#allocation6]   ;;  %s16991_s11 = smov [#allocation9]  }
   0x5   :  { %s39_s10 = sshll.u32 %s16990_s30, 4  ;;  %s58_s12 = sshll.u32 %s16991_s11, 4  ;;  %s40_s10 = int_to_ptr.vmem [resolvable:$true] %s39_s10  ;;  %s59_s12 = int_to_ptr.vmem [resolvable:$true] %s58_s12 }
   0x6   :  { %s16828_s13 = scalar_lea.vmem %s40_s10, 512  ;;  %p16833_p1 = scmp.lt.s32.totalorder %s40_s10, %s40_s10 }
   0x7   :  { %p16829_p0 = scmp.ne.s32.totalorder %s40_s10, %s16828_s13  ;;  %p16834_p2 = scmp.lt.s32.totalorder %s16828_s13, %s16828_s13 }
   0x9   :  { %p16835_p3 = por %p16834_p2, %p16833_p1 }
   0xb   :  { %p16836_p4 = pnand %p16835_p3, %p16829_p0 }
   0xd   :  { %16839 = shalt.err (!%p16836_p4)
}
   0xe   :  { %42 = dma.hbm_to_vmem [thread:$0]  %s19893_s2, 512, %s40_s10, [#allocation7]  }
   0xf   :  { %s16848_s16 = scalar_lea.vmem %s59_s12, 16384  ;;  %p16853_p6 = scmp.lt.s32.totalorder %s59_s12, %s59_s12 }
  0x10   :  { %p16849_p5 = scmp.ne.s32.totalorder %s59_s12, %s16848_s16  ;;  %p16854_p7 = scmp.lt.s32.totalorder %s16848_s16, %s16848_s16 }
  0x12   :  { %p16855_p8 = por %p16854_p7, %p16853_p6 }
  0x14   :  { %p16856_p9 = pnand %p16855_p8, %p16849_p5 }
  0x16   :  { %16859 = shalt.err (!%p16856_p9)
}
  0x17   :  { %s16992_s17 = smov 128   ;;  %s16993_s18 = smov 8  }
  0x18   :  { %64 = dma.hbm_to_vmem [thread:$0]  %s19895_s4, 16384, %s59_s12, [#allocation10], %s16992_s17, %s16992_s17, %s16993_s18  }
  0x19   :  { %s16994_s21 = smov [#allocation12]   ;;  %s16995_s23 = smov [#allocation4]  }
  0x1a   :  { %s81_s22 = sshll.u32 %s16994_s21, 4  ;;  %s26_s2 = sshll.u32 %s16995_s23, 4  ;;  %s82_s22 = int_to_ptr.vmem [resolvable:$true] %s81_s22  ;;  %s27_s2 = int_to_ptr.vmem [resolvable:$true] %s26_s2 }
  0x1b   :  { %s16868_s24 = scalar_lea.vmem %s82_s22, 16  ;;  %s16872_s25 = scalar_lea.vmem %s82_s22, 32 }
  0x1c   :  { %p16869_p10 = scmp.ne.s32.totalorder %s82_s22, %s16868_s24  ;;  %p16873_p11 = scmp.lt.s32.totalorder %s82_s22, %s82_s22 }
  0x1d   :  { %p16874_p12 = scmp.lt.s32.totalorder %s16872_s25, %s16868_s24 }
  0x1f   :  { %p16875_p13 = por %p16874_p12, %p16873_p11 }
  0x21   :  { %p16876_p0 = pnand %p16875_p13, %p16869_p10 }
  0x23   :  { %16879 = shalt.err (!%p16876_p0)
}
  0x24   :  { %84 = dma.hbm_to_vmem [thread:$0]  %s19897_s6, 16, %s82_s22, [#allocation13]  }
  0x25   :  { %s16888_s28 = scalar_lea.vmem %s27_s2, 52224  ;;  %p16893_p2 = scmp.lt.s32.totalorder %s27_s2, %s27_s2 }
  0x26   :  { %p16889_p1 = scmp.ne.s32.totalorder %s27_s2, %s16888_s28  ;;  %p16894_p3 = scmp.lt.s32.totalorder %s16888_s28, %s16888_s28 }
  0x28   :  { %p16895_p4 = por %p16894_p3, %p16893_p2 }
  0x2a   :  { %p16896_p5 = pnand %p16895_p4, %p16889_p1 }
  0x2c   :  { %16899 = shalt.err (!%p16896_p5)
}
  0x2d   :  { %s16996_s4 = smov 1024   ;;  %s16997_s29 = smov 64  }
  0x2e   :  { %32 = dma.hbm_to_vmem [thread:$0]  %s19892_s1, 52224, %s27_s2, [#allocation5], %s16996_s4, %s16996_s4, %s16997_s29  }
  0x2f   :  { %s16998_s11 = smov [#allocation8]   ;;  %s16999_s13 = smov [#allocation11]  }
  0x30   :  { %s49_s12 = sshll.u32 %s16998_s11, 4  ;;  %s71_s14 = sshll.u32 %s16999_s13, 4  ;;  %s50_s12 = int_to_ptr.vmem [resolvable:$true] %s49_s12  ;;  %s72_s14 = int_to_ptr.vmem [resolvable:$true] %s71_s14 }
  0x31   :  { %s16908_s6 = scalar_lea.vmem %s50_s12, 512  ;;  %p16913_p7 = scmp.lt.s32.totalorder %s50_s12, %s50_s12 }
  0x32   :  { %p16909_p6 = scmp.ne.s32.totalorder %s50_s12, %s16908_s6  ;;  %p16914_p8 = scmp.lt.s32.totalorder %s16908_s6, %s16908_s6 }
  0x34   :  { %p16915_p9 = por %p16914_p8, %p16913_p7 }
  0x36   :  { %p16916_p10 = pnand %p16915_p9, %p16909_p6 }
  0x38   :  { %16919 = shalt.err (!%p16916_p10)
}
  0x39   :  { %52 = dma.hbm_to_vmem [thread:$0]  %s19894_s3, 512, %s50_s12, [#allocation7]  }
  0x3a   :  { %s16928_s19 = scalar_lea.vmem %s72_s14, 16  ;;  %s16932_s1 = scalar_lea.vmem %s72_s14, 32 }
  0x3b   :  { %p16929_p11 = scmp.ne.s32.totalorder %s72_s14, %s16928_s19  ;;  %p16933_p12 = scmp.lt.s32.totalorder %s72_s14, %s72_s14 }
  0x3c   :  { %p16934_p13 = scmp.lt.s32.totalorder %s16932_s1, %s16928_s19 }
  0x3e   :  { %p16935_p0 = por %p16934_p13, %p16933_p12 }
  0x40   :  { %p16936_p1 = pnand %p16935_p0, %p16929_p11 }
  0x42   :  { %16939 = shalt.err (!%p16936_p1)
}
  0x43   :  { %74 = dma.hbm_to_vmem [thread:$0]  %s19896_s5, 16, %s72_s14, [#allocation10]  }
  0x44   :  { %s17000_s22 = smov [#allocation14]   ;;  %s17001_s2 = smov [#allocation15]  }
  0x45   :  { %s90_s23 = sshll.u32 %s17000_s22, 4  ;;  %s103_s24 = sshll.u32 %s17001_s2, 4  ;;  %s91_s23 = int_to_ptr.vmem [resolvable:$true] %s90_s23  ;;  %s104_s24 = int_to_ptr.vmem [resolvable:$true] %s103_s24 }
  0x46   :  { %s16948_s25 = scalar_lea.vmem %s91_s23, 2048  ;;  %p16953_p3 = scmp.lt.s32.totalorder %s91_s23, %s91_s23 }
  0x47   :  { %p16949_p2 = scmp.ne.s32.totalorder %s91_s23, %s16948_s25  ;;  %p16954_p4 = scmp.lt.s32.totalorder %s16948_s25, %s16948_s25 }
  0x49   :  { %p16955_p5 = por %p16954_p4, %p16953_p3 }
  0x4b   :  { %p16956_p6 = pnand %p16955_p5, %p16949_p2 }
  0x4d   :  { %16959 = shalt.err (!%p16956_p6)
}
  0x4e   :  { %96 = dma.hbm_to_vmem [thread:$0]  %s19898_s7, 2048, %s91_s23, [#allocation13], %s16992_s17, %s16992_s17, %s16993_s18  }
  0x4f   :  { %s16968_s5 = scalar_lea.vmem %s104_s24, 16  ;;  %s16972_s27 = scalar_lea.vmem %s104_s24, 32 }
  0x50   :  { %p16969_p7 = scmp.ne.s32.totalorder %s104_s24, %s16968_s5  ;;  %p16973_p8 = scmp.lt.s32.totalorder %s104_s24, %s104_s24 }
  0x51   :  { %p16974_p9 = scmp.lt.s32.totalorder %s16972_s27, %s16968_s5 }
  0x53   :  { %p16975_p10 = por %p16974_p9, %p16973_p8 }
  0x55   :  { %p16976_p11 = pnand %p16975_p10, %p16969_p7 }
  0x57   :  { %16979 = shalt.err (!%p16976_p11)
}
  0x58   :  { %106 = dma.hbm_to_vmem [thread:$0]  %s19899_s8, 16, %s104_s24, [#allocation16]  }
  0x59   :  { %16980 = dma.done.wait [#allocation5], 52224  }
  0x5a   :  { %16981 = vsyncadd [#allocation5], 4294915072 }
  0x5b   :  { %16982 = dma.done.wait [#allocation7], 1024  }
  0x5c   :  { %16983 = vsyncadd [#allocation7], 4294966272 }
  0x5d   :  { %16984 = dma.done.wait [#allocation10], 16400  }
  0x5e   :  { %16985 = vsyncadd [#allocation10], 4294950896 }
  0x5f   :  { %16986 = dma.done.wait [#allocation13], 2064  }
  0x60   :  { %16987 = vsyncadd [#allocation13], 4294965232 }
  0x61   :  { %16988 = dma.done.wait [#allocation16], 16  }
  0x62   :  { %16989 = vsyncadd [#allocation16], 4294967280  ;;  %v17084_v0 = vld [vmem:[#allocation4 + $0x380] sm:$0xff]  ;;  %vm9775_vm0 = vcmask 195584   ;;  %vm9779_vm1 = vcmask 1043456   ;;  %vm17003_vm2 = vmmov 0  }
  0x63   :  { %v17086_v1 = vld [vmem:[#allocation4 + $0x3c0] sm:$0xff]  ;;  %v768_v3 = vunpack.c.l.s8.bf16 %v17084_v0 }
  0x64   :  { %v17088_v2 = vld [vmem:[#allocation4 + $0xb80] sm:$0xff]  ;;  %v784_v4 = vunpack.c.l.s8.bf16 %v17086_v1 }
  0x65   :  { %v17092_v5 = vld [vmem:[#allocation4 + $0xbc0] sm:$0xff]  ;;  %v1280_v8 = vunpack.c.l.s8.bf16 %v17088_v2 }
  0x66   :  { %v17094_v6 = vld [vmem:[#allocation4 + $0x300] sm:$0xff]  ;;  %v1296_v9 = vunpack.c.l.s8.bf16 %v17092_v5  ;;  %v15201_v13 = vcombine.high %v768_v3, %v784_v4  ;;  %v15200_v14 = vcombine.low %v768_v3, %v784_v4 }
  0x67   :  { %v17096_v7 = vld [vmem:[#allocation4 + $0x340] sm:$0xff]  ;;  %v736_v15 = vunpack.c.l.s8.bf16 %v17094_v6 }
  0x68   :  { %v17100_v10 = vld [vmem:[#allocation4 + $0xb00] sm:$0xff]  ;;  %v15713_v19 = vcombine.high %v1280_v8, %v1296_v9  ;;  %v15712_v20 = vcombine.low %v1280_v8, %v1296_v9  ;;  %v752_v21 = vunpack.c.l.s8.bf16 %v17096_v7  ;;  %9876 = vmatprep.subr.bf16.mxu0 %v15201_v13 }
  0x69   :  { %v17102_v11 = vld [vmem:[#allocation4 + $0xb40] sm:$0xff]  ;;  %v1248_v22 = vunpack.c.l.s8.bf16 %v17100_v10  ;;  %9877 = vmatpush1.bf16.msra.mxu0 %v15200_v14 }
  0x6a   :  { %v17104_v12 = vld [vmem:[#allocation4 + $0x280] sm:$0xff]  ;;  %v1264_v23 = vunpack.c.l.s8.bf16 %v17102_v11  ;;  %9917 = vmatprep.subr.bf16.mxu1 %v15713_v19  ;;  %v15169_v28 = vcombine.high %v736_v15, %v752_v21  ;;  %v15168_v29 = vcombine.low %v736_v15, %v752_v21  ;;  %v17167_v19 = vld [vmem:[%s19891_s0 + $0x8] sm:$0xff] }
  0x6b   :  { %v17107_v16 = vld [vmem:[#allocation4 + $0x2c0] sm:$0xff]  ;;  %v704_v24 = vunpack.c.l.s8.bf16 %v17104_v12  ;;  %9918 = vmatpush1.bf16.msra.mxu1 %v15712_v20 }
  0x6c   :  { %v17109_v17 = vld [vmem:[#allocation4 + $0xa80] sm:$0xff]  ;;  %v720_v25 = vunpack.c.l.s8.bf16 %v17107_v16  ;;  %v15681_v34 = vcombine.high %v1248_v22, %v1264_v23  ;;  %v15680_v35 = vcombine.low %v1248_v22, %v1264_v23  ;;  %9878 = vmatprep.subr.bf16.mxu0 %v15169_v28 }
  0x6d   :  { %v17111_v18 = vld [vmem:[#allocation4 + $0xac0] sm:$0xff]  ;;  %v1216_v30 = vunpack.c.l.s8.bf16 %v17109_v17  ;;  %9879 = vmatpush1.bf16.msra.mxu0 %v15168_v29 }
  0x6e   :  { %v17118_v26 = vld [vmem:[#allocation4 + $0x200] sm:$0xff]  ;;  %v1232_v31 = vunpack.c.l.s8.bf16 %v17111_v18  ;;  %v15137_v36 = vcombine.high %v704_v24, %v720_v25  ;;  %9919 = vmatprep.subr.bf16.mxu1 %v15681_v34  ;;  %v15136_v46 = vcombine.low %v704_v24, %v720_v25 }
  0x6f   :  { %v17120_v27 = vld [vmem:[#allocation4 + $0x240] sm:$0xff]  ;;  %v672_v38 = vunpack.c.l.s8.bf16 %v17118_v26  ;;  %9920 = vmatpush1.bf16.msra.mxu1 %v15680_v35  ;;  %v17183_v35 = vcombine.high %v17167_v19, %v17167_v19 }
  0x70   :  { %v17124_v32 = vld [vmem:[#allocation4 + $0xa00] sm:$0xff]  ;;  %v15649_v37 = vcombine.high %v1216_v30, %v1232_v31  ;;  %v688_v39 = vunpack.c.l.s8.bf16 %v17120_v27  ;;  %9880 = vmatprep.subr.bf16.mxu0 %v15137_v36  ;;  %v15648_v47 = vcombine.low %v1216_v30, %v1232_v31 }
  0x71   :  { %v17126_v33 = vld [vmem:[#allocation4 + $0xa40] sm:$0xff]  ;;  %v1184_v42 = vunpack.c.l.s8.bf16 %v17124_v32  ;;  %9881 = vmatpush1.bf16.msra.mxu0 %v15136_v46  ;;  %19965 = vst [vmem:[#allocation22_spill] sm:$0xff] %v17183_v35  ;;  %15809 = vmatprep.mubr.msk.bf16.mxu1 %vm9775_vm0, %v17183_v35 }
  0x72   :  { %v17130_v40 = vld [vmem:[#allocation4 + $0x180] sm:$0xff]  ;;  %v1200_v43 = vunpack.c.l.s8.bf16 %v17126_v33  ;;  %v15105_v48 = vcombine.high %v672_v38, %v688_v39  ;;  %9921 = vmatprep.subr.bf16.mxu1 %v15649_v37  ;;  %v15104_v58 = vcombine.low %v672_v38, %v688_v39 }
  0x73   :  { %v17132_v41 = vld [vmem:[#allocation4 + $0x1c0] sm:$0xff]  ;;  %v640_v49 = vunpack.c.l.s8.bf16 %v17130_v40  ;;  %9922 = vmatpush1.bf16.msra.mxu1 %v15648_v47 }
  0x74   :  { %v17136_v44 = vld [vmem:[#allocation4 + $0x980] sm:$0xff]  ;;  %v656_v50 = vunpack.c.l.s8.bf16 %v17132_v41  ;;  %v15617_v51 = vcombine.high %v1184_v42, %v1200_v43  ;;  %9882 = vmatprep.subr.bf16.mxu0 %v15105_v48  ;;  %v15616_v59 = vcombine.low %v1184_v42, %v1200_v43 }
  0x75   :  { %v17138_v45 = vld [vmem:[#allocation4 + $0x9c0] sm:$0xff]  ;;  %v1152_v52 = vunpack.c.l.s8.bf16 %v17136_v44  ;;  %9883 = vmatpush1.bf16.msra.mxu0 %v15104_v58 }
  0x76   :  { %v1168_v53 = vunpack.c.l.s8.bf16 %v17138_v45  ;;  %v17144_v54 = vld [vmem:[#allocation4 + $0x100] sm:$0xff]  ;;  %v15073_v60 = vcombine.high %v640_v49, %v656_v50  ;;  %9923 = vmatprep.subr.bf16.mxu1 %v15617_v51  ;;  %v15072_v15 = vcombine.low %v640_v49, %v656_v50 }
  0x77   :  { %v17146_v55 = vld [vmem:[#allocation4 + $0x140] sm:$0xff]  ;;  %v608_v61 = vunpack.c.l.s8.bf16 %v17144_v54  ;;  %9924 = vmatpush1.bf16.msra.mxu1 %v15616_v59 }
  0x78   :  { %v17148_v56 = vld [vmem:[#allocation4 + $0x900] sm:$0xff]  ;;  %v624_v62 = vunpack.c.l.s8.bf16 %v17146_v55  ;;  %v15585_v63 = vcombine.high %v1152_v52, %v1168_v53  ;;  %9884 = vmatprep.subr.bf16.mxu0 %v15073_v60  ;;  %v15584_v20 = vcombine.low %v1152_v52, %v1168_v53 }
  0x79   :  { %v17150_v57 = vld [vmem:[#allocation4 + $0x940] sm:$0xff]  ;;  %v1120_v3 = vunpack.c.l.s8.bf16 %v17148_v56  ;;  %9885 = vmatpush1.bf16.msra.mxu0 %v15072_v15 }
  0x7a   :  { %v1136_v4 = vunpack.c.l.s8.bf16 %v17150_v57  ;;  %v17156_v8 = vld [vmem:[#allocation4 + $0x80] sm:$0xff]  ;;  %v15041_v21 = vcombine.high %v608_v61, %v624_v62  ;;  %9925 = vmatprep.subr.bf16.mxu1 %v15585_v63  ;;  %v15040_v36 = vcombine.low %v608_v61, %v624_v62 }
  0x7b   :  { %v17158_v9 = vld [vmem:[#allocation4 + $0xc0] sm:$0xff]  ;;  %v576_v22 = vunpack.c.l.s8.bf16 %v17156_v8  ;;  %9926 = vmatpush1.bf16.msra.mxu1 %v15584_v20 }
  0x7c   :  { %v17160_v13 = vld [vmem:[#allocation4 + $0x880] sm:$0xff]  ;;  %v592_v23 = vunpack.c.l.s8.bf16 %v17158_v9  ;;  %v15553_v24 = vcombine.high %v1120_v3, %v1136_v4  ;;  %9886 = vmatprep.subr.bf16.mxu0 %v15041_v21  ;;  %v15552_v37 = vcombine.low %v1120_v3, %v1136_v4 }
  0x7d   :  { %v17162_v14 = vld [vmem:[#allocation4 + $0x8c0] sm:$0xff]  ;;  %v1088_v25 = vunpack.c.l.s8.bf16 %v17160_v13  ;;  %9887 = vmatpush1.bf16.msra.mxu0 %v15040_v36 }
  0x7e   :  { %v1104_v28 = vunpack.c.l.s8.bf16 %v17162_v14  ;;  %v17173_v29 = vld [vmem:[#allocation4] sm:$0xff]  ;;  %v15009_v38 = vcombine.high %v576_v22, %v592_v23  ;;  %9927 = vmatprep.subr.bf16.mxu1 %v15553_v24  ;;  %v15008_v51 = vcombine.low %v576_v22, %v592_v23 }
  0x7f   :  { %v17175_v30 = vld [vmem:[#allocation4 + $0x40] sm:$0xff]  ;;  %v544_v39 = vunpack.c.l.s8.bf16 %v17173_v29  ;;  %9928 = vmatpush1.bf16.msra.mxu1 %v15552_v37 }
  0x80   :  { %v17177_v31 = vld [vmem:[#allocation4 + $0x800] sm:$0xff]  ;;  %v560_v42 = vunpack.c.l.s8.bf16 %v17175_v30  ;;  %v15521_v43 = vcombine.high %v1088_v25, %v1104_v28  ;;  %9888 = vmatprep.subr.bf16.mxu0 %v15009_v38  ;;  %v15520_v52 = vcombine.low %v1088_v25, %v1104_v28 }
  0x81   :  { %v17179_v34 = vld [vmem:[#allocation4 + $0x840] sm:$0xff]  ;;  %v1056_v46 = vunpack.c.l.s8.bf16 %v17177_v31  ;;  %9889 = vmatpush1.bf16.msra.mxu0 %v15008_v51 }
  0x82   :  { %v1072_v47 = vunpack.c.l.s8.bf16 %v17179_v34  ;;  %v17189_v48 = vld [vmem:[#allocation4 + $0x780] sm:$0xff]  ;;  %v14977_v53 = vcombine.high %v544_v39, %v560_v42  ;;  %9929 = vmatprep.subr.bf16.mxu1 %v15521_v43  ;;  %v14976_v15 = vcombine.low %v544_v39, %v560_v42 }
  0x83   :  { %v17191_v49 = vld [vmem:[#allocation4 + $0x7c0] sm:$0xff]  ;;  %v1024_v58 = vunpack.c.l.s8.bf16 %v17189_v48  ;;  %9930 = vmatpush1.bf16.msra.mxu1 %v15520_v52  ;;  %v769_v52 = vunpack.c.h.s8.bf16 %v17084_v0 }
  0x84   :  { %v17195_v50 = vld [vmem:[#allocation4 + $0xc80] sm:$0xff]  ;;  %v1040_v59 = vunpack.c.l.s8.bf16 %v17191_v49  ;;  %v15489_v60 = vcombine.high %v1056_v46, %v1072_v47  ;;  %9890 = vmatprep.subr.bf16.mxu0 %v14977_v53  ;;  %v15488_v21 = vcombine.low %v1056_v46, %v1072_v47  ;;  %v785_v53 = vunpack.c.h.s8.bf16 %v17086_v1 }
  0x85   :  { %19966 = vst [vmem:[#allocation23_spill] sm:$0xff] %v17195_v50  ;;  %v1344_v61 = vunpack.c.l.s8.bf16 %v17195_v50  ;;  %v17200_v62 = vld [vmem:[#allocation4 + $0x700] sm:$0xff]  ;;  %9891 = vmatpush1.bf16.msra.mxu0 %v14976_v15 }
  0x86   :  { %v17202_v63 = vld [vmem:[#allocation4 + $0x740] sm:$0xff]  ;;  %v15457_v22 = vcombine.high %v1024_v58, %v1040_v59  ;;  %v992_v23 = vunpack.c.l.s8.bf16 %v17200_v62  ;;  %9931 = vmatprep.subr.bf16.mxu1 %v15489_v60  ;;  %v15456_v43 = vcombine.low %v1024_v58, %v1040_v59 }
  0x87   :  { %v17204_v3 = vld [vmem:[#allocation4 + $0xc00] sm:$0xff]  ;;  %v1008_v24 = vunpack.c.l.s8.bf16 %v17202_v63  ;;  %v15777_v25 = vcombine.high %v1344_v61, %v1344_v61  ;;  %v15776_v28 = vcombine.low %v1344_v61, %v1344_v61  ;;  %9932 = vmatpush1.bf16.msra.mxu1 %v15488_v21 }
  0x88   :  { %19967 = vst [vmem:[#allocation24_spill] sm:$0xff] %v17204_v3  ;;  %v17206_v4 = vld [vmem:[#allocation4 + $0xc40] sm:$0xff]  ;;  %v1312_v36 = vunpack.c.l.s8.bf16 %v17204_v3  ;;  %9892 = vmatprep.subr.bf16.mxu0 %v15457_v22  ;;  %v15203_v22 = vcombine.high %v769_v52, %v785_v53 }
  0x89   :  { %19968 = vst [vmem:[#allocation25_spill] sm:$0xff] %v17206_v4  ;;  %v17211_v20 = vld [vmem:[%s19891_s0] sm:$0xff]  ;;  %v1328_v37 = vunpack.c.l.s8.bf16 %v17206_v4  ;;  %v15425_v46 = vcombine.high %v992_v23, %v1008_v24  ;;  %15808 = vmatprep.subr.msk.bf16.mxu1 %vm9779_vm1, %v15777_v25  ;;  %v9781_v60 = vsel %vm9779_vm1, %v15776_v28, 0  ;;  %9893 = vmatpush2.bf16.msra.mxu0 %v15456_v43  ;;  %v15424_v58 = vcombine.low %v992_v23, %v1008_v24 }
  0x8a   :  { %v17217_v38 = vld [vmem:[#allocation4 + $0x680] sm:$0xff]  ;;  %v17223_v42 = vcombine.high %v17211_v20, %v17211_v20  ;;  %v737_v25 = vunpack.c.h.s8.bf16 %v17094_v6  ;;  %v753_v28 = vunpack.c.h.s8.bf16 %v17096_v7  ;;  %v17246_v23 = vcombine.low %v17167_v19, %v17167_v19 }
  0x8b   :  { %v17219_v39 = vld [vmem:[#allocation4 + $0x6c0] sm:$0xff]  ;;  %v960_v47 = vunpack.c.l.s8.bf16 %v17217_v38  ;;  %v15745_v61 = vcombine.high %v1312_v36, %v1328_v37  ;;  %9946 = vmatpush2.bf16.msra.mxu1 %v9781_v60  ;;  %9894 = vmatprep.subr.bf16.mxu0 %v15425_v46  ;;  %v15744_v59 = vcombine.low %v1312_v36, %v1328_v37  ;;  %v15202_v36 = vcombine.low %v769_v52, %v785_v53 }
  0x8c   :  { %19969 = vst [vmem:[#allocation26_spill] sm:$0xff] %v17223_v42  ;;  %v976_v51 = vunpack.c.l.s8.bf16 %v17219_v39  ;;  %v17231_v4 = vld [vmem:[#allocation4 + $0x600] sm:$0xff]  ;;  %9908 = vmatprep.mubr.bf16.mxu0 %v17223_v42  ;;  %19970 = vst [vmem:[#allocation27_spill] sm:$0xff] %v17246_v23  ;;  %v15171_v7 = vcombine.high %v737_v25, %v753_v28  ;;  %v705_v46 = vunpack.c.h.s8.bf16 %v17104_v12  ;;  %v721_v60 = vunpack.c.h.s8.bf16 %v17107_v16 }
  0x8d   :  { %v17233_v15 = vld [vmem:[#allocation4 + $0x640] sm:$0xff]  ;;  %v928_v0 = vunpack.c.l.s8.bf16 %v17231_v4  ;;  %9947 = vmatprep.subr.bf16.mxu1 %v15745_v61  ;;  %9895 = vmatpush2.bf16.msra.mxu0 %v15424_v58  ;;  %v673_v16 = vunpack.c.h.s8.bf16 %v17118_v26 }
  0x8e   :  { %v15393_v21 = vcombine.high %v960_v47, %v976_v51  ;;  %v944_v1 = vunpack.c.l.s8.bf16 %v17233_v15  ;;  %v17240_v3 = vld [vmem:[#allocation4 + $0x580] sm:$0xff]  ;;  %v15392_v24 = vcombine.low %v960_v47, %v976_v51  ;;  %v15170_v47 = vcombine.low %v737_v25, %v753_v28 }
  0x8f   :  { %v17242_v50 = vld [vmem:[#allocation4 + $0x5c0] sm:$0xff]  ;;  %9948 = vmatpush2.bf16.msra.mxu1 %v15744_v59  ;;  %v896_v43 = vunpack.c.l.s8.bf16 %v17240_v3  ;;  %v15139_v12 = vcombine.high %v705_v46, %v721_v60  ;;  %v689_v59 = vunpack.c.h.s8.bf16 %v17120_v27  ;;  %v641_v27 = vunpack.c.h.s8.bf16 %v17130_v40 }
  0x90   :  { %9896 = vmatprep.subr.bf16.mxu0 %v15393_v21  ;;  %v15361_v37 = vcombine.high %v928_v0, %v944_v1  ;;  %v912_v6 = vunpack.c.l.s8.bf16 %v17242_v50  ;;  %9958 = vmatprep.subr.bf16.mxu1 %v15203_v22  ;;  %v17252_v61 = vld [vmem:[#allocation4 + $0x500] sm:$0xff]  ;;  %v15360_v19 = vcombine.low %v928_v0, %v944_v1  ;;  %v15138_v1 = vcombine.low %v705_v46, %v721_v60 }
  0x91   :  { %v17254_v58 = vld [vmem:[#allocation4 + $0x540] sm:$0xff]  ;;  %9897 = vmatpush2.bf16.msra.mxu0 %v15392_v24  ;;  %v864_v52 = vunpack.c.l.s8.bf16 %v17252_v61  ;;  %v15107_v26 = vcombine.high %v673_v16, %v689_v59  ;;  %v609_v40 = vunpack.c.h.s8.bf16 %v17144_v54 }
  0x92   :  { %9950 = vmatmul.mubr.bf16.vlgmr.msra.gmra.mxu1 %v17246_v23  ;;  %9898 = vmatprep.subr.bf16.mxu0 %v15361_v37  ;;  %v15329_v51 = vcombine.high %v896_v43, %v912_v6  ;;  %v880_v53 = vunpack.c.l.s8.bf16 %v17254_v58  ;;  %v17261_v21 = vld [vmem:[#allocation4 + $0x480] sm:$0xff]  ;;  %v15328_v0 = vcombine.low %v896_v43, %v912_v6  ;;  %v15106_v6 = vcombine.low %v673_v16, %v689_v59 }
  0x93   :  { %9959 = vmatpush1.bf16.msra.mxu1 %v15202_v36  ;;  %v17263_v22 = vld [vmem:[#allocation4 + $0x4c0] sm:$0xff]  ;;  %9990 = vmatprep.mubr.bf16.mxu1 %v17223_v42  ;;  %v832_v28 = vunpack.c.l.s8.bf16 %v17261_v21  ;;  %v657_v36 = vunpack.c.h.s8.bf16 %v17132_v41  ;;  %v625_v41 = vunpack.c.h.s8.bf16 %v17146_v55 }
  0x94   :  { %9960 = vmatprep.subr.bf16.mxu1 %v15171_v7  ;;  %v15297_v25 = vcombine.high %v864_v52, %v880_v53  ;;  %v848_v24 = vunpack.c.l.s8.bf16 %v17263_v22  ;;  %v17270_v37 = vld [vmem:[#allocation4 + $0x400] sm:$0xff]  ;;  %v15296_v43 = vcombine.low %v864_v52, %v880_v53  ;;  %v1297_v52 = vunpack.c.h.s8.bf16 %v17092_v5 }
  0x95   :  { %9899 = vmatpush2.bf16.msra.mxu0 %v15360_v19  ;;  %v17272_v7 = vld [vmem:[#allocation4 + $0x440] sm:$0xff]  ;;  %v800_v60 = vunpack.c.l.s8.bf16 %v17270_v37  ;;  %v15074_v53 = vcombine.low %v641_v27, %v657_v36  ;;  %v15043_v59 = vcombine.high %v609_v40, %v625_v41  ;;  %v15042_v55 = vcombine.low %v609_v40, %v625_v41 }
  0x96   :  { %9900 = vmatprep.subr.bf16.mxu0 %v15329_v51  ;;  %v15265_v46 = vcombine.high %v832_v28, %v848_v24  ;;  %v816_v19 = vunpack.c.l.s8.bf16 %v17272_v7  ;;  %v15264_v51 = vcombine.low %v832_v28, %v848_v24  ;;  %v1265_v5 = vunpack.c.h.s8.bf16 %v17102_v11 }
  0x97   :  { %9961 = vmatpush1.bf16.msra.mxu1 %v15170_v47  ;;  %v15075_v47 = vcombine.high %v641_v27, %v657_v36  ;;  %v545_v24 = vunpack.c.h.s8.bf16 %v17173_v29  ;;  %v1233_v11 = vunpack.c.h.s8.bf16 %v17111_v18  ;;  %v1025_v29 = vunpack.c.h.s8.bf16 %v17189_v48 }
  0x98   :  { %9962 = vmatprep.subr.bf16.mxu1 %v15139_v12  ;;  %v1281_v12 = vunpack.c.h.s8.bf16 %v17088_v2  ;;  %v15233_v16 = vcombine.high %v800_v60, %v816_v19  ;;  %v15232_v54 = vcombine.low %v800_v60, %v816_v19  ;;  %v1249_v2 = vunpack.c.h.s8.bf16 %v17100_v10 }
  0x99   :  { %9901 = vmatpush2.bf16.msra.mxu0 %v15328_v0  ;;  %v577_v0 = vunpack.c.h.s8.bf16 %v17156_v8  ;;  %v17288_v8 = vcombine.low %v17211_v20, %v17211_v20  ;;  %v1217_v10 = vunpack.c.h.s8.bf16 %v17109_v17  ;;  %v1185_v17 = vunpack.c.h.s8.bf16 %v17124_v32 }
  0x9a   :  { %9902 = vmatprep.subr.bf16.mxu0 %v15297_v25  ;;  %v15715_v25 = vcombine.high %v1281_v12, %v1297_v52  ;;  %v15683_v36 = vcombine.high %v1249_v2, %v1265_v5  ;;  %v15682_v20 = vcombine.low %v1249_v2, %v1265_v5  ;;  %v1201_v18 = vunpack.c.h.s8.bf16 %v17126_v33 }
  0x9b   :  { %9963 = vmatpush1.bf16.msra.mxu1 %v15138_v1  ;;  %v593_v1 = vunpack.c.h.s8.bf16 %v17158_v9  ;;  %19971 = vst [vmem:[#allocation28_spill] sm:$0xff] %v17288_v8  ;;  %v15714_v9 = vcombine.low %v1281_v12, %v1297_v52  ;;  %v993_v48 = vunpack.c.h.s8.bf16 %v17200_v62  ;;  %v15650_v19 = vcombine.low %v1217_v10, %v1233_v11 }
  0x9c   :  { %9964 = vmatprep.subr.bf16.mxu1 %v15107_v26  ;;  %v561_v26 = vunpack.c.h.s8.bf16 %v17175_v30  ;;  %v1041_v30 = vunpack.c.h.s8.bf16 %v17191_v49  ;;  %v1009_v49 = vunpack.c.h.s8.bf16 %v17202_v63  ;;  %v15619_v40 = vcombine.high %v1185_v17, %v1201_v18 }
  0x9d   :  { %9903 = vmatpush2.bf16.msra.mxu0 %v15296_v43  ;;  %v15011_v28 = vcombine.high %v577_v0, %v593_v1  ;;  %v15010_v27 = vcombine.low %v577_v0, %v593_v1  ;;  %v1153_v41 = vunpack.c.h.s8.bf16 %v17136_v44  ;;  %v961_v33 = vunpack.c.h.s8.bf16 %v17217_v38 }
  0x9e   :  { %9904 = vmatprep.subr.bf16.mxu0 %v15265_v46  ;;  %v14979_v43 = vcombine.high %v545_v24, %v561_v26  ;;  %v15651_v46 = vcombine.high %v1217_v10, %v1233_v11  ;;  %v15459_v60 = vcombine.high %v1025_v29, %v1041_v30  ;;  %v15427_v32 = vcombine.high %v993_v48, %v1009_v49  ;;  %v19973_v11 = vld [vmem:[#allocation24_spill] sm:$0xff] }
  0x9f   :  { %9965 = vmatpush1.bf16.msra.mxu1 %v15106_v6  ;;  %v14978_v6 = vcombine.low %v545_v24, %v561_v26  ;;  %v977_v12 = vunpack.c.h.s8.bf16 %v17219_v39  ;;  %v15618_v62 = vcombine.low %v1185_v17, %v1201_v18  ;;  %v15426_v63 = vcombine.low %v993_v48, %v1009_v49  ;;  %v19972_v26 = vld [vmem:[#allocation23_spill] sm:$0xff] }
  0xa0   :  { %9966 = vmatprep.subr.bf16.mxu1 %v15075_v47  ;;  %v15458_v47 = vcombine.low %v1025_v29, %v1041_v30  ;;  %v1089_v1 = vunpack.c.h.s8.bf16 %v17160_v13  ;;  %v1057_v2 = vunpack.c.h.s8.bf16 %v17177_v31  ;;  %v1073_v5 = vunpack.c.h.s8.bf16 %v17179_v34  ;;  %v19974_v29 = vld [vmem:[#allocation25_spill] sm:$0xff]  ;;  %v17328_v17 = vld [vmem:[#allocation4 + $0xb88] sm:$0xff] }
  0xa1   :  { %9905 = vmatpush2.bf16.msra.mxu0 %v15264_v51  ;;  %v1169_v51 = vunpack.c.h.s8.bf16 %v17138_v45  ;;  %v15395_v44 = vcombine.high %v961_v33, %v977_v12  ;;  %v929_v45 = vunpack.c.h.s8.bf16 %v17231_v4  ;;  %v15394_v39 = vcombine.low %v961_v33, %v977_v12  ;;  %v17330_v18 = vld [vmem:[#allocation4 + $0xbc8] sm:$0xff] }
  0xa2   :  { %9906 = vmatprep.subr.bf16.mxu0 %v15233_v16  ;;  %v1137_v16 = vunpack.c.h.s8.bf16 %v17150_v57  ;;  %v897_v57 = vunpack.c.h.s8.bf16 %v17240_v3  ;;  %v15491_v24 = vcombine.high %v1057_v2, %v1073_v5  ;;  %v833_v31 = vunpack.c.h.s8.bf16 %v17261_v21  ;;  %v17324_v21 = vld [vmem:[#allocation4 + $0x388] sm:$0xff] }
  0xa3   :  { %9967 = vmatpush1.bf16.msra.mxu1 %v15074_v53  ;;  %v15587_v52 = vcombine.high %v1153_v41, %v1169_v51  ;;  %v1121_v53 = vunpack.c.h.s8.bf16 %v17148_v56  ;;  %v15586_v38 = vcombine.low %v1153_v41, %v1169_v51  ;;  %v849_v34 = vunpack.c.h.s8.bf16 %v17263_v22  ;;  %v17326_v22 = vld [vmem:[#allocation4 + $0x3c8] sm:$0xff] }
  0xa4   :  { %9968 = vmatprep.subr.bf16.mxu1 %v15043_v59  ;;  %v945_v59 = vunpack.c.h.s8.bf16 %v17233_v15  ;;  %v15490_v10 = vcombine.low %v1057_v2, %v1073_v5  ;;  %v1329_v30 = vunpack.c.h.s8.bf16 %v19974_v29  ;;  %v17338_v41 = vld [vmem:[#allocation4 + $0x308] sm:$0xff] }
  0xa5   :  { %9907 = vmatpush2.bf16.msra.mxu0 %v15232_v54  ;;  %v15555_v0 = vcombine.high %v1121_v53, %v1137_v16  ;;  %v1105_v54 = vunpack.c.h.s8.bf16 %v17162_v14  ;;  %v15554_v4 = vcombine.low %v1121_v53, %v1137_v16  ;;  %v865_v14 = vunpack.c.h.s8.bf16 %v17252_v61  ;;  %v17340_v51 = vld [vmem:[#allocation4 + $0x348] sm:$0xff] }
  0xa6   :  { %9999 = vmatprep.subr.bf16.mxu0 %v15715_v25  ;;  %v15363_v56 = vcombine.high %v929_v45, %v945_v59  ;;  %v15362_v15 = vcombine.low %v929_v45, %v945_v59  ;;  %v17344_v33 = vld [vmem:[#allocation4 + $0xb48] sm:$0xff]  ;;  %v754_v53 = vunpack.c.l.s8.bf16 %v17340_v51 }
  0xa7   :  { %9969 = vmatpush1.bf16.msra.mxu1 %v15042_v55  ;;  %v913_v55 = vunpack.c.h.s8.bf16 %v17242_v50  ;;  %v15523_v25 = vcombine.high %v1089_v1, %v1105_v54  ;;  %v15522_v3 = vcombine.low %v1089_v1, %v1105_v54  ;;  %v1266_v45 = vunpack.c.l.s8.bf16 %v17344_v33  ;;  %v17350_v59 = vld [vmem:[#allocation4 + $0x288] sm:$0xff] }
  0xa8   :  { %9970 = vmatprep.subr.bf16.mxu1 %v15011_v28  ;;  %9909 = vmatmul.mubr.bf16.vlgmr.msra.gmra.mxu0 %v17288_v8  ;;  %v881_v28 = vunpack.c.h.s8.bf16 %v17254_v58  ;;  %v17362_v2 = vld [vmem:[#allocation4 + $0x208] sm:$0xff] }
  0xa9   :  { %10000 = vmatpush1.bf16.msra.mxu0 %v15714_v9  ;;  %15811 = vmatprep.mubr.msk.bf16.mxu0 %vm9775_vm0, %v17183_v35  ;;  %v15331_v13 = vcombine.high %v897_v57, %v913_v55  ;;  %v15330_v50 = vcombine.low %v897_v57, %v913_v55  ;;  %v1345_v9 = vunpack.c.h.s8.bf16 %v19972_v26  ;;  %v706_v57 = vunpack.c.l.s8.bf16 %v17350_v59  ;;  %v17364_v5 = vld [vmem:[#allocation4 + $0x248] sm:$0xff] }
  0xaa   :  { %10001 = vmatprep.subr.bf16.mxu0 %v15683_v36  ;;  %v15298_v36 = vcombine.low %v865_v14, %v881_v28  ;;  %v690_v26 = vunpack.c.l.s8.bf16 %v17364_v5 }
  0xab   :  { %9971 = vmatpush1.bf16.msra.mxu1 %v15010_v27  ;;  %v15299_v27 = vcombine.high %v865_v14, %v881_v28  ;;  %v15779_v61 = vcombine.high %v1345_v9, %v1345_v9  ;;  %v15778_v58 = vcombine.low %v1345_v9, %v1345_v9  ;;  %v17369_v14 = vld [vmem:[#allocation4 + $0xa48] sm:$0xff] }
  0xac   :  { %9972 = vmatprep.subr.bf16.mxu1 %v14979_v43  ;;  %v1313_v43 = vunpack.c.h.s8.bf16 %v19973_v11 }
  0xad   :  { %10002 = vmatpush1.bf16.msra.mxu0 %v15682_v20  ;;  %v15267_v20 = vcombine.high %v833_v31, %v849_v34  ;;  %v9787_v48 = vsel %vm9779_vm1, %v15778_v58, 0 }
  0xae   :  { %10003 = vmatprep.subr.bf16.mxu0 %v15651_v46  ;;  %v817_v46 = vunpack.c.h.s8.bf16 %v17272_v7  ;;  %v15747_v49 = vcombine.high %v1313_v43, %v1329_v30  ;;  %v786_v7 = vunpack.c.l.s8.bf16 %v17326_v22  ;;  %v15746_v12 = vcombine.low %v1313_v43, %v1329_v30 }
  0xaf   :  { %9973 = vmatpush1.bf16.msra.mxu1 %v14978_v6  ;;  %v801_v6 = vunpack.c.h.s8.bf16 %v17270_v37  ;;  %v770_v37 = vunpack.c.l.s8.bf16 %v17324_v21 }
  0xb0   :  { %9974 = vmatprep.subr.bf16.mxu1 %v15459_v60  ;;  %v15266_v60 = vcombine.low %v833_v31, %v849_v34  ;;  %v1202_v31 = vunpack.c.l.s8.bf16 %v17369_v14  ;;  %v17376_v34 = vld [vmem:[#allocation4 + $0x188] sm:$0xff] }
  0xb1   :  { %10004 = vmatpush1.bf16.msra.mxu0 %v15650_v19  ;;  %v15235_v19 = vcombine.high %v801_v6, %v817_v46  ;;  %v15204_v1 = vcombine.low %v770_v37, %v786_v7  ;;  %v642_v29 = vunpack.c.l.s8.bf16 %v17376_v34 }
  0xb2   :  { %10005 = vmatprep.subr.bf16.mxu0 %v15619_v40  ;;  %v1298_v40 = vunpack.c.l.s8.bf16 %v17330_v18 }
  0xb3   :  { %9975 = vmatpush2.bf16.msra.mxu1 %v15458_v47  ;;  %v1282_v47 = vunpack.c.l.s8.bf16 %v17328_v17 }
  0xb4   :  { %9976 = vmatprep.subr.bf16.mxu1 %v15427_v32  ;;  %v17342_v32 = vld [vmem:[#allocation4 + $0xb08] sm:$0xff] }
  0xb5   :  { %10006 = vmatpush1.bf16.msra.mxu0 %v15618_v62  ;;  %v15234_v62 = vcombine.low %v801_v6, %v817_v46  ;;  %v15717_v16 = vcombine.high %v1282_v47, %v1298_v40  ;;  %v15716_v54 = vcombine.low %v1282_v47, %v1298_v40 }
  0xb6   :  { %10007 = vmatprep.subr.bf16.mxu0 %v15587_v52  ;;  %v738_v52 = vunpack.c.l.s8.bf16 %v17338_v41 }
  0xb7   :  { %9977 = vmatpush2.bf16.msra.mxu1 %v15426_v63  ;;  %v15205_v63 = vcombine.high %v770_v37, %v786_v7  ;;  %v17397_v37 = vld [vmem:[#allocation4 + $0x948] sm:$0xff] }
  0xb8   :  { %9978 = vmatprep.subr.bf16.mxu1 %v15395_v44  ;;  %v1250_v44 = vunpack.c.l.s8.bf16 %v17342_v32  ;;  %v15172_v28 = vcombine.low %v738_v52, %v754_v53 }
  0xb9   :  { %10008 = vmatpush1.bf16.msra.mxu0 %v15586_v38  ;;  %v17352_v38 = vld [vmem:[#allocation4 + $0x2c8] sm:$0xff] }
  0xba   :  { %10009 = vmatprep.subr.bf16.mxu0 %v15555_v0  ;;  %v17356_v0 = vld [vmem:[#allocation4 + $0xac8] sm:$0xff]  ;;  %v722_v55 = vunpack.c.l.s8.bf16 %v17352_v38 }
  0xbb   :  { %9979 = vmatpush2.bf16.msra.mxu1 %v15394_v39  ;;  %v17354_v39 = vld [vmem:[#allocation4 + $0xa88] sm:$0xff] }
  0xbc   :  { %9980 = vmatprep.subr.bf16.mxu1 %v15363_v56  ;;  %v15173_v56 = vcombine.high %v738_v52, %v754_v53  ;;  %v15140_v58 = vcombine.low %v706_v57, %v722_v55  ;;  %v1138_v52 = vunpack.c.l.s8.bf16 %v17397_v37  ;;  %v17403_v53 = vld [vmem:[#allocation4 + $0x88] sm:$0xff] }
  0xbd   :  { %10010 = vmatpush1.bf16.msra.mxu0 %v15554_v4  ;;  %v15685_v4 = vcombine.high %v1250_v44, %v1266_v45 }
  0xbe   :  { %10011 = vmatprep.subr.bf16.mxu0 %v15523_v25  ;;  %v1234_v25 = vunpack.c.l.s8.bf16 %v17356_v0 }
  0xbf   :  { %9981 = vmatpush2.bf16.msra.mxu1 %v15362_v15  ;;  %v1218_v15 = vunpack.c.l.s8.bf16 %v17354_v39 }
  0xc0   :  { %9982 = vmatprep.subr.bf16.mxu1 %v15331_v13  ;;  %v17367_v13 = vld [vmem:[#allocation4 + $0xa08] sm:$0xff] }
  0xc1   :  { %10012 = vmatpush1.bf16.msra.mxu0 %v15522_v3  ;;  %v15684_v3 = vcombine.low %v1250_v44, %v1266_v45  ;;  %v15653_v9 = vcombine.high %v1218_v15, %v1234_v25  ;;  %v15652_v11 = vcombine.low %v1218_v15, %v1234_v25  ;;  %v17407_v44 = vld [vmem:[#allocation4 + $0x888] sm:$0xff] }
  0xc2   :  { %10013 = vmatprep.subr.bf16.mxu0 %v15491_v24  ;;  %v674_v24 = vunpack.c.l.s8.bf16 %v17362_v2  ;;  %v17409_v45 = vld [vmem:[#allocation4 + $0x8c8] sm:$0xff]  ;;  %v1090_v15 = vunpack.c.l.s8.bf16 %v17407_v44 }
  0xc3   :  { %9983 = vmatpush2.bf16.msra.mxu1 %v15330_v50  ;;  %v15141_v50 = vcombine.high %v706_v57, %v722_v55  ;;  %v578_v57 = vunpack.c.l.s8.bf16 %v17403_v53  ;;  %v1106_v25 = vunpack.c.l.s8.bf16 %v17409_v45 }
  0xc4   :  { %9984 = vmatprep.subr.bf16.mxu1 %v15299_v27  ;;  %v1186_v27 = vunpack.c.l.s8.bf16 %v17367_v13  ;;  %v15109_v43 = vcombine.high %v674_v24, %v690_v26  ;;  %v15108_v7 = vcombine.low %v674_v24, %v690_v26  ;;  %v17421_v24 = vld [vmem:[#allocation4 + $0x848] sm:$0xff] }
  0xc5   :  { %10014 = vmatpush1.bf16.msra.mxu0 %v15490_v10  ;;  %v17382_v10 = vld [vmem:[#allocation4 + $0x988] sm:$0xff] }
  0xc6   :  { %15810 = vmatprep.subr.msk.bf16.mxu0 %vm9779_vm1, %v15779_v61  ;;  %v17384_v61 = vld [vmem:[#allocation4 + $0x9c8] sm:$0xff]  ;;  %v1154_v6 = vunpack.c.l.s8.bf16 %v17382_v10 }
  0xc7   :  { %9985 = vmatpush2.bf16.msra.mxu1 %v15298_v36  ;;  %v17378_v36 = vld [vmem:[#allocation4 + $0x1c8] sm:$0xff]  ;;  %v1170_v46 = vunpack.c.l.s8.bf16 %v17384_v61 }
  0xc8   :  { %9986 = vmatprep.subr.bf16.mxu1 %v15267_v20  ;;  %v658_v30 = vunpack.c.l.s8.bf16 %v17378_v36  ;;  %v15621_v20 = vcombine.high %v1186_v27, %v1202_v31 }
  0xc9   :  { %10028 = vmatpush2.bf16.msra.mxu0 %v9787_v48  ;;  %v17393_v48 = vld [vmem:[#allocation4 + $0x148] sm:$0xff] }
  0xca   :  { %10029 = vmatprep.subr.bf16.mxu0 %v15747_v49  ;;  %v17395_v49 = vld [vmem:[#allocation4 + $0x908] sm:$0xff]  ;;  %v15077_v47 = vcombine.high %v642_v29, %v658_v30 }
  0xcb   :  { %9987 = vmatpush2.bf16.msra.mxu1 %v15266_v60  ;;  %v17391_v60 = vld [vmem:[#allocation4 + $0x108] sm:$0xff] }
  0xcc   :  { %9988 = vmatprep.subr.bf16.mxu1 %v15235_v19  ;;  %v15620_v19 = vcombine.low %v1186_v27, %v1202_v31  ;;  %v610_v40 = vunpack.c.l.s8.bf16 %v17391_v60 }
  0xcd   :  { %10030 = vmatpush2.bf16.msra.mxu0 %v15746_v12  ;;  %v626_v12 = vunpack.c.l.s8.bf16 %v17393_v48 }
  0xce   :  { %10040 = vmatprep.subr.bf16.mxu0 %v15205_v63  ;;  %v1122_v63 = vunpack.c.l.s8.bf16 %v17395_v49 }
  0xcf   :  { %9989 = vmatpush2.bf16.msra.mxu1 %v15234_v62  ;;  %v15589_v62 = vcombine.high %v1154_v6, %v1170_v46  ;;  %v15044_v26 = vcombine.low %v610_v40, %v626_v12 }
  0xd0   :  { %10081 = vmatprep.subr.bf16.mxu1 %v15717_v16  ;;  %10032 = vmatmul.mubr.bf16.vlgmr.msra.gmra.mxu0 %v17246_v23  ;;  %v17405_v16 = vld [vmem:[#allocation4 + $0xc8] sm:$0xff] }
  0xd1   :  { %10041 = vmatpush1.bf16.msra.mxu0 %v15204_v1  ;;  %10072 = vmatprep.mubr.bf16.mxu0 %v17223_v42  ;;  %v15076_v1 = vcombine.low %v642_v29, %v658_v30  ;;  %v594_v55 = vunpack.c.l.s8.bf16 %v17405_v16  ;;  %v1074_v29 = vunpack.c.l.s8.bf16 %v17421_v24  ;;  %v17427_v30 = vld [vmem:[#allocation4 + $0x788] sm:$0xff] }
  0xd2   :  { %9991 = vmatmul.mubr.bf16.vlgmr.msra.gmra.mxu1 %v17288_v8  ;;  %10042 = vmatprep.subr.bf16.mxu0 %v15173_v56  ;;  %v15045_v56 = vcombine.high %v610_v40, %v626_v12 }
  0xd3   :  { %10082 = vmatpush1.bf16.msra.mxu1 %v15716_v54  ;;  %15813 = vmatprep.mubr.msk.bf16.mxu1 %vm9775_vm0, %v17183_v35  ;;  %v15588_v54 = vcombine.low %v1154_v6, %v1170_v46  ;;  %v15013_v27 = vcombine.high %v578_v57, %v594_v55  ;;  %v17431_v6 = vld [vmem:[#allocation4 + $0xc88] sm:$0xff]  ;;  %v15012_v46 = vcombine.low %v578_v57, %v594_v55 }
  0xd4   :  { %10083 = vmatprep.subr.bf16.mxu1 %v15685_v4  ;;  %v15557_v4 = vcombine.high %v1122_v63, %v1138_v52  ;;  %19975 = vst [vmem:[#allocation23_spill] sm:$0xff] %v17431_v6 }
  0xd5   :  { %10043 = vmatpush1.bf16.msra.mxu0 %v15172_v28  ;;  %v17415_v28 = vld [vmem:[#allocation4 + $0x8] sm:$0xff] }
  0xd6   :  { %10044 = vmatprep.subr.bf16.mxu0 %v15141_v50  ;;  %v17419_v50 = vld [vmem:[#allocation4 + $0x808] sm:$0xff]  ;;  %v546_v31 = vunpack.c.l.s8.bf16 %v17415_v28 }
  0xd7   :  { %10084 = vmatpush1.bf16.msra.mxu1 %v15684_v3  ;;  %v17417_v3 = vld [vmem:[#allocation4 + $0x48] sm:$0xff] }
  0xd8   :  { %10085 = vmatprep.subr.bf16.mxu1 %v15653_v9  ;;  %v15556_v9 = vcombine.low %v1122_v63, %v1138_v52  ;;  %v17436_v63 = vld [vmem:[#allocation4 + $0x708] sm:$0xff] }
  0xd9   :  { %10045 = vmatpush1.bf16.msra.mxu0 %v15140_v58  ;;  %v562_v58 = vunpack.c.l.s8.bf16 %v17417_v3  ;;  %v17438_v52 = vld [vmem:[#allocation4 + $0x748] sm:$0xff] }
  0xda   :  { %10046 = vmatprep.subr.bf16.mxu0 %v15109_v43  ;;  %v1058_v43 = vunpack.c.l.s8.bf16 %v17419_v50 }
  0xdb   :  { %10086 = vmatpush1.bf16.msra.mxu1 %v15652_v11  ;;  %v15525_v11 = vcombine.high %v1090_v15, %v1106_v25 }
  0xdc   :  { %10087 = vmatprep.subr.bf16.mxu1 %v15621_v20  ;;  %v17429_v20 = vld [vmem:[#allocation4 + $0x7c8] sm:$0xff]  ;;  %v15493_v12 = vcombine.high %v1058_v43, %v1074_v29  ;;  %v15492_v57 = vcombine.low %v1058_v43, %v1074_v29 }
  0xdd   :  { %10047 = vmatpush1.bf16.msra.mxu0 %v15108_v7  ;;  %v15524_v7 = vcombine.low %v1090_v15, %v1106_v25  ;;  %v1042_v40 = vunpack.c.l.s8.bf16 %v17429_v20  ;;  %v1010_v15 = vunpack.c.l.s8.bf16 %v17438_v52 }
  0xde   :  { %10048 = vmatprep.subr.bf16.mxu0 %v15077_v47  ;;  %v1026_v47 = vunpack.c.l.s8.bf16 %v17427_v30 }
  0xdf   :  { %10088 = vmatpush1.bf16.msra.mxu1 %v15620_v19  ;;  %v14981_v19 = vcombine.high %v546_v31, %v562_v58 }
  0xe0   :  { %10089 = vmatprep.subr.bf16.mxu1 %v15589_v62  ;;  %v1346_v62 = vunpack.c.l.s8.bf16 %v17431_v6  ;;  %v15461_v55 = vcombine.high %v1026_v47, %v1042_v40  ;;  %v17450_v6 = vld [vmem:[#allocation4 + $0x6c8] sm:$0xff] }
  0xe1   :  { %10049 = vmatpush1.bf16.msra.mxu0 %v15076_v1  ;;  %v17440_v1 = vld [vmem:[#allocation4 + $0xc08] sm:$0xff]  ;;  %v978_v29 = vunpack.c.l.s8.bf16 %v17450_v6 }
  0xe2   :  { %10050 = vmatprep.subr.bf16.mxu0 %v15045_v56  ;;  %19976 = vst [vmem:[#allocation24_spill] sm:$0xff] %v17440_v1  ;;  %v14980_v56 = vcombine.low %v546_v31, %v562_v58  ;;  %v15781_v25 = vcombine.high %v1346_v62, %v1346_v62  ;;  %v15460_v31 = vcombine.low %v1026_v47, %v1042_v40 }
  0xe3   :  { %10090 = vmatpush1.bf16.msra.mxu1 %v15588_v54  ;;  %v17442_v54 = vld [vmem:[#allocation4 + $0xc48] sm:$0xff] }
  0xe4   :  { %10091 = vmatprep.subr.bf16.mxu1 %v15557_v4  ;;  %19977 = vst [vmem:[#allocation25_spill] sm:$0xff] %v17442_v54  ;;  %v994_v4 = vunpack.c.l.s8.bf16 %v17436_v63 }
  0xe5   :  { %10051 = vmatpush1.bf16.msra.mxu0 %v15044_v26  ;;  %v15780_v26 = vcombine.low %v1346_v62, %v1346_v62  ;;  %v17458_v62 = vld [vmem:[#allocation4 + $0x608] sm:$0xff] }
  0xe6   :  { %10052 = vmatprep.subr.bf16.mxu0 %v15013_v27  ;;  %v1330_v27 = vunpack.c.l.s8.bf16 %v17442_v54  ;;  %v15429_v58 = vcombine.high %v994_v4, %v1010_v15  ;;  %v15428_v47 = vcombine.low %v994_v4, %v1010_v15  ;;  %v17466_v54 = vld [vmem:[#allocation4 + $0x588] sm:$0xff] }
  0xe7   :  { %10092 = vmatpush1.bf16.msra.mxu1 %v15556_v9  ;;  %v1314_v9 = vunpack.c.l.s8.bf16 %v17440_v1  ;;  %v17468_v1 = vld [vmem:[#allocation4 + $0x5c8] sm:$0xff] }
  0xe8   :  { %10093 = vmatprep.subr.bf16.mxu1 %v15525_v11  ;;  %v17448_v11 = vld [vmem:[#allocation4 + $0x688] sm:$0xff] }
  0xe9   :  { %10053 = vmatpush1.bf16.msra.mxu0 %v15012_v46  ;;  %v962_v43 = vunpack.c.l.s8.bf16 %v17448_v11  ;;  %v9793_v46 = vsel %vm9779_vm1, %v15780_v26, 0  ;;  %v15748_v40 = vcombine.low %v1314_v9, %v1330_v27 }
  0xea   :  { %10054 = vmatprep.subr.bf16.mxu0 %v14981_v19  ;;  %v771_v19 = vunpack.c.h.s8.bf16 %v17324_v21  ;;  %v739_v21 = vunpack.c.h.s8.bf16 %v17338_v41  ;;  %v707_v41 = vunpack.c.h.s8.bf16 %v17350_v59 }
  0xeb   :  { %10094 = vmatpush1.bf16.msra.mxu1 %v15524_v7  ;;  %v15749_v7 = vcombine.high %v1314_v9, %v1330_v27  ;;  %v15396_v4 = vcombine.low %v962_v43, %v978_v29  ;;  %v898_v27 = vunpack.c.l.s8.bf16 %v17466_v54 }
  0xec   :  { %10095 = vmatprep.subr.bf16.mxu1 %v15493_v12  ;;  %v787_v12 = vunpack.c.h.s8.bf16 %v17326_v22  ;;  %v755_v22 = vunpack.c.h.s8.bf16 %v17340_v51  ;;  %v723_v51 = vunpack.c.h.s8.bf16 %v17352_v38  ;;  %v675_v38 = vunpack.c.h.s8.bf16 %v17362_v2 }
  0xed   :  { %10055 = vmatpush1.bf16.msra.mxu0 %v14980_v56  ;;  %v17460_v56 = vld [vmem:[#allocation4 + $0x648] sm:$0xff] }
  0xee   :  { %10056 = vmatprep.subr.bf16.mxu0 %v15461_v55  ;;  %v930_v55 = vunpack.c.l.s8.bf16 %v17458_v62  ;;  %v15207_v26 = vcombine.high %v771_v19, %v787_v12  ;;  %v15206_v15 = vcombine.low %v771_v19, %v787_v12  ;;  %v15143_v59 = vcombine.high %v707_v41, %v723_v51 }
  0xef   :  { %10096 = vmatpush1.bf16.msra.mxu1 %v15492_v57  ;;  %v15397_v57 = vcombine.high %v962_v43, %v978_v29  ;;  %v15174_v29 = vcombine.low %v739_v21, %v755_v22 }
  0xf0   :  { %15812 = vmatprep.subr.msk.bf16.mxu1 %vm9779_vm1, %v15781_v25  ;;  %v946_v25 = vunpack.c.l.s8.bf16 %v17460_v56 }
  0xf1   :  { %10057 = vmatpush2.bf16.msra.mxu0 %v15460_v31  ;;  %v914_v31 = vunpack.c.l.s8.bf16 %v17468_v1 }
  0xf2   :  { %10058 = vmatprep.subr.bf16.mxu0 %v15429_v58  ;;  %v15365_v9 = vcombine.high %v930_v55, %v946_v25  ;;  %v15175_v58 = vcombine.high %v739_v21, %v755_v22  ;;  %v15364_v43 = vcombine.low %v930_v55, %v946_v25  ;;  %v15142_v25 = vcombine.low %v707_v41, %v723_v51 }
  0xf3   :  { %10110 = vmatpush2.bf16.msra.mxu1 %v9793_v46  ;;  %v17474_v46 = vld [vmem:[#allocation4 + $0x508] sm:$0xff]  ;;  %v15333_v19 = vcombine.high %v898_v27, %v914_v31  ;;  %v15332_v55 = vcombine.low %v898_v27, %v914_v31 }
  0xf4   :  { %10111 = vmatprep.subr.bf16.mxu1 %v15749_v7  ;;  %v17476_v7 = vld [vmem:[#allocation4 + $0x548] sm:$0xff]  ;;  %v866_v12 = vunpack.c.l.s8.bf16 %v17474_v46 }
  0xf5   :  { %10059 = vmatpush2.bf16.msra.mxu0 %v15428_v47  ;;  %v882_v47 = vunpack.c.l.s8.bf16 %v17476_v7 }
  0xf6   :  { %10060 = vmatprep.subr.bf16.mxu0 %v15397_v57  ;;  %v17483_v57 = vld [vmem:[#allocation4 + $0x488] sm:$0xff] }
  0xf7   :  { %10112 = vmatpush2.bf16.msra.mxu1 %v15748_v40  ;;  %v691_v40 = vunpack.c.h.s8.bf16 %v17364_v5  ;;  %v15301_v21 = vcombine.high %v866_v12, %v882_v47  ;;  %v834_v22 = vunpack.c.l.s8.bf16 %v17483_v57  ;;  %v643_v5 = vunpack.c.h.s8.bf16 %v17376_v34 }
  0xf8   :  { %10122 = vmatprep.subr.bf16.mxu1 %v15207_v26  ;;  %v17485_v26 = vld [vmem:[#allocation4 + $0x4c8] sm:$0xff]  ;;  %v15300_v27 = vcombine.low %v866_v12, %v882_v47  ;;  %v611_v34 = vunpack.c.h.s8.bf16 %v17391_v60  ;;  %v1283_v47 = vunpack.c.h.s8.bf16 %v17328_v17 }
  0xf9   :  { %10061 = vmatpush2.bf16.msra.mxu0 %v15396_v4  ;;  %v850_v4 = vunpack.c.l.s8.bf16 %v17485_v26  ;;  %v15111_v2 = vcombine.high %v675_v38, %v691_v40  ;;  %v15110_v31 = vcombine.low %v675_v38, %v691_v40  ;;  %v1299_v38 = vunpack.c.h.s8.bf16 %v17330_v18 }
  0xfa   :  { %10114 = vmatmul.mubr.bf16.vlgmr.msra.gmra.mxu1 %v17246_v23  ;;  %10062 = vmatprep.subr.bf16.mxu0 %v15365_v9  ;;  %v17492_v9 = vld [vmem:[#allocation4 + $0x408] sm:$0xff]  ;;  %v547_v18 = vunpack.c.h.s8.bf16 %v17415_v28 }
  0xfb   :  { %10123 = vmatpush1.bf16.msra.mxu1 %v15206_v15  ;;  %10154 = vmatprep.mubr.bf16.mxu1 %v17223_v42  ;;  %v659_v15 = vunpack.c.h.s8.bf16 %v17378_v36  ;;  %v15269_v41 = vcombine.high %v834_v22, %v850_v4  ;;  %v802_v51 = vunpack.c.l.s8.bf16 %v17492_v9  ;;  %v627_v36 = vunpack.c.h.s8.bf16 %v17393_v48 }
  0xfc   :  { %10124 = vmatprep.subr.bf16.mxu1 %v15175_v58  ;;  %v17494_v58 = vld [vmem:[#allocation4 + $0x448] sm:$0xff] }
  0xfd   :  { %10063 = vmatpush2.bf16.msra.mxu0 %v15364_v43  ;;  %v818_v43 = vunpack.c.l.s8.bf16 %v17494_v58  ;;  %v15047_v40 = vcombine.high %v611_v34, %v627_v36  ;;  %v15046_v48 = vcombine.low %v611_v34, %v627_v36  ;;  %v1155_v36 = vunpack.c.h.s8.bf16 %v17382_v10 }
  0xfe   :  { %10064 = vmatprep.subr.bf16.mxu0 %v15333_v19  ;;  %v15268_v19 = vcombine.low %v834_v22, %v850_v4  ;;  %v1251_v22 = vunpack.c.h.s8.bf16 %v17342_v32  ;;  %v1267_v4 = vunpack.c.h.s8.bf16 %v17344_v33  ;;  %v1027_v33 = vunpack.c.h.s8.bf16 %v17427_v30 }
  0xff   :  { %10125 = vmatpush1.bf16.msra.mxu1 %v15174_v29  ;;  %v15079_v29 = vcombine.high %v643_v5, %v659_v15  ;;  %v15237_v12 = vcombine.high %v802_v51, %v818_v43  ;;  %v15236_v60 = vcombine.low %v802_v51, %v818_v43  ;;  %v995_v30 = vunpack.c.h.s8.bf16 %v17436_v63 }
 0x100   :  { %10126 = vmatprep.subr.bf16.mxu1 %v15143_v59  ;;  %v15078_v59 = vcombine.low %v643_v5, %v659_v15  ;;  %v15687_v5 = vcombine.high %v1251_v22, %v1267_v4  ;;  %v1219_v15 = vunpack.c.h.s8.bf16 %v17354_v39  ;;  %v15686_v28 = vcombine.low %v1251_v22, %v1267_v4 }
 0x101   :  { %10065 = vmatpush2.bf16.msra.mxu0 %v15332_v55  ;;  %v579_v55 = vunpack.c.h.s8.bf16 %v17403_v53  ;;  %v15718_v53 = vcombine.low %v1283_v47, %v1299_v38  ;;  %v1187_v39 = vunpack.c.h.s8.bf16 %v17367_v13  ;;  %v1059_v22 = vunpack.c.h.s8.bf16 %v17419_v50 }
 0x102   :  { %10066 = vmatprep.subr.bf16.mxu0 %v15301_v21  ;;  %v15719_v21 = vcombine.high %v1283_v47, %v1299_v38  ;;  %v1123_v47 = vunpack.c.h.s8.bf16 %v17395_v49  ;;  %v1139_v38 = vunpack.c.h.s8.bf16 %v17397_v37  ;;  %v899_v37 = vunpack.c.h.s8.bf16 %v17466_v54 }
 0x103   :  { %10127 = vmatpush1.bf16.msra.mxu1 %v15142_v25  ;;  %v595_v25 = vunpack.c.h.s8.bf16 %v17405_v16  ;;  %v1075_v4 = vunpack.c.h.s8.bf16 %v17421_v24  ;;  %v835_v50 = vunpack.c.h.s8.bf16 %v17483_v57  ;;  %v851_v24 = vunpack.c.h.s8.bf16 %v17485_v26  ;;  %v17542_v57 = vld [vmem:[#allocation4 + $0x390] sm:$0xff] }
 0x104   :  { %10128 = vmatprep.subr.bf16.mxu1 %v15111_v2  ;;  %v563_v2 = vunpack.c.h.s8.bf16 %v17417_v3  ;;  %v17544_v26 = vld [vmem:[#allocation4 + $0x3d0] sm:$0xff] }
 0x105   :  { %10067 = vmatpush2.bf16.msra.mxu0 %v15300_v27  ;;  %v15015_v17 = vcombine.high %v579_v55, %v595_v25  ;;  %v15014_v16 = vcombine.low %v579_v55, %v595_v25  ;;  %v1235_v27 = vunpack.c.h.s8.bf16 %v17356_v0  ;;  %v1203_v0 = vunpack.c.h.s8.bf16 %v17369_v14 }
 0x106   :  { %10068 = vmatprep.subr.bf16.mxu0 %v15269_v41  ;;  %v14983_v32 = vcombine.high %v547_v18, %v563_v2  ;;  %v14982_v3 = vcombine.low %v547_v18, %v563_v2  ;;  %v963_v14 = vunpack.c.h.s8.bf16 %v17448_v11  ;;  %v15559_v55 = vcombine.high %v1123_v47, %v1139_v38  ;;  %v19978_v2 = vld [vmem:[#allocation23_spill] sm:$0xff] }
 0x107   :  { %10129 = vmatpush1.bf16.msra.mxu1 %v15110_v31  ;;  %v1043_v31 = vunpack.c.h.s8.bf16 %v17429_v20  ;;  %v15655_v41 = vcombine.high %v1219_v15, %v1235_v27  ;;  %v1011_v20 = vunpack.c.h.s8.bf16 %v17438_v52  ;;  %v15654_v43 = vcombine.low %v1219_v15, %v1235_v27  ;;  %v19979_v27 = vld [vmem:[#allocation24_spill] sm:$0xff] }
 0x108   :  { %10130 = vmatprep.subr.bf16.mxu1 %v15079_v29  ;;  %v15623_v34 = vcombine.high %v1187_v39, %v1203_v0  ;;  %v15622_v63 = vcombine.low %v1187_v39, %v1203_v0  ;;  %v1091_v25 = vunpack.c.h.s8.bf16 %v17407_v44  ;;  %v15495_v18 = vcombine.high %v1059_v22, %v1075_v4  ;;  %v17546_v39 = vld [vmem:[#allocation4 + $0xb90] sm:$0xff] }
 0x109   :  { %10069 = vmatpush2.bf16.msra.mxu0 %v15268_v19  ;;  %v15463_v51 = vcombine.high %v1027_v33, %v1043_v31  ;;  %v15462_v29 = vcombine.low %v1027_v33, %v1043_v31  ;;  %v1171_v19 = vunpack.c.h.s8.bf16 %v17384_v61  ;;  %v15431_v13 = vcombine.high %v995_v30, %v1011_v20  ;;  %v19980_v33 = vld [vmem:[#allocation25_spill] sm:$0xff]  ;;  %v17548_v0 = vld [vmem:[#allocation4 + $0xbd0] sm:$0xff] }
 0x10a   :  { %10070 = vmatprep.subr.bf16.mxu0 %v15237_v12  ;;  %v15430_v52 = vcombine.low %v995_v30, %v1011_v20  ;;  %v931_v61 = vunpack.c.h.s8.bf16 %v17458_v62  ;;  %v15558_v62 = vcombine.low %v1123_v47, %v1139_v38  ;;  %v15494_v15 = vcombine.low %v1059_v22, %v1075_v4  ;;  %v17580_v22 = vld [vmem:[#allocation4 + $0x210] sm:$0xff] }
 0x10b   :  { %10131 = vmatpush1.bf16.msra.mxu1 %v15078_v59  ;;  %v979_v59 = vunpack.c.h.s8.bf16 %v17450_v6  ;;  %v15591_v12 = vcombine.high %v1155_v36, %v1171_v19  ;;  %v15590_v11 = vcombine.low %v1155_v36, %v1171_v19  ;;  %v1331_v31 = vunpack.c.h.s8.bf16 %v19980_v33  ;;  %v17556_v36 = vld [vmem:[#allocation4 + $0x310] sm:$0xff] }
 0x10c   :  { %10132 = vmatprep.subr.bf16.mxu1 %v15047_v40  ;;  %v947_v40 = vunpack.c.h.s8.bf16 %v17460_v56  ;;  %v17558_v19 = vld [vmem:[#allocation4 + $0x350] sm:$0xff] }
 0x10d   :  { %10071 = vmatpush2.bf16.msra.mxu0 %v15236_v60  ;;  %v15399_v10 = vcombine.high %v963_v14, %v979_v59  ;;  %v15398_v6 = vcombine.low %v963_v14, %v979_v59  ;;  %v1107_v60 = vunpack.c.h.s8.bf16 %v17409_v45  ;;  %v867_v45 = vunpack.c.h.s8.bf16 %v17474_v46  ;;  %v17562_v14 = vld [vmem:[#allocation4 + $0xb50] sm:$0xff] }
 0x10e   :  { %10163 = vmatprep.subr.bf16.mxu0 %v15719_v21  ;;  %v15367_v49 = vcombine.high %v931_v61, %v947_v40  ;;  %v15366_v56 = vcombine.low %v931_v61, %v947_v40  ;;  %v756_v47 = vunpack.c.l.s8.bf16 %v17558_v19  ;;  %v1268_v61 = vunpack.c.l.s8.bf16 %v17562_v14  ;;  %v17568_v40 = vld [vmem:[#allocation4 + $0x290] sm:$0xff] }
 0x10f   :  { %10133 = vmatpush1.bf16.msra.mxu1 %v15046_v48  ;;  %v915_v48 = vunpack.c.h.s8.bf16 %v17468_v1  ;;  %v15527_v21 = vcombine.high %v1091_v25, %v1107_v60  ;;  %v15526_v54 = vcombine.low %v1091_v25, %v1107_v60  ;;  %v17582_v4 = vld [vmem:[#allocation4 + $0x250] sm:$0xff] }
 0x110   :  { %10134 = vmatprep.subr.bf16.mxu1 %v15015_v17  ;;  %10073 = vmatmul.mubr.bf16.vlgmr.msra.gmra.mxu0 %v17288_v8  ;;  %v883_v17 = vunpack.c.h.s8.bf16 %v17476_v7 }
 0x111   :  { %10164 = vmatpush1.bf16.msra.mxu0 %v15718_v53  ;;  %15815 = vmatprep.mubr.msk.bf16.mxu0 %vm9775_vm0, %v17183_v35  ;;  %v15335_v44 = vcombine.high %v899_v37, %v915_v48  ;;  %v15334_v1 = vcombine.low %v899_v37, %v915_v48  ;;  %v1347_v53 = vunpack.c.h.s8.bf16 %v19978_v2  ;;  %v708_v37 = vunpack.c.l.s8.bf16 %v17568_v40 }
 0x112   :  { %10165 = vmatprep.subr.bf16.mxu0 %v15687_v5  ;;  %v15302_v5 = vcombine.low %v867_v45, %v883_v17  ;;  %v692_v2 = vunpack.c.l.s8.bf16 %v17582_v4 }
 0x113   :  { %10135 = vmatpush1.bf16.msra.mxu1 %v15014_v16  ;;  %v15303_v16 = vcombine.high %v867_v45, %v883_v17  ;;  %v15783_v46 = vcombine.high %v1347_v53, %v1347_v53  ;;  %v15782_v7 = vcombine.low %v1347_v53, %v1347_v53  ;;  %v17587_v45 = vld [vmem:[#allocation4 + $0xa50] sm:$0xff] }
 0x114   :  { %10136 = vmatprep.subr.bf16.mxu1 %v14983_v32  ;;  %v1315_v32 = vunpack.c.h.s8.bf16 %v19979_v27 }
 0x115   :  { %10166 = vmatpush1.bf16.msra.mxu0 %v15686_v28  ;;  %v15271_v28 = vcombine.high %v835_v50, %v851_v24  ;;  %v9799_v30 = vsel %vm9779_vm1, %v15782_v7, 0 }
 0x116   :  { %10167 = vmatprep.subr.bf16.mxu0 %v15655_v41  ;;  %v819_v41 = vunpack.c.h.s8.bf16 %v17494_v58  ;;  %v15751_v20 = vcombine.high %v1315_v32, %v1331_v31  ;;  %v788_v58 = vunpack.c.l.s8.bf16 %v17544_v26  ;;  %v15750_v59 = vcombine.low %v1315_v32, %v1331_v31 }
 0x117   :  { %10137 = vmatpush1.bf16.msra.mxu1 %v14982_v3  ;;  %v803_v3 = vunpack.c.h.s8.bf16 %v17492_v9  ;;  %v772_v9 = vunpack.c.l.s8.bf16 %v17542_v57 }
 0x118   :  { %10138 = vmatprep.subr.bf16.mxu1 %v15463_v51  ;;  %v15270_v51 = vcombine.low %v835_v50, %v851_v24  ;;  %v1204_v50 = vunpack.c.l.s8.bf16 %v17587_v45  ;;  %v17594_v24 = vld [vmem:[#allocation4 + $0x190] sm:$0xff] }
 0x119   :  { %10168 = vmatpush1.bf16.msra.mxu0 %v15654_v43  ;;  %v15239_v43 = vcombine.high %v803_v3, %v819_v41  ;;  %v15208_v25 = vcombine.low %v772_v9, %v788_v58  ;;  %v644_v33 = vunpack.c.l.s8.bf16 %v17594_v24 }
 0x11a   :  { %10169 = vmatprep.subr.bf16.mxu0 %v15623_v34  ;;  %v1300_v34 = vunpack.c.l.s8.bf16 %v17548_v0 }
 0x11b   :  { %10139 = vmatpush2.bf16.msra.mxu1 %v15462_v29  ;;  %v1284_v29 = vunpack.c.l.s8.bf16 %v17546_v39 }
 0x11c   :  { %10140 = vmatprep.subr.bf16.mxu1 %v15431_v13  ;;  %v17560_v13 = vld [vmem:[#allocation4 + $0xb10] sm:$0xff] }
 0x11d   :  { %10170 = vmatpush1.bf16.msra.mxu0 %v15622_v63  ;;  %v15238_v63 = vcombine.low %v803_v3, %v819_v41  ;;  %v15721_v38 = vcombine.high %v1284_v29, %v1300_v34  ;;  %v15720_v60 = vcombine.low %v1284_v29, %v1300_v34 }
 0x11e   :  { %10171 = vmatprep.subr.bf16.mxu0 %v15591_v12  ;;  %v740_v12 = vunpack.c.l.s8.bf16 %v17556_v36 }
 0x11f   :  { %10141 = vmatpush2.bf16.msra.mxu1 %v15430_v52  ;;  %v15209_v52 = vcombine.high %v772_v9, %v788_v58  ;;  %v17615_v9 = vld [vmem:[#allocation4 + $0x950] sm:$0xff] }
 0x120   :  { %10142 = vmatprep.subr.bf16.mxu1 %v15399_v10  ;;  %v1252_v10 = vunpack.c.l.s8.bf16 %v17560_v13  ;;  %v15176_v17 = vcombine.low %v740_v12, %v756_v47 }
 0x121   :  { %10172 = vmatpush1.bf16.msra.mxu0 %v15590_v11  ;;  %v17570_v11 = vld [vmem:[#allocation4 + $0x2d0] sm:$0xff] }
 0x122   :  { %10173 = vmatprep.subr.bf16.mxu0 %v15559_v55  ;;  %v17574_v55 = vld [vmem:[#allocation4 + $0xad0] sm:$0xff]  ;;  %v724_v48 = vunpack.c.l.s8.bf16 %v17570_v11 }
 0x123   :  { %10143 = vmatpush2.bf16.msra.mxu1 %v15398_v6  ;;  %v17572_v6 = vld [vmem:[#allocation4 + $0xa90] sm:$0xff] }
 0x124   :  { %10144 = vmatprep.subr.bf16.mxu1 %v15367_v49  ;;  %v15177_v49 = vcombine.high %v740_v12, %v756_v47  ;;  %v15144_v7 = vcombine.low %v708_v37, %v724_v48  ;;  %v1140_v12 = vunpack.c.l.s8.bf16 %v17615_v9  ;;  %v17621_v47 = vld [vmem:[#allocation4 + $0x90] sm:$0xff] }
 0x125   :  { %10174 = vmatpush1.bf16.msra.mxu0 %v15558_v62  ;;  %v15689_v62 = vcombine.high %v1252_v10, %v1268_v61 }
 0x126   :  { %10175 = vmatprep.subr.bf16.mxu0 %v15527_v21  ;;  %v1236_v21 = vunpack.c.l.s8.bf16 %v17574_v55 }
 0x127   :  { %10145 = vmatpush2.bf16.msra.mxu1 %v15366_v56  ;;  %v1220_v56 = vunpack.c.l.s8.bf16 %v17572_v6 }
 0x128   :  { %10146 = vmatprep.subr.bf16.mxu1 %v15335_v44  ;;  %v17585_v44 = vld [vmem:[#allocation4 + $0xa10] sm:$0xff] }
 0x129   :  { %10176 = vmatpush1.bf16.msra.mxu0 %v15526_v54  ;;  %v15688_v54 = vcombine.low %v1252_v10, %v1268_v61  ;;  %v15657_v53 = vcombine.high %v1220_v56, %v1236_v21  ;;  %v15656_v27 = vcombine.low %v1220_v56, %v1236_v21  ;;  %v17625_v10 = vld [vmem:[#allocation4 + $0x890] sm:$0xff] }
 0x12a   :  { %10177 = vmatprep.subr.bf16.mxu0 %v15495_v18  ;;  %v676_v18 = vunpack.c.l.s8.bf16 %v17580_v22  ;;  %v17627_v61 = vld [vmem:[#allocation4 + $0x8d0] sm:$0xff]  ;;  %v1092_v56 = vunpack.c.l.s8.bf16 %v17625_v10 }
 0x12b   :  { %10147 = vmatpush2.bf16.msra.mxu1 %v15334_v1  ;;  %v15145_v1 = vcombine.high %v708_v37, %v724_v48  ;;  %v580_v37 = vunpack.c.l.s8.bf16 %v17621_v47  ;;  %v1108_v21 = vunpack.c.l.s8.bf16 %v17627_v61 }
 0x12c   :  { %10148 = vmatprep.subr.bf16.mxu1 %v15303_v16  ;;  %v1188_v16 = vunpack.c.l.s8.bf16 %v17585_v44  ;;  %v15113_v32 = vcombine.high %v676_v18, %v692_v2  ;;  %v15112_v58 = vcombine.low %v676_v18, %v692_v2  ;;  %v17639_v18 = vld [vmem:[#allocation4 + $0x850] sm:$0xff] }
 0x12d   :  { %10178 = vmatpush1.bf16.msra.mxu0 %v15494_v15  ;;  %v17600_v15 = vld [vmem:[#allocation4 + $0x990] sm:$0xff]  ;;  %19982 = vst [vmem:[#allocation24_spill] sm:$0xff] %v17639_v18 }
 0x12e   :  { %15814 = vmatprep.subr.msk.bf16.mxu0 %vm9779_vm1, %v15783_v46  ;;  %v17602_v46 = vld [vmem:[#allocation4 + $0x9d0] sm:$0xff]  ;;  %v1156_v3 = vunpack.c.l.s8.bf16 %v17600_v15 }
 0x12f   :  { %10149 = vmatpush2.bf16.msra.mxu1 %v15302_v5  ;;  %v17596_v5 = vld [vmem:[#allocation4 + $0x1d0] sm:$0xff]  ;;  %v1172_v41 = vunpack.c.l.s8.bf16 %v17602_v46 }
 0x130   :  { %10150 = vmatprep.subr.bf16.mxu1 %v15271_v28  ;;  %v660_v31 = vunpack.c.l.s8.bf16 %v17596_v5  ;;  %v15625_v28 = vcombine.high %v1188_v16, %v1204_v50 }
 0x131   :  { %10192 = vmatpush2.bf16.msra.mxu0 %v9799_v30  ;;  %v17611_v30 = vld [vmem:[#allocation4 + $0x150] sm:$0xff] }
 0x132   :  { %10193 = vmatprep.subr.bf16.mxu0 %v15751_v20  ;;  %v17613_v20 = vld [vmem:[#allocation4 + $0x910] sm:$0xff]  ;;  %v15081_v29 = vcombine.high %v644_v33, %v660_v31 }
 0x133   :  { %10151 = vmatpush2.bf16.msra.mxu1 %v15270_v51  ;;  %v17609_v51 = vld [vmem:[#allocation4 + $0x110] sm:$0xff] }
 0x134   :  { %10152 = vmatprep.subr.bf16.mxu1 %v15239_v43  ;;  %v15624_v43 = vcombine.low %v1188_v16, %v1204_v50  ;;  %v612_v34 = vunpack.c.l.s8.bf16 %v17609_v51 }
 0x135   :  { %10194 = vmatpush2.bf16.msra.mxu0 %v15750_v59  ;;  %v628_v59 = vunpack.c.l.s8.bf16 %v17611_v30 }
 0x136   :  { %10204 = vmatprep.subr.bf16.mxu0 %v15209_v52  ;;  %v1124_v52 = vunpack.c.l.s8.bf16 %v17613_v20 }
 0x137   :  { %10153 = vmatpush2.bf16.msra.mxu1 %v15238_v63  ;;  %v15593_v63 = vcombine.high %v1156_v3, %v1172_v41  ;;  %v15048_v2 = vcombine.low %v612_v34, %v628_v59 }
 0x138   :  { %10245 = vmatprep.subr.bf16.mxu1 %v15721_v38  ;;  %10196 = vmatmul.mubr.bf16.vlgmr.msra.gmra.mxu0 %v17246_v23  ;;  %v17623_v38 = vld [vmem:[#allocation4 + $0xd0] sm:$0xff] }
 0x139   :  { %10205 = vmatpush1.bf16.msra.mxu0 %v15208_v25  ;;  %10236 = vmatprep.mubr.bf16.mxu0 %v17223_v42  ;;  %v15080_v25 = vcombine.low %v644_v33, %v660_v31  ;;  %v596_v48 = vunpack.c.l.s8.bf16 %v17623_v38  ;;  %v1076_v33 = vunpack.c.l.s8.bf16 %v17639_v18  ;;  %v17645_v31 = vld [vmem:[#allocation4 + $0x790] sm:$0xff] }
 0x13a   :  { %10155 = vmatmul.mubr.bf16.vlgmr.msra.gmra.mxu1 %v17288_v8  ;;  %10206 = vmatprep.subr.bf16.mxu0 %v15177_v49  ;;  %v15049_v49 = vcombine.high %v612_v34, %v628_v59  ;;  %v17670_v18 = vld [vmem:[#allocation4 + $0x690] sm:$0xff] }
 0x13b   :  { %10246 = vmatpush1.bf16.msra.mxu1 %v15720_v60  ;;  %15817 = vmatprep.mubr.msk.bf16.mxu1 %vm9775_vm0, %v17183_v35  ;;  %v15592_v60 = vcombine.low %v1156_v3, %v1172_v41  ;;  %v15017_v16 = vcombine.high %v580_v37, %v596_v48  ;;  %v17649_v3 = vld [vmem:[#allocation4 + $0xc90] sm:$0xff]  ;;  %v15016_v41 = vcombine.low %v580_v37, %v596_v48 }
 0x13c   :  { %10247 = vmatprep.subr.bf16.mxu1 %v15689_v62  ;;  %v15561_v62 = vcombine.high %v1124_v52, %v1140_v12  ;;  %19983 = vst [vmem:[#allocation25_spill] sm:$0xff] %v17649_v3 }
 0x13d   :  { %10207 = vmatpush1.bf16.msra.mxu0 %v15176_v17  ;;  %v17633_v17 = vld [vmem:[#allocation4 + $0x10] sm:$0xff] }
 0x13e   :  { %10208 = vmatprep.subr.bf16.mxu0 %v15145_v1  ;;  %v17637_v1 = vld [vmem:[#allocation4 + $0x810] sm:$0xff]  ;;  %v548_v50 = vunpack.c.l.s8.bf16 %v17633_v17 }
 0x13f   :  { %10248 = vmatpush1.bf16.msra.mxu1 %v15688_v54  ;;  %v17635_v54 = vld [vmem:[#allocation4 + $0x50] sm:$0xff]  ;;  %19981 = vst [vmem:[#allocation23_spill] sm:$0xff] %v17637_v1 }
 0x140   :  { %10249 = vmatprep.subr.bf16.mxu1 %v15657_v53  ;;  %v15560_v53 = vcombine.low %v1124_v52, %v1140_v12  ;;  %v17654_v52 = vld [vmem:[#allocation4 + $0x710] sm:$0xff] }
 0x141   :  { %10209 = vmatpush1.bf16.msra.mxu0 %v15144_v7  ;;  %v564_v7 = vunpack.c.l.s8.bf16 %v17635_v54  ;;  %v17656_v12 = vld [vmem:[#allocation4 + $0x750] sm:$0xff] }
 0x142   :  { %10210 = vmatprep.subr.bf16.mxu0 %v15113_v32  ;;  %v1060_v32 = vunpack.c.l.s8.bf16 %v17637_v1  ;;  %v17690_v1 = vld [vmem:[#allocation4 + $0x5d0] sm:$0xff] }
 0x143   :  { %10250 = vmatpush1.bf16.msra.mxu1 %v15656_v27  ;;  %v15529_v27 = vcombine.high %v1092_v56, %v1108_v21  ;;  %v14984_v37 = vcombine.low %v548_v50, %v564_v7 }
 0x144   :  { %10251 = vmatprep.subr.bf16.mxu1 %v15625_v28  ;;  %v17647_v28 = vld [vmem:[#allocation4 + $0x7d0] sm:$0xff]  ;;  %v15497_v59 = vcombine.high %v1060_v32, %v1076_v33  ;;  %v15496_v48 = vcombine.low %v1060_v32, %v1076_v33 }
 0x145   :  { %10211 = vmatpush1.bf16.msra.mxu0 %v15112_v58  ;;  %v15528_v58 = vcombine.low %v1092_v56, %v1108_v21  ;;  %v1044_v34 = vunpack.c.l.s8.bf16 %v17647_v28  ;;  %v996_v56 = vunpack.c.l.s8.bf16 %v17654_v52  ;;  %v1012_v21 = vunpack.c.l.s8.bf16 %v17656_v12 }
 0x146   :  { %10212 = vmatprep.subr.bf16.mxu0 %v15081_v29  ;;  %v1028_v29 = vunpack.c.l.s8.bf16 %v17645_v31 }
 0x147   :  { %10252 = vmatpush1.bf16.msra.mxu1 %v15624_v43  ;;  %v14985_v43 = vcombine.high %v548_v50, %v564_v7  ;;  %v17672_v50 = vld [vmem:[#allocation4 + $0x6d0] sm:$0xff]  ;;  %v15433_v33 = vcombine.high %v996_v56, %v1012_v21 }
 0x148   :  { %10253 = vmatprep.subr.bf16.mxu1 %v15593_v63  ;;  %v1348_v63 = vunpack.c.l.s8.bf16 %v17649_v3  ;;  %v15464_v32 = vcombine.low %v1028_v29, %v1044_v34 }
 0x149   :  { %10213 = vmatpush1.bf16.msra.mxu0 %v15080_v25  ;;  %v17658_v25 = vld [vmem:[#allocation4 + $0xc10] sm:$0xff] }
 0x14a   :  { %10214 = vmatprep.subr.bf16.mxu0 %v15049_v49  ;;  %19984 = vst [vmem:[#allocation29_spill] sm:$0xff] %v17658_v25 }
 0x14b   :  { %10254 = vmatpush1.bf16.msra.mxu1 %v15592_v60  ;;  %v17660_v60 = vld [vmem:[#allocation4 + $0xc50] sm:$0xff] }
 0x14c   :  { %10255 = vmatprep.subr.bf16.mxu1 %v15561_v62  ;;  %19985 = vst [vmem:[#allocation30_spill] sm:$0xff] %v17660_v60  ;;  %v15465_v62 = vcombine.high %v1028_v29, %v1044_v34  ;;  %v1332_v3 = vunpack.c.l.s8.bf16 %v17660_v60  ;;  %v773_v60 = vunpack.c.h.s8.bf16 %v17542_v57  ;;  %v17682_v29 = vld [vmem:[#allocation4 + $0x650] sm:$0xff]  ;;  %v15432_v34 = vcombine.low %v996_v56, %v1012_v21 }
 0x14d   :  { %10215 = vmatpush1.bf16.msra.mxu0 %v15048_v2  ;;  %v741_v57 = vunpack.c.h.s8.bf16 %v17556_v36  ;;  %v709_v36 = vunpack.c.h.s8.bf16 %v17568_v40 }
 0x14e   :  { %10216 = vmatprep.subr.bf16.mxu0 %v15017_v16  ;;  %v15784_v16 = vcombine.low %v1348_v63, %v1348_v63 }
 0x14f   :  { %10256 = vmatpush1.bf16.msra.mxu1 %v15560_v53  ;;  %v15785_v53 = vcombine.high %v1348_v63, %v1348_v63 }
 0x150   :  { %10257 = vmatprep.subr.bf16.mxu1 %v15529_v27  ;;  %v1316_v27 = vunpack.c.l.s8.bf16 %v17658_v25  ;;  %v789_v25 = vunpack.c.h.s8.bf16 %v17544_v26  ;;  %v757_v26 = vunpack.c.h.s8.bf16 %v17558_v19  ;;  %v725_v19 = vunpack.c.h.s8.bf16 %v17570_v11 }
 0x151   :  { %10217 = vmatpush1.bf16.msra.mxu0 %v15016_v41  ;;  %v964_v41 = vunpack.c.l.s8.bf16 %v17670_v18  ;;  %v677_v11 = vunpack.c.h.s8.bf16 %v17580_v22 }
 0x152   :  { %v17662_v49 = vpop.f32.mrf.mxu1  ;;  %10218 = vmatprep.subr.bf16.mxu0 %v14985_v43  ;;  %v15753_v63 = vcombine.high %v1316_v27, %v1332_v3  ;;  %v15147_v40 = vcombine.high %v709_v36, %v725_v19 }
 0x153   :  { %10258 = vmatpush1.bf16.msra.mxu1 %v15528_v58  ;;  %v980_v58 = vunpack.c.l.s8.bf16 %v17672_v50 }
 0x154   :  { %v17666_v2 = vpop.f32.mrf.mxu1  ;;  %10259 = vmatprep.subr.bf16.mxu1 %v15497_v59  ;;  %v9805_v59 = vsel %vm9779_vm1, %v15784_v16, 0  ;;  %v15211_v16 = vcombine.high %v773_v60, %v789_v25 }
 0x155   :  { %10219 = vmatpush1.bf16.msra.mxu0 %v14984_v37  ;;  %v15752_v37 = vcombine.low %v1316_v27, %v1332_v3  ;;  %v15400_v56 = vcombine.low %v964_v41, %v980_v58  ;;  %v15210_v3 = vcombine.low %v773_v60, %v789_v25  ;;  %v15178_v25 = vcombine.low %v741_v57, %v757_v26 }
 0x156   :  { %v9955_v7 = vpop.f32.mrf.mxu1  ;;  %10220 = vmatprep.subr.bf16.mxu0 %v15465_v62 }
 0x157   :  { %10260 = vmatpush1.bf16.msra.mxu1 %v15496_v48  ;;  %v17680_v7 = vld [vmem:[#allocation4 + $0x610] sm:$0xff]  ;;  %v15401_v48 = vcombine.high %v964_v41, %v980_v58 }
 0x158   :  { %v9956_v43 = vpop.f32.mrf.mxu1  ;;  %15816 = vmatprep.subr.msk.bf16.mxu1 %vm9779_vm1, %v15785_v53  ;;  %v932_v62 = vunpack.c.l.s8.bf16 %v17680_v7  ;;  %v948_v53 = vunpack.c.l.s8.bf16 %v17682_v29 }
 0x159   :  { %10221 = vmatpush2.bf16.msra.mxu0 %v15464_v32  ;;  %v17688_v43 = vld [vmem:[#allocation4 + $0x590] sm:$0xff]  ;;  %v916_v32 = vunpack.c.l.s8.bf16 %v17690_v1 }
 0x15a   :  { %10222 = vmatprep.subr.bf16.mxu0 %v15433_v33  ;;  %v15369_v21 = vcombine.high %v932_v62, %v948_v53  ;;  %v900_v27 = vunpack.c.l.s8.bf16 %v17688_v43  ;;  %v15179_v33 = vcombine.high %v741_v57, %v757_v26  ;;  %v15368_v41 = vcombine.low %v932_v62, %v948_v53 }
 0x15b   :  { %10274 = vmatpush2.bf16.msra.mxu1 %v9805_v59  ;;  %v17696_v59 = vld [vmem:[#allocation4 + $0x510] sm:$0xff]  ;;  %v15146_v53 = vcombine.low %v709_v36, %v725_v19 }
 0x15c   :  { %10275 = vmatprep.subr.bf16.mxu1 %v15753_v63  ;;  %v17698_v63 = vld [vmem:[#allocation4 + $0x550] sm:$0xff]  ;;  %v15337_v60 = vcombine.high %v900_v27, %v916_v32  ;;  %v868_v58 = vunpack.c.l.s8.bf16 %v17696_v59  ;;  %v15336_v62 = vcombine.low %v900_v27, %v916_v32 }
 0x15d   :  { %10223 = vmatpush2.bf16.msra.mxu0 %v15432_v34  ;;  %v884_v34 = vunpack.c.l.s8.bf16 %v17698_v63 }
 0x15e   :  { %10224 = vmatprep.subr.bf16.mxu0 %v15401_v48  ;;  %v17705_v48 = vld [vmem:[#allocation4 + $0x490] sm:$0xff] }
 0x15f   :  { %10276 = vmatpush2.bf16.msra.mxu1 %v15752_v37  ;;  %v693_v37 = vunpack.c.h.s8.bf16 %v17582_v4  ;;  %v15305_v57 = vcombine.high %v868_v58, %v884_v34  ;;  %v836_v26 = vunpack.c.l.s8.bf16 %v17705_v48  ;;  %v645_v4 = vunpack.c.h.s8.bf16 %v17594_v24 }
 0x160   :  { %10286 = vmatprep.subr.bf16.mxu1 %v15211_v16  ;;  %v17707_v16 = vld [vmem:[#allocation4 + $0x4d0] sm:$0xff]  ;;  %v15304_v32 = vcombine.low %v868_v58, %v884_v34 }
 0x161   :  { %10225 = vmatpush2.bf16.msra.mxu0 %v15400_v56  ;;  %v852_v56 = vunpack.c.l.s8.bf16 %v17707_v16  ;;  %v15115_v22 = vcombine.high %v677_v11, %v693_v37  ;;  %v15114_v19 = vcombine.low %v677_v11, %v693_v37 }
 0x162   :  { %10278 = vmatmul.mubr.bf16.vlgmr.msra.gmra.mxu1 %v17246_v23  ;;  %10226 = vmatprep.subr.bf16.mxu0 %v15369_v21  ;;  %v17714_v21 = vld [vmem:[#allocation4 + $0x410] sm:$0xff] }
 0x163   :  { %10287 = vmatpush1.bf16.msra.mxu1 %v15210_v3  ;;  %10318 = vmatprep.mubr.bf16.mxu1 %v17223_v42  ;;  %v661_v3 = vunpack.c.h.s8.bf16 %v17596_v5  ;;  %v613_v42 = vunpack.c.h.s8.bf16 %v17609_v51  ;;  %v15272_v58 = vcombine.low %v836_v26, %v852_v56  ;;  %v597_v51 = vunpack.c.h.s8.bf16 %v17623_v38 }
 0x164   :  { %10288 = vmatprep.subr.bf16.mxu1 %v15179_v33  ;;  %v17716_v33 = vld [vmem:[#allocation4 + $0x450] sm:$0xff] }
 0x165   :  { %10227 = vmatpush2.bf16.msra.mxu0 %v15368_v41  ;;  %v820_v24 = vunpack.c.l.s8.bf16 %v17716_v33  ;;  %v15082_v11 = vcombine.low %v645_v4, %v661_v3 }
 0x166   :  { %10228 = vmatprep.subr.bf16.mxu0 %v15337_v60  ;;  %v804_v60 = vunpack.c.l.s8.bf16 %v17714_v21 }
 0x167   :  { %10289 = vmatpush1.bf16.msra.mxu1 %v15178_v25  ;;  %v15273_v25 = vcombine.high %v836_v26, %v852_v56 }
 0x168   :  { %10290 = vmatprep.subr.bf16.mxu1 %v15147_v40  ;;  %v9910_v41 = vpop.f32.mrf.mxu0  ;;  %v15083_v40 = vcombine.high %v645_v4, %v661_v3  ;;  %v15241_v37 = vcombine.high %v804_v60, %v820_v24  ;;  %v1269_v4 = vunpack.c.h.s8.bf16 %v17562_v14  ;;  %v565_v3 = vunpack.c.h.s8.bf16 %v17635_v54 }
 0x169   :  { %v17719_v27 = vadd.f32 %v17662_v49, %v9910_v41  ;;  %10229 = vmatpush2.bf16.msra.mxu0 %v15336_v62  ;;  %v629_v49 = vunpack.c.h.s8.bf16 %v17611_v30  ;;  %v15240_v30 = vcombine.low %v804_v60, %v820_v24  ;;  %v1253_v41 = vunpack.c.h.s8.bf16 %v17560_v13 }
 0x16a   :  { %v9912_v36 = vpop.f32.mrf.mxu0  ;;  %10230 = vmatprep.subr.bf16.mxu0 %v15305_v57  ;;  %v1301_v57 = vunpack.c.h.s8.bf16 %v17548_v0  ;;  %v549_v0 = vunpack.c.h.s8.bf16 %v17633_v17  ;;  %v1029_v14 = vunpack.c.h.s8.bf16 %v17645_v31  ;;  %v997_v31 = vunpack.c.h.s8.bf16 %v17654_v52 }
 0x16b   :  { %19986 = vst [vmem:[#allocation31_spill] sm:$0xff] %v17719_v27  ;;  %10291 = vmatpush1.bf16.msra.mxu1 %v15146_v53  ;;  %v17724_v5 = vadd.f32 %v17666_v2, %v9912_v36  ;;  %v1285_v53 = vunpack.c.h.s8.bf16 %v17546_v39  ;;  %v15051_v2 = vcombine.high %v613_v42, %v629_v49  ;;  %v15050_v26 = vcombine.low %v613_v42, %v629_v49 }
 0x16c   :  { %10292 = vmatprep.subr.bf16.mxu1 %v15115_v22  ;;  %v9914_v62 = vpop.f32.mrf.mxu0  ;;  %v581_v22 = vunpack.c.h.s8.bf16 %v17621_v47  ;;  %v1221_v36 = vunpack.c.h.s8.bf16 %v17572_v6  ;;  %v1237_v42 = vunpack.c.h.s8.bf16 %v17574_v55  ;;  %v14987_v13 = vcombine.high %v549_v0, %v565_v3 }
 0x16d   :  { %19987 = vst [vmem:[#allocation32_spill] sm:$0xff] %v17724_v5  ;;  %10231 = vmatpush2.bf16.msra.mxu0 %v15304_v32  ;;  %v15723_v56 = vcombine.high %v1285_v53, %v1301_v57  ;;  %v15722_v47 = vcombine.low %v1285_v53, %v1301_v57  ;;  %v15691_v32 = vcombine.high %v1253_v41, %v1269_v4  ;;  %v1189_v6 = vunpack.c.h.s8.bf16 %v17585_v44 }
 0x16e   :  { %v9915_v34 = vpop.f32.mrf.mxu0  ;;  %10232 = vmatprep.subr.bf16.mxu0 %v15273_v25  ;;  %v15019_v39 = vcombine.high %v581_v22, %v597_v51  ;;  %v15018_v38 = vcombine.low %v581_v22, %v597_v51  ;;  %v15690_v17 = vcombine.low %v1253_v41, %v1269_v4  ;;  %v14986_v54 = vcombine.low %v549_v0, %v565_v3  ;;  %v19989_v4 = vld [vmem:[#allocation24_spill] sm:$0xff]  ;;  %v19990_v3 = vld [vmem:[#allocation25_spill] sm:$0xff] }
 0x16f   :  { %10293 = vmatpush1.bf16.msra.mxu1 %v15114_v19  ;;  %v1045_v19 = vunpack.c.h.s8.bf16 %v17647_v28  ;;  %v15659_v25 = vcombine.high %v1221_v36, %v1237_v42  ;;  %v1205_v55 = vunpack.c.h.s8.bf16 %v17587_v45  ;;  %v1013_v28 = vunpack.c.h.s8.bf16 %v17656_v12 }
 0x170   :  { %10294 = vmatprep.subr.bf16.mxu1 %v15083_v40  ;;  %v15658_v24 = vcombine.low %v1221_v36, %v1237_v42  ;;  %v1157_v62 = vunpack.c.h.s8.bf16 %v17600_v15  ;;  %v965_v45 = vunpack.c.h.s8.bf16 %v17670_v18  ;;  %v981_v34 = vunpack.c.h.s8.bf16 %v17672_v50 }
 0x171   :  { %10233 = vmatpush2.bf16.msra.mxu0 %v15272_v58  ;;  %v15467_v60 = vcombine.high %v1029_v14, %v1045_v19  ;;  %v15466_v40 = vcombine.low %v1029_v14, %v1045_v19  ;;  %v15627_v49 = vcombine.high %v1189_v6, %v1205_v55  ;;  %v1173_v58 = vunpack.c.h.s8.bf16 %v17602_v46 }
 0x172   :  { %10234 = vmatprep.subr.bf16.mxu0 %v15241_v37  ;;  %v15435_v44 = vcombine.high %v997_v31, %v1013_v28  ;;  %v15626_v52 = vcombine.low %v1189_v6, %v1205_v55  ;;  %v15434_v12 = vcombine.low %v997_v31, %v1013_v28  ;;  %v1125_v37 = vunpack.c.h.s8.bf16 %v17613_v20  ;;  %v19992_v6 = vld [vmem:[#allocation29_spill] sm:$0xff] }
 0x173   :  { %10295 = vmatpush1.bf16.msra.mxu1 %v15082_v11  ;;  %v15595_v11 = vcombine.high %v1157_v62, %v1173_v58  ;;  %v1141_v53 = vunpack.c.h.s8.bf16 %v17615_v9  ;;  %v15403_v15 = vcombine.high %v965_v45, %v981_v34  ;;  %v933_v46 = vunpack.c.h.s8.bf16 %v17680_v7 }
 0x174   :  { %10296 = vmatprep.subr.bf16.mxu1 %v15051_v2  ;;  %v949_v57 = vunpack.c.h.s8.bf16 %v17682_v29  ;;  %v15594_v18 = vcombine.low %v1157_v62, %v1173_v58  ;;  %v15402_v50 = vcombine.low %v965_v45, %v981_v34  ;;  %v1093_v22 = vunpack.c.h.s8.bf16 %v17625_v10  ;;  %v17780_v45 = vld [vmem:[#allocation4 + $0xbd8] sm:$0xff] }
 0x175   :  { %10235 = vmatpush2.bf16.msra.mxu0 %v15240_v30  ;;  %v15563_v2 = vcombine.high %v1125_v37, %v1141_v53  ;;  %v1109_v51 = vunpack.c.h.s8.bf16 %v17627_v61  ;;  %v901_v9 = vunpack.c.h.s8.bf16 %v17688_v43  ;;  %v917_v30 = vunpack.c.h.s8.bf16 %v17690_v1 }
 0x176   :  { %10327 = vmatprep.subr.bf16.mxu0 %v15723_v56  ;;  %v15371_v20 = vcombine.high %v933_v46, %v949_v57  ;;  %v15562_v7 = vcombine.low %v1125_v37, %v1141_v53  ;;  %v15370_v29 = vcombine.low %v933_v46, %v949_v57  ;;  %v19988_v56 = vld [vmem:[#allocation23_spill] sm:$0xff]  ;;  %v869_v61 = vunpack.c.h.s8.bf16 %v17696_v59 }
 0x177   :  { %10297 = vmatpush1.bf16.msra.mxu1 %v15050_v26  ;;  %v15531_v26 = vcombine.high %v1093_v22, %v1109_v51  ;;  %v1061_v41 = vunpack.c.h.s8.bf16 %v19988_v56  ;;  %v15339_v10 = vcombine.high %v901_v9, %v917_v30  ;;  %v885_v0 = vunpack.c.h.s8.bf16 %v17698_v63 }
 0x178   :  { %10298 = vmatprep.subr.bf16.mxu1 %v15019_v39  ;;  %10237 = vmatmul.mubr.bf16.vlgmr.msra.gmra.mxu0 %v17288_v8  ;;  %v1077_v39 = vunpack.c.h.s8.bf16 %v19989_v4  ;;  %v15530_v43 = vcombine.low %v1093_v22, %v1109_v51  ;;  %v1349_v1 = vunpack.c.h.s8.bf16 %v19990_v3  ;;  %v837_v36 = vunpack.c.h.s8.bf16 %v17705_v48  ;;  %v17794_v22 = vld [vmem:[#allocation4 + $0xb58] sm:$0xff] }
 0x179   :  { %10328 = vmatpush1.bf16.msra.mxu0 %v15722_v47  ;;  %15819 = vmatprep.mubr.msk.bf16.mxu0 %vm9775_vm0, %v17183_v35  ;;  %v15338_v47 = vcombine.low %v901_v9, %v917_v30  ;;  %v853_v42 = vunpack.c.h.s8.bf16 %v17707_v16  ;;  %v15306_v59 = vcombine.low %v869_v61, %v885_v0  ;;  %v1317_v55 = vunpack.c.h.s8.bf16 %v19992_v6  ;;  %v17802_v4 = vld [vmem:[#allocation4 + $0x2d8] sm:$0xff] }
 0x17a   :  { %10329 = vmatprep.subr.bf16.mxu0 %v15691_v32  ;;  %v15307_v32 = vcombine.high %v869_v61, %v885_v0  ;;  %v15498_v19 = vcombine.low %v1061_v41, %v1077_v39  ;;  %v15787_v63 = vcombine.high %v1349_v1, %v1349_v1  ;;  %v805_v16 = vunpack.c.h.s8.bf16 %v17714_v21 }
 0x17b   :  { %10299 = vmatpush1.bf16.msra.mxu1 %v15018_v38  ;;  %v15499_v38 = vcombine.high %v1061_v41, %v1077_v39  ;;  %v15275_v48 = vcombine.high %v837_v36, %v853_v42  ;;  %v1302_v57 = vunpack.c.l.s8.bf16 %v17780_v45  ;;  %v1270_v56 = vunpack.c.l.s8.bf16 %v17794_v22  ;;  %v17800_v41 = vld [vmem:[#allocation4 + $0x298] sm:$0xff] }
 0x17c   :  { %10300 = vmatprep.subr.bf16.mxu1 %v14987_v13  ;;  %v17804_v39 = vld [vmem:[#allocation4 + $0xa98] sm:$0xff]  ;;  %v710_v3 = vunpack.c.l.s8.bf16 %v17800_v41 }
 0x17d   :  { %10330 = vmatpush1.bf16.msra.mxu0 %v15690_v17 }
 0x17e   :  { %10331 = vmatprep.subr.bf16.mxu0 %v15659_v25  ;;  %v15786_v25 = vcombine.low %v1349_v1, %v1349_v1  ;;  %v726_v1 = vunpack.c.l.s8.bf16 %v17802_v4 }
 0x17f   :  { %10301 = vmatpush1.bf16.msra.mxu1 %v14986_v54 }
 0x180   :  { %10302 = vmatprep.subr.bf16.mxu1 %v15467_v60  ;;  %v19993_v60 = vld [vmem:[#allocation30_spill] sm:$0xff]  ;;  %v9811_v21 = vsel %vm9779_vm1, %v15786_v25, 0 }
 0x181   :  { %10332 = vmatpush1.bf16.msra.mxu0 %v15658_v24  ;;  %v1333_v31 = vunpack.c.h.s8.bf16 %v19993_v60  ;;  %v821_v24 = vunpack.c.h.s8.bf16 %v17716_v33 }
 0x182   :  { %10333 = vmatprep.subr.bf16.mxu0 %v15627_v49  ;;  %v17774_v49 = vld [vmem:[#allocation4 + $0x3d8] sm:$0xff] }
 0x183   :  { %10303 = vmatpush2.bf16.msra.mxu1 %v15466_v40  ;;  %v17772_v40 = vld [vmem:[#allocation4 + $0x398] sm:$0xff]  ;;  %v15755_v33 = vcombine.high %v1317_v55, %v1333_v31  ;;  %v790_v37 = vunpack.c.l.s8.bf16 %v17774_v49  ;;  %v15754_v51 = vcombine.low %v1317_v55, %v1333_v31 }
 0x184   :  { %10304 = vmatprep.subr.bf16.mxu1 %v15435_v44  ;;  %v17778_v44 = vld [vmem:[#allocation4 + $0xb98] sm:$0xff] }
 0x185   :  { %10334 = vmatpush1.bf16.msra.mxu0 %v15626_v52  ;;  %v15274_v52 = vcombine.low %v837_v36, %v853_v42  ;;  %v1286_v46 = vunpack.c.l.s8.bf16 %v17778_v44  ;;  %v17812_v36 = vld [vmem:[#allocation4 + $0x218] sm:$0xff] }
 0x186   :  { %10335 = vmatprep.subr.bf16.mxu0 %v15595_v11  ;;  %v774_v11 = vunpack.c.l.s8.bf16 %v17772_v40  ;;  %v17814_v42 = vld [vmem:[#allocation4 + $0x258] sm:$0xff] }
 0x187   :  { %10305 = vmatpush2.bf16.msra.mxu1 %v15434_v12  ;;  %v15724_v0 = vcombine.low %v1286_v46, %v1302_v57  ;;  %v694_v25 = vunpack.c.l.s8.bf16 %v17814_v42  ;;  %v17826_v31 = vld [vmem:[#allocation4 + $0x198] sm:$0xff] }
 0x188   :  { %10306 = vmatprep.subr.bf16.mxu1 %v15403_v15  ;;  %v15243_v15 = vcombine.high %v805_v16, %v821_v24  ;;  %v15213_v9 = vcombine.high %v774_v11, %v790_v37  ;;  %v15212_v61 = vcombine.low %v774_v11, %v790_v37 }
 0x189   :  { %10336 = vmatpush1.bf16.msra.mxu0 %v15594_v18  ;;  %v17788_v18 = vld [vmem:[#allocation4 + $0x318] sm:$0xff] }
 0x18a   :  { %10337 = vmatprep.subr.bf16.mxu0 %v15563_v2  ;;  %v17792_v2 = vld [vmem:[#allocation4 + $0xb18] sm:$0xff]  ;;  %v742_v30 = vunpack.c.l.s8.bf16 %v17788_v18 }
 0x18b   :  { %10307 = vmatpush2.bf16.msra.mxu1 %v15402_v50  ;;  %v17790_v50 = vld [vmem:[#allocation4 + $0x358] sm:$0xff] }
 0x18c   :  { %10308 = vmatprep.subr.bf16.mxu1 %v15371_v20  ;;  %v15242_v20 = vcombine.low %v805_v16, %v821_v24  ;;  %v17834_v16 = vld [vmem:[#allocation4 + $0x9d8] sm:$0xff]  ;;  %v19995_v24 = vld [vmem:[#allocation26_spill] sm:$0xff] }
 0x18d   :  { %10338 = vmatpush1.bf16.msra.mxu0 %v15562_v7  ;;  %v758_v7 = vunpack.c.l.s8.bf16 %v17790_v50  ;;  %v1174_v37 = vunpack.c.l.s8.bf16 %v17834_v16 }
 0x18e   :  { %10339 = vmatprep.subr.bf16.mxu0 %v15531_v26  ;;  %v1254_v26 = vunpack.c.l.s8.bf16 %v17792_v2 }
 0x18f   :  { %10309 = vmatpush2.bf16.msra.mxu1 %v15370_v29  ;;  %v15725_v29 = vcombine.high %v1286_v46, %v1302_v57  ;;  %v17845_v46 = vld [vmem:[#allocation4 + $0x918] sm:$0xff] }
 0x190   :  { %10310 = vmatprep.subr.bf16.mxu1 %v15339_v10  ;;  %v10033_v13 = vpop.f32.mrf.mxu0  ;;  %v17806_v10 = vld [vmem:[#allocation4 + $0xad8] sm:$0xff] }
 0x191   :  { %10340 = vmatpush1.bf16.msra.mxu0 %v15530_v43  ;;  %v15181_v43 = vcombine.high %v742_v30, %v758_v7  ;;  %v17847_v57 = vld [vmem:[#allocation4 + $0x958] sm:$0xff] }
 0x192   :  { %v9992_v14 = vpop.f32.mrf.mxu1  ;;  %v10035_v54 = vpop.f32.mrf.mxu0  ;;  %10341 = vmatprep.subr.bf16.mxu0 %v15499_v38  ;;  %v1222_v38 = vunpack.c.l.s8.bf16 %v17804_v39 }
 0x193   :  { %v17766_v17 = vadd.f32 %v10033_v13, %v9992_v14  ;;  %10311 = vmatpush2.bf16.msra.mxu1 %v15338_v47  ;;  %v15693_v47 = vcombine.high %v1254_v26, %v1270_v56  ;;  %v17817_v13 = vld [vmem:[#allocation4 + $0xa18] sm:$0xff] }
 0x194   :  { %v9994_v28 = vpop.f32.mrf.mxu1  ;;  %10312 = vmatprep.subr.bf16.mxu1 %v15307_v32  ;;  %v10037_v58 = vpop.f32.mrf.mxu0  ;;  %v1238_v32 = vunpack.c.l.s8.bf16 %v17806_v10  ;;  %v17819_v14 = vld [vmem:[#allocation4 + $0xa58] sm:$0xff]  ;;  %v1190_v55 = vunpack.c.l.s8.bf16 %v17817_v13 }
 0x195   :  { %19991 = vst [vmem:[#allocation23_spill] sm:$0xff] %v17766_v17  ;;  %v17776_v62 = vadd.f32 %v10035_v54, %v9994_v28  ;;  %10342 = vmatpush1.bf16.msra.mxu0 %v15498_v19  ;;  %v15692_v19 = vcombine.low %v1254_v26, %v1270_v56  ;;  %v678_v54 = vunpack.c.l.s8.bf16 %v17812_v36  ;;  %v1206_v60 = vunpack.c.l.s8.bf16 %v17819_v14  ;;  %v17828_v28 = vld [vmem:[#allocation4 + $0x1d8] sm:$0xff] }
 0x196   :  { %v9996_v34 = vpop.f32.mrf.mxu1  ;;  %v10038_v12 = vpop.f32.mrf.mxu0  ;;  %15818 = vmatprep.subr.msk.bf16.mxu0 %vm9779_vm1, %v15787_v63  ;;  %v15149_v63 = vcombine.high %v710_v3, %v726_v1  ;;  %v15661_v6 = vcombine.high %v1222_v38, %v1238_v32  ;;  %v15148_v58 = vcombine.low %v710_v3, %v726_v1  ;;  %v1126_v26 = vunpack.c.l.s8.bf16 %v17845_v46  ;;  %v17859_v3 = vld [vmem:[#allocation4 + $0x8d8] sm:$0xff] }
 0x197   :  { %19994 = vst [vmem:[#allocation24_spill] sm:$0xff] %v17776_v62  ;;  %10313 = vmatpush2.bf16.msra.mxu1 %v15306_v59  ;;  %v15180_v59 = vcombine.low %v742_v30, %v758_v7  ;;  %v15660_v34 = vcombine.low %v1222_v38, %v1238_v32  ;;  %v646_v12 = vunpack.c.l.s8.bf16 %v17826_v31  ;;  %v1142_v56 = vunpack.c.l.s8.bf16 %v17847_v57  ;;  %v17890_v17 = vld [vmem:[#allocation4 + $0xc18] sm:$0xff] }
 0x198   :  { %v9997_v53 = vpop.f32.mrf.mxu1  ;;  %10314 = vmatprep.subr.bf16.mxu1 %v15275_v48  ;;  %v17832_v48 = vld [vmem:[#allocation4 + $0x998] sm:$0xff]  ;;  %19999 = vst [vmem:[#allocation33_spill] sm:$0xff] %v17890_v17  ;;  %v1318_v5 = vunpack.c.l.s8.bf16 %v17890_v17  ;;  %v791_v17 = vunpack.c.h.s8.bf16 %v17774_v49  ;;  %v759_v49 = vunpack.c.h.s8.bf16 %v17790_v50  ;;  %v727_v50 = vunpack.c.h.s8.bf16 %v17802_v4 }
 0x199   :  { %10356 = vmatpush2.bf16.msra.mxu0 %v9811_v21  ;;  %v662_v21 = vunpack.c.l.s8.bf16 %v17828_v28  ;;  %v1158_v11 = vunpack.c.l.s8.bf16 %v17832_v48  ;;  %v17841_v53 = vld [vmem:[#allocation4 + $0x118] sm:$0xff]  ;;  %v679_v4 = vunpack.c.h.s8.bf16 %v17812_v36 }
 0x19a   :  { %10357 = vmatprep.subr.bf16.mxu0 %v15755_v33  ;;  %v15629_v33 = vcombine.high %v1190_v55, %v1206_v60  ;;  %v614_v30 = vunpack.c.l.s8.bf16 %v17841_v53 }
 0x19b   :  { %10315 = vmatpush2.bf16.msra.mxu1 %v15274_v52  ;;  %v15117_v52 = vcombine.high %v678_v54, %v694_v25  ;;  %v15084_v1 = vcombine.low %v646_v12, %v662_v21 }
 0x19c   :  { %10316 = vmatprep.subr.bf16.mxu1 %v15243_v15  ;;  %v17843_v15 = vld [vmem:[#allocation4 + $0x158] sm:$0xff] }
 0x19d   :  { %10358 = vmatpush2.bf16.msra.mxu0 %v15754_v51  ;;  %v15116_v51 = vcombine.low %v678_v54, %v694_v25  ;;  %v630_v7 = vunpack.c.l.s8.bf16 %v17843_v15  ;;  %v1110_v54 = vunpack.c.l.s8.bf16 %v17859_v3  ;;  %v17865_v25 = vld [vmem:[#allocation4 + $0x18] sm:$0xff] }
 0x19e   :  { %10368 = vmatprep.subr.bf16.mxu0 %v15213_v9  ;;  %v15085_v9 = vcombine.high %v646_v12, %v662_v21  ;;  %v550_v12 = vunpack.c.l.s8.bf16 %v17865_v25 }
 0x19f   :  { %10317 = vmatpush2.bf16.msra.mxu1 %v15242_v20  ;;  %v15628_v20 = vcombine.low %v1190_v55, %v1206_v60  ;;  %v15053_v38 = vcombine.high %v614_v30, %v630_v7  ;;  %v17869_v55 = vld [vmem:[#allocation4 + $0x818] sm:$0xff] }
 0x1a0   :  { %10409 = vmatprep.subr.bf16.mxu1 %v15725_v29  ;;  %10360 = vmatmul.mubr.bf16.vlgmr.msra.gmra.mxu0 %v17246_v23  ;;  %v15597_v29 = vcombine.high %v1158_v11, %v1174_v37  ;;  %19996 = vst [vmem:[#allocation25_spill] sm:$0xff] %v17869_v55  ;;  %v17871_v60 = vld [vmem:[#allocation4 + $0x858] sm:$0xff] }
 0x1a1   :  { %10369 = vmatpush1.bf16.msra.mxu0 %v15212_v61  ;;  %10400 = vmatprep.mubr.bf16.mxu0 %v19995_v24  ;;  %v17853_v61 = vld [vmem:[#allocation4 + $0x98] sm:$0xff]  ;;  %19997 = vst [vmem:[#allocation29_spill] sm:$0xff] %v17871_v60 }
 0x1a2   :  { %10319 = vmatmul.mubr.bf16.vlgmr.msra.gmra.mxu1 %v17288_v8  ;;  %10370 = vmatprep.subr.bf16.mxu0 %v15181_v43  ;;  %v17857_v43 = vld [vmem:[#allocation4 + $0x898] sm:$0xff]  ;;  %v582_v32 = vunpack.c.l.s8.bf16 %v17853_v61 }
 0x1a3   :  { %10410 = vmatpush1.bf16.msra.mxu1 %v15724_v0  ;;  %15821 = vmatprep.mubr.msk.bf16.mxu1 %vm9775_vm0, %v17183_v35  ;;  %v17855_v0 = vld [vmem:[#allocation4 + $0xd8] sm:$0xff] }
 0x1a4   :  { %10411 = vmatprep.subr.bf16.mxu1 %v15693_v47  ;;  %v15596_v47 = vcombine.low %v1158_v11, %v1174_v37  ;;  %v1062_v11 = vunpack.c.l.s8.bf16 %v17869_v55  ;;  %v1078_v37 = vunpack.c.l.s8.bf16 %v17871_v60  ;;  %v17902_v60 = vld [vmem:[#allocation4 + $0x698] sm:$0xff] }
 0x1a5   :  { %10371 = vmatpush1.bf16.msra.mxu0 %v15180_v59  ;;  %v598_v59 = vunpack.c.l.s8.bf16 %v17855_v0  ;;  %v17922_v55 = vld [vmem:[#allocation4 + $0x5d8] sm:$0xff] }
 0x1a6   :  { %10372 = vmatprep.subr.bf16.mxu0 %v15149_v63  ;;  %v1094_v63 = vunpack.c.l.s8.bf16 %v17857_v43 }
 0x1a7   :  { %10412 = vmatpush1.bf16.msra.mxu1 %v15692_v19  ;;  %v15565_v19 = vcombine.high %v1126_v26, %v1142_v56 }
 0x1a8   :  { %10413 = vmatprep.subr.bf16.mxu1 %v15661_v6  ;;  %v17867_v6 = vld [vmem:[#allocation4 + $0x58] sm:$0xff] }
 0x1a9   :  { %10373 = vmatpush1.bf16.msra.mxu0 %v15148_v58  ;;  %v15052_v58 = vcombine.low %v614_v30, %v630_v7  ;;  %v566_v21 = vunpack.c.l.s8.bf16 %v17867_v6  ;;  %v15020_v30 = vcombine.low %v582_v32, %v598_v59  ;;  %v15532_v7 = vcombine.low %v1094_v63, %v1110_v54 }
 0x1aa   :  { %10374 = vmatprep.subr.bf16.mxu0 %v15117_v52  ;;  %v15021_v52 = vcombine.high %v582_v32, %v598_v59 }
 0x1ab   :  { %10414 = vmatpush1.bf16.msra.mxu1 %v15660_v34  ;;  %v15564_v34 = vcombine.low %v1126_v26, %v1142_v56  ;;  %v14988_v59 = vcombine.low %v550_v12, %v566_v21 }
 0x1ac   :  { %10415 = vmatprep.subr.bf16.mxu1 %v15629_v33  ;;  %v15533_v33 = vcombine.high %v1094_v63, %v1110_v54  ;;  %v15500_v63 = vcombine.low %v1062_v11, %v1078_v37 }
 0x1ad   :  { %10375 = vmatpush1.bf16.msra.mxu0 %v15116_v51  ;;  %v17877_v51 = vld [vmem:[#allocation4 + $0x798] sm:$0xff] }
 0x1ae   :  { %10376 = vmatprep.subr.bf16.mxu0 %v15085_v9  ;;  %v17881_v9 = vld [vmem:[#allocation4 + $0xc98] sm:$0xff]  ;;  %v1030_v26 = vunpack.c.l.s8.bf16 %v17877_v51 }
 0x1af   :  { %10416 = vmatpush1.bf16.msra.mxu1 %v15628_v20  ;;  %v17879_v20 = vld [vmem:[#allocation4 + $0x7d8] sm:$0xff]  ;;  %19998 = vst [vmem:[#allocation30_spill] sm:$0xff] %v17881_v9 }
 0x1b0   :  { %10417 = vmatprep.subr.bf16.mxu1 %v15597_v29  ;;  %v14989_v29 = vcombine.high %v550_v12, %v566_v21  ;;  %v1046_v56 = vunpack.c.l.s8.bf16 %v17879_v20  ;;  %v17904_v12 = vld [vmem:[#allocation4 + $0x6d8] sm:$0xff] }
 0x1b1   :  { %10377 = vmatpush1.bf16.msra.mxu0 %v15084_v1  ;;  %v15501_v1 = vcombine.high %v1062_v11, %v1078_v37 }
 0x1b2   :  { %10378 = vmatprep.subr.bf16.mxu0 %v15053_v38  ;;  %v17886_v38 = vld [vmem:[#allocation4 + $0x718] sm:$0xff]  ;;  %v15469_v54 = vcombine.high %v1030_v26, %v1046_v56  ;;  %v15468_v11 = vcombine.low %v1030_v26, %v1046_v56 }
 0x1b3   :  { %10418 = vmatpush1.bf16.msra.mxu1 %v15596_v47  ;;  %v1350_v47 = vunpack.c.l.s8.bf16 %v17881_v9  ;;  %v17914_v26 = vld [vmem:[#allocation4 + $0x658] sm:$0xff] }
 0x1b4   :  { %10419 = vmatprep.subr.bf16.mxu1 %v15565_v19  ;;  %v17888_v19 = vld [vmem:[#allocation4 + $0x758] sm:$0xff] }
 0x1b5   :  { %10379 = vmatpush1.bf16.msra.mxu0 %v15052_v58  ;;  %v17892_v58 = vld [vmem:[#allocation4 + $0xc58] sm:$0xff]  ;;  %v15789_v27 = vcombine.high %v1350_v47, %v1350_v47  ;;  %v15788_v62 = vcombine.low %v1350_v47, %v1350_v47 }
 0x1b6   :  { %10380 = vmatprep.subr.bf16.mxu0 %v15021_v52  ;;  %20000 = vst [vmem:[#allocation34_spill] sm:$0xff] %v17892_v58  ;;  %v1014_v52 = vunpack.c.l.s8.bf16 %v17888_v19  ;;  %v1334_v9 = vunpack.c.l.s8.bf16 %v17892_v58  ;;  %v775_v58 = vunpack.c.h.s8.bf16 %v17772_v40  ;;  %v743_v40 = vunpack.c.h.s8.bf16 %v17788_v18 }
 0x1b7   :  { %10420 = vmatpush1.bf16.msra.mxu1 %v15564_v34  ;;  %v998_v34 = vunpack.c.l.s8.bf16 %v17886_v38  ;;  %v711_v18 = vunpack.c.h.s8.bf16 %v17800_v41 }
 0x1b8   :  { %10421 = vmatprep.subr.bf16.mxu1 %v15533_v33  ;;  %v15757_v47 = vcombine.high %v1318_v5, %v1334_v9 }
 0x1b9   :  { %10381 = vmatpush1.bf16.msra.mxu0 %v15020_v30  ;;  %v15437_v37 = vcombine.high %v998_v34, %v1014_v52  ;;  %v966_v30 = vunpack.c.l.s8.bf16 %v17902_v60  ;;  %v15436_v56 = vcombine.low %v998_v34, %v1014_v52  ;;  %v15151_v41 = vcombine.high %v711_v18, %v727_v50 }
 0x1ba   :  { %v17894_v32 = vpop.f32.mrf.mxu1  ;;  %10382 = vmatprep.subr.bf16.mxu0 %v14989_v29 }
 0x1bb   :  { %10422 = vmatpush1.bf16.msra.mxu1 %v15532_v7  ;;  %v982_v7 = vunpack.c.l.s8.bf16 %v17904_v12 }
 0x1bc   :  { %v17898_v33 = vpop.f32.mrf.mxu1  ;;  %10423 = vmatprep.subr.bf16.mxu1 %v15501_v1  ;;  %v9817_v1 = vsel %vm9779_vm1, %v15788_v62, 0  ;;  %v15215_v62 = vcombine.high %v775_v58, %v791_v17 }
 0x1bd   :  { %10383 = vmatpush1.bf16.msra.mxu0 %v14988_v59  ;;  %v15756_v59 = vcombine.low %v1318_v5, %v1334_v9  ;;  %v15404_v34 = vcombine.low %v966_v30, %v982_v7  ;;  %v15214_v5 = vcombine.low %v775_v58, %v791_v17  ;;  %v15182_v17 = vcombine.low %v743_v40, %v759_v49 }
 0x1be   :  { %v10119_v21 = vpop.f32.mrf.mxu1  ;;  %10384 = vmatprep.subr.bf16.mxu0 %v15469_v54 }
 0x1bf   :  { %10424 = vmatpush1.bf16.msra.mxu1 %v15500_v63  ;;  %v17912_v21 = vld [vmem:[#allocation4 + $0x618] sm:$0xff]  ;;  %v15405_v63 = vcombine.high %v966_v30, %v982_v7 }
 0x1c0   :  { %v10120_v29 = vpop.f32.mrf.mxu1  ;;  %15820 = vmatprep.subr.msk.bf16.mxu1 %vm9779_vm1, %v15789_v27  ;;  %v934_v54 = vunpack.c.l.s8.bf16 %v17912_v21  ;;  %v950_v27 = vunpack.c.l.s8.bf16 %v17914_v26 }
 0x1c1   :  { %10385 = vmatpush2.bf16.msra.mxu0 %v15468_v11  ;;  %v17920_v29 = vld [vmem:[#allocation4 + $0x598] sm:$0xff]  ;;  %v918_v11 = vunpack.c.l.s8.bf16 %v17922_v55 }
 0x1c2   :  { %10386 = vmatprep.subr.bf16.mxu0 %v15437_v37  ;;  %v15373_v9 = vcombine.high %v934_v54, %v950_v27  ;;  %v902_v52 = vunpack.c.l.s8.bf16 %v17920_v29  ;;  %v15183_v37 = vcombine.high %v743_v40, %v759_v49  ;;  %v15372_v30 = vcombine.low %v934_v54, %v950_v27 }
 0x1c3   :  { %10438 = vmatpush2.bf16.msra.mxu1 %v9817_v1  ;;  %v17928_v1 = vld [vmem:[#allocation4 + $0x518] sm:$0xff]  ;;  %v15150_v27 = vcombine.low %v711_v18, %v727_v50 }
 0x1c4   :  { %10439 = vmatprep.subr.bf16.mxu1 %v15757_v47  ;;  %v17930_v47 = vld [vmem:[#allocation4 + $0x558] sm:$0xff]  ;;  %v15341_v58 = vcombine.high %v902_v52, %v918_v11  ;;  %v870_v7 = vunpack.c.l.s8.bf16 %v17928_v1  ;;  %v15340_v54 = vcombine.low %v902_v52, %v918_v11 }
 0x1c5   :  { %10387 = vmatpush2.bf16.msra.mxu0 %v15436_v56  ;;  %v886_v56 = vunpack.c.l.s8.bf16 %v17930_v47 }
 0x1c6   :  { %10388 = vmatprep.subr.bf16.mxu0 %v15405_v63  ;;  %v17937_v63 = vld [vmem:[#allocation4 + $0x498] sm:$0xff] }
 0x1c7   :  { %10440 = vmatpush2.bf16.msra.mxu1 %v15756_v59  ;;  %v695_v59 = vunpack.c.h.s8.bf16 %v17814_v42  ;;  %v15309_v40 = vcombine.high %v870_v7, %v886_v56  ;;  %v838_v49 = vunpack.c.l.s8.bf16 %v17937_v63  ;;  %v647_v42 = vunpack.c.h.s8.bf16 %v17826_v31 }
 0x1c8   :  { %10450 = vmatprep.subr.bf16.mxu1 %v15215_v62  ;;  %v17939_v62 = vld [vmem:[#allocation4 + $0x4d8] sm:$0xff]  ;;  %v15308_v11 = vcombine.low %v870_v7, %v886_v56 }
 0x1c9   :  { %10389 = vmatpush2.bf16.msra.mxu0 %v15404_v34  ;;  %v854_v34 = vunpack.c.l.s8.bf16 %v17939_v62  ;;  %v15119_v36 = vcombine.high %v679_v4, %v695_v59  ;;  %v15118_v50 = vcombine.low %v679_v4, %v695_v59 }
 0x1ca   :  { %10442 = vmatmul.mubr.bf16.vlgmr.msra.gmra.mxu1 %v17246_v23  ;;  %10390 = vmatprep.subr.bf16.mxu0 %v15373_v9  ;;  %v17946_v9 = vld [vmem:[#allocation4 + $0x418] sm:$0xff] }
 0x1cb   :  { %10451 = vmatpush1.bf16.msra.mxu1 %v15214_v5  ;;  %10482 = vmatprep.mubr.bf16.mxu1 %v19995_v24  ;;  %v663_v5 = vunpack.c.h.s8.bf16 %v17828_v28  ;;  %v615_v24 = vunpack.c.h.s8.bf16 %v17841_v53  ;;  %v15276_v7 = vcombine.low %v838_v49, %v854_v34  ;;  %v599_v53 = vunpack.c.h.s8.bf16 %v17855_v0 }
 0x1cc   :  { %10452 = vmatprep.subr.bf16.mxu1 %v15183_v37  ;;  %v17948_v37 = vld [vmem:[#allocation4 + $0x458] sm:$0xff] }
 0x1cd   :  { %10391 = vmatpush2.bf16.msra.mxu0 %v15372_v30  ;;  %v822_v31 = vunpack.c.l.s8.bf16 %v17948_v37  ;;  %v15086_v4 = vcombine.low %v647_v42, %v663_v5 }
 0x1ce   :  { %10392 = vmatprep.subr.bf16.mxu0 %v15341_v58  ;;  %v806_v58 = vunpack.c.l.s8.bf16 %v17946_v9 }
 0x1cf   :  { %10453 = vmatpush1.bf16.msra.mxu1 %v15182_v17  ;;  %v15277_v17 = vcombine.high %v838_v49, %v854_v34 }
 0x1d0   :  { %10454 = vmatprep.subr.bf16.mxu1 %v15151_v41  ;;  %v10074_v30 = vpop.f32.mrf.mxu0  ;;  %v15087_v41 = vcombine.high %v647_v42, %v663_v5  ;;  %v15245_v59 = vcombine.high %v806_v58, %v822_v31  ;;  %v1271_v42 = vunpack.c.h.s8.bf16 %v17794_v22  ;;  %v567_v5 = vunpack.c.h.s8.bf16 %v17867_v6 }
 0x1d1   :  { %v17951_v52 = vadd.f32 %v17894_v32, %v10074_v30  ;;  %10393 = vmatpush2.bf16.msra.mxu0 %v15340_v54  ;;  %v631_v32 = vunpack.c.h.s8.bf16 %v17843_v15  ;;  %v15244_v15 = vcombine.low %v806_v58, %v822_v31  ;;  %v1255_v30 = vunpack.c.h.s8.bf16 %v17792_v2 }
 0x1d2   :  { %v10076_v18 = vpop.f32.mrf.mxu0  ;;  %10394 = vmatprep.subr.bf16.mxu0 %v15309_v40  ;;  %v1303_v40 = vunpack.c.h.s8.bf16 %v17780_v45  ;;  %v551_v45 = vunpack.c.h.s8.bf16 %v17865_v25  ;;  %v1031_v22 = vunpack.c.h.s8.bf16 %v17877_v51  ;;  %v999_v51 = vunpack.c.h.s8.bf16 %v17886_v38 }
 0x1d3   :  { %20001 = vst [vmem:[#allocation35_spill] sm:$0xff] %v17951_v52  ;;  %10455 = vmatpush1.bf16.msra.mxu1 %v15150_v27  ;;  %v17956_v28 = vadd.f32 %v17898_v33, %v10076_v18  ;;  %v1287_v27 = vunpack.c.h.s8.bf16 %v17778_v44  ;;  %v15055_v33 = vcombine.high %v615_v24, %v631_v32  ;;  %v15054_v49 = vcombine.low %v615_v24, %v631_v32 }
 0x1d4   :  { %10456 = vmatprep.subr.bf16.mxu1 %v15119_v36  ;;  %v10078_v54 = vpop.f32.mrf.mxu0  ;;  %v583_v36 = vunpack.c.h.s8.bf16 %v17853_v61  ;;  %v1223_v18 = vunpack.c.h.s8.bf16 %v17804_v39  ;;  %v1239_v24 = vunpack.c.h.s8.bf16 %v17806_v10  ;;  %v14991_v2 = vcombine.high %v551_v45, %v567_v5 }
 0x1d5   :  { %20002 = vst [vmem:[#allocation36_spill] sm:$0xff] %v17956_v28  ;;  %10395 = vmatpush2.bf16.msra.mxu0 %v15308_v11  ;;  %v15727_v34 = vcombine.high %v1287_v27, %v1303_v40  ;;  %v15726_v61 = vcombine.low %v1287_v27, %v1303_v40  ;;  %v15695_v11 = vcombine.high %v1255_v30, %v1271_v42  ;;  %v1191_v39 = vunpack.c.h.s8.bf16 %v17817_v13 }
 0x1d6   :  { %v10079_v56 = vpop.f32.mrf.mxu0  ;;  %10396 = vmatprep.subr.bf16.mxu0 %v15277_v17  ;;  %v15023_v44 = vcombine.high %v583_v36, %v599_v53  ;;  %v15022_v0 = vcombine.low %v583_v36, %v599_v53  ;;  %v15694_v25 = vcombine.low %v1255_v30, %v1271_v42  ;;  %v14990_v6 = vcombine.low %v551_v45, %v567_v5  ;;  %v20004_v42 = vld [vmem:[#allocation29_spill] sm:$0xff]  ;;  %v20005_v5 = vld [vmem:[#allocation30_spill] sm:$0xff] }
 0x1d7   :  { %10457 = vmatpush1.bf16.msra.mxu1 %v15118_v50  ;;  %v1047_v50 = vunpack.c.h.s8.bf16 %v17879_v20  ;;  %v15663_v17 = vcombine.high %v1223_v18, %v1239_v24  ;;  %v1207_v10 = vunpack.c.h.s8.bf16 %v17819_v14  ;;  %v1015_v20 = vunpack.c.h.s8.bf16 %v17888_v19 }
 0x1d8   :  { %10458 = vmatprep.subr.bf16.mxu1 %v15087_v41  ;;  %v15662_v31 = vcombine.low %v1223_v18, %v1239_v24  ;;  %v1159_v54 = vunpack.c.h.s8.bf16 %v17832_v48  ;;  %v967_v14 = vunpack.c.h.s8.bf16 %v17902_v60  ;;  %v983_v56 = vunpack.c.h.s8.bf16 %v17904_v12 }
 0x1d9   :  { %10397 = vmatpush2.bf16.msra.mxu0 %v15276_v7  ;;  %v15471_v58 = vcombine.high %v1031_v22, %v1047_v50  ;;  %v15470_v41 = vcombine.low %v1031_v22, %v1047_v50  ;;  %v15631_v32 = vcombine.high %v1191_v39, %v1207_v10  ;;  %v1175_v7 = vunpack.c.h.s8.bf16 %v17834_v16 }
 0x1da   :  { %10398 = vmatprep.subr.bf16.mxu0 %v15245_v59  ;;  %v15439_v13 = vcombine.high %v999_v51, %v1015_v20  ;;  %v15630_v38 = vcombine.low %v1191_v39, %v1207_v10  ;;  %v15438_v19 = vcombine.low %v999_v51, %v1015_v20  ;;  %v1127_v59 = vunpack.c.h.s8.bf16 %v17845_v46  ;;  %v20007_v39 = vld [vmem:[#allocation33_spill] sm:$0xff] }
 0x1db   :  { %10459 = vmatpush1.bf16.msra.mxu1 %v15086_v4  ;;  %v15599_v4 = vcombine.high %v1159_v54, %v1175_v7  ;;  %v1143_v27 = vunpack.c.h.s8.bf16 %v17847_v57  ;;  %v15407_v48 = vcombine.high %v967_v14, %v983_v56  ;;  %v935_v16 = vunpack.c.h.s8.bf16 %v17912_v21 }
 0x1dc   :  { %10460 = vmatprep.subr.bf16.mxu1 %v15055_v33  ;;  %v951_v40 = vunpack.c.h.s8.bf16 %v17914_v26  ;;  %v15598_v60 = vcombine.low %v1159_v54, %v1175_v7  ;;  %v15406_v12 = vcombine.low %v967_v14, %v983_v56  ;;  %v1095_v36 = vunpack.c.h.s8.bf16 %v17857_v43  ;;  %v18012_v14 = vld [vmem:[#allocation4 + $0xbe0] sm:$0xff] }
 0x1dd   :  { %10399 = vmatpush2.bf16.msra.mxu0 %v15244_v15  ;;  %v15567_v33 = vcombine.high %v1127_v59, %v1143_v27  ;;  %v1111_v53 = vunpack.c.h.s8.bf16 %v17859_v3  ;;  %v903_v57 = vunpack.c.h.s8.bf16 %v17920_v29  ;;  %v919_v15 = vunpack.c.h.s8.bf16 %v17922_v55 }
 0x1de   :  { %10491 = vmatprep.subr.bf16.mxu0 %v15727_v34  ;;  %v15375_v46 = vcombine.high %v935_v16, %v951_v40  ;;  %v15566_v21 = vcombine.low %v1127_v59, %v1143_v27  ;;  %v15374_v26 = vcombine.low %v935_v16, %v951_v40  ;;  %v20003_v34 = vld [vmem:[#allocation25_spill] sm:$0xff]  ;;  %v871_v3 = vunpack.c.h.s8.bf16 %v17928_v1 }
 0x1df   :  { %10461 = vmatpush1.bf16.msra.mxu1 %v15054_v49  ;;  %v15535_v49 = vcombine.high %v1095_v36, %v1111_v53  ;;  %v1063_v30 = vunpack.c.h.s8.bf16 %v20003_v34  ;;  %v15343_v43 = vcombine.high %v903_v57, %v919_v15  ;;  %v887_v45 = vunpack.c.h.s8.bf16 %v17930_v47 }
 0x1e0   :  { %10462 = vmatprep.subr.bf16.mxu1 %v15023_v44  ;;  %10401 = vmatmul.mubr.bf16.vlgmr.msra.gmra.mxu0 %v17288_v8  ;;  %v1079_v44 = vunpack.c.h.s8.bf16 %v20004_v42  ;;  %v15534_v29 = vcombine.low %v1095_v36, %v1111_v53  ;;  %v1351_v55 = vunpack.c.h.s8.bf16 %v20005_v5  ;;  %v839_v18 = vunpack.c.h.s8.bf16 %v17937_v63  ;;  %v18026_v36 = vld [vmem:[#allocation4 + $0xb60] sm:$0xff] }
 0x1e1   :  { %10492 = vmatpush1.bf16.msra.mxu0 %v15726_v61  ;;  %15823 = vmatprep.mubr.msk.bf16.mxu0 %vm9775_vm0, %v17183_v35  ;;  %v15342_v61 = vcombine.low %v903_v57, %v919_v15  ;;  %v855_v24 = vunpack.c.h.s8.bf16 %v17939_v62  ;;  %v15310_v1 = vcombine.low %v871_v3, %v887_v45  ;;  %v1319_v10 = vunpack.c.h.s8.bf16 %v20007_v39  ;;  %v18034_v42 = vld [vmem:[#allocation4 + $0x2e0] sm:$0xff] }
 0x1e2   :  { %10493 = vmatprep.subr.bf16.mxu0 %v15695_v11  ;;  %v15311_v11 = vcombine.high %v871_v3, %v887_v45  ;;  %v15502_v50 = vcombine.low %v1063_v30, %v1079_v44  ;;  %v15791_v47 = vcombine.high %v1351_v55, %v1351_v55  ;;  %v807_v62 = vunpack.c.h.s8.bf16 %v17946_v9 }
 0x1e3   :  { %10463 = vmatpush1.bf16.msra.mxu1 %v15022_v0  ;;  %v15503_v0 = vcombine.high %v1063_v30, %v1079_v44  ;;  %v15279_v63 = vcombine.high %v839_v18, %v855_v24  ;;  %v1304_v40 = vunpack.c.l.s8.bf16 %v18012_v14  ;;  %v1272_v34 = vunpack.c.l.s8.bf16 %v18026_v36  ;;  %v18032_v30 = vld [vmem:[#allocation4 + $0x2a0] sm:$0xff] }
 0x1e4   :  { %10464 = vmatprep.subr.bf16.mxu1 %v14991_v2  ;;  %v18036_v44 = vld [vmem:[#allocation4 + $0xaa0] sm:$0xff]  ;;  %v712_v5 = vunpack.c.l.s8.bf16 %v18032_v30 }
 0x1e5   :  { %10494 = vmatpush1.bf16.msra.mxu0 %v15694_v25 }
 0x1e6   :  { %10495 = vmatprep.subr.bf16.mxu0 %v15663_v17  ;;  %v15790_v17 = vcombine.low %v1351_v55, %v1351_v55  ;;  %v728_v55 = vunpack.c.l.s8.bf16 %v18034_v42 }
 0x1e7   :  { %10465 = vmatpush1.bf16.msra.mxu1 %v14990_v6 }
 0x1e8   :  { %10466 = vmatprep.subr.bf16.mxu1 %v15471_v58  ;;  %v20008_v58 = vld [vmem:[#allocation34_spill] sm:$0xff]  ;;  %v9823_v9 = vsel %vm9779_vm1, %v15790_v17, 0 }
 0x1e9   :  { %10496 = vmatpush1.bf16.msra.mxu0 %v15662_v31  ;;  %v1335_v51 = vunpack.c.h.s8.bf16 %v20008_v58  ;;  %v823_v31 = vunpack.c.h.s8.bf16 %v17948_v37 }
 0x1ea   :  { %10497 = vmatprep.subr.bf16.mxu0 %v15631_v32  ;;  %v18006_v32 = vld [vmem:[#allocation4 + $0x3e0] sm:$0xff] }
 0x1eb   :  { %10467 = vmatpush2.bf16.msra.mxu1 %v15470_v41  ;;  %v18004_v41 = vld [vmem:[#allocation4 + $0x3a0] sm:$0xff]  ;;  %v15759_v37 = vcombine.high %v1319_v10, %v1335_v51  ;;  %v792_v59 = vunpack.c.l.s8.bf16 %v18006_v32  ;;  %v15758_v53 = vcombine.low %v1319_v10, %v1335_v51 }
 0x1ec   :  { %10468 = vmatprep.subr.bf16.mxu1 %v15439_v13  ;;  %v18010_v13 = vld [vmem:[#allocation4 + $0xba0] sm:$0xff] }
 0x1ed   :  { %10498 = vmatpush1.bf16.msra.mxu0 %v15630_v38  ;;  %v15278_v38 = vcombine.low %v839_v18, %v855_v24  ;;  %v1288_v16 = vunpack.c.l.s8.bf16 %v18010_v13  ;;  %v18044_v18 = vld [vmem:[#allocation4 + $0x220] sm:$0xff] }
 0x1ee   :  { %10499 = vmatprep.subr.bf16.mxu0 %v15599_v4  ;;  %v776_v4 = vunpack.c.l.s8.bf16 %v18004_v41  ;;  %v18046_v24 = vld [vmem:[#allocation4 + $0x260] sm:$0xff] }
 0x1ef   :  { %10469 = vmatpush2.bf16.msra.mxu1 %v15438_v19  ;;  %v15728_v45 = vcombine.low %v1288_v16, %v1304_v40  ;;  %v696_v17 = vunpack.c.l.s8.bf16 %v18046_v24  ;;  %v18058_v51 = vld [vmem:[#allocation4 + $0x1a0] sm:$0xff] }
 0x1f0   :  { %10470 = vmatprep.subr.bf16.mxu1 %v15407_v48  ;;  %v15247_v48 = vcombine.high %v807_v62, %v823_v31  ;;  %v15217_v57 = vcombine.high %v776_v4, %v792_v59  ;;  %v15216_v3 = vcombine.low %v776_v4, %v792_v59 }
 0x1f1   :  { %10500 = vmatpush1.bf16.msra.mxu0 %v15598_v60  ;;  %v18020_v60 = vld [vmem:[#allocation4 + $0x320] sm:$0xff] }
 0x1f2   :  { %10501 = vmatprep.subr.bf16.mxu0 %v15567_v33  ;;  %v18024_v33 = vld [vmem:[#allocation4 + $0xb20] sm:$0xff]  ;;  %v744_v15 = vunpack.c.l.s8.bf16 %v18020_v60 }
 0x1f3   :  { %10471 = vmatpush2.bf16.msra.mxu1 %v15406_v12  ;;  %v18022_v12 = vld [vmem:[#allocation4 + $0x360] sm:$0xff] }
 0x1f4   :  { %10472 = vmatprep.subr.bf16.mxu1 %v15375_v46  ;;  %v15246_v46 = vcombine.low %v807_v62, %v823_v31  ;;  %v18066_v62 = vld [vmem:[#allocation4 + $0x9e0] sm:$0xff] }
 0x1f5   :  { %10502 = vmatpush1.bf16.msra.mxu0 %v15566_v21  ;;  %v760_v21 = vunpack.c.l.s8.bf16 %v18022_v12  ;;  %v20010_v31 = vld [vmem:[#allocation26_spill] sm:$0xff]  ;;  %v1176_v59 = vunpack.c.l.s8.bf16 %v18066_v62 }
 0x1f6   :  { %10503 = vmatprep.subr.bf16.mxu0 %v15535_v49  ;;  %v1256_v49 = vunpack.c.l.s8.bf16 %v18024_v33 }
 0x1f7   :  { %10473 = vmatpush2.bf16.msra.mxu1 %v15374_v26  ;;  %v15729_v26 = vcombine.high %v1288_v16, %v1304_v40  ;;  %v18077_v16 = vld [vmem:[#allocation4 + $0x920] sm:$0xff] }
 0x1f8   :  { %10474 = vmatprep.subr.bf16.mxu1 %v15343_v43  ;;  %v10197_v2 = vpop.f32.mrf.mxu0  ;;  %v18038_v43 = vld [vmem:[#allocation4 + $0xae0] sm:$0xff] }
 0x1f9   :  { %10504 = vmatpush1.bf16.msra.mxu0 %v15534_v29  ;;  %v15185_v29 = vcombine.high %v744_v15, %v760_v21  ;;  %v18079_v40 = vld [vmem:[#allocation4 + $0x960] sm:$0xff] }
 0x1fa   :  { %v10156_v22 = vpop.f32.mrf.mxu1  ;;  %v10199_v6 = vpop.f32.mrf.mxu0  ;;  %10505 = vmatprep.subr.bf16.mxu0 %v15503_v0  ;;  %v1224_v0 = vunpack.c.l.s8.bf16 %v18036_v44 }
 0x1fb   :  { %v17998_v25 = vadd.f32 %v10197_v2, %v10156_v22  ;;  %10475 = vmatpush2.bf16.msra.mxu1 %v15342_v61  ;;  %v15697_v61 = vcombine.high %v1256_v49, %v1272_v34  ;;  %v18049_v2 = vld [vmem:[#allocation4 + $0xa20] sm:$0xff] }
 0x1fc   :  { %v10158_v20 = vpop.f32.mrf.mxu1  ;;  %10476 = vmatprep.subr.bf16.mxu1 %v15311_v11  ;;  %v10201_v7 = vpop.f32.mrf.mxu0  ;;  %v1240_v11 = vunpack.c.l.s8.bf16 %v18038_v43  ;;  %v18051_v22 = vld [vmem:[#allocation4 + $0xa60] sm:$0xff]  ;;  %v1192_v10 = vunpack.c.l.s8.bf16 %v18049_v2 }
 0x1fd   :  { %20006 = vst [vmem:[#allocation25_spill] sm:$0xff] %v17998_v25  ;;  %v18008_v54 = vadd.f32 %v10199_v6, %v10158_v20  ;;  %10506 = vmatpush1.bf16.msra.mxu0 %v15502_v50  ;;  %v15696_v50 = vcombine.low %v1256_v49, %v1272_v34  ;;  %v680_v6 = vunpack.c.l.s8.bf16 %v18044_v18  ;;  %v1208_v58 = vunpack.c.l.s8.bf16 %v18051_v22  ;;  %v18060_v20 = vld [vmem:[#allocation4 + $0x1e0] sm:$0xff] }
 0x1fe   :  { %v10160_v56 = vpop.f32.mrf.mxu1  ;;  %v10202_v19 = vpop.f32.mrf.mxu0  ;;  %15822 = vmatprep.subr.msk.bf16.mxu0 %vm9779_vm1, %v15791_v47  ;;  %v15153_v47 = vcombine.high %v712_v5, %v728_v55  ;;  %v15665_v39 = vcombine.high %v1224_v0, %v1240_v11  ;;  %v15152_v7 = vcombine.low %v712_v5, %v728_v55  ;;  %v1128_v49 = vunpack.c.l.s8.bf16 %v18077_v16  ;;  %v18091_v5 = vld [vmem:[#allocation4 + $0x8e0] sm:$0xff] }
 0x1ff   :  { %20009 = vst [vmem:[#allocation29_spill] sm:$0xff] %v18008_v54  ;;  %10477 = vmatpush2.bf16.msra.mxu1 %v15310_v1  ;;  %v15184_v1 = vcombine.low %v744_v15, %v760_v21  ;;  %v15664_v56 = vcombine.low %v1224_v0, %v1240_v11  ;;  %v648_v19 = vunpack.c.l.s8.bf16 %v18058_v51  ;;  %v1144_v34 = vunpack.c.l.s8.bf16 %v18079_v40  ;;  %v18122_v25 = vld [vmem:[#allocation4 + $0xc20] sm:$0xff] }
 0x200   :  { %v10161_v27 = vpop.f32.mrf.mxu1  ;;  %10478 = vmatprep.subr.bf16.mxu1 %v15279_v63  ;;  %v18064_v63 = vld [vmem:[#allocation4 + $0x9a0] sm:$0xff]  ;;  %20014 = vst [vmem:[#allocation37_spill] sm:$0xff] %v18122_v25  ;;  %v1320_v28 = vunpack.c.l.s8.bf16 %v18122_v25  ;;  %v793_v25 = vunpack.c.h.s8.bf16 %v18006_v32  ;;  %v761_v32 = vunpack.c.h.s8.bf16 %v18022_v12  ;;  %v729_v12 = vunpack.c.h.s8.bf16 %v18034_v42 }
 0x201   :  { %10520 = vmatpush2.bf16.msra.mxu0 %v9823_v9  ;;  %v664_v9 = vunpack.c.l.s8.bf16 %v18060_v20  ;;  %v1160_v4 = vunpack.c.l.s8.bf16 %v18064_v63  ;;  %v18073_v27 = vld [vmem:[#allocation4 + $0x120] sm:$0xff]  ;;  %v681_v42 = vunpack.c.h.s8.bf16 %v18044_v18 }
 0x202   :  { %10521 = vmatprep.subr.bf16.mxu0 %v15759_v37  ;;  %v15633_v37 = vcombine.high %v1192_v10, %v1208_v58  ;;  %v616_v15 = vunpack.c.l.s8.bf16 %v18073_v27 }
 0x203   :  { %10479 = vmatpush2.bf16.msra.mxu1 %v15278_v38  ;;  %v15121_v38 = vcombine.high %v680_v6, %v696_v17  ;;  %v15088_v55 = vcombine.low %v648_v19, %v664_v9 }
 0x204   :  { %10480 = vmatprep.subr.bf16.mxu1 %v15247_v48  ;;  %v18075_v48 = vld [vmem:[#allocation4 + $0x160] sm:$0xff] }
 0x205   :  { %10522 = vmatpush2.bf16.msra.mxu0 %v15758_v53  ;;  %v15120_v53 = vcombine.low %v680_v6, %v696_v17  ;;  %v632_v21 = vunpack.c.l.s8.bf16 %v18075_v48  ;;  %v1112_v6 = vunpack.c.l.s8.bf16 %v18091_v5  ;;  %v18097_v17 = vld [vmem:[#allocation4 + $0x20] sm:$0xff] }
 0x206   :  { %10532 = vmatprep.subr.bf16.mxu0 %v15217_v57  ;;  %v15089_v57 = vcombine.high %v648_v19, %v664_v9  ;;  %v552_v19 = vunpack.c.l.s8.bf16 %v18097_v17 }
 0x207   :  { %10481 = vmatpush2.bf16.msra.mxu1 %v15246_v46  ;;  %v15632_v46 = vcombine.low %v1192_v10, %v1208_v58  ;;  %v15057_v0 = vcombine.high %v616_v15, %v632_v21  ;;  %v18101_v10 = vld [vmem:[#allocation4 + $0x820] sm:$0xff] }
 0x208   :  { %10573 = vmatprep.subr.bf16.mxu1 %v15729_v26  ;;  %10524 = vmatmul.mubr.bf16.vlgmr.msra.gmra.mxu0 %v17246_v23  ;;  %v15601_v26 = vcombine.high %v1160_v4, %v1176_v59  ;;  %20011 = vst [vmem:[#allocation30_spill] sm:$0xff] %v18101_v10  ;;  %v18103_v58 = vld [vmem:[#allocation4 + $0x860] sm:$0xff] }
 0x209   :  { %10533 = vmatpush1.bf16.msra.mxu0 %v15216_v3  ;;  %10564 = vmatprep.mubr.bf16.mxu0 %v20010_v31  ;;  %v18085_v3 = vld [vmem:[#allocation4 + $0xa0] sm:$0xff]  ;;  %20012 = vst [vmem:[#allocation33_spill] sm:$0xff] %v18103_v58 }
 0x20a   :  { %10483 = vmatmul.mubr.bf16.vlgmr.msra.gmra.mxu1 %v17288_v8  ;;  %10534 = vmatprep.subr.bf16.mxu0 %v15185_v29  ;;  %v18089_v29 = vld [vmem:[#allocation4 + $0x8a0] sm:$0xff]  ;;  %v584_v11 = vunpack.c.l.s8.bf16 %v18085_v3 }
 0x20b   :  { %10574 = vmatpush1.bf16.msra.mxu1 %v15728_v45  ;;  %15825 = vmatprep.mubr.msk.bf16.mxu1 %vm9775_vm0, %v17183_v35  ;;  %v18087_v45 = vld [vmem:[#allocation4 + $0xe0] sm:$0xff] }
 0x20c   :  { %10575 = vmatprep.subr.bf16.mxu1 %v15697_v61  ;;  %v15600_v61 = vcombine.low %v1160_v4, %v1176_v59  ;;  %v1064_v4 = vunpack.c.l.s8.bf16 %v18101_v10  ;;  %v1080_v59 = vunpack.c.l.s8.bf16 %v18103_v58  ;;  %v18134_v58 = vld [vmem:[#allocation4 + $0x6a0] sm:$0xff] }
 0x20d   :  { %10535 = vmatpush1.bf16.msra.mxu0 %v15184_v1  ;;  %v600_v1 = vunpack.c.l.s8.bf16 %v18087_v45  ;;  %v18154_v10 = vld [vmem:[#allocation4 + $0x5e0] sm:$0xff] }
 0x20e   :  { %10536 = vmatprep.subr.bf16.mxu0 %v15153_v47  ;;  %v1096_v47 = vunpack.c.l.s8.bf16 %v18089_v29 }
 0x20f   :  { %10576 = vmatpush1.bf16.msra.mxu1 %v15696_v50  ;;  %v15569_v50 = vcombine.high %v1128_v49, %v1144_v34 }
 0x210   :  { %10577 = vmatprep.subr.bf16.mxu1 %v15665_v39  ;;  %v18099_v39 = vld [vmem:[#allocation4 + $0x60] sm:$0xff] }
 0x211   :  { %10537 = vmatpush1.bf16.msra.mxu0 %v15152_v7  ;;  %v15056_v7 = vcombine.low %v616_v15, %v632_v21  ;;  %v568_v9 = vunpack.c.l.s8.bf16 %v18099_v39  ;;  %v15024_v15 = vcombine.low %v584_v11, %v600_v1  ;;  %v15536_v21 = vcombine.low %v1096_v47, %v1112_v6 }
 0x212   :  { %10538 = vmatprep.subr.bf16.mxu0 %v15121_v38  ;;  %v15025_v38 = vcombine.high %v584_v11, %v600_v1 }
 0x213   :  { %10578 = vmatpush1.bf16.msra.mxu1 %v15664_v56  ;;  %v15568_v56 = vcombine.low %v1128_v49, %v1144_v34  ;;  %v14992_v1 = vcombine.low %v552_v19, %v568_v9 }
 0x214   :  { %10579 = vmatprep.subr.bf16.mxu1 %v15633_v37  ;;  %v15537_v37 = vcombine.high %v1096_v47, %v1112_v6  ;;  %v15504_v47 = vcombine.low %v1064_v4, %v1080_v59 }
 0x215   :  { %10539 = vmatpush1.bf16.msra.mxu0 %v15120_v53  ;;  %v18109_v53 = vld [vmem:[#allocation4 + $0x7a0] sm:$0xff] }
 0x216   :  { %10540 = vmatprep.subr.bf16.mxu0 %v15089_v57  ;;  %v18113_v57 = vld [vmem:[#allocation4 + $0xca0] sm:$0xff]  ;;  %v1032_v49 = vunpack.c.l.s8.bf16 %v18109_v53 }
 0x217   :  { %10580 = vmatpush1.bf16.msra.mxu1 %v15632_v46  ;;  %v18111_v46 = vld [vmem:[#allocation4 + $0x7e0] sm:$0xff]  ;;  %20013 = vst [vmem:[#allocation34_spill] sm:$0xff] %v18113_v57 }
 0x218   :  { %10581 = vmatprep.subr.bf16.mxu1 %v15601_v26  ;;  %v14993_v26 = vcombine.high %v552_v19, %v568_v9  ;;  %v1048_v34 = vunpack.c.l.s8.bf16 %v18111_v46  ;;  %v18136_v19 = vld [vmem:[#allocation4 + $0x6e0] sm:$0xff] }
 0x219   :  { %10541 = vmatpush1.bf16.msra.mxu0 %v15088_v55  ;;  %v15505_v55 = vcombine.high %v1064_v4, %v1080_v59 }
 0x21a   :  { %10542 = vmatprep.subr.bf16.mxu0 %v15057_v0  ;;  %v18118_v0 = vld [vmem:[#allocation4 + $0x720] sm:$0xff]  ;;  %v15473_v6 = vcombine.high %v1032_v49, %v1048_v34  ;;  %v15472_v4 = vcombine.low %v1032_v49, %v1048_v34 }
 0x21b   :  { %10582 = vmatpush1.bf16.msra.mxu1 %v15600_v61  ;;  %v1352_v61 = vunpack.c.l.s8.bf16 %v18113_v57  ;;  %v18146_v49 = vld [vmem:[#allocation4 + $0x660] sm:$0xff] }
 0x21c   :  { %10583 = vmatprep.subr.bf16.mxu1 %v15569_v50  ;;  %v18120_v50 = vld [vmem:[#allocation4 + $0x760] sm:$0xff] }
 0x21d   :  { %10543 = vmatpush1.bf16.msra.mxu0 %v15056_v7  ;;  %v18124_v7 = vld [vmem:[#allocation4 + $0xc60] sm:$0xff]  ;;  %v15793_v52 = vcombine.high %v1352_v61, %v1352_v61  ;;  %v15792_v54 = vcombine.low %v1352_v61, %v1352_v61 }
 0x21e   :  { %10544 = vmatprep.subr.bf16.mxu0 %v15025_v38  ;;  %20015 = vst [vmem:[#allocation38_spill] sm:$0xff] %v18124_v7  ;;  %v1016_v38 = vunpack.c.l.s8.bf16 %v18120_v50  ;;  %v1336_v57 = vunpack.c.l.s8.bf16 %v18124_v7  ;;  %v777_v7 = vunpack.c.h.s8.bf16 %v18004_v41  ;;  %v745_v41 = vunpack.c.h.s8.bf16 %v18020_v60 }
 0x21f   :  { %10584 = vmatpush1.bf16.msra.mxu1 %v15568_v56  ;;  %v1000_v56 = vunpack.c.l.s8.bf16 %v18118_v0  ;;  %v713_v60 = vunpack.c.h.s8.bf16 %v18032_v30 }
 0x220   :  { %10585 = vmatprep.subr.bf16.mxu1 %v15537_v37  ;;  %v15761_v61 = vcombine.high %v1320_v28, %v1336_v57 }
 0x221   :  { %10545 = vmatpush1.bf16.msra.mxu0 %v15024_v15  ;;  %v15441_v59 = vcombine.high %v1000_v56, %v1016_v38  ;;  %v968_v15 = vunpack.c.l.s8.bf16 %v18134_v58  ;;  %v15440_v34 = vcombine.low %v1000_v56, %v1016_v38  ;;  %v15155_v30 = vcombine.high %v713_v60, %v729_v12 }
 0x222   :  { %v18126_v11 = vpop.f32.mrf.mxu1  ;;  %10546 = vmatprep.subr.bf16.mxu0 %v14993_v26 }
 0x223   :  { %10586 = vmatpush1.bf16.msra.mxu1 %v15536_v21  ;;  %v984_v21 = vunpack.c.l.s8.bf16 %v18136_v19 }
 0x224   :  { %v18130_v37 = vpop.f32.mrf.mxu1  ;;  %10587 = vmatprep.subr.bf16.mxu1 %v15505_v55  ;;  %v9829_v55 = vsel %vm9779_vm1, %v15792_v54, 0  ;;  %v15219_v54 = vcombine.high %v777_v7, %v793_v25 }
 0x225   :  { %10547 = vmatpush1.bf16.msra.mxu0 %v14992_v1  ;;  %v15760_v1 = vcombine.low %v1320_v28, %v1336_v57  ;;  %v15408_v56 = vcombine.low %v968_v15, %v984_v21  ;;  %v15218_v28 = vcombine.low %v777_v7, %v793_v25  ;;  %v15186_v25 = vcombine.low %v745_v41, %v761_v32 }
 0x226   :  { %v10283_v9 = vpop.f32.mrf.mxu1  ;;  %10548 = vmatprep.subr.bf16.mxu0 %v15473_v6 }
 0x227   :  { %10588 = vmatpush1.bf16.msra.mxu1 %v15504_v47  ;;  %v18144_v9 = vld [vmem:[#allocation4 + $0x620] sm:$0xff]  ;;  %v15409_v47 = vcombine.high %v968_v15, %v984_v21 }
 0x228   :  { %v10284_v26 = vpop.f32.mrf.mxu1  ;;  %15824 = vmatprep.subr.msk.bf16.mxu1 %vm9779_vm1, %v15793_v52  ;;  %v936_v6 = vunpack.c.l.s8.bf16 %v18144_v9  ;;  %v952_v52 = vunpack.c.l.s8.bf16 %v18146_v49 }
 0x229   :  { %10549 = vmatpush2.bf16.msra.mxu0 %v15472_v4  ;;  %v18152_v26 = vld [vmem:[#allocation4 + $0x5a0] sm:$0xff]  ;;  %v920_v4 = vunpack.c.l.s8.bf16 %v18154_v10 }
 0x22a   :  { %10550 = vmatprep.subr.bf16.mxu0 %v15441_v59  ;;  %v15377_v57 = vcombine.high %v936_v6, %v952_v52  ;;  %v904_v38 = vunpack.c.l.s8.bf16 %v18152_v26  ;;  %v15187_v59 = vcombine.high %v745_v41, %v761_v32  ;;  %v15376_v15 = vcombine.low %v936_v6, %v952_v52 }
 0x22b   :  { %10602 = vmatpush2.bf16.msra.mxu1 %v9829_v55  ;;  %v18160_v55 = vld [vmem:[#allocation4 + $0x520] sm:$0xff]  ;;  %v15154_v52 = vcombine.low %v713_v60, %v729_v12 }
 0x22c   :  { %10603 = vmatprep.subr.bf16.mxu1 %v15761_v61  ;;  %v18162_v61 = vld [vmem:[#allocation4 + $0x560] sm:$0xff]  ;;  %v15345_v7 = vcombine.high %v904_v38, %v920_v4  ;;  %v872_v21 = vunpack.c.l.s8.bf16 %v18160_v55  ;;  %v15344_v6 = vcombine.low %v904_v38, %v920_v4 }
 0x22d   :  { %10551 = vmatpush2.bf16.msra.mxu0 %v15440_v34  ;;  %v888_v34 = vunpack.c.l.s8.bf16 %v18162_v61 }
 0x22e   :  { %10552 = vmatprep.subr.bf16.mxu0 %v15409_v47  ;;  %v18169_v47 = vld [vmem:[#allocation4 + $0x4a0] sm:$0xff] }
 0x22f   :  { %10604 = vmatpush2.bf16.msra.mxu1 %v15760_v1  ;;  %v697_v1 = vunpack.c.h.s8.bf16 %v18046_v24  ;;  %v15313_v41 = vcombine.high %v872_v21, %v888_v34  ;;  %v840_v32 = vunpack.c.l.s8.bf16 %v18169_v47  ;;  %v649_v24 = vunpack.c.h.s8.bf16 %v18058_v51 }
 0x230   :  { %10614 = vmatprep.subr.bf16.mxu1 %v15219_v54  ;;  %v18171_v54 = vld [vmem:[#allocation4 + $0x4e0] sm:$0xff]  ;;  %v15312_v4 = vcombine.low %v872_v21, %v888_v34 }
 0x231   :  { %10553 = vmatpush2.bf16.msra.mxu0 %v15408_v56  ;;  %v856_v56 = vunpack.c.l.s8.bf16 %v18171_v54  ;;  %v15123_v18 = vcombine.high %v681_v42, %v697_v1  ;;  %v15122_v12 = vcombine.low %v681_v42, %v697_v1 }
 0x232   :  { %10606 = vmatmul.mubr.bf16.vlgmr.msra.gmra.mxu1 %v17246_v23  ;;  %10554 = vmatprep.subr.bf16.mxu0 %v15377_v57  ;;  %v18178_v57 = vld [vmem:[#allocation4 + $0x420] sm:$0xff] }
 0x233   :  { %10615 = vmatpush1.bf16.msra.mxu1 %v15218_v28  ;;  %10646 = vmatprep.mubr.bf16.mxu1 %v20010_v31  ;;  %v665_v28 = vunpack.c.h.s8.bf16 %v18060_v20  ;;  %v617_v31 = vunpack.c.h.s8.bf16 %v18073_v27  ;;  %v15280_v21 = vcombine.low %v840_v32, %v856_v56  ;;  %v601_v27 = vunpack.c.h.s8.bf16 %v18087_v45 }
 0x234   :  { %10616 = vmatprep.subr.bf16.mxu1 %v15187_v59  ;;  %v18180_v59 = vld [vmem:[#allocation4 + $0x460] sm:$0xff] }
 0x235   :  { %10555 = vmatpush2.bf16.msra.mxu0 %v15376_v15  ;;  %v824_v51 = vunpack.c.l.s8.bf16 %v18180_v59  ;;  %v15090_v42 = vcombine.low %v649_v24, %v665_v28 }
 0x236   :  { %10556 = vmatprep.subr.bf16.mxu0 %v15345_v7  ;;  %v808_v7 = vunpack.c.l.s8.bf16 %v18178_v57 }
 0x237   :  { %10617 = vmatpush1.bf16.msra.mxu1 %v15186_v25  ;;  %v15281_v25 = vcombine.high %v840_v32, %v856_v56 }
 0x238   :  { %10618 = vmatprep.subr.bf16.mxu1 %v15155_v30  ;;  %v10238_v15 = vpop.f32.mrf.mxu0  ;;  %v15091_v30 = vcombine.high %v649_v24, %v665_v28  ;;  %v15249_v1 = vcombine.high %v808_v7, %v824_v51  ;;  %v1273_v24 = vunpack.c.h.s8.bf16 %v18026_v36  ;;  %v569_v28 = vunpack.c.h.s8.bf16 %v18099_v39 }
 0x239   :  { %v18183_v38 = vadd.f32 %v18126_v11, %v10238_v15  ;;  %10557 = vmatpush2.bf16.msra.mxu0 %v15344_v6  ;;  %v633_v11 = vunpack.c.h.s8.bf16 %v18075_v48  ;;  %v15248_v48 = vcombine.low %v808_v7, %v824_v51  ;;  %v1257_v15 = vunpack.c.h.s8.bf16 %v18024_v33 }
 0x23a   :  { %v10240_v60 = vpop.f32.mrf.mxu0  ;;  %10558 = vmatprep.subr.bf16.mxu0 %v15313_v41  ;;  %v1305_v41 = vunpack.c.h.s8.bf16 %v18012_v14  ;;  %v553_v14 = vunpack.c.h.s8.bf16 %v18097_v17  ;;  %v1033_v36 = vunpack.c.h.s8.bf16 %v18109_v53  ;;  %v1001_v53 = vunpack.c.h.s8.bf16 %v18118_v0 }
 0x23b   :  { %20016 = vst [vmem:[#allocation39_spill] sm:$0xff] %v18183_v38  ;;  %10619 = vmatpush1.bf16.msra.mxu1 %v15154_v52  ;;  %v18188_v20 = vadd.f32 %v18130_v37, %v10240_v60  ;;  %v1289_v52 = vunpack.c.h.s8.bf16 %v18010_v13  ;;  %v15059_v37 = vcombine.high %v617_v31, %v633_v11  ;;  %v15058_v32 = vcombine.low %v617_v31, %v633_v11 }
 0x23c   :  { %10620 = vmatprep.subr.bf16.mxu1 %v15123_v18  ;;  %v10242_v6 = vpop.f32.mrf.mxu0  ;;  %v585_v18 = vunpack.c.h.s8.bf16 %v18085_v3  ;;  %v1225_v60 = vunpack.c.h.s8.bf16 %v18036_v44  ;;  %v1241_v31 = vunpack.c.h.s8.bf16 %v18038_v43  ;;  %v14995_v33 = vcombine.high %v553_v14, %v569_v28 }
 0x23d   :  { %20017 = vst [vmem:[#allocation40_spill] sm:$0xff] %v18188_v20  ;;  %10559 = vmatpush2.bf16.msra.mxu0 %v15312_v4  ;;  %v15731_v56 = vcombine.high %v1289_v52, %v1305_v41  ;;  %v15730_v3 = vcombine.low %v1289_v52, %v1305_v41  ;;  %v15699_v4 = vcombine.high %v1257_v15, %v1273_v24  ;;  %v1193_v44 = vunpack.c.h.s8.bf16 %v18049_v2 }
 0x23e   :  { %v10243_v34 = vpop.f32.mrf.mxu0  ;;  %10560 = vmatprep.subr.bf16.mxu0 %v15281_v25  ;;  %v15027_v13 = vcombine.high %v585_v18, %v601_v27  ;;  %v15026_v45 = vcombine.low %v585_v18, %v601_v27  ;;  %v15698_v17 = vcombine.low %v1257_v15, %v1273_v24  ;;  %v14994_v39 = vcombine.low %v553_v14, %v569_v28  ;;  %v20019_v24 = vld [vmem:[#allocation33_spill] sm:$0xff]  ;;  %v20020_v28 = vld [vmem:[#allocation34_spill] sm:$0xff] }
 0x23f   :  { %10621 = vmatpush1.bf16.msra.mxu1 %v15122_v12  ;;  %v1049_v12 = vunpack.c.h.s8.bf16 %v18111_v46  ;;  %v15667_v25 = vcombine.high %v1225_v60, %v1241_v31  ;;  %v1209_v43 = vunpack.c.h.s8.bf16 %v18051_v22  ;;  %v1017_v46 = vunpack.c.h.s8.bf16 %v18120_v50 }
 0x240   :  { %10622 = vmatprep.subr.bf16.mxu1 %v15091_v30  ;;  %v15666_v51 = vcombine.low %v1225_v60, %v1241_v31  ;;  %v1161_v6 = vunpack.c.h.s8.bf16 %v18064_v63  ;;  %v969_v22 = vunpack.c.h.s8.bf16 %v18134_v58  ;;  %v985_v34 = vunpack.c.h.s8.bf16 %v18136_v19 }
 0x241   :  { %10561 = vmatpush2.bf16.msra.mxu0 %v15280_v21  ;;  %v15475_v7 = vcombine.high %v1033_v36, %v1049_v12  ;;  %v15474_v30 = vcombine.low %v1033_v36, %v1049_v12  ;;  %v15635_v11 = vcombine.high %v1193_v44, %v1209_v43  ;;  %v1177_v21 = vunpack.c.h.s8.bf16 %v18066_v62 }
 0x242   :  { %10562 = vmatprep.subr.bf16.mxu0 %v15249_v1  ;;  %v15443_v2 = vcombine.high %v1001_v53, %v1017_v46  ;;  %v15634_v0 = vcombine.low %v1193_v44, %v1209_v43  ;;  %v15442_v50 = vcombine.low %v1001_v53, %v1017_v46  ;;  %v1129_v1 = vunpack.c.h.s8.bf16 %v18077_v16  ;;  %v20022_v44 = vld [vmem:[#allocation37_spill] sm:$0xff] }
 0x243   :  { %10623 = vmatpush1.bf16.msra.mxu1 %v15090_v42  ;;  %v15603_v42 = vcombine.high %v1161_v6, %v1177_v21  ;;  %v1145_v52 = vunpack.c.h.s8.bf16 %v18079_v40  ;;  %v15411_v63 = vcombine.high %v969_v22, %v985_v34  ;;  %v937_v62 = vunpack.c.h.s8.bf16 %v18144_v9 }
 0x244   :  { %10624 = vmatprep.subr.bf16.mxu1 %v15059_v37  ;;  %v953_v41 = vunpack.c.h.s8.bf16 %v18146_v49  ;;  %v15602_v58 = vcombine.low %v1161_v6, %v1177_v21  ;;  %v15410_v19 = vcombine.low %v969_v22, %v985_v34  ;;  %v1097_v18 = vunpack.c.h.s8.bf16 %v18089_v29  ;;  %v18244_v22 = vld [vmem:[#allocation4 + $0xbe8] sm:$0xff] }
 0x245   :  { %10563 = vmatpush2.bf16.msra.mxu0 %v15248_v48  ;;  %v15571_v37 = vcombine.high %v1129_v1, %v1145_v52  ;;  %v1113_v27 = vunpack.c.h.s8.bf16 %v18091_v5  ;;  %v905_v40 = vunpack.c.h.s8.bf16 %v18152_v26  ;;  %v921_v48 = vunpack.c.h.s8.bf16 %v18154_v10 }
 0x246   :  { %10655 = vmatprep.subr.bf16.mxu0 %v15731_v56  ;;  %v15379_v16 = vcombine.high %v937_v62, %v953_v41  ;;  %v15570_v9 = vcombine.low %v1129_v1, %v1145_v52  ;;  %v15378_v49 = vcombine.low %v937_v62, %v953_v41  ;;  %v20018_v56 = vld [vmem:[#allocation30_spill] sm:$0xff]  ;;  %v873_v5 = vunpack.c.h.s8.bf16 %v18160_v55 }
 0x247   :  { %10625 = vmatpush1.bf16.msra.mxu1 %v15058_v32  ;;  %v15539_v32 = vcombine.high %v1097_v18, %v1113_v27  ;;  %v1065_v15 = vunpack.c.h.s8.bf16 %v20018_v56  ;;  %v15347_v29 = vcombine.high %v905_v40, %v921_v48  ;;  %v889_v14 = vunpack.c.h.s8.bf16 %v18162_v61 }
 0x248   :  { %10626 = vmatprep.subr.bf16.mxu1 %v15027_v13  ;;  %10565 = vmatmul.mubr.bf16.vlgmr.msra.gmra.mxu0 %v17288_v8  ;;  %v1081_v13 = vunpack.c.h.s8.bf16 %v20019_v24  ;;  %v15538_v26 = vcombine.low %v1097_v18, %v1113_v27  ;;  %v1353_v10 = vunpack.c.h.s8.bf16 %v20020_v28  ;;  %v841_v60 = vunpack.c.h.s8.bf16 %v18169_v47  ;;  %v18258_v18 = vld [vmem:[#allocation4 + $0xb68] sm:$0xff] }
 0x249   :  { %10656 = vmatpush1.bf16.msra.mxu0 %v15730_v3  ;;  %15827 = vmatprep.mubr.msk.bf16.mxu0 %vm9775_vm0, %v17183_v35  ;;  %v15346_v3 = vcombine.low %v905_v40, %v921_v48  ;;  %v857_v31 = vunpack.c.h.s8.bf16 %v18171_v54  ;;  %v15314_v55 = vcombine.low %v873_v5, %v889_v14  ;;  %v1321_v43 = vunpack.c.h.s8.bf16 %v20022_v44  ;;  %v18266_v24 = vld [vmem:[#allocation4 + $0x2e8] sm:$0xff] }
 0x24a   :  { %10657 = vmatprep.subr.bf16.mxu0 %v15699_v4  ;;  %v15315_v4 = vcombine.high %v873_v5, %v889_v14  ;;  %v15506_v12 = vcombine.low %v1065_v15, %v1081_v13  ;;  %v15795_v61 = vcombine.high %v1353_v10, %v1353_v10  ;;  %v809_v54 = vunpack.c.h.s8.bf16 %v18178_v57 }
 0x24b   :  { %10627 = vmatpush1.bf16.msra.mxu1 %v15026_v45  ;;  %v15507_v45 = vcombine.high %v1065_v15, %v1081_v13  ;;  %v15283_v47 = vcombine.high %v841_v60, %v857_v31  ;;  %v1306_v41 = vunpack.c.l.s8.bf16 %v18244_v22  ;;  %v1274_v56 = vunpack.c.l.s8.bf16 %v18258_v18  ;;  %v18264_v15 = vld [vmem:[#allocation4 + $0x2a8] sm:$0xff] }
 0x24c   :  { %10628 = vmatprep.subr.bf16.mxu1 %v14995_v33  ;;  %v18268_v13 = vld [vmem:[#allocation4 + $0xaa8] sm:$0xff]  ;;  %v714_v28 = vunpack.c.l.s8.bf16 %v18264_v15 }
 0x24d   :  { %10658 = vmatpush1.bf16.msra.mxu0 %v15698_v17 }
 0x24e   :  { %10659 = vmatprep.subr.bf16.mxu0 %v15667_v25  ;;  %v15794_v25 = vcombine.low %v1353_v10, %v1353_v10  ;;  %v730_v10 = vunpack.c.l.s8.bf16 %v18266_v24 }
 0x24f   :  { %10629 = vmatpush1.bf16.msra.mxu1 %v14994_v39 }
 0x250   :  { %10630 = vmatprep.subr.bf16.mxu1 %v15475_v7  ;;  %v20023_v7 = vld [vmem:[#allocation38_spill] sm:$0xff]  ;;  %v9835_v57 = vsel %vm9779_vm1, %v15794_v25, 0 }
 0x251   :  { %10660 = vmatpush1.bf16.msra.mxu0 %v15666_v51  ;;  %v1337_v53 = vunpack.c.h.s8.bf16 %v20023_v7  ;;  %v825_v51 = vunpack.c.h.s8.bf16 %v18180_v59 }
 0x252   :  { %10661 = vmatprep.subr.bf16.mxu0 %v15635_v11  ;;  %v18238_v11 = vld [vmem:[#allocation4 + $0x3e8] sm:$0xff] }
 0x253   :  { %10631 = vmatpush2.bf16.msra.mxu1 %v15474_v30  ;;  %v18236_v30 = vld [vmem:[#allocation4 + $0x3a8] sm:$0xff]  ;;  %v15763_v59 = vcombine.high %v1321_v43, %v1337_v53  ;;  %v794_v1 = vunpack.c.l.s8.bf16 %v18238_v11  ;;  %v15762_v27 = vcombine.low %v1321_v43, %v1337_v53 }
 0x254   :  { %10632 = vmatprep.subr.bf16.mxu1 %v15443_v2  ;;  %v18242_v2 = vld [vmem:[#allocation4 + $0xba8] sm:$0xff] }
 0x255   :  { %10662 = vmatpush1.bf16.msra.mxu0 %v15634_v0  ;;  %v15282_v0 = vcombine.low %v841_v60, %v857_v31  ;;  %v1290_v62 = vunpack.c.l.s8.bf16 %v18242_v2  ;;  %v18276_v60 = vld [vmem:[#allocation4 + $0x228] sm:$0xff] }
 0x256   :  { %10663 = vmatprep.subr.bf16.mxu0 %v15603_v42  ;;  %v778_v42 = vunpack.c.l.s8.bf16 %v18236_v30  ;;  %v18278_v31 = vld [vmem:[#allocation4 + $0x268] sm:$0xff] }
 0x257   :  { %10633 = vmatpush2.bf16.msra.mxu1 %v15442_v50  ;;  %v15732_v14 = vcombine.low %v1290_v62, %v1306_v41  ;;  %v698_v25 = vunpack.c.l.s8.bf16 %v18278_v31  ;;  %v18290_v53 = vld [vmem:[#allocation4 + $0x1a8] sm:$0xff] }
 0x258   :  { %10634 = vmatprep.subr.bf16.mxu1 %v15411_v63  ;;  %v15251_v63 = vcombine.high %v809_v54, %v825_v51  ;;  %v15221_v40 = vcombine.high %v778_v42, %v794_v1  ;;  %v15220_v5 = vcombine.low %v778_v42, %v794_v1 }
 0x259   :  { %10664 = vmatpush1.bf16.msra.mxu0 %v15602_v58  ;;  %v18252_v58 = vld [vmem:[#allocation4 + $0x328] sm:$0xff] }
 0x25a   :  { %10665 = vmatprep.subr.bf16.mxu0 %v15571_v37  ;;  %v18256_v37 = vld [vmem:[#allocation4 + $0xb28] sm:$0xff]  ;;  %v746_v48 = vunpack.c.l.s8.bf16 %v18252_v58 }
 0x25b   :  { %10635 = vmatpush2.bf16.msra.mxu1 %v15410_v19  ;;  %v18254_v19 = vld [vmem:[#allocation4 + $0x368] sm:$0xff] }
 0x25c   :  { %10636 = vmatprep.subr.bf16.mxu1 %v15379_v16  ;;  %v15250_v16 = vcombine.low %v809_v54, %v825_v51  ;;  %v18298_v54 = vld [vmem:[#allocation4 + $0x9e8] sm:$0xff] }
 0x25d   :  { %10666 = vmatpush1.bf16.msra.mxu0 %v15570_v9  ;;  %v762_v9 = vunpack.c.l.s8.bf16 %v18254_v19  ;;  %v20025_v51 = vld [vmem:[#allocation26_spill] sm:$0xff]  ;;  %v1178_v1 = vunpack.c.l.s8.bf16 %v18298_v54 }
 0x25e   :  { %10667 = vmatprep.subr.bf16.mxu0 %v15539_v32  ;;  %v1258_v32 = vunpack.c.l.s8.bf16 %v18256_v37 }
 0x25f   :  { %10637 = vmatpush2.bf16.msra.mxu1 %v15378_v49  ;;  %v15733_v49 = vcombine.high %v1290_v62, %v1306_v41  ;;  %v18309_v62 = vld [vmem:[#allocation4 + $0x928] sm:$0xff] }
 0x260   :  { %10638 = vmatprep.subr.bf16.mxu1 %v15347_v29  ;;  %v10361_v33 = vpop.f32.mrf.mxu0  ;;  %v18270_v29 = vld [vmem:[#allocation4 + $0xae8] sm:$0xff] }
 0x261   :  { %10668 = vmatpush1.bf16.msra.mxu0 %v15538_v26  ;;  %v15189_v26 = vcombine.high %v746_v48, %v762_v9  ;;  %v18311_v41 = vld [vmem:[#allocation4 + $0x968] sm:$0xff] }
 0x262   :  { %v10320_v36 = vpop.f32.mrf.mxu1  ;;  %v10363_v39 = vpop.f32.mrf.mxu0  ;;  %10669 = vmatprep.subr.bf16.mxu0 %v15507_v45  ;;  %v1226_v45 = vunpack.c.l.s8.bf16 %v18268_v13 }
 0x263   :  { %v18230_v17 = vadd.f32 %v10361_v33, %v10320_v36  ;;  %10639 = vmatpush2.bf16.msra.mxu1 %v15346_v3  ;;  %v15701_v3 = vcombine.high %v1258_v32, %v1274_v56  ;;  %v18281_v33 = vld [vmem:[#allocation4 + $0xa28] sm:$0xff] }
 0x264   :  { %v10322_v46 = vpop.f32.mrf.mxu1  ;;  %10640 = vmatprep.subr.bf16.mxu1 %v15315_v4  ;;  %v10365_v21 = vpop.f32.mrf.mxu0  ;;  %v1242_v4 = vunpack.c.l.s8.bf16 %v18270_v29  ;;  %v18283_v36 = vld [vmem:[#allocation4 + $0xa68] sm:$0xff]  ;;  %v1194_v43 = vunpack.c.l.s8.bf16 %v18281_v33 }
 0x265   :  { %20021 = vst [vmem:[#allocation30_spill] sm:$0xff] %v18230_v17  ;;  %v18240_v6 = vadd.f32 %v10363_v39, %v10322_v46  ;;  %10670 = vmatpush1.bf16.msra.mxu0 %v15506_v12  ;;  %v15700_v12 = vcombine.low %v1258_v32, %v1274_v56  ;;  %v682_v39 = vunpack.c.l.s8.bf16 %v18276_v60  ;;  %v1210_v7 = vunpack.c.l.s8.bf16 %v18283_v36  ;;  %v18292_v46 = vld [vmem:[#allocation4 + $0x1e8] sm:$0xff] }
 0x266   :  { %v10324_v34 = vpop.f32.mrf.mxu1  ;;  %v10366_v50 = vpop.f32.mrf.mxu0  ;;  %15826 = vmatprep.subr.msk.bf16.mxu0 %vm9779_vm1, %v15795_v61  ;;  %v15157_v61 = vcombine.high %v714_v28, %v730_v10  ;;  %v15669_v44 = vcombine.high %v1226_v45, %v1242_v4  ;;  %v15156_v21 = vcombine.low %v714_v28, %v730_v10  ;;  %v1130_v32 = vunpack.c.l.s8.bf16 %v18309_v62  ;;  %v18323_v28 = vld [vmem:[#allocation4 + $0x8e8] sm:$0xff] }
 0x267   :  { %20024 = vst [vmem:[#allocation33_spill] sm:$0xff] %v18240_v6  ;;  %10641 = vmatpush2.bf16.msra.mxu1 %v15314_v55  ;;  %v15188_v55 = vcombine.low %v746_v48, %v762_v9  ;;  %v15668_v34 = vcombine.low %v1226_v45, %v1242_v4  ;;  %v650_v50 = vunpack.c.l.s8.bf16 %v18290_v53  ;;  %v1146_v56 = vunpack.c.l.s8.bf16 %v18311_v41  ;;  %v18354_v17 = vld [vmem:[#allocation4 + $0xc28] sm:$0xff] }
 0x268   :  { %v10325_v52 = vpop.f32.mrf.mxu1  ;;  %10642 = vmatprep.subr.bf16.mxu1 %v15283_v47  ;;  %v18296_v47 = vld [vmem:[#allocation4 + $0x9a8] sm:$0xff]  ;;  %20029 = vst [vmem:[#allocation41_spill] sm:$0xff] %v18354_v17  ;;  %v1322_v20 = vunpack.c.l.s8.bf16 %v18354_v17  ;;  %v795_v17 = vunpack.c.h.s8.bf16 %v18238_v11  ;;  %v763_v11 = vunpack.c.h.s8.bf16 %v18254_v19  ;;  %v731_v19 = vunpack.c.h.s8.bf16 %v18266_v24 }
 0x269   :  { %10684 = vmatpush2.bf16.msra.mxu0 %v9835_v57  ;;  %v666_v57 = vunpack.c.l.s8.bf16 %v18292_v46  ;;  %v1162_v42 = vunpack.c.l.s8.bf16 %v18296_v47  ;;  %v18305_v52 = vld [vmem:[#allocation4 + $0x128] sm:$0xff]  ;;  %v683_v24 = vunpack.c.h.s8.bf16 %v18276_v60 }
 0x26a   :  { %10685 = vmatprep.subr.bf16.mxu0 %v15763_v59  ;;  %v15637_v59 = vcombine.high %v1194_v43, %v1210_v7  ;;  %v618_v48 = vunpack.c.l.s8.bf16 %v18305_v52 }
 0x26b   :  { %10643 = vmatpush2.bf16.msra.mxu1 %v15282_v0  ;;  %v15125_v0 = vcombine.high %v682_v39, %v698_v25  ;;  %v15092_v10 = vcombine.low %v650_v50, %v666_v57 }
 0x26c   :  { %10644 = vmatprep.subr.bf16.mxu1 %v15251_v63  ;;  %v18307_v63 = vld [vmem:[#allocation4 + $0x168] sm:$0xff] }
 0x26d   :  { %10686 = vmatpush2.bf16.msra.mxu0 %v15762_v27  ;;  %v15124_v27 = vcombine.low %v682_v39, %v698_v25  ;;  %v634_v9 = vunpack.c.l.s8.bf16 %v18307_v63  ;;  %v1114_v39 = vunpack.c.l.s8.bf16 %v18323_v28  ;;  %v18329_v25 = vld [vmem:[#allocation4 + $0x28] sm:$0xff] }
 0x26e   :  { %10696 = vmatprep.subr.bf16.mxu0 %v15221_v40  ;;  %v15093_v40 = vcombine.high %v650_v50, %v666_v57  ;;  %v554_v50 = vunpack.c.l.s8.bf16 %v18329_v25 }
 0x26f   :  { %10645 = vmatpush2.bf16.msra.mxu1 %v15250_v16  ;;  %v15636_v16 = vcombine.low %v1194_v43, %v1210_v7  ;;  %v15061_v45 = vcombine.high %v618_v48, %v634_v9  ;;  %v18333_v43 = vld [vmem:[#allocation4 + $0x828] sm:$0xff] }
 0x270   :  { %10737 = vmatprep.subr.bf16.mxu1 %v15733_v49  ;;  %10688 = vmatmul.mubr.bf16.vlgmr.msra.gmra.mxu0 %v17246_v23  ;;  %v15605_v49 = vcombine.high %v1162_v42, %v1178_v1  ;;  %20026 = vst [vmem:[#allocation34_spill] sm:$0xff] %v18333_v43  ;;  %v18335_v7 = vld [vmem:[#allocation4 + $0x868] sm:$0xff] }
 0x271   :  { %10697 = vmatpush1.bf16.msra.mxu0 %v15220_v5  ;;  %10728 = vmatprep.mubr.bf16.mxu0 %v20025_v51  ;;  %v18317_v5 = vld [vmem:[#allocation4 + $0xa8] sm:$0xff]  ;;  %20027 = vst [vmem:[#allocation37_spill] sm:$0xff] %v18335_v7 }
 0x272   :  { %10647 = vmatmul.mubr.bf16.vlgmr.msra.gmra.mxu1 %v17288_v8  ;;  %10698 = vmatprep.subr.bf16.mxu0 %v15189_v26  ;;  %v18321_v26 = vld [vmem:[#allocation4 + $0x8a8] sm:$0xff]  ;;  %v586_v4 = vunpack.c.l.s8.bf16 %v18317_v5 }
 0x273   :  { %10738 = vmatpush1.bf16.msra.mxu1 %v15732_v14  ;;  %15829 = vmatprep.mubr.msk.bf16.mxu1 %vm9775_vm0, %v17183_v35  ;;  %v18319_v14 = vld [vmem:[#allocation4 + $0xe8] sm:$0xff] }
 0x274   :  { %10739 = vmatprep.subr.bf16.mxu1 %v15701_v3  ;;  %v15604_v3 = vcombine.low %v1162_v42, %v1178_v1  ;;  %v1066_v42 = vunpack.c.l.s8.bf16 %v18333_v43  ;;  %v1082_v1 = vunpack.c.l.s8.bf16 %v18335_v7  ;;  %v18366_v7 = vld [vmem:[#allocation4 + $0x6a8] sm:$0xff] }
 0x275   :  { %10699 = vmatpush1.bf16.msra.mxu0 %v15188_v55  ;;  %v602_v55 = vunpack.c.l.s8.bf16 %v18319_v14  ;;  %v18386_v43 = vld [vmem:[#allocation4 + $0x5e8] sm:$0xff] }
 0x276   :  { %10700 = vmatprep.subr.bf16.mxu0 %v15157_v61  ;;  %v1098_v61 = vunpack.c.l.s8.bf16 %v18321_v26 }
 0x277   :  { %10740 = vmatpush1.bf16.msra.mxu1 %v15700_v12  ;;  %v15573_v12 = vcombine.high %v1130_v32, %v1146_v56 }
 0x278   :  { %10741 = vmatprep.subr.bf16.mxu1 %v15669_v44  ;;  %v18331_v44 = vld [vmem:[#allocation4 + $0x68] sm:$0xff] }
 0x279   :  { %10701 = vmatpush1.bf16.msra.mxu0 %v15156_v21  ;;  %v15060_v21 = vcombine.low %v618_v48, %v634_v9  ;;  %v570_v57 = vunpack.c.l.s8.bf16 %v18331_v44  ;;  %v15028_v48 = vcombine.low %v586_v4, %v602_v55  ;;  %v15540_v9 = vcombine.low %v1098_v61, %v1114_v39 }
 0x27a   :  { %10702 = vmatprep.subr.bf16.mxu0 %v15125_v0  ;;  %v15029_v0 = vcombine.high %v586_v4, %v602_v55 }
 0x27b   :  { %10742 = vmatpush1.bf16.msra.mxu1 %v15668_v34  ;;  %v15572_v34 = vcombine.low %v1130_v32, %v1146_v56  ;;  %v14996_v55 = vcombine.low %v554_v50, %v570_v57 }
 0x27c   :  { %10743 = vmatprep.subr.bf16.mxu1 %v15637_v59  ;;  %v15541_v59 = vcombine.high %v1098_v61, %v1114_v39  ;;  %v15508_v61 = vcombine.low %v1066_v42, %v1082_v1 }
 0x27d   :  { %10703 = vmatpush1.bf16.msra.mxu0 %v15124_v27  ;;  %v18341_v27 = vld [vmem:[#allocation4 + $0x7a8] sm:$0xff] }
 0x27e   :  { %10704 = vmatprep.subr.bf16.mxu0 %v15093_v40  ;;  %v18345_v40 = vld [vmem:[#allocation4 + $0xca8] sm:$0xff]  ;;  %v1034_v32 = vunpack.c.l.s8.bf16 %v18341_v27 }
 0x27f   :  { %10744 = vmatpush1.bf16.msra.mxu1 %v15636_v16  ;;  %v18343_v16 = vld [vmem:[#allocation4 + $0x7e8] sm:$0xff]  ;;  %20028 = vst [vmem:[#allocation38_spill] sm:$0xff] %v18345_v40 }
 0x280   :  { %10745 = vmatprep.subr.bf16.mxu1 %v15605_v49  ;;  %v14997_v49 = vcombine.high %v554_v50, %v570_v57  ;;  %v1050_v56 = vunpack.c.l.s8.bf16 %v18343_v16  ;;  %v18368_v50 = vld [vmem:[#allocation4 + $0x6e8] sm:$0xff] }
 0x281   :  { %10705 = vmatpush1.bf16.msra.mxu0 %v15092_v10  ;;  %v15509_v10 = vcombine.high %v1066_v42, %v1082_v1 }
 0x282   :  { %10706 = vmatprep.subr.bf16.mxu0 %v15061_v45  ;;  %v18350_v45 = vld [vmem:[#allocation4 + $0x728] sm:$0xff]  ;;  %v15477_v39 = vcombine.high %v1034_v32, %v1050_v56  ;;  %v15476_v42 = vcombine.low %v1034_v32, %v1050_v56 }
 0x283   :  { %10746 = vmatpush1.bf16.msra.mxu1 %v15604_v3  ;;  %v1354_v3 = vunpack.c.l.s8.bf16 %v18345_v40  ;;  %v18378_v32 = vld [vmem:[#allocation4 + $0x668] sm:$0xff] }
 0x284   :  { %10747 = vmatprep.subr.bf16.mxu1 %v15573_v12  ;;  %v18352_v12 = vld [vmem:[#allocation4 + $0x768] sm:$0xff] }
 0x285   :  { %10707 = vmatpush1.bf16.msra.mxu0 %v15060_v21  ;;  %v18356_v21 = vld [vmem:[#allocation4 + $0xc68] sm:$0xff]  ;;  %v15797_v38 = vcombine.high %v1354_v3, %v1354_v3  ;;  %v15796_v6 = vcombine.low %v1354_v3, %v1354_v3 }
 0x286   :  { %10708 = vmatprep.subr.bf16.mxu0 %v15029_v0  ;;  %20030 = vst [vmem:[#allocation42_spill] sm:$0xff] %v18356_v21  ;;  %v1018_v0 = vunpack.c.l.s8.bf16 %v18352_v12  ;;  %v1338_v40 = vunpack.c.l.s8.bf16 %v18356_v21  ;;  %v779_v21 = vunpack.c.h.s8.bf16 %v18236_v30  ;;  %v747_v30 = vunpack.c.h.s8.bf16 %v18252_v58 }
 0x287   :  { %10748 = vmatpush1.bf16.msra.mxu1 %v15572_v34  ;;  %v1002_v34 = vunpack.c.l.s8.bf16 %v18350_v45  ;;  %v715_v58 = vunpack.c.h.s8.bf16 %v18264_v15 }
 0x288   :  { %10749 = vmatprep.subr.bf16.mxu1 %v15541_v59  ;;  %v15765_v3 = vcombine.high %v1322_v20, %v1338_v40 }
 0x289   :  { %10709 = vmatpush1.bf16.msra.mxu0 %v15028_v48  ;;  %v15445_v1 = vcombine.high %v1002_v34, %v1018_v0  ;;  %v970_v48 = vunpack.c.l.s8.bf16 %v18366_v7  ;;  %v15444_v56 = vcombine.low %v1002_v34, %v1018_v0  ;;  %v15159_v15 = vcombine.high %v715_v58, %v731_v19 }
 0x28a   :  { %v18358_v4 = vpop.f32.mrf.mxu1  ;;  %10710 = vmatprep.subr.bf16.mxu0 %v14997_v49 }
 0x28b   :  { %10750 = vmatpush1.bf16.msra.mxu1 %v15540_v9  ;;  %v986_v9 = vunpack.c.l.s8.bf16 %v18368_v50 }
 0x28c   :  { %v18362_v59 = vpop.f32.mrf.mxu1  ;;  %10751 = vmatprep.subr.bf16.mxu1 %v15509_v10  ;;  %v9841_v10 = vsel %vm9779_vm1, %v15796_v6, 0  ;;  %v15223_v6 = vcombine.high %v779_v21, %v795_v17 }
 0x28d   :  { %10711 = vmatpush1.bf16.msra.mxu0 %v14996_v55  ;;  %v15764_v55 = vcombine.low %v1322_v20, %v1338_v40  ;;  %v15412_v34 = vcombine.low %v970_v48, %v986_v9  ;;  %v15222_v20 = vcombine.low %v779_v21, %v795_v17  ;;  %v15190_v17 = vcombine.low %v747_v30, %v763_v11 }
 0x28e   :  { %v10447_v57 = vpop.f32.mrf.mxu1  ;;  %10712 = vmatprep.subr.bf16.mxu0 %v15477_v39 }
 0x28f   :  { %10752 = vmatpush1.bf16.msra.mxu1 %v15508_v61  ;;  %v18376_v57 = vld [vmem:[#allocation4 + $0x628] sm:$0xff]  ;;  %v15413_v61 = vcombine.high %v970_v48, %v986_v9 }
 0x290   :  { %v10448_v49 = vpop.f32.mrf.mxu1  ;;  %15828 = vmatprep.subr.msk.bf16.mxu1 %vm9779_vm1, %v15797_v38  ;;  %v938_v39 = vunpack.c.l.s8.bf16 %v18376_v57  ;;  %v954_v38 = vunpack.c.l.s8.bf16 %v18378_v32 }
 0x291   :  { %10713 = vmatpush2.bf16.msra.mxu0 %v15476_v42  ;;  %v18384_v49 = vld [vmem:[#allocation4 + $0x5a8] sm:$0xff]  ;;  %v922_v42 = vunpack.c.l.s8.bf16 %v18386_v43 }
 0x292   :  { %10714 = vmatprep.subr.bf16.mxu0 %v15445_v1  ;;  %v15381_v40 = vcombine.high %v938_v39, %v954_v38  ;;  %v906_v0 = vunpack.c.l.s8.bf16 %v18384_v49  ;;  %v15191_v1 = vcombine.high %v747_v30, %v763_v11  ;;  %v15380_v48 = vcombine.low %v938_v39, %v954_v38 }
 0x293   :  { %10766 = vmatpush2.bf16.msra.mxu1 %v9841_v10  ;;  %v18392_v10 = vld [vmem:[#allocation4 + $0x528] sm:$0xff]  ;;  %v15158_v38 = vcombine.low %v715_v58, %v731_v19 }
 0x294   :  { %10767 = vmatprep.subr.bf16.mxu1 %v15765_v3  ;;  %v18394_v3 = vld [vmem:[#allocation4 + $0x568] sm:$0xff]  ;;  %v15349_v21 = vcombine.high %v906_v0, %v922_v42  ;;  %v874_v9 = vunpack.c.l.s8.bf16 %v18392_v10  ;;  %v15348_v39 = vcombine.low %v906_v0, %v922_v42 }
 0x295   :  { %10715 = vmatpush2.bf16.msra.mxu0 %v15444_v56  ;;  %v890_v56 = vunpack.c.l.s8.bf16 %v18394_v3 }
 0x296   :  { %10716 = vmatprep.subr.bf16.mxu0 %v15413_v61  ;;  %v18401_v61 = vld [vmem:[#allocation4 + $0x4a8] sm:$0xff] }
 0x297   :  { %10768 = vmatpush2.bf16.msra.mxu1 %v15764_v55  ;;  %v699_v55 = vunpack.c.h.s8.bf16 %v18278_v31  ;;  %v15317_v30 = vcombine.high %v874_v9, %v890_v56  ;;  %v842_v11 = vunpack.c.l.s8.bf16 %v18401_v61  ;;  %v651_v31 = vunpack.c.h.s8.bf16 %v18290_v53 }
 0x298   :  { %10778 = vmatprep.subr.bf16.mxu1 %v15223_v6  ;;  %v18403_v6 = vld [vmem:[#allocation4 + $0x4e8] sm:$0xff]  ;;  %v15316_v42 = vcombine.low %v874_v9, %v890_v56 }
 0x299   :  { %10717 = vmatpush2.bf16.msra.mxu0 %v15412_v34  ;;  %v858_v34 = vunpack.c.l.s8.bf16 %v18403_v6  ;;  %v15127_v60 = vcombine.high %v683_v24, %v699_v55  ;;  %v15126_v19 = vcombine.low %v683_v24, %v699_v55 }
 0x29a   :  { %10770 = vmatmul.mubr.bf16.vlgmr.msra.gmra.mxu1 %v17246_v23  ;;  %10718 = vmatprep.subr.bf16.mxu0 %v15381_v40  ;;  %v18410_v40 = vld [vmem:[#allocation4 + $0x428] sm:$0xff] }
 0x29b   :  { %10779 = vmatpush1.bf16.msra.mxu1 %v15222_v20  ;;  %10810 = vmatprep.mubr.bf16.mxu1 %v20025_v51  ;;  %v667_v20 = vunpack.c.h.s8.bf16 %v18292_v46  ;;  %v619_v51 = vunpack.c.h.s8.bf16 %v18305_v52  ;;  %v15284_v9 = vcombine.low %v842_v11, %v858_v34  ;;  %v603_v52 = vunpack.c.h.s8.bf16 %v18319_v14 }
 0x29c   :  { %10780 = vmatprep.subr.bf16.mxu1 %v15191_v1  ;;  %v18412_v1 = vld [vmem:[#allocation4 + $0x468] sm:$0xff] }
 0x29d   :  { %10719 = vmatpush2.bf16.msra.mxu0 %v15380_v48  ;;  %v826_v53 = vunpack.c.l.s8.bf16 %v18412_v1  ;;  %v15094_v24 = vcombine.low %v651_v31, %v667_v20 }
 0x29e   :  { %10720 = vmatprep.subr.bf16.mxu0 %v15349_v21  ;;  %v810_v21 = vunpack.c.l.s8.bf16 %v18410_v40 }
 0x29f   :  { %10781 = vmatpush1.bf16.msra.mxu1 %v15190_v17  ;;  %v15285_v17 = vcombine.high %v842_v11, %v858_v34 }
 0x2a0   :  { %10782 = vmatprep.subr.bf16.mxu1 %v15159_v15  ;;  %v10402_v48 = vpop.f32.mrf.mxu0  ;;  %v15095_v15 = vcombine.high %v651_v31, %v667_v20  ;;  %v15253_v55 = vcombine.high %v810_v21, %v826_v53  ;;  %v1275_v31 = vunpack.c.h.s8.bf16 %v18258_v18  ;;  %v571_v20 = vunpack.c.h.s8.bf16 %v18331_v44 }
 0x2a1   :  { %v18415_v0 = vadd.f32 %v18358_v4, %v10402_v48  ;;  %10721 = vmatpush2.bf16.msra.mxu0 %v15348_v39  ;;  %v635_v4 = vunpack.c.h.s8.bf16 %v18307_v63  ;;  %v15252_v63 = vcombine.low %v810_v21, %v826_v53  ;;  %v1259_v48 = vunpack.c.h.s8.bf16 %v18256_v37 }
 0x2a2   :  { %v10404_v58 = vpop.f32.mrf.mxu0  ;;  %10722 = vmatprep.subr.bf16.mxu0 %v15317_v30  ;;  %v1307_v30 = vunpack.c.h.s8.bf16 %v18244_v22  ;;  %v555_v22 = vunpack.c.h.s8.bf16 %v18329_v25  ;;  %v1035_v18 = vunpack.c.h.s8.bf16 %v18341_v27  ;;  %v1003_v27 = vunpack.c.h.s8.bf16 %v18350_v45 }
 0x2a3   :  { %20031 = vst [vmem:[#allocation43_spill] sm:$0xff] %v18415_v0  ;;  %10783 = vmatpush1.bf16.msra.mxu1 %v15158_v38  ;;  %v18420_v46 = vadd.f32 %v18362_v59, %v10404_v58  ;;  %v1291_v38 = vunpack.c.h.s8.bf16 %v18242_v2  ;;  %v15063_v59 = vcombine.high %v619_v51, %v635_v4  ;;  %v15062_v11 = vcombine.low %v619_v51, %v635_v4 }
 0x2a4   :  { %10784 = vmatprep.subr.bf16.mxu1 %v15127_v60  ;;  %v10406_v39 = vpop.f32.mrf.mxu0  ;;  %v587_v60 = vunpack.c.h.s8.bf16 %v18317_v5  ;;  %v1227_v58 = vunpack.c.h.s8.bf16 %v18268_v13  ;;  %v1243_v51 = vunpack.c.h.s8.bf16 %v18270_v29  ;;  %v14999_v37 = vcombine.high %v555_v22, %v571_v20 }
 0x2a5   :  { %20032 = vst [vmem:[#allocation44_spill] sm:$0xff] %v18420_v46  ;;  %10723 = vmatpush2.bf16.msra.mxu0 %v15316_v42  ;;  %v15735_v34 = vcombine.high %v1291_v38, %v1307_v30  ;;  %v15734_v5 = vcombine.low %v1291_v38, %v1307_v30  ;;  %v15703_v42 = vcombine.high %v1259_v48, %v1275_v31  ;;  %v1195_v13 = vunpack.c.h.s8.bf16 %v18281_v33 }
 0x2a6   :  { %v10407_v56 = vpop.f32.mrf.mxu0  ;;  %10724 = vmatprep.subr.bf16.mxu0 %v15285_v17  ;;  %v15031_v2 = vcombine.high %v587_v60, %v603_v52  ;;  %v15030_v14 = vcombine.low %v587_v60, %v603_v52  ;;  %v15702_v25 = vcombine.low %v1259_v48, %v1275_v31  ;;  %v14998_v44 = vcombine.low %v555_v22, %v571_v20  ;;  %v20034_v31 = vld [vmem:[#allocation37_spill] sm:$0xff]  ;;  %v20035_v20 = vld [vmem:[#allocation38_spill] sm:$0xff] }
 0x2a7   :  { %10785 = vmatpush1.bf16.msra.mxu1 %v15126_v19  ;;  %v1051_v19 = vunpack.c.h.s8.bf16 %v18343_v16  ;;  %v15671_v17 = vcombine.high %v1227_v58, %v1243_v51  ;;  %v1211_v29 = vunpack.c.h.s8.bf16 %v18283_v36  ;;  %v1019_v16 = vunpack.c.h.s8.bf16 %v18352_v12 }
 0x2a8   :  { %10786 = vmatprep.subr.bf16.mxu1 %v15095_v15  ;;  %v15670_v53 = vcombine.low %v1227_v58, %v1243_v51  ;;  %v1163_v39 = vunpack.c.h.s8.bf16 %v18296_v47  ;;  %v971_v36 = vunpack.c.h.s8.bf16 %v18366_v7  ;;  %v987_v56 = vunpack.c.h.s8.bf16 %v18368_v50 }
 0x2a9   :  { %10725 = vmatpush2.bf16.msra.mxu0 %v15284_v9  ;;  %v15479_v21 = vcombine.high %v1035_v18, %v1051_v19  ;;  %v15478_v15 = vcombine.low %v1035_v18, %v1051_v19  ;;  %v15639_v4 = vcombine.high %v1195_v13, %v1211_v29  ;;  %v1179_v9 = vunpack.c.h.s8.bf16 %v18298_v54 }
 0x2aa   :  { %10726 = vmatprep.subr.bf16.mxu0 %v15253_v55  ;;  %v15447_v33 = vcombine.high %v1003_v27, %v1019_v16  ;;  %v15638_v45 = vcombine.low %v1195_v13, %v1211_v29  ;;  %v15446_v12 = vcombine.low %v1003_v27, %v1019_v16  ;;  %v1131_v55 = vunpack.c.h.s8.bf16 %v18309_v62  ;;  %v20037_v13 = vld [vmem:[#allocation41_spill] sm:$0xff] }
 0x2ab   :  { %10787 = vmatpush1.bf16.msra.mxu1 %v15094_v24  ;;  %v15607_v24 = vcombine.high %v1163_v39, %v1179_v9  ;;  %v1147_v38 = vunpack.c.h.s8.bf16 %v18311_v41  ;;  %v15415_v47 = vcombine.high %v971_v36, %v987_v56  ;;  %v939_v54 = vunpack.c.h.s8.bf16 %v18376_v57 }
 0x2ac   :  { %10788 = vmatprep.subr.bf16.mxu1 %v15063_v59  ;;  %v955_v30 = vunpack.c.h.s8.bf16 %v18378_v32  ;;  %v15606_v7 = vcombine.low %v1163_v39, %v1179_v9  ;;  %v15414_v50 = vcombine.low %v971_v36, %v987_v56  ;;  %v1099_v60 = vunpack.c.h.s8.bf16 %v18321_v26  ;;  %v18476_v36 = vld [vmem:[#allocation4 + $0xbf0] sm:$0xff] }
 0x2ad   :  { %10727 = vmatpush2.bf16.msra.mxu0 %v15252_v63  ;;  %v15575_v59 = vcombine.high %v1131_v55, %v1147_v38  ;;  %v1115_v52 = vunpack.c.h.s8.bf16 %v18323_v28  ;;  %v907_v41 = vunpack.c.h.s8.bf16 %v18384_v49  ;;  %v923_v63 = vunpack.c.h.s8.bf16 %v18386_v43 }
 0x2ae   :  { %10819 = vmatprep.subr.bf16.mxu0 %v15735_v34  ;;  %v15383_v62 = vcombine.high %v939_v54, %v955_v30  ;;  %v15574_v57 = vcombine.low %v1131_v55, %v1147_v38  ;;  %v15382_v32 = vcombine.low %v939_v54, %v955_v30  ;;  %v20033_v34 = vld [vmem:[#allocation34_spill] sm:$0xff]  ;;  %v875_v28 = vunpack.c.h.s8.bf16 %v18392_v10 }
 0x2af   :  { %10789 = vmatpush1.bf16.msra.mxu1 %v15062_v11  ;;  %v15543_v11 = vcombine.high %v1099_v60, %v1115_v52  ;;  %v1067_v48 = vunpack.c.h.s8.bf16 %v20033_v34  ;;  %v15351_v26 = vcombine.high %v907_v41, %v923_v63  ;;  %v891_v22 = vunpack.c.h.s8.bf16 %v18394_v3 }
 0x2b0   :  { %10790 = vmatprep.subr.bf16.mxu1 %v15031_v2  ;;  %10729 = vmatmul.mubr.bf16.vlgmr.msra.gmra.mxu0 %v17288_v8  ;;  %v1083_v2 = vunpack.c.h.s8.bf16 %v20034_v31  ;;  %v15542_v49 = vcombine.low %v1099_v60, %v1115_v52  ;;  %v1355_v43 = vunpack.c.h.s8.bf16 %v20035_v20  ;;  %v843_v58 = vunpack.c.h.s8.bf16 %v18401_v61  ;;  %v18490_v60 = vld [vmem:[#allocation4 + $0xb70] sm:$0xff] }
 0x2b1   :  { %10820 = vmatpush1.bf16.msra.mxu0 %v15734_v5  ;;  %15831 = vmatprep.mubr.msk.bf16.mxu0 %vm9775_vm0, %v17183_v35  ;;  %v15350_v5 = vcombine.low %v907_v41, %v923_v63  ;;  %v859_v51 = vunpack.c.h.s8.bf16 %v18403_v6  ;;  %v15318_v10 = vcombine.low %v875_v28, %v891_v22  ;;  %v1323_v29 = vunpack.c.h.s8.bf16 %v20037_v13  ;;  %v18498_v31 = vld [vmem:[#allocation4 + $0x2f0] sm:$0xff] }
 0x2b2   :  { %10821 = vmatprep.subr.bf16.mxu0 %v15703_v42  ;;  %v15319_v42 = vcombine.high %v875_v28, %v891_v22  ;;  %v15510_v19 = vcombine.low %v1067_v48, %v1083_v2  ;;  %v15799_v3 = vcombine.high %v1355_v43, %v1355_v43  ;;  %v811_v6 = vunpack.c.h.s8.bf16 %v18410_v40 }
 0x2b3   :  { %10791 = vmatpush1.bf16.msra.mxu1 %v15030_v14  ;;  %v15511_v14 = vcombine.high %v1067_v48, %v1083_v2  ;;  %v15287_v61 = vcombine.high %v843_v58, %v859_v51  ;;  %v1308_v30 = vunpack.c.l.s8.bf16 %v18476_v36  ;;  %v1276_v34 = vunpack.c.l.s8.bf16 %v18490_v60  ;;  %v18496_v48 = vld [vmem:[#allocation4 + $0x2b0] sm:$0xff] }
 0x2b4   :  { %10792 = vmatprep.subr.bf16.mxu1 %v14999_v37  ;;  %v18500_v2 = vld [vmem:[#allocation4 + $0xab0] sm:$0xff]  ;;  %v716_v20 = vunpack.c.l.s8.bf16 %v18496_v48 }
 0x2b5   :  { %10822 = vmatpush1.bf16.msra.mxu0 %v15702_v25 }
 0x2b6   :  { %10823 = vmatprep.subr.bf16.mxu0 %v15671_v17  ;;  %v15798_v17 = vcombine.low %v1355_v43, %v1355_v43  ;;  %v732_v43 = vunpack.c.l.s8.bf16 %v18498_v31 }
 0x2b7   :  { %10793 = vmatpush1.bf16.msra.mxu1 %v14998_v44 }
 0x2b8   :  { %10794 = vmatprep.subr.bf16.mxu1 %v15479_v21  ;;  %v20038_v21 = vld [vmem:[#allocation42_spill] sm:$0xff]  ;;  %v9847_v40 = vsel %vm9779_vm1, %v15798_v17, 0 }
 0x2b9   :  { %10824 = vmatpush1.bf16.msra.mxu0 %v15670_v53  ;;  %v1339_v27 = vunpack.c.h.s8.bf16 %v20038_v21  ;;  %v827_v53 = vunpack.c.h.s8.bf16 %v18412_v1 }
 0x2ba   :  { %10825 = vmatprep.subr.bf16.mxu0 %v15639_v4  ;;  %v18470_v4 = vld [vmem:[#allocation4 + $0x3f0] sm:$0xff] }
 0x2bb   :  { %10795 = vmatpush2.bf16.msra.mxu1 %v15478_v15  ;;  %v18468_v15 = vld [vmem:[#allocation4 + $0x3b0] sm:$0xff]  ;;  %v15767_v1 = vcombine.high %v1323_v29, %v1339_v27  ;;  %v796_v55 = vunpack.c.l.s8.bf16 %v18470_v4  ;;  %v15766_v52 = vcombine.low %v1323_v29, %v1339_v27 }
 0x2bc   :  { %10796 = vmatprep.subr.bf16.mxu1 %v15447_v33  ;;  %v18474_v33 = vld [vmem:[#allocation4 + $0xbb0] sm:$0xff] }
 0x2bd   :  { %10826 = vmatpush1.bf16.msra.mxu0 %v15638_v45  ;;  %v15286_v45 = vcombine.low %v843_v58, %v859_v51  ;;  %v1292_v54 = vunpack.c.l.s8.bf16 %v18474_v33  ;;  %v18508_v58 = vld [vmem:[#allocation4 + $0x230] sm:$0xff] }
 0x2be   :  { %10827 = vmatprep.subr.bf16.mxu0 %v15607_v24  ;;  %v780_v24 = vunpack.c.l.s8.bf16 %v18468_v15  ;;  %v18510_v51 = vld [vmem:[#allocation4 + $0x270] sm:$0xff] }
 0x2bf   :  { %10797 = vmatpush2.bf16.msra.mxu1 %v15446_v12  ;;  %v15736_v22 = vcombine.low %v1292_v54, %v1308_v30  ;;  %v700_v17 = vunpack.c.l.s8.bf16 %v18510_v51  ;;  %v18522_v27 = vld [vmem:[#allocation4 + $0x1b0] sm:$0xff] }
 0x2c0   :  { %10798 = vmatprep.subr.bf16.mxu1 %v15415_v47  ;;  %v15255_v47 = vcombine.high %v811_v6, %v827_v53  ;;  %v15225_v41 = vcombine.high %v780_v24, %v796_v55  ;;  %v15224_v28 = vcombine.low %v780_v24, %v796_v55 }
 0x2c1   :  { %10828 = vmatpush1.bf16.msra.mxu0 %v15606_v7  ;;  %v18484_v7 = vld [vmem:[#allocation4 + $0x330] sm:$0xff] }
 0x2c2   :  { %10829 = vmatprep.subr.bf16.mxu0 %v15575_v59  ;;  %v18488_v59 = vld [vmem:[#allocation4 + $0xb30] sm:$0xff]  ;;  %v748_v63 = vunpack.c.l.s8.bf16 %v18484_v7 }
 0x2c3   :  { %10799 = vmatpush2.bf16.msra.mxu1 %v15414_v50  ;;  %v18486_v50 = vld [vmem:[#allocation4 + $0x370] sm:$0xff] }
 0x2c4   :  { %10800 = vmatprep.subr.bf16.mxu1 %v15383_v62  ;;  %v15254_v62 = vcombine.low %v811_v6, %v827_v53  ;;  %v18530_v6 = vld [vmem:[#allocation4 + $0x9f0] sm:$0xff]  ;;  %v20040_v53 = vld [vmem:[#allocation26_spill] sm:$0xff] }
 0x2c5   :  { %10830 = vmatpush1.bf16.msra.mxu0 %v15574_v57  ;;  %v764_v57 = vunpack.c.l.s8.bf16 %v18486_v50  ;;  %v1180_v55 = vunpack.c.l.s8.bf16 %v18530_v6 }
 0x2c6   :  { %10831 = vmatprep.subr.bf16.mxu0 %v15543_v11  ;;  %v1260_v11 = vunpack.c.l.s8.bf16 %v18488_v59 }
 0x2c7   :  { %10801 = vmatpush2.bf16.msra.mxu1 %v15382_v32  ;;  %v15737_v32 = vcombine.high %v1292_v54, %v1308_v30  ;;  %v18541_v54 = vld [vmem:[#allocation4 + $0x930] sm:$0xff] }
 0x2c8   :  { %10802 = vmatprep.subr.bf16.mxu1 %v15351_v26  ;;  %v10525_v37 = vpop.f32.mrf.mxu0  ;;  %v18502_v26 = vld [vmem:[#allocation4 + $0xaf0] sm:$0xff] }
 0x2c9   :  { %10832 = vmatpush1.bf16.msra.mxu0 %v15542_v49  ;;  %v15193_v49 = vcombine.high %v748_v63, %v764_v57  ;;  %v18543_v30 = vld [vmem:[#allocation4 + $0x970] sm:$0xff] }
 0x2ca   :  { %v10484_v18 = vpop.f32.mrf.mxu1  ;;  %v10527_v44 = vpop.f32.mrf.mxu0  ;;  %10833 = vmatprep.subr.bf16.mxu0 %v15511_v14  ;;  %v1228_v14 = vunpack.c.l.s8.bf16 %v18500_v2  ;;  %20041 = vst [vmem:[#allocation38_spill] sm:$0xff] %v18543_v30 }
 0x2cb   :  { %v18462_v25 = vadd.f32 %v10525_v37, %v10484_v18  ;;  %10803 = vmatpush2.bf16.msra.mxu1 %v15350_v5  ;;  %v15705_v5 = vcombine.high %v1260_v11, %v1276_v34  ;;  %v18513_v37 = vld [vmem:[#allocation4 + $0xa30] sm:$0xff] }
 0x2cc   :  { %v10486_v16 = vpop.f32.mrf.mxu1  ;;  %10804 = vmatprep.subr.bf16.mxu1 %v15319_v42  ;;  %v10529_v9 = vpop.f32.mrf.mxu0  ;;  %v1244_v42 = vunpack.c.l.s8.bf16 %v18502_v26  ;;  %v18515_v18 = vld [vmem:[#allocation4 + $0xa70] sm:$0xff]  ;;  %v1196_v29 = vunpack.c.l.s8.bf16 %v18513_v37 }
 0x2cd   :  { %20036 = vst [vmem:[#allocation34_spill] sm:$0xff] %v18462_v25  ;;  %v18472_v39 = vadd.f32 %v10527_v44, %v10486_v16  ;;  %10834 = vmatpush1.bf16.msra.mxu0 %v15510_v19  ;;  %v15704_v19 = vcombine.low %v1260_v11, %v1276_v34  ;;  %v684_v44 = vunpack.c.l.s8.bf16 %v18508_v58  ;;  %v1212_v21 = vunpack.c.l.s8.bf16 %v18515_v18  ;;  %v18524_v16 = vld [vmem:[#allocation4 + $0x1f0] sm:$0xff] }
 0x2ce   :  { %v10488_v56 = vpop.f32.mrf.mxu1  ;;  %v10530_v12 = vpop.f32.mrf.mxu0  ;;  %15830 = vmatprep.subr.msk.bf16.mxu0 %vm9779_vm1, %v15799_v3  ;;  %v15161_v3 = vcombine.high %v716_v20, %v732_v43  ;;  %v15673_v13 = vcombine.high %v1228_v14, %v1244_v42  ;;  %v15160_v9 = vcombine.low %v716_v20, %v732_v43  ;;  %v1132_v11 = vunpack.c.l.s8.bf16 %v18541_v54  ;;  %v18555_v20 = vld [vmem:[#allocation4 + $0x8f0] sm:$0xff] }
 0x2cf   :  { %20039 = vst [vmem:[#allocation37_spill] sm:$0xff] %v18472_v39  ;;  %10805 = vmatpush2.bf16.msra.mxu1 %v15318_v10  ;;  %v15192_v10 = vcombine.low %v748_v63, %v764_v57  ;;  %v15672_v56 = vcombine.low %v1228_v14, %v1244_v42  ;;  %v652_v12 = vunpack.c.l.s8.bf16 %v18522_v27  ;;  %v1148_v34 = vunpack.c.l.s8.bf16 %v18543_v30  ;;  %20043 = vst [vmem:[#allocation42_spill] sm:$0xff] %v18555_v20  ;;  %v18586_v25 = vld [vmem:[#allocation4 + $0xc30] sm:$0xff] }
 0x2d0   :  { %v10489_v38 = vpop.f32.mrf.mxu1  ;;  %10806 = vmatprep.subr.bf16.mxu1 %v15287_v61  ;;  %v18528_v61 = vld [vmem:[#allocation4 + $0x9b0] sm:$0xff]  ;;  %20047 = vst [vmem:[#allocation48_spill] sm:$0xff] %v18586_v25 }
 0x2d1   :  { %10848 = vmatpush2.bf16.msra.mxu0 %v9847_v40  ;;  %v668_v40 = vunpack.c.l.s8.bf16 %v18524_v16  ;;  %v1164_v24 = vunpack.c.l.s8.bf16 %v18528_v61  ;;  %v18537_v38 = vld [vmem:[#allocation4 + $0x130] sm:$0xff] }
 0x2d2   :  { %10849 = vmatprep.subr.bf16.mxu0 %v15767_v1  ;;  %v15641_v1 = vcombine.high %v1196_v29, %v1212_v21  ;;  %v620_v63 = vunpack.c.l.s8.bf16 %v18537_v38 }
 0x2d3   :  { %10807 = vmatpush2.bf16.msra.mxu1 %v15286_v45  ;;  %v15129_v45 = vcombine.high %v684_v44, %v700_v17  ;;  %v15096_v43 = vcombine.low %v652_v12, %v668_v40 }
 0x2d4   :  { %10808 = vmatprep.subr.bf16.mxu1 %v15255_v47  ;;  %v18539_v47 = vld [vmem:[#allocation4 + $0x170] sm:$0xff] }
 0x2d5   :  { %10850 = vmatpush2.bf16.msra.mxu0 %v15766_v52  ;;  %v15128_v52 = vcombine.low %v684_v44, %v700_v17  ;;  %v636_v57 = vunpack.c.l.s8.bf16 %v18539_v47  ;;  %v1116_v44 = vunpack.c.l.s8.bf16 %v18555_v20  ;;  %v18561_v17 = vld [vmem:[#allocation4 + $0x30] sm:$0xff]  ;;  %v733_v20 = vunpack.c.h.s8.bf16 %v18498_v31 }
 0x2d6   :  { %10860 = vmatprep.subr.bf16.mxu0 %v15225_v41  ;;  %v15097_v41 = vcombine.high %v652_v12, %v668_v40  ;;  %v556_v12 = vunpack.c.l.s8.bf16 %v18561_v17  ;;  %v685_v31 = vunpack.c.h.s8.bf16 %v18508_v58 }
 0x2d7   :  { %10809 = vmatpush2.bf16.msra.mxu1 %v15254_v62  ;;  %v15640_v62 = vcombine.low %v1196_v29, %v1212_v21  ;;  %v15065_v14 = vcombine.high %v620_v63, %v636_v57  ;;  %v18565_v29 = vld [vmem:[#allocation4 + $0x830] sm:$0xff] }
 0x2d8   :  { %10901 = vmatprep.subr.bf16.mxu1 %v15737_v32  ;;  %10852 = vmatmul.mubr.bf16.vlgmr.msra.gmra.mxu0 %v17246_v23  ;;  %v15609_v32 = vcombine.high %v1164_v24, %v1180_v55  ;;  %20044 = vst [vmem:[#allocation45_spill] sm:$0xff] %v18565_v29  ;;  %v18567_v21 = vld [vmem:[#allocation4 + $0x870] sm:$0xff] }
 0x2d9   :  { %10861 = vmatpush1.bf16.msra.mxu0 %v15224_v28  ;;  %10892 = vmatprep.mubr.bf16.mxu0 %v20040_v53  ;;  %v18549_v28 = vld [vmem:[#allocation4 + $0xb0] sm:$0xff]  ;;  %20045 = vst [vmem:[#allocation46_spill] sm:$0xff] %v18567_v21 }
 0x2da   :  { %10811 = vmatmul.mubr.bf16.vlgmr.msra.gmra.mxu1 %v17288_v8  ;;  %10862 = vmatprep.subr.bf16.mxu0 %v15193_v49  ;;  %v18553_v49 = vld [vmem:[#allocation4 + $0x8b0] sm:$0xff]  ;;  %v588_v42 = vunpack.c.l.s8.bf16 %v18549_v28 }
 0x2db   :  { %10902 = vmatpush1.bf16.msra.mxu1 %v15736_v22  ;;  %15833 = vmatprep.mubr.msk.bf16.mxu1 %vm9775_vm0, %v17183_v35  ;;  %v18551_v22 = vld [vmem:[#allocation4 + $0xf0] sm:$0xff]  ;;  %20042 = vst [vmem:[#allocation41_spill] sm:$0xff] %v18553_v49  ;;  %v1324_v35 = vunpack.c.l.s8.bf16 %v18586_v25  ;;  %v781_v25 = vunpack.c.h.s8.bf16 %v18468_v15 }
 0x2dc   :  { %10903 = vmatprep.subr.bf16.mxu1 %v15705_v5  ;;  %v15608_v5 = vcombine.low %v1164_v24, %v1180_v55  ;;  %v1068_v24 = vunpack.c.l.s8.bf16 %v18565_v29  ;;  %v1084_v55 = vunpack.c.l.s8.bf16 %v18567_v21  ;;  %v18619_v15 = vld [vmem:[#allocation4 + $0x5b0] sm:$0xff] }
 0x2dd   :  { %10863 = vmatpush1.bf16.msra.mxu0 %v15192_v10  ;;  %v604_v10 = vunpack.c.l.s8.bf16 %v18551_v22  ;;  %v908_v29 = vunpack.c.l.s8.bf16 %v18619_v15 }
 0x2de   :  { %10864 = vmatprep.subr.bf16.mxu0 %v15161_v3  ;;  %v1100_v3 = vunpack.c.l.s8.bf16 %v18553_v49 }
 0x2df   :  { %10904 = vmatpush1.bf16.msra.mxu1 %v15704_v19  ;;  %v15577_v19 = vcombine.high %v1132_v11, %v1148_v34 }
 0x2e0   :  { %10905 = vmatprep.subr.bf16.mxu1 %v15673_v13  ;;  %v18563_v13 = vld [vmem:[#allocation4 + $0x70] sm:$0xff] }
 0x2e1   :  { %10865 = vmatpush1.bf16.msra.mxu0 %v15160_v9  ;;  %v15064_v9 = vcombine.low %v620_v63, %v636_v57  ;;  %v572_v40 = vunpack.c.l.s8.bf16 %v18563_v13  ;;  %v15032_v63 = vcombine.low %v588_v42, %v604_v10  ;;  %v15544_v57 = vcombine.low %v1100_v3, %v1116_v44 }
 0x2e2   :  { %10866 = vmatprep.subr.bf16.mxu0 %v15129_v45  ;;  %v15033_v45 = vcombine.high %v588_v42, %v604_v10  ;;  %v11196_v42 = vlaneseq }
 0x2e3   :  { %10906 = vmatpush1.bf16.msra.mxu1 %v15672_v56  ;;  %v15576_v56 = vcombine.low %v1132_v11, %v1148_v34 }
 0x2e4   :  { %10907 = vmatprep.subr.bf16.mxu1 %v15641_v1  ;;  %v15545_v1 = vcombine.high %v1100_v3, %v1116_v44  ;;  %v15000_v3 = vcombine.low %v556_v12, %v572_v40  ;;  %v15512_v44 = vcombine.low %v1068_v24, %v1084_v55 }
 0x2e5   :  { %10867 = vmatpush1.bf16.msra.mxu0 %v15128_v52  ;;  %v18573_v52 = vld [vmem:[#allocation4 + $0x7b0] sm:$0xff] }
 0x2e6   :  { %10868 = vmatprep.subr.bf16.mxu0 %v15097_v41  ;;  %v18577_v41 = vld [vmem:[#allocation4 + $0xcb0] sm:$0xff]  ;;  %v1036_v11 = vunpack.c.l.s8.bf16 %v18573_v52 }
 0x2e7   :  { %10908 = vmatpush1.bf16.msra.mxu1 %v15640_v62  ;;  %v18575_v62 = vld [vmem:[#allocation4 + $0x7f0] sm:$0xff]  ;;  %20046 = vst [vmem:[#allocation47_spill] sm:$0xff] %v18577_v41 }
 0x2e8   :  { %10909 = vmatprep.subr.bf16.mxu1 %v15609_v32  ;;  %v15001_v32 = vcombine.high %v556_v12, %v572_v40  ;;  %v1052_v34 = vunpack.c.l.s8.bf16 %v18575_v62  ;;  %v18600_v12 = vld [vmem:[#allocation4 + $0x6f0] sm:$0xff] }
 0x2e9   :  { %10869 = vmatpush1.bf16.msra.mxu0 %v15096_v43  ;;  %v15513_v43 = vcombine.high %v1068_v24, %v1084_v55  ;;  %v18602_v55 = vshrl.u32 %v11196_v42, 7 }
 0x2ea   :  { %10870 = vmatprep.subr.bf16.mxu0 %v15065_v14  ;;  %v18582_v14 = vld [vmem:[#allocation4 + $0x730] sm:$0xff]  ;;  %v15480_v24 = vcombine.low %v1036_v11, %v1052_v34 }
 0x2eb   :  { %10910 = vmatpush1.bf16.msra.mxu1 %v15608_v5  ;;  %v1356_v5 = vunpack.c.l.s8.bf16 %v18577_v41  ;;  %v18598_v41 = vld [vmem:[#allocation4 + $0x6b0] sm:$0xff]  ;;  %20049 = vst [vmem:[#allocation50_spill] sm:$0xff] %v18602_v55  ;;  %v18615_v42 = vsub.s32 1, %v18602_v55  ;;  %v18626_v21 = vsub.s32 3, %v18602_v55 }
 0x2ec   :  { %10911 = vmatprep.subr.bf16.mxu1 %v15577_v19  ;;  %v18584_v19 = vld [vmem:[#allocation4 + $0x770] sm:$0xff] }
 0x2ed   :  { %10871 = vmatpush1.bf16.msra.mxu0 %v15064_v9  ;;  %v18588_v9 = vld [vmem:[#allocation4 + $0xc70] sm:$0xff]  ;;  %v15801_v39 = vcombine.high %v1356_v5, %v1356_v5  ;;  %v15800_v46 = vcombine.low %v1356_v5, %v1356_v5  ;;  %20050 = vst [vmem:[#allocation51_spill] sm:$0xff] %v18615_v42  ;;  %20053 = vst [vmem:[#allocation54_spill] sm:$0xff] %v18626_v21 }
 0x2ee   :  { %10872 = vmatprep.subr.bf16.mxu0 %v15033_v45  ;;  %20048 = vst [vmem:[#allocation49_spill] sm:$0xff] %v18588_v9  ;;  %v1004_v45 = vunpack.c.l.s8.bf16 %v18582_v14  ;;  %v1340_v8 = vunpack.c.l.s8.bf16 %v18588_v9 }
 0x2ef   :  { %10912 = vmatpush1.bf16.msra.mxu1 %v15576_v56  ;;  %v15481_v56 = vcombine.high %v1036_v11, %v1052_v34  ;;  %v9853_v5 = vsel %vm9779_vm1, %v15800_v46, 0  ;;  %v18610_v11 = vld [vmem:[#allocation4 + $0x630] sm:$0xff] }
 0x2f0   :  { %10913 = vmatprep.subr.bf16.mxu1 %v15545_v1  ;;  %v1020_v1 = vunpack.c.l.s8.bf16 %v18584_v19  ;;  %v15769_v9 = vcombine.high %v1324_v35, %v1340_v8  ;;  %v18612_v34 = vld [vmem:[#allocation4 + $0x670] sm:$0xff]  ;;  %v940_v46 = vunpack.c.l.s8.bf16 %v18610_v11 }
 0x2f1   :  { %10873 = vmatpush1.bf16.msra.mxu0 %v15032_v63 }
 0x2f2   :  { %v18590_v10 = vpop.f32.mrf.mxu1  ;;  %10874 = vmatprep.subr.bf16.mxu0 %v15001_v32  ;;  %v15449_v63 = vcombine.high %v1004_v45, %v1020_v1  ;;  %v988_v32 = vunpack.c.l.s8.bf16 %v18600_v12 }
 0x2f3   :  { %10914 = vmatpush1.bf16.msra.mxu1 %v15544_v57  ;;  %v972_v57 = vunpack.c.l.s8.bf16 %v18598_v41 }
 0x2f4   :  { %v18594_v0 = vpop.f32.mrf.mxu1  ;;  %10915 = vmatprep.subr.bf16.mxu1 %v15513_v43 }
 0x2f5   :  { %10875 = vmatpush1.bf16.msra.mxu0 %v15000_v3  ;;  %v797_v3 = vunpack.c.h.s8.bf16 %v18470_v4  ;;  %v18621_v4 = vld [vmem:[#allocation4 + $0x5f0] sm:$0xff] }
 0x2f6   :  { %v10611_v40 = vpop.f32.mrf.mxu1  ;;  %10876 = vmatprep.subr.bf16.mxu0 %v15481_v56  ;;  %v15768_v56 = vcombine.low %v1324_v35, %v1340_v8  ;;  %20051 = vst [vmem:[#allocation52_spill] sm:$0xff] %v18621_v4  ;;  %v765_v35 = vunpack.c.h.s8.bf16 %v18486_v50  ;;  %v18630_v8 = vld [vmem:[#allocation4 + $0x530] sm:$0xff]  ;;  %v924_v55 = vunpack.c.l.s8.bf16 %v18621_v4  ;;  %v701_v4 = vunpack.c.h.s8.bf16 %v18510_v51 }
 0x2f7   :  { %10916 = vmatpush1.bf16.msra.mxu1 %v15512_v44  ;;  %v15448_v44 = vcombine.low %v1004_v45, %v1020_v1  ;;  %v956_v40 = vunpack.c.l.s8.bf16 %v18612_v34  ;;  %v749_v45 = vunpack.c.h.s8.bf16 %v18484_v7  ;;  %v18632_v1 = vld [vmem:[#allocation4 + $0x570] sm:$0xff]  ;;  %v15226_v49 = vcombine.low %v781_v25, %v797_v3 }
 0x2f8   :  { %v10612_v43 = vpop.f32.mrf.mxu1  ;;  %15832 = vmatprep.subr.msk.bf16.mxu1 %vm9779_vm1, %v15801_v39  ;;  %v15417_v39 = vcombine.high %v972_v57, %v988_v32  ;;  %v18640_v7 = vld [vmem:[#allocation4 + $0x4b0] sm:$0xff]  ;;  %v15352_v21 = vcombine.low %v908_v29, %v924_v55  ;;  %v653_v51 = vunpack.c.h.s8.bf16 %v18522_v27  ;;  %v589_v27 = vunpack.c.h.s8.bf16 %v18549_v28 }
 0x2f9   :  { %10877 = vmatpush2.bf16.msra.mxu0 %v15480_v24  ;;  %v18623_v43 = vld [vmem:[#allocation6] sm:$0xff]  ;;  %v15227_v24 = vcombine.high %v781_v25, %v797_v3  ;;  %v18642_v50 = vld [vmem:[#allocation4 + $0x4f0] sm:$0xff]  ;;  %v15385_v30 = vcombine.high %v940_v46, %v956_v40  ;;  %v15194_v42 = vcombine.low %v749_v45, %v765_v35  ;;  %v557_v28 = vunpack.c.h.s8.bf16 %v18561_v17 }
 0x2fa   :  { %10878 = vmatprep.subr.bf16.mxu0 %v15449_v63  ;;  %20052 = vst [vmem:[#allocation53_spill] sm:$0xff] %v18623_v43  ;;  %v876_v63 = vunpack.c.l.s8.bf16 %v18630_v8  ;;  %v860_v25 = vunpack.c.l.s8.bf16 %v18642_v50  ;;  %v18652_v3 = vld [vmem:[#allocation4 + $0x430] sm:$0xff]  ;;  %v621_v43 = vunpack.c.h.s8.bf16 %v18537_v38  ;;  %v1053_v17 = vunpack.c.h.s8.bf16 %v18575_v62 }
 0x2fb   :  { %10930 = vmatpush2.bf16.msra.mxu1 %v9853_v5  ;;  %v15416_v5 = vcombine.low %v972_v57, %v988_v32  ;;  %v892_v57 = vunpack.c.l.s8.bf16 %v18632_v1  ;;  %v15353_v32 = vcombine.high %v908_v29, %v924_v55  ;;  %v15131_v29 = vcombine.high %v685_v31, %v701_v4 }
 0x2fc   :  { %10931 = vmatprep.subr.bf16.mxu1 %v15769_v9  ;;  %v717_v9 = vunpack.c.h.s8.bf16 %v18496_v48  ;;  %v15384_v48 = vcombine.low %v940_v46, %v956_v40  ;;  %v669_v40 = vunpack.c.h.s8.bf16 %v18524_v16  ;;  %v605_v16 = vunpack.c.h.s8.bf16 %v18551_v22 }
 0x2fd   :  { %10879 = vmatpush2.bf16.msra.mxu0 %v15448_v44  ;;  %v15195_v44 = vcombine.high %v749_v45, %v765_v35  ;;  %v15321_v58 = vcombine.high %v876_v63, %v892_v57  ;;  %v812_v45 = vunpack.c.l.s8.bf16 %v18652_v3  ;;  %v1293_v55 = vunpack.c.h.s8.bf16 %v18474_v33 }
 0x2fe   :  { %10880 = vmatprep.subr.bf16.mxu0 %v15417_v39  ;;  %v18654_v39 = vld [vmem:[#allocation4 + $0x470] sm:$0xff]  ;;  %v15162_v46 = vcombine.low %v717_v9, %v733_v20  ;;  %v15099_v38 = vcombine.high %v653_v51, %v669_v40  ;;  %v573_v22 = vunpack.c.h.s8.bf16 %v18563_v13  ;;  %v1261_v33 = vunpack.c.h.s8.bf16 %v18488_v59 }
 0x2ff   :  { %10932 = vmatpush2.bf16.msra.mxu1 %v15768_v56  ;;  %v844_v56 = vunpack.c.l.s8.bf16 %v18640_v7  ;;  %v828_v35 = vunpack.c.l.s8.bf16 %v18654_v39  ;;  %v1229_v13 = vunpack.c.h.s8.bf16 %v18500_v2  ;;  %v1245_v59 = vunpack.c.h.s8.bf16 %v18502_v26 }
 0x300   :  { %10942 = vmatprep.subr.bf16.mxu1 %v15227_v24  ;;  %v15163_v24 = vcombine.high %v717_v9, %v733_v20  ;;  %v1309_v9 = vunpack.c.h.s8.bf16 %v18476_v36  ;;  %v1277_v36 = vunpack.c.h.s8.bf16 %v18490_v60  ;;  %v1005_v60 = vunpack.c.h.s8.bf16 %v18582_v14 }
 0x301   :  { %10881 = vmatpush2.bf16.msra.mxu0 %v15416_v5  ;;  %v637_v5 = vunpack.c.h.s8.bf16 %v18539_v47  ;;  %v15289_v20 = vcombine.high %v844_v56, %v860_v25  ;;  %v15098_v47 = vcombine.low %v653_v51, %v669_v40  ;;  %v18698_v2 = vcombine.high %v557_v28, %v573_v22 }
 0x302   :  { %10934 = vmatmul.mubr.bf16.vlgmr.msra.gmra.mxu1 %v17246_v23  ;;  %10882 = vmatprep.subr.bf16.mxu0 %v15385_v30  ;;  %v15130_v30 = vcombine.low %v685_v31, %v701_v4  ;;  %v18696_v62 = vcombine.low %v1293_v55, %v1309_v9  ;;  %v18700_v26 = vcombine.high %v1261_v33, %v1277_v36 }
 0x303   :  { %10943 = vmatpush1.bf16.msra.mxu1 %v15226_v49  ;;  %10974 = vmatprep.mubr.bf16.mxu1 %v20040_v53  ;;  %v15320_v49 = vcombine.low %v876_v63, %v892_v57  ;;  %v15257_v53 = vcombine.high %v812_v45, %v828_v35  ;;  %v15067_v23 = vcombine.high %v621_v43, %v637_v5 }
 0x304   :  { %10944 = vmatprep.subr.bf16.mxu1 %v15195_v44  ;;  %v15288_v44 = vcombine.low %v844_v56, %v860_v25  ;;  %v18668_v63 = vcombine.low %v812_v45, %v828_v35  ;;  %v18670_v4 = vcombine.low %v621_v43, %v637_v5  ;;  %v1037_v43 = vunpack.c.h.s8.bf16 %v18573_v52 }
 0x305   :  { %10883 = vmatpush2.bf16.msra.mxu0 %v15384_v48  ;;  %v18681_v48 = vcombine.high %v1293_v55, %v1309_v9  ;;  %v1197_v56 = vunpack.c.h.s8.bf16 %v18513_v37  ;;  %v1213_v52 = vunpack.c.h.s8.bf16 %v18515_v18  ;;  %v18702_v14 = vcombine.low %v557_v28, %v573_v22  ;;  %v20060_v22 = vld [vmem:[#allocation45_spill] sm:$0xff] }
 0x306   :  { %10884 = vmatprep.subr.bf16.mxu0 %v15353_v32  ;;  %v18679_v32 = vcombine.high %v589_v27, %v605_v16  ;;  %v989_v37 = vunpack.c.h.s8.bf16 %v18600_v12  ;;  %v18712_v51 = vcombine.low %v1037_v43, %v1053_v17  ;;  %v18714_v40 = vcombine.low %v1229_v13, %v1245_v59 }
 0x307   :  { %10945 = vmatpush1.bf16.msra.mxu1 %v15194_v42  ;;  %v18718_v35 = vcombine.high %v1197_v56, %v1213_v52  ;;  %v1181_v12 = vunpack.c.h.s8.bf16 %v18530_v6  ;;  %v909_v9 = vunpack.c.h.s8.bf16 %v18619_v15  ;;  %v20058_v6 = vld [vmem:[#allocation41_spill] sm:$0xff] }
 0x308   :  { %10946 = vmatprep.subr.bf16.mxu1 %v15163_v24  ;;  %v10566_v57 = vpop.f32.mrf.mxu0  ;;  %v18694_v24 = vcombine.low %v589_v27, %v605_v16  ;;  %v1133_v27 = vunpack.c.h.s8.bf16 %v18541_v54  ;;  %v20056_v16 = vld [vmem:[#allocation38_spill] sm:$0xff] }
 0x309   :  { %v18677_v42 = vadd.f32 %v18590_v10, %v10566_v57  ;;  %10885 = vmatpush2.bf16.msra.mxu0 %v15352_v21  ;;  %v1021_v21 = vunpack.c.h.s8.bf16 %v18584_v19  ;;  %v973_v19 = vunpack.c.h.s8.bf16 %v18598_v41  ;;  %v1165_v41 = vunpack.c.h.s8.bf16 %v18528_v61  ;;  %v20057_v61 = vld [vmem:[#allocation52_spill] sm:$0xff]  ;;  %v20061_v54 = vld [vmem:[#allocation46_spill] sm:$0xff] }
 0x30a   :  { %v10568_v31 = vpop.f32.mrf.mxu0  ;;  %10886 = vmatprep.subr.bf16.mxu0 %v15321_v58  ;;  %v18710_v58 = vcombine.high %v1229_v13, %v1245_v59  ;;  %v1149_v55 = vunpack.c.h.s8.bf16 %v20056_v16  ;;  %v1101_v57 = vunpack.c.h.s8.bf16 %v20058_v6  ;;  %v503_v6 = vld [vmem:[#allocation4 + $0xb78] sm:$0xff] }
 0x30b   :  { %20054 = vst [vmem:[#allocation55_spill] sm:$0xff] %v18677_v42  ;;  %10947 = vmatpush1.bf16.msra.mxu1 %v15162_v46  ;;  %v18689_v10 = vadd.f32 %v18594_v0, %v10568_v31  ;;  %v18704_v0 = vcombine.low %v1261_v33, %v1277_v36  ;;  %v18708_v46 = vcombine.high %v1037_v43, %v1053_v17  ;;  %v1069_v33 = vunpack.c.h.s8.bf16 %v20060_v22 }
 0x30c   :  { %10948 = vmatprep.subr.bf16.mxu1 %v15131_v29  ;;  %v10570_v25 = vpop.f32.mrf.mxu0  ;;  %v18716_v45 = vcombine.high %v1005_v60, %v1021_v21  ;;  %v18720_v5 = vcombine.low %v1005_v60, %v1021_v21  ;;  %v941_v29 = vunpack.c.h.s8.bf16 %v18610_v11  ;;  %v20059_v11 = vld [vmem:[#allocation42_spill] sm:$0xff]  ;;  %v1085_v36 = vunpack.c.h.s8.bf16 %v20061_v54  ;;  %v20062_v60 = vld [vmem:[#allocation47_spill] sm:$0xff] }
 0x30d   :  { %20055 = vst [vmem:[#allocation56_spill] sm:$0xff] %v18689_v10  ;;  %10887 = vmatpush2.bf16.msra.mxu0 %v15320_v49  ;;  %v957_v49 = vunpack.c.h.s8.bf16 %v18612_v34  ;;  %v1117_v28 = vunpack.c.h.s8.bf16 %v20059_v11  ;;  %v877_v34 = vunpack.c.h.s8.bf16 %v18630_v8  ;;  %v18740_v43 = vcombine.high %v1165_v41, %v1181_v12 }
 0x30e   :  { %v10571_v18 = vpop.f32.mrf.mxu0  ;;  %10888 = vmatprep.subr.bf16.mxu0 %v15289_v20  ;;  %v18728_v20 = vcombine.high %v973_v19, %v989_v37  ;;  %v18744_v15 = vcombine.low %v1165_v41, %v1181_v12  ;;  %v18749_v31 = vcombine.high %v1133_v27, %v1149_v55  ;;  %v845_v8 = vunpack.c.h.s8.bf16 %v18640_v7  ;;  %v511_v12 = vld [vmem:[#allocation4 + $0xbb8] sm:$0xff] }
 0x30f   :  { %10949 = vmatpush1.bf16.msra.mxu1 %v15130_v30  ;;  %v18726_v30 = vcombine.low %v1197_v56, %v1213_v52  ;;  %v18757_v17 = vcombine.low %v1133_v27, %v1149_v55  ;;  %v18761_v59 = vcombine.high %v1101_v57, %v1117_v28  ;;  %v18769_v7 = vcombine.low %v1101_v57, %v1117_v28  ;;  %v20063_v56 = vld [vmem:[#allocation28_spill] sm:$0xff]  ;;  %v20065_v18 = vld [vmem:[#allocation49_spill] sm:$0xff]  ;;  %v20066_v55 = vld [vmem:[#allocation22_spill] sm:$0xff] }
 0x310   :  { %10950 = vmatprep.subr.bf16.mxu1 %v15099_v38  ;;  %v925_v38 = vunpack.c.h.s8.bf16 %v20057_v61  ;;  %v813_v52 = vunpack.c.h.s8.bf16 %v18652_v3  ;;  %v829_v25 = vunpack.c.h.s8.bf16 %v18654_v39  ;;  %v1341_v41 = vunpack.c.h.s8.bf16 %v20065_v18  ;;  %v239_v3 = vld [vmem:[#allocation4 + $0x338] sm:$0xff] }
 0x311   :  { %10889 = vmatpush2.bf16.msra.mxu0 %v15288_v44  ;;  %v893_v44 = vunpack.c.h.s8.bf16 %v18632_v1  ;;  %v861_v1 = vunpack.c.h.s8.bf16 %v18642_v50  ;;  %v18783_v27 = vcombine.low %v1069_v33, %v1085_v36  ;;  %v247_v61 = vld [vmem:[#allocation4 + $0x378] sm:$0xff]  ;;  %v1294_v28 = vunpack.c.l.s8.bf16 %v511_v12 }
 0x312   :  { %10890 = vmatprep.subr.bf16.mxu0 %v15257_v53  ;;  %v18742_v53 = vcombine.low %v973_v19, %v989_v37  ;;  %v18759_v13 = vcombine.high %v909_v9, %v925_v38  ;;  %v18767_v21 = vcombine.low %v909_v9, %v925_v38  ;;  %v20064_v19 = vld [vmem:[#allocation48_spill] sm:$0xff]  ;;  %v750_v54 = vunpack.c.l.s8.bf16 %v239_v3 }
 0x313   :  { %10951 = vmatpush1.bf16.msra.mxu1 %v15098_v47  ;;  %v18746_v47 = vcombine.high %v941_v29, %v957_v49  ;;  %v18771_v50 = vcombine.high %v877_v34, %v893_v44  ;;  %v1325_v37 = vunpack.c.h.s8.bf16 %v20064_v19  ;;  %v18785_v16 = vcombine.high %v845_v8, %v861_v1  ;;  %v495_v38 = vld [vmem:[#allocation4 + $0xb38] sm:$0xff] }
 0x314   :  { %10952 = vmatprep.subr.bf16.mxu1 %v15067_v23  ;;  %v18751_v23 = vcombine.low %v941_v29, %v957_v49  ;;  %v519_v29 = vld [vmem:[#allocation4 + $0xbf8] sm:$0xff]  ;;  %v18781_v49 = vcombine.low %v877_v34, %v893_v44  ;;  %v18793_v9 = vcombine.low %v845_v8, %v861_v1  ;;  %v766_v1 = vunpack.c.l.s8.bf16 %v247_v61 }
 0x315   :  { %10891 = vmatpush2.bf16.msra.mxu0 %v18668_v63  ;;  %v18764_v63 = vunpack.c.h.s8.bf16 %v20062_v60  ;;  %v1310_v34 = vunpack.c.l.s8.bf16 %v519_v29  ;;  %v2191_v44 = vld [vmem:[#allocation9 + $0x78] sm:$0xff]  ;;  %v18800_v22 = vcombine.high %v1325_v37, %v1341_v41  ;;  %v1262_v60 = vunpack.c.l.s8.bf16 %v495_v38 }
 0x316   :  { %10983 = vmatprep.subr.bf16.mxu0 %v18681_v48  ;;  %v255_v48 = vld [vmem:[#allocation4 + $0x3b8] sm:$0xff]  ;;  %v18807_v19 = vcombine.low %v1325_v37, %v1341_v41  ;;  %v2335_v18 = vunpack.c.h.s8.bf16 %v2191_v44  ;;  %v18823_v38 = vcombine.high %v750_v54, %v766_v1 }
 0x317   :  { %10953 = vmatpush1.bf16.msra.mxu1 %v18670_v4  ;;  %v18773_v4 = vcombine.high %v1069_v33, %v1085_v36  ;;  %v782_v57 = vunpack.c.l.s8.bf16 %v255_v48  ;;  %v18802_v33 = vcombine.low %v813_v52, %v829_v25  ;;  %v2179_v36 = vld [vmem:[#allocation9 + $0x18] sm:$0xff]  ;;  %v18816_v3 = vcombine.low %v1294_v28, %v1310_v34 }
 0x318   :  { %10954 = vmatprep.subr.bf16.mxu1 %v18679_v32  ;;  %10893 = vmatmul.mubr.bf16.vlgmr.msra.gmra.mxu0 %v20063_v56  ;;  %v263_v32 = vld [vmem:[#allocation4 + $0x3f8] sm:$0xff]  ;;  %v14522_v37 = vcombine.low %v2335_v18, %v2335_v18  ;;  %v14523_v41 = vcombine.high %v2335_v18, %v2335_v18 }
 0x319   :  { %10984 = vmatpush1.bf16.msra.mxu0 %v18696_v62  ;;  %15835 = vmatprep.mubr.msk.bf16.mxu0 %vm9775_vm0, %v20066_v55  ;;  %v15802_v62 = vcombine.low %v18764_v63, %v18764_v63  ;;  %v798_v11 = vunpack.c.l.s8.bf16 %v263_v32  ;;  %v2187_v8 = vld [vmem:[#allocation9 + $0x58] sm:$0xff]  ;;  %v2311_v32 = vunpack.c.h.s8.bf16 %v2179_v36 }
 0x31a   :  { %10985 = vmatprep.subr.bf16.mxu0 %v18700_v26  ;;  %v18798_v26 = vcombine.high %v813_v52, %v829_v25  ;;  %v2327_v12 = vunpack.c.h.s8.bf16 %v2187_v8  ;;  %v18812_v25 = vcombine.high %v1294_v28, %v1310_v34  ;;  %v18818_v61 = vld [vmem:[#allocation4 + $0x2b8] sm:$0xff]  ;;  %4414 = vst [vmem:[#allocation3 + $0xf8] sm:$0xf] %v14522_v37  ;;  %4415 = vst [vmem:[#allocation3 + $0xfc] sm:$0xf] %v14523_v41  ;;  %v2326_v41 = vunpack.c.l.s8.bf16 %v2187_v8 }
 0x31b   :  { %10955 = vmatpush1.bf16.msra.mxu1 %v18694_v24  ;;  %v2183_v24 = vld [vmem:[#allocation9 + $0x38] sm:$0xff]  ;;  %v18810_v52 = vcombine.high %v782_v57, %v798_v11  ;;  %v18838_v34 = vsel %vm9779_vm1, %v15802_v62, 0  ;;  %v2334_v62 = vunpack.c.l.s8.bf16 %v2191_v44  ;;  %v2186_v44 = vld [vmem:[#allocation9 + $0x50] sm:$0xff] }
 0x31c   :  { %10956 = vmatprep.subr.bf16.mxu1 %v18698_v2  ;;  %v1278_v2 = vunpack.c.l.s8.bf16 %v503_v6  ;;  %v2319_v48 = vunpack.c.h.s8.bf16 %v2183_v24  ;;  %v18827_v6 = vcombine.low %v750_v54, %v766_v1  ;;  %v18833_v28 = vld [vmem:[#allocation4 + $0xaf8] sm:$0xff]  ;;  %v14475_v54 = vcombine.high %v2311_v32, %v2311_v32 }
 0x31d   :  { %10986 = vmatpush1.bf16.msra.mxu0 %v18704_v0  ;;  %v18814_v0 = vcombine.low %v782_v57, %v798_v11  ;;  %v18831_v11 = vld [vmem:[#allocation4 + $0xab8] sm:$0xff]  ;;  %v14506_v1 = vcombine.low %v2327_v12, %v2327_v12  ;;  %v2318_v18 = vunpack.c.l.s8.bf16 %v2183_v24  ;;  %v14520_v24 = vcombine.low %v2334_v62, %v2334_v62 }
 0x31e   :  { %10987 = vmatprep.subr.bf16.mxu0 %v18710_v58  ;;  %v14490_v29 = vcombine.low %v2319_v48, %v2319_v48  ;;  %v14491_v58 = vcombine.high %v2319_v48, %v2319_v48  ;;  %v18829_v57 = vcombine.low %v1262_v60, %v1278_v2  ;;  %v14507_v48 = vcombine.high %v2327_v12, %v2327_v12  ;;  %v2178_v12 = vld [vmem:[#allocation9 + $0x10] sm:$0xff] }
 0x31f   :  { %10957 = vmatpush1.bf16.msra.mxu1 %v18702_v14  ;;  %v18820_v14 = vld [vmem:[#allocation4 + $0x2f8] sm:$0xff]  ;;  %4367 = vst [vmem:[#allocation3 + $0x3c] sm:$0xf] %v14475_v54  ;;  %4398 = vst [vmem:[#allocation3 + $0xb8] sm:$0xf] %v14506_v1  ;;  %v14489_v37 = vcombine.high %v2318_v18, %v2318_v18 }
 0x320   :  { %10958 = vmatprep.subr.bf16.mxu1 %v18708_v46  ;;  %v18825_v46 = vcombine.high %v1262_v60, %v1278_v2  ;;  %4382 = vst [vmem:[#allocation3 + $0x78] sm:$0xf] %v14490_v29  ;;  %4383 = vst [vmem:[#allocation3 + $0x7c] sm:$0xf] %v14491_v58  ;;  %v718_v60 = vunpack.c.l.s8.bf16 %v18818_v61  ;;  %v734_v2 = vunpack.c.l.s8.bf16 %v18820_v14  ;;  %v2310_v29 = vunpack.c.l.s8.bf16 %v2179_v36  ;;  %v2182_v58 = vld [vmem:[#allocation9 + $0x30] sm:$0xff] }
 0x321   :  { %10988 = vmatpush1.bf16.msra.mxu0 %v18714_v40  ;;  %v14474_v40 = vcombine.low %v2311_v32, %v2311_v32  ;;  %v2190_v32 = vld [vmem:[#allocation9 + $0x70] sm:$0xff]  ;;  %4399 = vst [vmem:[#allocation3 + $0xbc] sm:$0xf] %v14507_v48  ;;  %v2317_v39 = vunpack.c.h.s8.bf16 %v2182_v58  ;;  %4381 = vst [vmem:[#allocation3 + $0x74] sm:$0xf] %v14489_v37  ;;  %v14504_v36 = vcombine.low %v2326_v41, %v2326_v41 }
 0x322   :  { %10989 = vmatprep.subr.bf16.mxu0 %v18718_v35  ;;  %v1246_v35 = vunpack.c.l.s8.bf16 %v18833_v28  ;;  %v14472_v54 = vcombine.low %v2310_v29, %v2310_v29  ;;  %v2333_v1 = vunpack.c.h.s8.bf16 %v2190_v32  ;;  %v14505_v48 = vcombine.high %v2326_v41, %v2326_v41  ;;  %4412 = vst [vmem:[#allocation3 + $0xf0] sm:$0xf] %v14520_v24 }
 0x323   :  { %10959 = vmatpush2.bf16.msra.mxu1 %v18712_v51  ;;  %4366 = vst [vmem:[#allocation3 + $0x38] sm:$0xf] %v14474_v40  ;;  %v14521_v40 = vcombine.high %v2334_v62, %v2334_v62  ;;  %v14487_v8 = vcombine.high %v2317_v39, %v2317_v39  ;;  %4396 = vst [vmem:[#allocation3 + $0xb0] sm:$0xf] %v14504_v36  ;;  %v2325_v62 = vunpack.c.h.s8.bf16 %v2186_v44  ;;  %v2308_v24 = vunpack.c.l.s8.bf16 %v2178_v12 }
 0x324   :  { %10960 = vmatprep.subr.bf16.mxu1 %v18716_v45  ;;  %v14488_v45 = vcombine.low %v2318_v18, %v2318_v18  ;;  %v14486_v18 = vcombine.low %v2317_v39, %v2317_v39  ;;  %4364 = vst [vmem:[#allocation3 + $0x30] sm:$0xf] %v14472_v54  ;;  %v14519_v51 = vcombine.high %v2333_v1, %v2333_v1  ;;  %4397 = vst [vmem:[#allocation3 + $0xb4] sm:$0xf] %v14505_v48  ;;  %v18858_v39 = vld [vmem:[#allocation4 + $0x238] sm:$0xff] }
 0x325   :  { %10990 = vmatpush1.bf16.msra.mxu0 %v18726_v30  ;;  %v14473_v30 = vcombine.high %v2310_v29, %v2310_v29  ;;  %4413 = vst [vmem:[#allocation3 + $0xf4] sm:$0xf] %v14521_v40  ;;  %v2316_v29 = vunpack.c.l.s8.bf16 %v2182_v58  ;;  %4379 = vst [vmem:[#allocation3 + $0x6c] sm:$0xf] %v14487_v8  ;;  %v2324_v40 = vunpack.c.l.s8.bf16 %v2186_v44  ;;  %v18863_v54 = vld [vmem:[#allocation4 + $0xa38] sm:$0xff]  ;;  %v14502_v58 = vcombine.low %v2325_v62, %v2325_v62  ;;  %v2181_v8 = vld [vmem:[#allocation9 + $0x28] sm:$0xff] }
 0x326   :  { %10991 = vmatprep.subr.bf16.mxu0 %v18740_v43  ;;  %4380 = vst [vmem:[#allocation3 + $0x70] sm:$0xf] %v14488_v45  ;;  %v2309_v43 = vunpack.c.h.s8.bf16 %v2178_v12  ;;  %4378 = vst [vmem:[#allocation3 + $0x68] sm:$0xf] %v14486_v18  ;;  %v2332_v45 = vunpack.c.l.s8.bf16 %v2190_v32  ;;  %v14503_v32 = vcombine.high %v2325_v62, %v2325_v62  ;;  %v14468_v48 = vcombine.low %v2308_v24, %v2308_v24 }
 0x327   :  { %10961 = vmatpush2.bf16.msra.mxu1 %v18720_v5  ;;  %v14518_v5 = vcombine.low %v2333_v1, %v2333_v1  ;;  %4365 = vst [vmem:[#allocation3 + $0x34] sm:$0xf] %v14473_v30  ;;  %4411 = vst [vmem:[#allocation3 + $0xec] sm:$0xf] %v14519_v51  ;;  %v14485_v1 = vcombine.high %v2316_v29, %v2316_v29  ;;  %v14469_v51 = vcombine.high %v2308_v24, %v2308_v24  ;;  %v18897_v24 = vld [vmem:[#allocation4 + $0x9b8] sm:$0xff] }
 0x328   :  { %10962 = vmatprep.subr.bf16.mxu1 %v18728_v20  ;;  %v18854_v20 = vcombine.high %v718_v60, %v734_v2  ;;  %v14470_v37 = vcombine.low %v2309_v43, %v2309_v43  ;;  %v14471_v41 = vcombine.high %v2309_v43, %v2309_v43  ;;  %v14516_v30 = vcombine.low %v2332_v45, %v2332_v45  ;;  %v2177_v43 = vld [vmem:[#allocation9 + $0x8] sm:$0xff] }
 0x329   :  { %10992 = vmatpush1.bf16.msra.mxu0 %v18744_v15  ;;  %v18860_v15 = vld [vmem:[#allocation4 + $0x278] sm:$0xff]  ;;  %4410 = vst [vmem:[#allocation3 + $0xe8] sm:$0xf] %v14518_v5  ;;  %v14517_v36 = vcombine.high %v2332_v45, %v2332_v45  ;;  %v686_v12 = vunpack.c.l.s8.bf16 %v18858_v39  ;;  %4394 = vst [vmem:[#allocation3 + $0xa8] sm:$0xf] %v14502_v58  ;;  %v14500_v44 = vcombine.low %v2324_v40, %v2324_v40  ;;  %v2189_v5 = vld [vmem:[#allocation9 + $0x68] sm:$0xff]  ;;  %v2315_v61 = vunpack.c.h.s8.bf16 %v2181_v8 }
 0x32a   :  { %10993 = vmatprep.subr.bf16.mxu0 %v18749_v31  ;;  %v18865_v31 = vld [vmem:[#allocation4 + $0xa78] sm:$0xff]  ;;  %4362 = vst [vmem:[#allocation3 + $0x28] sm:$0xf] %v14470_v37  ;;  %4363 = vst [vmem:[#allocation3 + $0x2c] sm:$0xf] %v14471_v41  ;;  %v14501_v18 = vcombine.high %v2324_v40, %v2324_v40  ;;  %v2331_v14 = vunpack.c.h.s8.bf16 %v2189_v5 }
 0x32b   :  { %10963 = vmatpush2.bf16.msra.mxu1 %v18742_v53  ;;  %v14484_v53 = vcombine.low %v2316_v29, %v2316_v29  ;;  %4395 = vst [vmem:[#allocation3 + $0xac] sm:$0xf] %v14503_v32  ;;  %4377 = vst [vmem:[#allocation3 + $0x64] sm:$0xf] %v14485_v1  ;;  %v18895_v41 = vld [vmem:[#allocation4 + $0x1f8] sm:$0xff]  ;;  %v14482_v28 = vcombine.low %v2315_v61, %v2315_v61  ;;  %v14483_v58 = vcombine.high %v2315_v61, %v2315_v61 }
 0x32c   :  { %10964 = vmatprep.subr.bf16.mxu1 %v18746_v47  ;;  %v18872_v47 = vcombine.low %v718_v60, %v734_v2  ;;  %4408 = vst [vmem:[#allocation3 + $0xe0] sm:$0xf] %v14516_v30  ;;  %4409 = vst [vmem:[#allocation3 + $0xe4] sm:$0xf] %v14517_v36  ;;  %v2307_v60 = vunpack.c.h.s8.bf16 %v2177_v43  ;;  %v20067_v2 = vunpack.c.l.s8.bf16 %v18831_v11  ;;  %v18899_v40 = vld [vmem:[#allocation4 + $0x9f8] sm:$0xff]  ;;  %v14514_v11 = vcombine.low %v2331_v14, %v2331_v14 }
 0x32d   :  { %10994 = vmatpush1.bf16.msra.mxu0 %v18757_v17  ;;  %4376 = vst [vmem:[#allocation3 + $0x60] sm:$0xf] %v14484_v53  ;;  %v702_v17 = vunpack.c.l.s8.bf16 %v18860_v15  ;;  %4360 = vst [vmem:[#allocation3 + $0x20] sm:$0xf] %v14468_v48  ;;  %v18902_v53 = vld [vmem:[#allocation4 + $0x138] sm:$0xff] }
 0x32e   :  { %10995 = vmatprep.subr.bf16.mxu0 %v18761_v59  ;;  %4361 = vst [vmem:[#allocation3 + $0x24] sm:$0xf] %v14469_v51  ;;  %v18883_v62 = vcombine.high %v20067_v2, %v1246_v35  ;;  %4392 = vst [vmem:[#allocation3 + $0xa0] sm:$0xf] %v14500_v44  ;;  %v18904_v1 = vld [vmem:[#allocation4 + $0x178] sm:$0xff]  ;;  %v14466_v48 = vcombine.low %v2307_v60, %v2307_v60  ;;  %v14467_v51 = vcombine.high %v2307_v60, %v2307_v60 }
 0x32f   :  { %10965 = vmatpush2.bf16.msra.mxu1 %v18751_v23  ;;  %v20068_v23 = vmov %v20067_v2  ;;  %4393 = vst [vmem:[#allocation3 + $0xa4] sm:$0xf] %v14501_v18  ;;  %v18906_v30 = vld [vmem:[#allocation4 + $0x938] sm:$0xff]  ;;  %v2314_v44 = vunpack.c.l.s8.bf16 %v2181_v8  ;;  %v2330_v18 = vunpack.c.l.s8.bf16 %v2189_v5  ;;  %4374 = vst [vmem:[#allocation3 + $0x58] sm:$0xf] %v14482_v28 }
 0x330   :  { %10966 = vmatprep.subr.bf16.mxu1 %v18759_v13  ;;  %v18889_v59 = vcombine.low %v20068_v23, %v1246_v35  ;;  %v10689_v37 = vpop.f32.mrf.mxu0  ;;  %v18893_v13 = vld [vmem:[#allocation4 + $0x1b8] sm:$0xff]  ;;  %v14515_v35 = vcombine.high %v2331_v14, %v2331_v14  ;;  %v18916_v14 = vcombine.low %v686_v12, %v702_v17  ;;  %4375 = vst [vmem:[#allocation3 + $0x5c] sm:$0xf] %v14483_v58  ;;  %4406 = vst [vmem:[#allocation3 + $0xd8] sm:$0xf] %v14514_v11 }
 0x331   :  { %10996 = vmatpush1.bf16.msra.mxu0 %v18769_v7  ;;  %v18908_v36 = vld [vmem:[#allocation4 + $0x978] sm:$0xff]  ;;  %v18914_v7 = vcombine.high %v686_v12, %v702_v17  ;;  %4358 = vst [vmem:[#allocation3 + $0x18] sm:$0xf] %v14466_v48  ;;  %4359 = vst [vmem:[#allocation3 + $0x1c] sm:$0xf] %v14467_v51  ;;  %v14480_v5 = vcombine.low %v2314_v44, %v2314_v44  ;;  %v14481_v17 = vcombine.high %v2314_v44, %v2314_v44 }
 0x332   :  { %v10648_v32 = vpop.f32.mrf.mxu1  ;;  %v10691_v61 = vpop.f32.mrf.mxu0  ;;  %10997 = vmatprep.subr.bf16.mxu0 %v18773_v4  ;;  %v18918_v23 = vld [vmem:[#allocation4 + $0xb8] sm:$0xff]  ;;  %4407 = vst [vmem:[#allocation3 + $0xdc] sm:$0xf] %v14515_v35  ;;  %v20075_v58 = vunpack.c.l.s8.bf16 %v18865_v31  ;;  %v654_v48 = vunpack.c.l.s8.bf16 %v18893_v13  ;;  %v670_v51 = vunpack.c.l.s8.bf16 %v18895_v41  ;;  %v1166_v44 = vunpack.c.l.s8.bf16 %v18897_v24 }
 0x333   :  { %v18910_v2 = vadd.f32 %v10689_v37, %v10648_v32  ;;  %10967 = vmatpush2.bf16.msra.mxu1 %v18767_v21  ;;  %20070 = vst [vmem:[#allocation52_spill] sm:$0xff] %v18918_v23  ;;  %v18920_v29 = vld [vmem:[#allocation4 + $0xf8] sm:$0xff]  ;;  %v2306_v21 = vunpack.c.l.s8.bf16 %v2177_v43  ;;  %v14512_v37 = vcombine.low %v2330_v18, %v2330_v18  ;;  %v14513_v32 = vcombine.high %v2330_v18, %v2330_v18 }
 0x334   :  { %20071 = vst [vmem:[#allocation41_spill] sm:$0xff] %v18920_v29  ;;  %v18922_v45 = vld [vmem:[#allocation4 + $0x8b8] sm:$0xff]  ;;  %v10650_v8 = vpop.f32.mrf.mxu1  ;;  %10968 = vmatprep.subr.bf16.mxu1 %v18771_v50  ;;  %v10693_v28 = vpop.f32.mrf.mxu0  ;;  %v20076_v43 = vunpack.c.l.s8.bf16 %v18863_v54  ;;  %v1182_v18 = vunpack.c.l.s8.bf16 %v18899_v40  ;;  %4372 = vst [vmem:[#allocation3 + $0x50] sm:$0xf] %v14480_v5  ;;  %v1134_v24 = vunpack.c.l.s8.bf16 %v18906_v30  ;;  %v1150_v40 = vunpack.c.l.s8.bf16 %v18908_v36 }
 0x335   :  { %20069 = vst [vmem:[#allocation38_spill] sm:$0xff] %v18910_v2  ;;  %v18924_v60 = vld [vmem:[#allocation4 + $0x8f8] sm:$0xff]  ;;  %v18931_v2 = vadd.f32 %v10691_v61, %v10650_v8  ;;  %v14464_v35 = vcombine.low %v2306_v21, %v2306_v21  ;;  %v14465_v42 = vcombine.high %v2306_v21, %v2306_v21  ;;  %10998 = vmatpush1.bf16.msra.mxu0 %v18783_v27  ;;  %4373 = vst [vmem:[#allocation3 + $0x54] sm:$0xf] %v14481_v17 }
 0x336   :  { %v18927_v4 = vld [vmem:[#allocation4 + $0x38] sm:$0xff]  ;;  %v18937_v11 = vcombine.high %v20076_v43, %v20075_v58  ;;  %v10652_v10 = vpop.f32.mrf.mxu1  ;;  %4404 = vst [vmem:[#allocation3 + $0xd0] sm:$0xf] %v14512_v37  ;;  %4405 = vst [vmem:[#allocation3 + $0xd4] sm:$0xf] %v14513_v32  ;;  %v10694_v8 = vpop.f32.mrf.mxu0  ;;  %v622_v27 = vunpack.c.l.s8.bf16 %v18902_v53  ;;  %v638_v21 = vunpack.c.l.s8.bf16 %v18904_v1  ;;  %v606_v17 = vunpack.c.l.s8.bf16 %v18920_v29 }
 0x337   :  { %20072 = vst [vmem:[#allocation42_spill] sm:$0xff] %v18927_v4  ;;  %v18929_v12 = vld [vmem:[#allocation4 + $0x78] sm:$0xff]  ;;  %20074 = vst [vmem:[#allocation46_spill] sm:$0xff] %v18931_v2  ;;  %10969 = vmatpush2.bf16.msra.mxu1 %v18781_v49  ;;  %v20077_v10 = vcombine.high %v18764_v63, %v18764_v63  ;;  %v590_v49 = vunpack.c.l.s8.bf16 %v18918_v23  ;;  %v1102_v63 = vunpack.c.l.s8.bf16 %v18922_v45  ;;  %v1118_v37 = vunpack.c.l.s8.bf16 %v18924_v60 }
 0x338   :  { %20073 = vst [vmem:[#allocation45_spill] sm:$0xff] %v18929_v12  ;;  %v18939_v50 = vld [vmem:[#allocation4 + $0x838] sm:$0xff]  ;;  %4356 = vst [vmem:[#allocation3 + $0x10] sm:$0xf] %v14464_v35  ;;  %v10653_v5 = vpop.f32.mrf.mxu1  ;;  %10970 = vmatprep.subr.bf16.mxu1 %v18785_v16  ;;  %v558_v28 = vunpack.c.l.s8.bf16 %v18927_v4  ;;  %v574_v30 = vunpack.c.l.s8.bf16 %v18929_v12  ;;  %v20078_v16 = vunpack.c.l.s8.bf16 %v18865_v31  ;;  %v20079_v45 = vunpack.c.l.s8.bf16 %v18863_v54  ;;  %v2180_v12 = vld [vmem:[#allocation9 + $0x20] sm:$0xff] }
 0x339   :  { %v407_v61 = vld [vmem:[#allocation4 + $0x878] sm:$0xff]  ;;  %15834 = vmatprep.subr.msk.bf16.mxu0 %vm9779_vm1, %v20077_v10  ;;  %4357 = vst [vmem:[#allocation3 + $0x14] sm:$0xf] %v14465_v42  ;;  %v1070_v36 = vunpack.c.l.s8.bf16 %v18939_v50  ;;  %v18974_v60 = vcombine.high %v654_v48, %v670_v51  ;;  %v18976_v8 = vcombine.high %v1166_v44, %v1182_v18  ;;  %v18978_v10 = vcombine.low %v654_v48, %v670_v51 }
 0x33a   :  { %v543_v32 = vld [vmem:[#allocation4 + $0xcb8] sm:$0xff]  ;;  %v1086_v58 = vunpack.c.l.s8.bf16 %v407_v61  ;;  %11012 = vmatpush2.bf16.msra.mxu0 %v18838_v34  ;;  %v18972_v35 = vcombine.low %v20079_v45, %v20078_v16  ;;  %v18984_v61 = vcombine.low %v1166_v44, %v1182_v18  ;;  %v18986_v34 = vcombine.high %v622_v27, %v638_v21 }
 0x33b   :  { %v18963_v42 = vld [vmem:[#allocation4 + $0x7b8] sm:$0xff]  ;;  %10971 = vmatpush2.bf16.msra.mxu1 %v18793_v9  ;;  %11013 = vmatprep.subr.bf16.mxu0 %v18800_v22  ;;  %v18988_v31 = vcombine.low %v622_v27, %v638_v21  ;;  %v18990_v54 = vunpack.c.l.s8.bf16 %v543_v32  ;;  %v18997_v48 = vcombine.high %v1134_v24, %v1150_v40  ;;  %v18999_v51 = vcombine.low %v1134_v24, %v1150_v40 }
 0x33c   :  { %v18965_v43 = vld [vmem:[#allocation4 + $0x7f8] sm:$0xff]  ;;  %10972 = vmatprep.subr.bf16.mxu1 %v18798_v26  ;;  %v19001_v9 = vcombine.high %v590_v49, %v606_v17  ;;  %v19003_v22 = vcombine.high %v1102_v63, %v1118_v37  ;;  %v19007_v18 = vcombine.low %v590_v49, %v606_v17  ;;  %v19009_v27 = vcombine.low %v1102_v63, %v1118_v37  ;;  %v2185_v49 = vld [vmem:[#allocation9 + $0x48] sm:$0xff]  ;;  %v2188_v63 = vld [vmem:[#allocation9 + $0x60] sm:$0xff] }
 0x33d   :  { %v18980_v50 = vld [vmem:[#allocation4 + $0x738] sm:$0xff]  ;;  %v19011_v21 = vcombine.high %v558_v28, %v574_v30  ;;  %v19013_v32 = vcombine.high %v1070_v36, %v1086_v58  ;;  %v19018_v26 = vcombine.low %v558_v28, %v574_v30  ;;  %v19020_v24 = vcombine.low %v1070_v36, %v1086_v58  ;;  %v2176_v28 = vld [vmem:[#allocation9] sm:$0xff] }
 0x33e   :  { %v18992_v5 = vld [vmem:[#allocation4 + $0x778] sm:$0xff]  ;;  %11014 = vmatpush2.bf16.msra.mxu0 %v18807_v19  ;;  %v2323_v37 = vunpack.c.h.s8.bf16 %v2185_v49  ;;  %v2322_v19 = vunpack.c.l.s8.bf16 %v2185_v49  ;;  %v2329_v49 = vunpack.c.h.s8.bf16 %v2188_v63  ;;  %v2184_v30 = vld [vmem:[#allocation9 + $0x40] sm:$0xff]  ;;  %v2312_v4 = vunpack.c.l.s8.bf16 %v2180_v12 }
 0x33f   :  { %v18994_v16 = vld [vmem:[#allocation4 + $0xc38] sm:$0xff]  ;;  %10973 = vmatpush2.bf16.msra.mxu1 %v18802_v33  ;;  %11024 = vmatprep.subr.bf16.mxu0 %v18810_v52  ;;  %v20080_v33 = vld [vmem:[#allocation27_spill] sm:$0xff]  ;;  %v2328_v36 = vunpack.c.l.s8.bf16 %v2188_v63  ;;  %v2304_v58 = vunpack.c.l.s8.bf16 %v2176_v28 }
 0x340   :  { %v19005_v44 = vld [vmem:[#allocation4 + $0xc78] sm:$0xff]  ;;  %11065 = vmatprep.subr.bf16.mxu1 %v18812_v25  ;;  %v14498_v52 = vcombine.low %v2323_v37, %v2323_v37  ;;  %v14499_v40 = vcombine.high %v2323_v37, %v2323_v37  ;;  %v14496_v2 = vcombine.low %v2322_v19, %v2322_v19  ;;  %v14497_v17 = vcombine.high %v2322_v19, %v2322_v19 }
 0x341   :  { %v19015_v45 = vld [vmem:[#allocation4 + $0x6b8] sm:$0xff]  ;;  %11016 = vmatmul.mubr.bf16.vlgmr.msra.gmra.mxu0 %v20080_v33  ;;  %v2313_v25 = vunpack.c.h.s8.bf16 %v2180_v12  ;;  %v2305_v37 = vunpack.c.h.s8.bf16 %v2176_v28  ;;  %v2321_v19 = vunpack.c.h.s8.bf16 %v2184_v30  ;;  %v14476_v28 = vcombine.low %v2312_v4, %v2312_v4 }
 0x342   :  { %10975 = vmatmul.mubr.bf16.vlgmr.msra.gmra.mxu1 %v20063_v56  ;;  %11025 = vmatpush1.bf16.msra.mxu0 %v18814_v0  ;;  %v19037_v29 = vld [vmem:[#allocation9 + $0xb8] sm:$0xff]  ;;  %4390 = vst [vmem:[#allocation3 + $0x98] sm:$0xf] %v14498_v52  ;;  %4391 = vst [vmem:[#allocation3 + $0x9c] sm:$0xf] %v14499_v40  ;;  %v2320_v0 = vunpack.c.l.s8.bf16 %v2184_v30  ;;  %v14510_v56 = vcombine.low %v2329_v49, %v2329_v49  ;;  %v14511_v40 = vcombine.high %v2329_v49, %v2329_v49 }
 0x343   :  { %11066 = vmatpush1.bf16.msra.mxu1 %v18816_v3  ;;  %11026 = vmatprep.subr.bf16.mxu0 %v18823_v38  ;;  %4388 = vst [vmem:[#allocation3 + $0x90] sm:$0xf] %v14496_v2  ;;  %4389 = vst [vmem:[#allocation3 + $0x94] sm:$0xf] %v14497_v17  ;;  %v14478_v12 = vcombine.low %v2313_v25, %v2313_v25  ;;  %v14479_v63 = vcombine.high %v2313_v25, %v2313_v25  ;;  %v2351_v3 = vunpack.c.h.s8.bf16 %v19037_v29  ;;  %v2207_v33 = vld [vmem:[#allocation9 + $0xf8] sm:$0xff]  ;;  %v20081_v38 = vld [vmem:[#allocation26_spill] sm:$0xff] }
 0x344   :  { %11067 = vmatprep.subr.bf16.mxu1 %v18825_v46  ;;  %15837 = vmatprep.mubr.msk.bf16.mxu1 %vm9775_vm0, %v20066_v55  ;;  %v14462_v2 = vcombine.low %v2305_v37, %v2305_v37  ;;  %v14463_v17 = vcombine.high %v2305_v37, %v2305_v37  ;;  %v14494_v52 = vcombine.low %v2321_v19, %v2321_v19  ;;  %v2195_v25 = vld [vmem:[#allocation9 + $0x98] sm:$0xff] }
 0x345   :  { %11056 = vmatprep.mubr.bf16.mxu0 %v20081_v38  ;;  %4370 = vst [vmem:[#allocation3 + $0x48] sm:$0xf] %v14478_v12  ;;  %4371 = vst [vmem:[#allocation3 + $0x4c] sm:$0xf] %v14479_v63  ;;  %v14495_v46 = vcombine.high %v2321_v19, %v2321_v19  ;;  %v14477_v30 = vcombine.high %v2312_v4, %v2312_v4  ;;  %v14508_v55 = vcombine.low %v2328_v36, %v2328_v36  ;;  %v2203_v23 = vld [vmem:[#allocation9 + $0xd8] sm:$0xff]  ;;  %v2198_v63 = vld [vmem:[#allocation9 + $0xb0] sm:$0xff] }
 0x346   :  { %11027 = vmatpush1.bf16.msra.mxu0 %v18827_v6  ;;  %4402 = vst [vmem:[#allocation3 + $0xc8] sm:$0xf] %v14510_v56  ;;  %4403 = vst [vmem:[#allocation3 + $0xcc] sm:$0xf] %v14511_v40  ;;  %v14509_v49 = vcombine.high %v2328_v36, %v2328_v36  ;;  %v14460_v37 = vcombine.low %v2304_v58, %v2304_v58  ;;  %v14461_v6 = vcombine.high %v2304_v58, %v2304_v58 }
 0x347   :  { %11068 = vmatpush1.bf16.msra.mxu1 %v18829_v57  ;;  %11028 = vmatprep.subr.bf16.mxu0 %v18854_v20  ;;  %4354 = vst [vmem:[#allocation3 + $0x8] sm:$0xf] %v14462_v2  ;;  %4355 = vst [vmem:[#allocation3 + $0xc] sm:$0xf] %v14463_v17  ;;  %v2367_v12 = vunpack.c.h.s8.bf16 %v2207_v33  ;;  %v14492_v56 = vcombine.low %v2320_v0, %v2320_v0  ;;  %v14493_v4 = vcombine.high %v2320_v0, %v2320_v0 }
 0x348   :  { %4386 = vst [vmem:[#allocation3 + $0x88] sm:$0xf] %v14494_v52  ;;  %11069 = vmatprep.subr.bf16.mxu1 %v18883_v62  ;;  %4387 = vst [vmem:[#allocation3 + $0x8c] sm:$0xf] %v14495_v46  ;;  %v14554_v19 = vcombine.low %v2351_v3, %v2351_v3  ;;  %v14555_v57 = vcombine.high %v2351_v3, %v2351_v3  ;;  %v2343_v36 = vunpack.c.h.s8.bf16 %v2195_v25  ;;  %v2359_v2 = vunpack.c.h.s8.bf16 %v2203_v23 }
 0x349   :  { %4368 = vst [vmem:[#allocation3 + $0x40] sm:$0xf] %v14476_v28  ;;  %4369 = vst [vmem:[#allocation3 + $0x44] sm:$0xf] %v14477_v30  ;;  %v14586_v20 = vcombine.low %v2367_v12, %v2367_v12  ;;  %v14587_v40 = vcombine.high %v2367_v12, %v2367_v12  ;;  %v2366_v62 = vunpack.c.l.s8.bf16 %v2207_v33  ;;  %v2342_v58 = vunpack.c.l.s8.bf16 %v2195_v25  ;;  %v2194_v33 = vld [vmem:[#allocation9 + $0x90] sm:$0xff] }
 0x34a   :  { %4400 = vst [vmem:[#allocation3 + $0xc0] sm:$0xf] %v14508_v55  ;;  %4401 = vst [vmem:[#allocation3 + $0xc4] sm:$0xf] %v14509_v49  ;;  %11029 = vmatpush1.bf16.msra.mxu0 %v18872_v47  ;;  %v2350_v55 = vunpack.c.l.s8.bf16 %v19037_v29  ;;  %v2358_v0 = vunpack.c.l.s8.bf16 %v2203_v23  ;;  %v14538_v3 = vcombine.low %v2343_v36, %v2343_v36  ;;  %v14539_v17 = vcombine.high %v2343_v36, %v2343_v36  ;;  %v2206_v47 = vld [vmem:[#allocation9 + $0xf0] sm:$0xff] }
 0x34b   :  { %4352 = vst [vmem:[#allocation3] sm:$0xf] %v14460_v37  ;;  %4353 = vst [vmem:[#allocation3 + $0x4] sm:$0xf] %v14461_v6  ;;  %11070 = vmatpush1.bf16.msra.mxu1 %v18889_v59  ;;  %11030 = vmatprep.subr.bf16.mxu0 %v18914_v7  ;;  %v14570_v52 = vcombine.low %v2359_v2, %v2359_v2  ;;  %v2349_v46 = vunpack.c.h.s8.bf16 %v2198_v63  ;;  %v14571_v28 = vcombine.high %v2359_v2, %v2359_v2  ;;  %v2202_v25 = vld [vmem:[#allocation9 + $0xd0] sm:$0xff] }
 0x34c   :  { %4384 = vst [vmem:[#allocation3 + $0x80] sm:$0xf] %v14492_v56  ;;  %4385 = vst [vmem:[#allocation3 + $0x84] sm:$0xf] %v14493_v4  ;;  %11071 = vmatprep.subr.bf16.mxu1 %v18937_v11  ;;  %v14552_v30 = vcombine.low %v2350_v55, %v2350_v55  ;;  %v14553_v49 = vcombine.high %v2350_v55, %v2350_v55  ;;  %v14584_v29 = vcombine.low %v2366_v62, %v2366_v62 }
 0x34d   :  { %4446 = vst [vmem:[#allocation3 + $0x178] sm:$0xf] %v14554_v19  ;;  %4447 = vst [vmem:[#allocation3 + $0x17c] sm:$0xf] %v14555_v57  ;;  %v14585_v59 = vcombine.high %v2366_v62, %v2366_v62  ;;  %v14536_v7 = vcombine.low %v2342_v58, %v2342_v58  ;;  %v14537_v23 = vcombine.high %v2342_v58, %v2342_v58  ;;  %v2365_v56 = vunpack.c.h.s8.bf16 %v2206_v47 }
 0x34e   :  { %4478 = vst [vmem:[#allocation3 + $0x1f8] sm:$0xf] %v14586_v20  ;;  %4479 = vst [vmem:[#allocation3 + $0x1fc] sm:$0xf] %v14587_v40  ;;  %v14568_v37 = vcombine.low %v2358_v0, %v2358_v0  ;;  %11031 = vmatpush1.bf16.msra.mxu0 %v18916_v14  ;;  %v14569_v11 = vcombine.high %v2358_v0, %v2358_v0  ;;  %v14550_v6 = vcombine.low %v2349_v46, %v2349_v46  ;;  %v19059_v20 = vld [vmem:[#allocation4 + $0x6f8] sm:$0xff] }
 0x34f   :  { %4430 = vst [vmem:[#allocation3 + $0x138] sm:$0xf] %v14538_v3  ;;  %4431 = vst [vmem:[#allocation3 + $0x13c] sm:$0xf] %v14539_v17  ;;  %v14551_v12 = vcombine.high %v2349_v46, %v2349_v46  ;;  %11072 = vmatpush1.bf16.msra.mxu1 %v18972_v35  ;;  %11032 = vmatprep.subr.bf16.mxu0 %v18974_v60  ;;  %v2341_v4 = vunpack.c.h.s8.bf16 %v2194_v33  ;;  %v2357_v19 = vunpack.c.h.s8.bf16 %v2202_v25  ;;  %v2348_v57 = vunpack.c.l.s8.bf16 %v2198_v63  ;;  %v19061_v60 = vld [vmem:[#allocation4 + $0x638] sm:$0xff] }
 0x350   :  { %4462 = vst [vmem:[#allocation3 + $0x1b8] sm:$0xf] %v14570_v52  ;;  %4463 = vst [vmem:[#allocation3 + $0x1bc] sm:$0xf] %v14571_v28  ;;  %v2364_v14 = vunpack.c.l.s8.bf16 %v2206_v47  ;;  %11073 = vmatprep.subr.bf16.mxu1 %v18976_v8  ;;  %v14582_v40 = vcombine.low %v2365_v56, %v2365_v56  ;;  %v14583_v36 = vcombine.high %v2365_v56, %v2365_v56  ;;  %v2340_v35 = vunpack.c.l.s8.bf16 %v2194_v33  ;;  %v19064_v63 = vld [vmem:[#allocation4 + $0x678] sm:$0xff] }
 0x351   :  { %4444 = vst [vmem:[#allocation3 + $0x170] sm:$0xf] %v14552_v30  ;;  %4445 = vst [vmem:[#allocation3 + $0x174] sm:$0xf] %v14553_v49  ;;  %v2356_v2 = vunpack.c.l.s8.bf16 %v2202_v25  ;;  %v14534_v55 = vcombine.low %v2341_v4, %v2341_v4  ;;  %v14535_v62 = vcombine.high %v2341_v4, %v2341_v4  ;;  %v14566_v58 = vcombine.low %v2357_v19, %v2357_v19  ;;  %v19069_v47 = vld [vmem:[#allocation4 + $0x5b8] sm:$0xff] }
 0x352   :  { %4476 = vst [vmem:[#allocation3 + $0x1f0] sm:$0xf] %v14584_v29  ;;  %4477 = vst [vmem:[#allocation3 + $0x1f4] sm:$0xf] %v14585_v59  ;;  %v14567_v0 = vcombine.high %v2357_v19, %v2357_v19  ;;  %11033 = vmatpush1.bf16.msra.mxu0 %v18978_v10  ;;  %v14548_v8 = vcombine.low %v2348_v57, %v2348_v57  ;;  %v14549_v3 = vcombine.high %v2348_v57, %v2348_v57 }
 0x353   :  { %4428 = vst [vmem:[#allocation3 + $0x130] sm:$0xf] %v14536_v7  ;;  %4429 = vst [vmem:[#allocation3 + $0x134] sm:$0xf] %v14537_v23  ;;  %v14580_v17 = vcombine.low %v2364_v14, %v2364_v14  ;;  %v14581_v52 = vcombine.high %v2364_v14, %v2364_v14  ;;  %11074 = vmatpush1.bf16.msra.mxu1 %v18984_v61  ;;  %11034 = vmatprep.subr.bf16.mxu0 %v18986_v34  ;;  %v990_v46 = vunpack.c.l.s8.bf16 %v19059_v20  ;;  %v19086_v7 = vld [vmem:[#allocation4 + $0x5f8] sm:$0xff] }
 0x354   :  { %4460 = vst [vmem:[#allocation3 + $0x1b0] sm:$0xf] %v14568_v37  ;;  %4461 = vst [vmem:[#allocation3 + $0x1b4] sm:$0xf] %v14569_v11  ;;  %v14532_v10 = vcombine.low %v2340_v35, %v2340_v35  ;;  %v14533_v28 = vcombine.high %v2340_v35, %v2340_v35  ;;  %v14564_v30 = vcombine.low %v2356_v2, %v2356_v2  ;;  %11075 = vmatprep.subr.bf16.mxu1 %v18997_v48  ;;  %v16777_v35 = vld [vmem:[#allocation4 + $0x3b8] sm:$0xff] }
 0x355   :  { %4442 = vst [vmem:[#allocation3 + $0x168] sm:$0xf] %v14550_v6  ;;  %4443 = vst [vmem:[#allocation3 + $0x16c] sm:$0xf] %v14551_v12  ;;  %v20082_v49 = vunpack.c.l.s8.bf16 %v18965_v43  ;;  %v20083_v29 = vunpack.c.l.s8.bf16 %v18963_v42  ;;  %v15805_v34 = vcombine.high %v18990_v54, %v18990_v54  ;;  %v14565_v48 = vcombine.high %v2356_v2, %v2356_v2 }
 0x356   :  { %4474 = vst [vmem:[#allocation3 + $0x1e8] sm:$0xf] %v14582_v40  ;;  %4475 = vst [vmem:[#allocation3 + $0x1ec] sm:$0xf] %v14583_v36  ;;  %v20086_v23 = vcombine.low %v18990_v54, %v18990_v54  ;;  %v20087_v11 = vunpack.c.l.s8.bf16 %v18992_v5  ;;  %v20088_v6 = vunpack.c.l.s8.bf16 %v18980_v50  ;;  %v20089_v56 = vunpack.c.l.s8.bf16 %v19005_v44  ;;  %v303_v36 = vld [vmem:[#allocation4 + $0x538] sm:$0xff]  ;;  %11035 = vmatpush1.bf16.msra.mxu0 %v18988_v31 }
 0x357   :  { %4426 = vst [vmem:[#allocation3 + $0x128] sm:$0xf] %v14534_v55  ;;  %4427 = vst [vmem:[#allocation3 + $0x12c] sm:$0xf] %v14535_v62  ;;  %v19076_v61 = vcombine.high %v20083_v29, %v20082_v49  ;;  %v20084_v33 = vmov %v20082_v49  ;;  %v20085_v25 = vmov %v20083_v29  ;;  %v20090_v4 = vunpack.c.l.s8.bf16 %v18994_v16  ;;  %v16778_v55 = vld [vmem:[#allocation4 + $0x3f8] sm:$0xff]  ;;  %11076 = vmatpush1.bf16.msra.mxu1 %v18999_v51  ;;  %11036 = vmatprep.subr.bf16.mxu0 %v19001_v9 }
 0x358   :  { %4458 = vst [vmem:[#allocation3 + $0x1a8] sm:$0xf] %v14566_v58  ;;  %4459 = vst [vmem:[#allocation3 + $0x1ac] sm:$0xf] %v14567_v0  ;;  %v19084_v59 = vcombine.low %v20085_v25, %v20084_v33  ;;  %v19092_v37 = vsel %vm9779_vm1, %v20086_v23, 0  ;;  %v19098_v12 = vcombine.high %v20088_v6, %v20087_v11  ;;  %v20091_v57 = vmov %v20087_v11  ;;  %11077 = vmatprep.subr.bf16.mxu1 %v19003_v22  ;;  %v16781_v44 = vld [vmem:[#allocation4 + $0x2b8] sm:$0xff] }
 0x359   :  { %4440 = vst [vmem:[#allocation3 + $0x160] sm:$0xf] %v14548_v8  ;;  %4441 = vst [vmem:[#allocation3 + $0x164] sm:$0xf] %v14549_v3  ;;  %v19104_v19 = vcombine.high %v20090_v4, %v20089_v56  ;;  %v20092_v14 = vmov %v20088_v6  ;;  %v783_v2 = vunpack.c.h.s8.bf16 %v16777_v35  ;;  %v799_v62 = vunpack.c.h.s8.bf16 %v16778_v55  ;;  %v19115_v8 = vld [vmem:[#allocation4 + $0x578] sm:$0xff] }
 0x35a   :  { %4472 = vst [vmem:[#allocation3 + $0x1e0] sm:$0xf] %v14580_v17  ;;  %4473 = vst [vmem:[#allocation3 + $0x1e4] sm:$0xf] %v14581_v52  ;;  %v19110_v40 = vcombine.low %v20092_v14, %v20091_v57  ;;  %v942_v58 = vunpack.c.l.s8.bf16 %v19061_v60  ;;  %v958_v0 = vunpack.c.l.s8.bf16 %v19064_v63  ;;  %v20093_v50 = vmov %v20089_v56  ;;  %v16779_v60 = vld [vmem:[#allocation4 + $0x338] sm:$0xff]  ;;  %v19139_v11 = vpop.f32.mrf.mxu1  ;;  %11037 = vmatpush1.bf16.msra.mxu0 %v19007_v18 }
 0x35b   :  { %4424 = vst [vmem:[#allocation3 + $0x120] sm:$0xf] %v14532_v10  ;;  %4425 = vst [vmem:[#allocation3 + $0x124] sm:$0xf] %v14533_v28  ;;  %v20094_v5 = vmov %v20090_v4  ;;  %v20095_v3 = vunpack.c.l.s8.bf16 %v19015_v45  ;;  %v751_v52 = vunpack.c.h.s8.bf16 %v16779_v60  ;;  %v16780_v63 = vld [vmem:[#allocation4 + $0x378] sm:$0xff]  ;;  %v910_v51 = vunpack.c.l.s8.bf16 %v19069_v47  ;;  %11078 = vmatpush1.bf16.msra.mxu1 %v19009_v27  ;;  %11038 = vmatprep.subr.bf16.mxu0 %v19011_v21 }
 0x35c   :  { %4456 = vst [vmem:[#allocation3 + $0x1a0] sm:$0xf] %v14564_v30  ;;  %4457 = vst [vmem:[#allocation3 + $0x1a4] sm:$0xf] %v14565_v48  ;;  %v19123_v31 = vcombine.low %v20094_v5, %v20093_v50  ;;  %v767_v10 = vunpack.c.h.s8.bf16 %v16780_v63  ;;  %v19129_v28 = vld [vmem:[#allocation4 + $0x4b8] sm:$0xff]  ;;  %v926_v9 = vunpack.c.l.s8.bf16 %v19086_v7  ;;  %v719_v16 = vunpack.c.h.s8.bf16 %v16781_v44  ;;  %11079 = vmatprep.subr.bf16.mxu1 %v19013_v32  ;;  %v20100_v44 = vld [vmem:[#allocation42_spill] sm:$0xff] }
 0x35d   :  { %v19127_v17 = vcombine.high %v20095_v3, %v990_v46  ;;  %v16782_v30 = vld [vmem:[#allocation4 + $0x2f8] sm:$0xff]  ;;  %v878_v33 = vunpack.c.l.s8.bf16 %v303_v36  ;;  %v894_v25 = vunpack.c.l.s8.bf16 %v19115_v8  ;;  %v687_v48 = vunpack.c.h.s8.bf16 %v18858_v39 }
 0x35e   :  { %v735_v49 = vunpack.c.h.s8.bf16 %v16782_v30  ;;  %v19134_v29 = vld [vmem:[#allocation4 + $0x4f8] sm:$0xff]  ;;  %v703_v23 = vunpack.c.h.s8.bf16 %v18860_v15  ;;  %v19142_v22 = vcombine.high %v783_v2, %v799_v62  ;;  %v20097_v47 = vmov %v20095_v3  ;;  %11039 = vmatpush1.bf16.msra.mxu0 %v19018_v26 }
 0x35f   :  { %20096 = vst [vmem:[#allocation47_spill] sm:$0xff] %v19134_v29  ;;  %v19146_v7 = vcombine.low %v20097_v47, %v990_v46  ;;  %v19148_v6 = vcombine.low %v783_v2, %v799_v62  ;;  %v19150_v56 = vcombine.high %v942_v58, %v958_v0  ;;  %v271_v4 = vld [vmem:[#allocation4 + $0x438] sm:$0xff]  ;;  %v19154_v39 = vcombine.high %v751_v52, %v767_v10  ;;  %v19160_v46 = vpop.f32.mrf.mxu1 }
 0x360   :  { %v19156_v15 = vcombine.low %v942_v58, %v958_v0  ;;  %v846_v18 = vunpack.c.l.s8.bf16 %v19129_v28  ;;  %v862_v57 = vunpack.c.l.s8.bf16 %v19134_v29  ;;  %v279_v45 = vld [vmem:[#allocation4 + $0x478] sm:$0xff]  ;;  %v19163_v14 = vcombine.low %v751_v52, %v767_v10  ;;  %11080 = vmatpush1.bf16.msra.mxu1 %v19020_v24  ;;  %11040 = vmatprep.subr.bf16.mxu0 %v19076_v61  ;;  %v2192_v29 = vld [vmem:[#allocation9 + $0x80] sm:$0xff] }
 0x361   :  { %v19165_v36 = vcombine.high %v910_v51, %v926_v9  ;;  %v19167_v27 = vcombine.high %v719_v16, %v735_v49  ;;  %v19169_v21 = vcombine.low %v910_v51, %v926_v9  ;;  %v19171_v35 = vcombine.low %v719_v16, %v735_v49  ;;  %v10775_v58 = vpop.f32.mrf.mxu1  ;;  %15836 = vmatprep.subr.msk.bf16.mxu1 %vm9779_vm1, %v15805_v34  ;;  %v20099_v26 = vld [vmem:[#allocation41_spill] sm:$0xff] }
 0x362   :  { %v19173_v2 = vcombine.high %v878_v33, %v894_v25  ;;  %v19175_v55 = vcombine.high %v687_v48, %v703_v23  ;;  %v19177_v62 = vcombine.low %v878_v33, %v894_v25  ;;  %v655_v32 = vunpack.c.h.s8.bf16 %v18893_v13  ;;  %v20098_v13 = vld [vmem:[#allocation52_spill] sm:$0xff]  ;;  %v20101_v30 = vld [vmem:[#allocation45_spill] sm:$0xff]  ;;  %11041 = vmatpush2.bf16.msra.mxu0 %v19084_v59 }
 0x363   :  { %v671_v0 = vunpack.c.h.s8.bf16 %v18895_v41  ;;  %v814_v50 = vunpack.c.l.s8.bf16 %v271_v4  ;;  %v830_v5 = vunpack.c.l.s8.bf16 %v279_v45  ;;  %v19184_v3 = vcombine.low %v687_v48, %v703_v23  ;;  %v10776_v10 = vpop.f32.mrf.mxu1  ;;  %v16783_v28 = vld [vmem:[#allocation4 + $0xbb8] sm:$0xff]  ;;  %11042 = vmatprep.subr.bf16.mxu0 %v19098_v12 }
 0x364   :  { %v19186_v60 = vcombine.high %v846_v18, %v862_v57  ;;  %v623_v52 = vunpack.c.h.s8.bf16 %v18902_v53  ;;  %v639_v63 = vunpack.c.h.s8.bf16 %v18904_v1  ;;  %v591_v41 = vunpack.c.h.s8.bf16 %v20098_v13  ;;  %v16784_v51 = vld [vmem:[#allocation4 + $0xbf8] sm:$0xff]  ;;  %11094 = vmatpush2.bf16.msra.mxu1 %v19092_v37 }
 0x365   :  { %v607_v24 = vunpack.c.h.s8.bf16 %v20099_v26  ;;  %v1295_v61 = vunpack.c.h.s8.bf16 %v16783_v28  ;;  %v1311_v9 = vunpack.c.h.s8.bf16 %v16784_v51  ;;  %v559_v16 = vunpack.c.h.s8.bf16 %v20100_v44  ;;  %v16785_v49 = vld [vmem:[#allocation4 + $0xb38] sm:$0xff]  ;;  %11095 = vmatprep.subr.bf16.mxu1 %v19104_v19  ;;  %v2205_v26 = vld [vmem:[#allocation9 + $0xe8] sm:$0xff] }
 0x366   :  { %v575_v53 = vunpack.c.h.s8.bf16 %v20101_v30  ;;  %v1263_v1 = vunpack.c.h.s8.bf16 %v16785_v49  ;;  %v16786_v33 = vld [vmem:[#allocation4 + $0xb78] sm:$0xff]  ;;  %v19199_v54 = vcombine.high %v655_v32, %v671_v0  ;;  %v19201_v34 = vcombine.low %v846_v18, %v862_v57  ;;  %11043 = vmatpush2.bf16.msra.mxu0 %v19110_v40  ;;  %v2201_v28 = vld [vmem:[#allocation9 + $0xc8] sm:$0xff] }
 0x367   :  { %v1279_v25 = vunpack.c.h.s8.bf16 %v16786_v33  ;;  %v19203_v48 = vcombine.low %v655_v32, %v671_v0  ;;  %v19205_v23 = vcombine.high %v814_v50, %v830_v5  ;;  %v19209_v47 = vcombine.high %v623_v52, %v639_v63  ;;  %v19238_v10 = vld [vmem:[#allocation4 + $0xaf8] sm:$0xff]  ;;  %11044 = vmatprep.subr.bf16.mxu0 %v19127_v17  ;;  %v2196_v17 = vld [vmem:[#allocation9 + $0xa0] sm:$0xff] }
 0x368   :  { %v19211_v4 = vcombine.low %v814_v50, %v830_v5  ;;  %v19962_v45 = vunpack.c.h.s8.bf16 %v18963_v42  ;;  %v19963_v59 = vunpack.c.h.s8.bf16 %v18965_v43  ;;  %v19216_v18 = vcombine.low %v623_v52, %v639_v63  ;;  %v2197_v5 = vld [vmem:[#allocation9 + $0xa8] sm:$0xff]  ;;  %v19235_v52 = vld [vmem:[#allocation4 + $0xab8] sm:$0xff]  ;;  %11096 = vmatpush2.bf16.msra.mxu1 %v19123_v31 }
 0x369   :  { %v19218_v57 = vcombine.high %v591_v41, %v607_v24  ;;  %v19220_v58 = vcombine.high %v1295_v61, %v1311_v9  ;;  %v19222_v32 = vcombine.low %v591_v41, %v607_v24  ;;  %v19224_v37 = vcombine.low %v1295_v61, %v1311_v9  ;;  %v2193_v24 = vld [vmem:[#allocation9 + $0x88] sm:$0xff]  ;;  %11106 = vmatprep.subr.bf16.mxu1 %v19142_v22 }
 0x36a   :  { %v19226_v12 = vcombine.high %v559_v16, %v575_v53  ;;  %v19228_v0 = vcombine.high %v1263_v1, %v1279_v25  ;;  %v19230_v50 = vcombine.low %v559_v16, %v575_v53  ;;  %v19233_v19 = vcombine.low %v1263_v1, %v1279_v25  ;;  %v2204_v25 = vld [vmem:[#allocation9 + $0xe0] sm:$0xff]  ;;  %v20102_v63 = vld [vmem:[#allocation27_spill] sm:$0xff]  ;;  %11045 = vmatpush2.bf16.msra.mxu0 %v19146_v7 }
 0x36b   :  { %v2347_v41 = vunpack.c.h.s8.bf16 %v2197_v5  ;;  %v19247_v40 = vcombine.high %v19962_v45, %v19963_v59  ;;  %v2363_v61 = vunpack.c.h.s8.bf16 %v2205_v26  ;;  %v2339_v51 = vunpack.c.h.s8.bf16 %v2193_v24  ;;  %11098 = vmatmul.mubr.bf16.vlgmr.msra.gmra.mxu1 %v20102_v63  ;;  %11046 = vmatprep.subr.bf16.mxu0 %v19150_v56 }
 0x36c   :  { %v2355_v9 = vunpack.c.h.s8.bf16 %v2201_v28  ;;  %v2346_v30 = vunpack.c.l.s8.bf16 %v2197_v5  ;;  %v2362_v53 = vunpack.c.l.s8.bf16 %v2205_v26  ;;  %v2338_v22 = vunpack.c.l.s8.bf16 %v2193_v24  ;;  %11107 = vmatpush1.bf16.msra.mxu1 %v19148_v6  ;;  %11138 = vmatprep.mubr.bf16.mxu1 %v20081_v38 }
 0x36d   :  { %v14546_v44 = vcombine.low %v2347_v41, %v2347_v41  ;;  %v14547_v16 = vcombine.high %v2347_v41, %v2347_v41  ;;  %v14578_v49 = vcombine.low %v2363_v61, %v2363_v61  ;;  %v14579_v1 = vcombine.high %v2363_v61, %v2363_v61  ;;  %v2200_v41 = vld [vmem:[#allocation9 + $0xc0] sm:$0xff]  ;;  %11108 = vmatprep.subr.bf16.mxu1 %v19154_v39 }
 0x36e   :  { %v14530_v31 = vcombine.low %v2339_v51, %v2339_v51  ;;  %v14531_v33 = vcombine.high %v2339_v51, %v2339_v51  ;;  %v14562_v45 = vcombine.low %v2355_v9, %v2355_v9  ;;  %v14563_v59 = vcombine.high %v2355_v9, %v2355_v9  ;;  %11047 = vmatpush2.bf16.msra.mxu0 %v19156_v15 }
 0x36f   :  { %4438 = vst [vmem:[#allocation3 + $0x158] sm:$0xf] %v14546_v44  ;;  %4439 = vst [vmem:[#allocation3 + $0x15c] sm:$0xf] %v14547_v16  ;;  %v14544_v13 = vcombine.low %v2346_v30, %v2346_v30  ;;  %v14545_v5 = vcombine.high %v2346_v30, %v2346_v30  ;;  %v14576_v26 = vcombine.low %v2362_v53, %v2362_v53  ;;  %v2354_v7 = vunpack.c.l.s8.bf16 %v2201_v28  ;;  %v19259_v28 = vld [vmem:[#allocation9 + $0x178] sm:$0xff] }
 0x370   :  { %4470 = vst [vmem:[#allocation3 + $0x1d8] sm:$0xf] %v14578_v49  ;;  %4471 = vst [vmem:[#allocation3 + $0x1dc] sm:$0xf] %v14579_v1  ;;  %v14577_v61 = vcombine.high %v2362_v53, %v2362_v53  ;;  %v14528_v24 = vcombine.low %v2338_v22, %v2338_v22  ;;  %v14529_v51 = vcombine.high %v2338_v22, %v2338_v22  ;;  %v2345_v6 = vunpack.c.h.s8.bf16 %v2196_v17 }
 0x371   :  { %4422 = vst [vmem:[#allocation3 + $0x118] sm:$0xf] %v14530_v31  ;;  %4423 = vst [vmem:[#allocation3 + $0x11c] sm:$0xf] %v14531_v33  ;;  %v2361_v9 = vunpack.c.h.s8.bf16 %v2204_v25  ;;  %v14560_v56 = vcombine.low %v2354_v7, %v2354_v7  ;;  %v14561_v44 = vcombine.high %v2354_v7, %v2354_v7  ;;  %v2337_v16 = vunpack.c.h.s8.bf16 %v2192_v29  ;;  %11109 = vmatpush1.bf16.msra.mxu1 %v19163_v14  ;;  %v10730_v14 = vpop.f32.mrf.mxu0 }
 0x372   :  { %4454 = vst [vmem:[#allocation3 + $0x198] sm:$0xf] %v14562_v45  ;;  %4455 = vst [vmem:[#allocation3 + $0x19c] sm:$0xf] %v14563_v59  ;;  %v2353_v30 = vunpack.c.h.s8.bf16 %v2200_v41  ;;  %v14542_v39 = vcombine.low %v2345_v6, %v2345_v6  ;;  %v14543_v38 = vcombine.high %v2345_v6, %v2345_v6  ;;  %11048 = vmatprep.subr.bf16.mxu0 %v19165_v36  ;;  %v2344_v15 = vunpack.c.l.s8.bf16 %v2196_v17 }
 0x373   :  { %4436 = vst [vmem:[#allocation3 + $0x150] sm:$0xf] %v14544_v13  ;;  %4437 = vst [vmem:[#allocation3 + $0x154] sm:$0xf] %v14545_v5  ;;  %v14574_v45 = vcombine.low %v2361_v9, %v2361_v9  ;;  %v14575_v59 = vcombine.high %v2361_v9, %v2361_v9  ;;  %v19257_v13 = vld [vmem:[#allocation9 + $0x138] sm:$0xff]  ;;  %v14526_v53 = vcombine.low %v2337_v16, %v2337_v16  ;;  %11110 = vmatprep.subr.bf16.mxu1 %v19167_v27 }
 0x374   :  { %4468 = vst [vmem:[#allocation3 + $0x1d0] sm:$0xf] %v14576_v26  ;;  %4469 = vst [vmem:[#allocation3 + $0x1d4] sm:$0xf] %v14577_v61  ;;  %v14527_v49 = vcombine.high %v2337_v16, %v2337_v16  ;;  %v14558_v1 = vcombine.low %v2353_v30, %v2353_v30  ;;  %v14559_v31 = vcombine.high %v2353_v30, %v2353_v30  ;;  %v2360_v33 = vunpack.c.l.s8.bf16 %v2204_v25  ;;  %v2211_v26 = vld [vmem:[#allocation9 + $0x118] sm:$0xff] }
 0x375   :  { %4420 = vst [vmem:[#allocation3 + $0x110] sm:$0xf] %v14528_v24  ;;  %4421 = vst [vmem:[#allocation3 + $0x114] sm:$0xf] %v14529_v51  ;;  %v2336_v22 = vunpack.c.l.s8.bf16 %v2192_v29  ;;  %v2352_v5 = vunpack.c.l.s8.bf16 %v2200_v41  ;;  %v14540_v36 = vcombine.low %v2344_v15, %v2344_v15  ;;  %v14541_v61 = vcombine.high %v2344_v15, %v2344_v15  ;;  %11049 = vmatpush2.bf16.msra.mxu0 %v19169_v21  ;;  %v10732_v24 = vpop.f32.mrf.mxu0  ;;  %v19291_v15 = vld [vmem:[#allocation4 + $0x738] sm:$0xff] }
 0x376   :  { %4452 = vst [vmem:[#allocation3 + $0x190] sm:$0xf] %v14560_v56  ;;  %4453 = vst [vmem:[#allocation3 + $0x194] sm:$0xf] %v14561_v44  ;;  %v2383_v7 = vunpack.c.h.s8.bf16 %v19257_v13  ;;  %v2399_v17 = vunpack.c.h.s8.bf16 %v19259_v28  ;;  %v19267_v27 = vadd.f32 %v19139_v11, %v10730_v14  ;;  %v14572_v25 = vcombine.low %v2360_v33, %v2360_v33  ;;  %11111 = vmatpush1.bf16.msra.mxu1 %v19171_v35  ;;  %v2219_v44 = vld [vmem:[#allocation9 + $0x158] sm:$0xff] }
 0x377   :  { %4434 = vst [vmem:[#allocation3 + $0x148] sm:$0xf] %v14542_v39  ;;  %4435 = vst [vmem:[#allocation3 + $0x14c] sm:$0xf] %v14543_v38  ;;  %v14573_v29 = vcombine.high %v2360_v33, %v2360_v33  ;;  %v14524_v41 = vcombine.low %v2336_v22, %v2336_v22  ;;  %11050 = vmatprep.subr.bf16.mxu0 %v19173_v2  ;;  %v14525_v51 = vcombine.high %v2336_v22, %v2336_v22  ;;  %v19282_v39 = vld [vmem:[#allocation9 + $0x130] sm:$0xff]  ;;  %v10734_v38 = vpop.f32.mrf.mxu0 }
 0x378   :  { %4466 = vst [vmem:[#allocation3 + $0x1c8] sm:$0xf] %v14574_v45  ;;  %4467 = vst [vmem:[#allocation3 + $0x1cc] sm:$0xf] %v14575_v59  ;;  %v14556_v6 = vcombine.low %v2352_v5, %v2352_v5  ;;  %v14557_v9 = vcombine.high %v2352_v5, %v2352_v5  ;;  %v2375_v56 = vunpack.c.h.s8.bf16 %v2211_v26  ;;  %v19273_v11 = vadd.f32 %v19160_v46, %v10732_v24  ;;  %v2218_v24 = vld [vmem:[#allocation9 + $0x150] sm:$0xff] }
 0x379   :  { %4418 = vst [vmem:[#allocation3 + $0x108] sm:$0xf] %v14526_v53  ;;  %4419 = vst [vmem:[#allocation3 + $0x10c] sm:$0xf] %v14527_v49  ;;  %11112 = vmatprep.subr.bf16.mxu1 %v19175_v55  ;;  %v20103_v21 = vunpack.c.h.s8.bf16 %v19238_v10  ;;  %v20104_v16 = vunpack.c.h.s8.bf16 %v19235_v52  ;;  %v14618_v2 = vcombine.low %v2383_v7, %v2383_v7  ;;  %v14619_v30 = vcombine.high %v2383_v7, %v2383_v7  ;;  %v10735_v5 = vpop.f32.mrf.mxu0 }
 0x37a   :  { %4450 = vst [vmem:[#allocation3 + $0x188] sm:$0xf] %v14558_v1  ;;  %4451 = vst [vmem:[#allocation3 + $0x18c] sm:$0xf] %v14559_v31  ;;  %v14650_v46 = vcombine.low %v2399_v17, %v2399_v17  ;;  %v14651_v45 = vcombine.high %v2399_v17, %v2399_v17  ;;  %v14602_v55 = vcombine.low %v2375_v56, %v2375_v56  ;;  %11051 = vmatpush2.bf16.msra.mxu0 %v19177_v62  ;;  %v2209_v5 = vld [vmem:[#allocation9 + $0x108] sm:$0xff] }
 0x37b   :  { %4432 = vst [vmem:[#allocation3 + $0x140] sm:$0xf] %v14540_v36  ;;  %4433 = vst [vmem:[#allocation3 + $0x144] sm:$0xf] %v14541_v61  ;;  %v19280_v35 = vcombine.high %v20104_v16, %v20103_v21  ;;  %v14603_v59 = vcombine.high %v2375_v56, %v2375_v56  ;;  %v20105_v53 = vmov %v20103_v21  ;;  %v20106_v49 = vmov %v20104_v16  ;;  %11113 = vmatpush1.bf16.msra.mxu1 %v19184_v3  ;;  %v2222_v36 = vld [vmem:[#allocation9 + $0x170] sm:$0xff]  ;;  %v19300_v61 = vld [vmem:[#allocation4 + $0x778] sm:$0xff] }
 0x37c   :  { %4464 = vst [vmem:[#allocation3 + $0x1c0] sm:$0xf] %v14572_v25  ;;  %4465 = vst [vmem:[#allocation3 + $0x1c4] sm:$0xf] %v14573_v29  ;;  %v19289_v1 = vcombine.low %v20106_v49, %v20105_v53  ;;  %v1007_v31 = vunpack.c.h.s8.bf16 %v19291_v15  ;;  %v2391_v33 = vunpack.c.h.s8.bf16 %v2219_v44  ;;  %v2382_v22 = vunpack.c.l.s8.bf16 %v19257_v13  ;;  %11052 = vmatprep.subr.bf16.mxu0 %v19186_v60  ;;  %11114 = vmatprep.subr.bf16.mxu1 %v19199_v54  ;;  %v19303_v13 = vld [vmem:[#allocation4 + $0xa38] sm:$0xff]  ;;  %v2210_v25 = vld [vmem:[#allocation9 + $0x110] sm:$0xff] }
 0x37d   :  { %4416 = vst [vmem:[#allocation3 + $0x100] sm:$0xf] %v14524_v41  ;;  %4417 = vst [vmem:[#allocation3 + $0x104] sm:$0xf] %v14525_v51  ;;  %v2398_v62 = vunpack.c.l.s8.bf16 %v19259_v28  ;;  %v2374_v52 = vunpack.c.l.s8.bf16 %v2211_v26  ;;  %v2390_v10 = vunpack.c.l.s8.bf16 %v2219_v44  ;;  %v2381_v14 = vunpack.c.h.s8.bf16 %v19282_v39  ;;  %v19307_v51 = vld [vmem:[#allocation4 + $0xa78] sm:$0xff]  ;;  %v2221_v53 = vld [vmem:[#allocation9 + $0x168] sm:$0xff] }
 0x37e   :  { %4448 = vst [vmem:[#allocation3 + $0x180] sm:$0xf] %v14556_v6  ;;  %4449 = vst [vmem:[#allocation3 + $0x184] sm:$0xf] %v14557_v9  ;;  %v1023_v3 = vunpack.c.h.s8.bf16 %v19300_v61  ;;  %v1199_v60 = vunpack.c.h.s8.bf16 %v19303_v13  ;;  %v14634_v7 = vcombine.low %v2391_v33, %v2391_v33  ;;  %v14635_v17 = vcombine.high %v2391_v33, %v2391_v33  ;;  %11053 = vmatpush2.bf16.msra.mxu0 %v19201_v34 }
 0x37f   :  { %4510 = vst [vmem:[#allocation3 + $0x278] sm:$0xf] %v14618_v2  ;;  %4511 = vst [vmem:[#allocation3 + $0x27c] sm:$0xf] %v14619_v30  ;;  %v14616_v29 = vcombine.low %v2382_v22, %v2382_v22  ;;  %v14617_v28 = vcombine.high %v2382_v22, %v2382_v22  ;;  %v14648_v26 = vcombine.low %v2398_v62, %v2398_v62  ;;  %v1215_v54 = vunpack.c.h.s8.bf16 %v19307_v51  ;;  %v16798_v51 = vld [vmem:[#allocation4 + $0x638] sm:$0xff] }
 0x380   :  { %4542 = vst [vmem:[#allocation3 + $0x2f8] sm:$0xf] %v14650_v46  ;;  %4543 = vst [vmem:[#allocation3 + $0x2fc] sm:$0xf] %v14651_v45  ;;  %v14649_v41 = vcombine.high %v2398_v62, %v2398_v62  ;;  %v14600_v6 = vcombine.low %v2374_v52, %v2374_v52  ;;  %v14601_v9 = vcombine.high %v2374_v52, %v2374_v52  ;;  %11115 = vmatpush1.bf16.msra.mxu1 %v19203_v48  ;;  %v2213_v46 = vld [vmem:[#allocation9 + $0x128] sm:$0xff] }
 0x381   :  { %4494 = vst [vmem:[#allocation3 + $0x238] sm:$0xf] %v14602_v55  ;;  %4495 = vst [vmem:[#allocation3 + $0x23c] sm:$0xf] %v14603_v59  ;;  %v14632_v56 = vcombine.low %v2390_v10, %v2390_v10  ;;  %11054 = vmatprep.subr.bf16.mxu0 %v19205_v23  ;;  %v14633_v44 = vcombine.high %v2390_v10, %v2390_v10  ;;  %v14614_v21 = vcombine.low %v2381_v14, %v2381_v14 }
 0x382   :  { %4526 = vst [vmem:[#allocation3 + $0x2b8] sm:$0xf] %v14634_v7  ;;  %4527 = vst [vmem:[#allocation3 + $0x2bc] sm:$0xf] %v14635_v17  ;;  %v14615_v34 = vcombine.high %v2381_v14, %v2381_v14  ;;  %v2397_v16 = vunpack.c.h.s8.bf16 %v2222_v36  ;;  %11116 = vmatprep.subr.bf16.mxu1 %v19209_v47  ;;  %v2373_v2 = vunpack.c.h.s8.bf16 %v2210_v25  ;;  %v2389_v30 = vunpack.c.h.s8.bf16 %v2218_v24  ;;  %11055 = vmatpush2.bf16.msra.mxu0 %v19211_v4  ;;  %v2217_v14 = vld [vmem:[#allocation9 + $0x148] sm:$0xff] }
 0x383   :  { %4508 = vst [vmem:[#allocation3 + $0x270] sm:$0xf] %v14616_v29  ;;  %4509 = vst [vmem:[#allocation3 + $0x274] sm:$0xf] %v14617_v28  ;;  %v2380_v38 = vunpack.c.l.s8.bf16 %v19282_v39  ;;  %v2396_v48 = vunpack.c.l.s8.bf16 %v2222_v36  ;;  %v2372_v55 = vunpack.c.l.s8.bf16 %v2210_v25  ;;  %v2388_v59 = vunpack.c.l.s8.bf16 %v2218_v24  ;;  %11147 = vmatprep.subr.bf16.mxu0 %v19220_v58 }
 0x384   :  { %4540 = vst [vmem:[#allocation3 + $0x2f0] sm:$0xf] %v14648_v26  ;;  %4541 = vst [vmem:[#allocation3 + $0x2f4] sm:$0xf] %v14649_v41  ;;  %v14646_v23 = vcombine.low %v2397_v16, %v2397_v16  ;;  %v14647_v45 = vcombine.high %v2397_v16, %v2397_v16  ;;  %v14598_v47 = vcombine.low %v2373_v2, %v2373_v2  ;;  %11117 = vmatpush1.bf16.msra.mxu1 %v19216_v18  ;;  %v20107_v18 = vld [vmem:[#allocation28_spill] sm:$0xff] }
 0x385   :  { %4492 = vst [vmem:[#allocation3 + $0x230] sm:$0xf] %v14600_v6  ;;  %4493 = vst [vmem:[#allocation3 + $0x234] sm:$0xf] %v14601_v9  ;;  %v14599_v49 = vcombine.high %v2373_v2, %v2373_v2  ;;  %v14630_v33 = vcombine.low %v2389_v30, %v2389_v30  ;;  %v14631_v22 = vcombine.high %v2389_v30, %v2389_v30  ;;  %v2379_v10 = vunpack.c.h.s8.bf16 %v2213_v46 }
 0x386   :  { %4524 = vst [vmem:[#allocation3 + $0x2b0] sm:$0xf] %v14632_v56  ;;  %4525 = vst [vmem:[#allocation3 + $0x2b4] sm:$0xf] %v14633_v44  ;;  %v14612_v39 = vcombine.low %v2380_v38, %v2380_v38  ;;  %v14613_v62 = vcombine.high %v2380_v38, %v2380_v38  ;;  %v14644_v52 = vcombine.low %v2396_v48, %v2396_v48  ;;  %11118 = vmatprep.subr.bf16.mxu1 %v19218_v57  ;;  %v20108_v57 = vld [vmem:[#allocation22_spill] sm:$0xff] }
 0x387   :  { %4506 = vst [vmem:[#allocation3 + $0x268] sm:$0xf] %v14614_v21  ;;  %4507 = vst [vmem:[#allocation3 + $0x26c] sm:$0xf] %v14615_v34  ;;  %v14645_v4 = vcombine.high %v2396_v48, %v2396_v48  ;;  %v14596_v36 = vcombine.low %v2372_v55, %v2372_v55  ;;  %v14597_v7 = vcombine.high %v2372_v55, %v2372_v55  ;;  %11057 = vmatmul.mubr.bf16.vlgmr.msra.gmra.mxu0 %v20107_v18 }
 0x388   :  { %4538 = vst [vmem:[#allocation3 + $0x2e8] sm:$0xf] %v14646_v23  ;;  %4539 = vst [vmem:[#allocation3 + $0x2ec] sm:$0xf] %v14647_v45  ;;  %v14628_v17 = vcombine.low %v2388_v59, %v2388_v59  ;;  %v14629_v58 = vcombine.high %v2388_v59, %v2388_v59  ;;  %v14610_v25 = vcombine.low %v2379_v10, %v2379_v10  ;;  %v2395_v28 = vunpack.c.h.s8.bf16 %v2221_v53 }
 0x389   :  { %4490 = vst [vmem:[#allocation3 + $0x228] sm:$0xf] %v14598_v47  ;;  %4491 = vst [vmem:[#allocation3 + $0x22c] sm:$0xf] %v14599_v49  ;;  %v14611_v29 = vcombine.high %v2379_v10, %v2379_v10  ;;  %11148 = vmatpush1.bf16.msra.mxu0 %v19224_v37  ;;  %15839 = vmatprep.mubr.msk.bf16.mxu0 %vm9775_vm0, %v20108_v57  ;;  %v2371_v26 = vunpack.c.h.s8.bf16 %v2209_v5  ;;  %v2387_v41 = vunpack.c.h.s8.bf16 %v2217_v14  ;;  %v2378_v24 = vunpack.c.l.s8.bf16 %v2213_v46  ;;  %v16794_v49 = vld [vmem:[#allocation4 + $0x9f8] sm:$0xff]  ;;  %v20114_v10 = vld [vmem:[#allocation51_spill] sm:$0xff] }
 0x38a   :  { %4522 = vst [vmem:[#allocation3 + $0x2a8] sm:$0xf] %v14630_v33  ;;  %4523 = vst [vmem:[#allocation3 + $0x2ac] sm:$0xf] %v14631_v22  ;;  %v2394_v6 = vunpack.c.l.s8.bf16 %v2221_v53  ;;  %11119 = vmatpush1.bf16.msra.mxu1 %v19222_v32  ;;  %11149 = vmatprep.subr.bf16.mxu0 %v19228_v0  ;;  %v14642_v9 = vcombine.low %v2395_v28, %v2395_v28  ;;  %v14643_v37 = vcombine.high %v2395_v28, %v2395_v28  ;;  %v16793_v53 = vld [vmem:[#allocation4 + $0x9b8] sm:$0xff] }
 0x38b   :  { %4504 = vst [vmem:[#allocation3 + $0x260] sm:$0xf] %v14612_v39  ;;  %4505 = vst [vmem:[#allocation3 + $0x264] sm:$0xf] %v14613_v62  ;;  %v2370_v56 = vunpack.c.l.s8.bf16 %v2209_v5  ;;  %v2386_v44 = vunpack.c.l.s8.bf16 %v2217_v14  ;;  %11120 = vmatprep.subr.bf16.mxu1 %v19226_v12  ;;  %v14594_v21 = vcombine.low %v2371_v26, %v2371_v26  ;;  %v14595_v34 = vcombine.high %v2371_v26, %v2371_v26  ;;  %v20111_v5 = vld [vmem:[#allocation50_spill] sm:$0xff]  ;;  %v20112_v62 = vld [vmem:[#allocation32_spill] sm:$0xff] }
 0x38c   :  { %4536 = vst [vmem:[#allocation3 + $0x2e0] sm:$0xf] %v14644_v52  ;;  %4537 = vst [vmem:[#allocation3 + $0x2e4] sm:$0xf] %v14645_v4  ;;  %v14626_v16 = vcombine.low %v2387_v41, %v2387_v41  ;;  %v14627_v2 = vcombine.high %v2387_v41, %v2387_v41  ;;  %v14608_v30 = vcombine.low %v2378_v24, %v2378_v24  ;;  %v20109_v45 = vunpack.c.h.s8.bf16 %v18965_v43  ;;  %v16795_v43 = vld [vmem:[#allocation4 + $0x6b8] sm:$0xff] }
 0x38d   :  { %4488 = vst [vmem:[#allocation3 + $0x220] sm:$0xf] %v14596_v36  ;;  %4489 = vst [vmem:[#allocation3 + $0x224] sm:$0xf] %v14597_v7  ;;  %v14609_v38 = vcombine.high %v2378_v24, %v2378_v24  ;;  %v14640_v32 = vcombine.low %v2394_v6, %v2394_v6  ;;  %v14641_v48 = vcombine.high %v2394_v6, %v2394_v6  ;;  %11150 = vmatpush1.bf16.msra.mxu0 %v19233_v19  ;;  %v20113_v52 = vld [vmem:[#allocation53_spill] sm:$0xff]  ;;  %v20116_v7 = vld [vmem:[#allocation24_spill] sm:$0xff] }
 0x38e   :  { %4520 = vst [vmem:[#allocation3 + $0x2a0] sm:$0xf] %v14628_v17  ;;  %4521 = vst [vmem:[#allocation3 + $0x2a4] sm:$0xf] %v14629_v58  ;;  %v14592_v0 = vcombine.low %v2370_v56, %v2370_v56  ;;  %v14593_v46 = vcombine.high %v2370_v56, %v2370_v56  ;;  %v14624_v23 = vcombine.low %v2386_v44, %v2386_v44  ;;  %11121 = vmatpush1.bf16.msra.mxu1 %v19230_v50  ;;  %v19336_v50 = vld [vmem:[#allocation8] sm:$0xff]  ;;  %v16796_v26 = vld [vmem:[#allocation4 + $0x938] sm:$0xff] }
 0x38f   :  { %4502 = vst [vmem:[#allocation3 + $0x258] sm:$0xf] %v14610_v25  ;;  %4503 = vst [vmem:[#allocation3 + $0x25c] sm:$0xf] %v14611_v29  ;;  %v14625_v12 = vcombine.high %v2386_v44, %v2386_v44  ;;  %11151 = vmatprep.subr.bf16.mxu0 %v19280_v35  ;;  %v20110_v55 = vunpack.c.h.s8.bf16 %v18963_v42  ;;  %v15647_v19 = vcombine.high %v1199_v60, %v1215_v54  ;;  %v1167_v47 = vunpack.c.h.s8.bf16 %v16793_v53  ;;  %v16797_v24 = vld [vmem:[#allocation4 + $0x978] sm:$0xff] }
 0x390   :  { %4534 = vst [vmem:[#allocation3 + $0x2d8] sm:$0xf] %v14642_v9  ;;  %4535 = vst [vmem:[#allocation3 + $0x2dc] sm:$0xf] %v14643_v37  ;;  %v1183_v33 = vunpack.c.h.s8.bf16 %v16794_v49  ;;  %11122 = vmatprep.subr.bf16.mxu1 %v19247_v40  ;;  %v15455_v42 = vcombine.high %v1007_v31, %v1023_v3  ;;  %v975_v35 = vunpack.c.h.s8.bf16 %v16795_v43  ;;  %v991_v22 = vunpack.c.h.s8.bf16 %v19059_v20  ;;  %v20117_v20 = vld [vmem:[#allocation54_spill] sm:$0xff] }
 0x391   :  { %4486 = vst [vmem:[#allocation3 + $0x218] sm:$0xf] %v14594_v21  ;;  %4487 = vst [vmem:[#allocation3 + $0x21c] sm:$0xf] %v14595_v34  ;;  %v15486_v59 = vcombine.low %v20110_v55, %v20109_v45  ;;  %v19345_v39 = vsub.s32 0, %v20111_v5  ;;  %v20115_v40 = vrot.slane %v20113_v52, %v20114_v10  ;;  %v11403_v4 = vrot.slane %v19336_v50, %v20114_v10  ;;  %v19374_v37 = vld [vmem:[#allocation6] sm:$0xff] }
 0x392   :  { %4518 = vst [vmem:[#allocation3 + $0x298] sm:$0xf] %v14626_v16  ;;  %4519 = vst [vmem:[#allocation3 + $0x29c] sm:$0xf] %v14627_v2  ;;  %v19354_v36 = vsub.s32 2, %v20111_v5  ;;  %v20118_v17 = vrot.slane %v20113_v52, %v20117_v20  ;;  %v11411_v25 = vrot.slane %v19336_v50, %v20117_v20  ;;  %11152 = vmatpush1.bf16.msra.mxu0 %v19289_v1  ;;  %v1135_v41 = vunpack.c.h.s8.bf16 %v16796_v26  ;;  %v16801_v2 = vld [vmem:[#allocation4 + $0x8b8] sm:$0xff] }
 0x393   :  { %4500 = vst [vmem:[#allocation3 + $0x250] sm:$0xf] %v14608_v30  ;;  %4501 = vst [vmem:[#allocation3 + $0x254] sm:$0xf] %v14609_v38  ;;  %v11357_v14 = vmul.f32 %v20115_v40, %v20112_v62  ;;  %v15646_v29 = vcombine.low %v1199_v60, %v1215_v54  ;;  %11123 = vmatpush2.bf16.msra.mxu1 %v15486_v59  ;;  %11153 = vmatprep.subr.bf16.mxu0 %v15647_v19  ;;  %v1151_v6 = vunpack.c.h.s8.bf16 %v16797_v24  ;;  %v16799_v60 = vld [vmem:[#allocation4 + $0x678] sm:$0xff]  ;;  %v20119_v55 = vld [vmem:[#allocation31_spill] sm:$0xff] }
 0x394   :  { %4532 = vst [vmem:[#allocation3 + $0x2d0] sm:$0xf] %v14640_v32  ;;  %4533 = vst [vmem:[#allocation3 + $0x2d4] sm:$0xf] %v14641_v48  ;;  %v11359_v58 = vmul.f32 %v20118_v17, %v20116_v7  ;;  %v15454_v28 = vcombine.low %v1007_v31, %v1023_v3  ;;  %v15615_v57 = vcombine.high %v1167_v47, %v1183_v33  ;;  %v19372_v9 = vsub.s32 5, %v20111_v5  ;;  %v16802_v38 = vld [vmem:[#allocation4 + $0x8f8] sm:$0xff] }
 0x395   :  { %4484 = vst [vmem:[#allocation3 + $0x210] sm:$0xf] %v14592_v0  ;;  %4485 = vst [vmem:[#allocation3 + $0x214] sm:$0xf] %v14593_v46  ;;  %11124 = vmatprep.subr.bf16.mxu1 %v15455_v42  ;;  %v15423_v1 = vcombine.high %v975_v35, %v991_v22  ;;  %v943_v13 = vunpack.c.h.s8.bf16 %v16798_v51  ;;  %v959_v54 = vunpack.c.h.s8.bf16 %v16799_v60  ;;  %v11199_v15 = vrot.slane %v19374_v37, %v19345_v39  ;;  %v16803_v46 = vld [vmem:[#allocation4 + $0x5b8] sm:$0xff] }
 0x396   :  { %4516 = vst [vmem:[#allocation3 + $0x290] sm:$0xf] %v14624_v23  ;;  %4517 = vst [vmem:[#allocation3 + $0x294] sm:$0xf] %v14625_v12  ;;  %v11399_v31 = vrot.slane %v19336_v50, %v19345_v39  ;;  %v11557_v61 = vadd.f32 %v11403_v4, %v11357_v14  ;;  %v11207_v3 = vrot.slane %v19374_v37, %v19354_v36  ;;  %11154 = vmatpush1.bf16.msra.mxu0 %v15646_v29  ;;  %v16804_v12 = vld [vmem:[#allocation4 + $0x5f8] sm:$0xff] }
 0x397   :  { %v11407_v56 = vrot.slane %v19336_v50, %v19354_v36  ;;  %v11559_v44 = vadd.f32 %v11411_v25, %v11359_v58  ;;  %v15614_v21 = vcombine.low %v1167_v47, %v1183_v33  ;;  %11125 = vmatpush2.bf16.msra.mxu1 %v15454_v28  ;;  %11155 = vmatprep.subr.bf16.mxu0 %v15615_v57  ;;  %v1103_v30 = vunpack.c.h.s8.bf16 %v16801_v2  ;;  %v16805_v33 = vld [vmem:[#allocation4 + $0x538] sm:$0xff]  ;;  %v20120_v25 = vld [vmem:[#allocation47_spill] sm:$0xff] }
 0x398   :  { %v15422_v34 = vcombine.low %v975_v35, %v991_v22  ;;  %v15583_v16 = vcombine.high %v1135_v41, %v1151_v6  ;;  %v1119_v32 = vunpack.c.h.s8.bf16 %v16802_v38  ;;  %v11219_v48 = vrot.slane %v19374_v37, %v19372_v9  ;;  %11126 = vmatprep.subr.bf16.mxu1 %v15423_v1  ;;  %v16806_v52 = vld [vmem:[#allocation4 + $0x838] sm:$0xff] }
 0x399   :  { %v15391_v0 = vcombine.high %v943_v13, %v959_v54  ;;  %v911_v23 = vunpack.c.h.s8.bf16 %v16803_v46  ;;  %v927_v45 = vunpack.c.h.s8.bf16 %v16804_v12  ;;  %v11356_v59 = vmul.f32 %v11199_v15, %v20119_v55  ;;  %v16807_v14 = vld [vmem:[#allocation4 + $0x878] sm:$0xff]  ;;  %v2220_v55 = vld [vmem:[#allocation9 + $0x160] sm:$0xff] }
 0x39a   :  { %v11419_v19 = vrot.slane %v19336_v50, %v19372_v9  ;;  %v19390_v53 = vsub.s32 7, %v20111_v5  ;;  %v11589_v47 = vmax.f32 %v11557_v61, 0.0  ;;  %11156 = vmatpush1.bf16.msra.mxu0 %v15614_v21  ;;  %v15582_v49 = vcombine.low %v1135_v41, %v1151_v6  ;;  %v16808_v17 = vld [vmem:[#allocation4 + $0x4b8] sm:$0xff] }
 0x39b   :  { %v879_v42 = vunpack.c.h.s8.bf16 %v16805_v33  ;;  %v895_v43 = vunpack.c.h.s8.bf16 %v19115_v8  ;;  %v11591_v35 = vmax.f32 %v11559_v44, 0.0  ;;  %11127 = vmatpush2.bf16.msra.mxu1 %v15422_v34  ;;  %11157 = vmatprep.subr.bf16.mxu0 %v15583_v16  ;;  %v15390_v22 = vcombine.low %v943_v13, %v959_v54  ;;  %v16809_v28 = vld [vmem:[#allocation4 + $0xcb8] sm:$0xff]  ;;  %v20121_v8 = vld [vmem:[#allocation23_spill] sm:$0xff]  ;;  %v10853_v16 = vpop.f32.mrf.mxu0 }
 0x39c   :  { %v15551_v62 = vcombine.high %v1103_v30, %v1119_v32  ;;  %v1071_v40 = vunpack.c.h.s8.bf16 %v16806_v52  ;;  %v1087_v4 = vunpack.c.h.s8.bf16 %v16807_v14  ;;  %11128 = vmatprep.subr.bf16.mxu1 %v15391_v0  ;;  %v15359_v7 = vcombine.high %v911_v23, %v927_v45  ;;  %v19418_v2 = vld [vmem:[#allocation4 + $0x438] sm:$0xff] }
 0x39d   :  { %v847_v58 = vunpack.c.h.s8.bf16 %v16808_v17  ;;  %v863_v29 = vunpack.c.h.s8.bf16 %v20120_v25  ;;  %v19394_v57 = vunpack.c.h.s8.bf16 %v16809_v28  ;;  %v19396_v26 = vadd.f32 %v11399_v31, %v11356_v59  ;;  %v19421_v38 = vld [vmem:[#allocation4 + $0x478] sm:$0xff]  ;;  %v2208_v59 = vld [vmem:[#allocation9 + $0x100] sm:$0xff] }
 0x39e   :  { %v19399_v41 = vmul.f32 %v11207_v3, %v20121_v8  ;;  %v11227_v24 = vrot.slane %v19374_v37, %v19390_v53  ;;  %v19403_v6 = vpack.c.bf16 %v11589_v47, %v11589_v47  ;;  %11158 = vmatpush1.bf16.msra.mxu0 %v15582_v49  ;;  %v15358_v1 = vcombine.low %v911_v23, %v927_v45  ;;  %v19424_v0 = vld [vmem:[#allocation4 + $0xc38] sm:$0xff]  ;;  %v2212_v45 = vld [vmem:[#allocation9 + $0x120] sm:$0xff]  ;;  %v10812_v47 = vpop.f32.mrf.mxu1 }
 0x39f   :  { %v15550_v51 = vcombine.low %v1103_v30, %v1119_v32  ;;  %v15327_v13 = vcombine.high %v879_v42, %v895_v43  ;;  %v19405_v60 = vpack.c.bf16 %v11591_v35, %v11591_v35  ;;  %v19408_v54 = vsub.s32 4, %v20111_v5  ;;  %11129 = vmatpush2.bf16.msra.mxu1 %v15390_v22  ;;  %11159 = vmatprep.subr.bf16.mxu0 %v15551_v62  ;;  %v19427_v23 = vld [vmem:[#allocation4 + $0xc78] sm:$0xff]  ;;  %v10855_v62 = vpop.f32.mrf.mxu0 }
 0x3a0   :  { %v15519_v15 = vcombine.high %v1071_v40, %v1087_v4  ;;  %v15326_v31 = vcombine.low %v879_v42, %v895_v43  ;;  %v15518_v61 = vcombine.low %v1071_v40, %v1087_v4  ;;  %11130 = vmatprep.subr.bf16.mxu1 %v15359_v7  ;;  %v19410_v3 = vcombine.high %v847_v58, %v863_v29  ;;  %v2216_v43 = vld [vmem:[#allocation9 + $0x140] sm:$0xff]  ;;  %v10814_v4 = vpop.f32.mrf.mxu1 }
 0x3a1   :  { %v15807_v44 = vcombine.high %v19394_v57, %v19394_v57  ;;  %v19414_v21 = vcombine.low %v847_v58, %v863_v29  ;;  %v15806_v34 = vcombine.low %v19394_v57, %v19394_v57  ;;  %v815_v30 = vunpack.c.h.s8.bf16 %v19418_v2  ;;  %v10857_v28 = vpop.f32.mrf.mxu0  ;;  %v19464_v2 = vld [vmem:[#allocation9 + $0x190] sm:$0xff] }
 0x3a2   :  { %v831_v32 = vunpack.c.h.s8.bf16 %v19421_v38  ;;  %v1327_v46 = vunpack.c.h.s8.bf16 %v19424_v0  ;;  %v1343_v12 = vunpack.c.h.s8.bf16 %v19427_v23  ;;  %11160 = vmatpush1.bf16.msra.mxu0 %v15550_v51  ;;  %v2377_v49 = vunpack.c.h.s8.bf16 %v2212_v45  ;;  %v16521_v0 = vld [vmem:[#allocation3 + $0x78] sm:$0xff]  }
 0x3a3   :  { %v2393_v33 = vunpack.c.h.s8.bf16 %v2220_v55  ;;  %v2369_v42 = vunpack.c.h.s8.bf16 %v2208_v59  ;;  %v2376_v35 = vunpack.c.l.s8.bf16 %v2212_v45  ;;  %v19430_v22 = vadd.f32 %v10853_v16, %v10812_v47  ;;  %11131 = vmatpush2.bf16.msra.mxu1 %v15358_v1  ;;  %11161 = vmatprep.subr.bf16.mxu0 %v15519_v15  ;;  %v2231_v16 = vld [vmem:[#allocation9 + $0x1b8] sm:$0xff]  ;;  %v10816_v1 = vpop.f32.mrf.mxu1 }
 0x3a4   :  { %v2385_v52 = vunpack.c.h.s8.bf16 %v2216_v43  ;;  %v2392_v40 = vunpack.c.l.s8.bf16 %v2220_v55  ;;  %v2368_v14 = vunpack.c.l.s8.bf16 %v2208_v59  ;;  %11132 = vmatprep.subr.bf16.mxu1 %v15327_v13  ;;  %v14606_v7 = vcombine.low %v2377_v49, %v2377_v49  ;;  %v10858_v59 = vpop.f32.mrf.mxu0 }
 0x3a5   :  { %v14607_v17 = vcombine.high %v2377_v49, %v2377_v49  ;;  %v14638_v58 = vcombine.low %v2393_v33, %v2393_v33  ;;  %v14639_v25 = vcombine.high %v2393_v33, %v2393_v33  ;;  %v19432_v29 = vadd.f32 %v10855_v62, %v10814_v4  ;;  %v2239_v33 = vld [vmem:[#allocation9 + $0x1f8] sm:$0xff] }
 0x3a6   :  { %v9871_v57 = vsel %vm9779_vm1, %v15806_v34, 0  ;;  %v14590_v8 = vcombine.low %v2369_v42, %v2369_v42  ;;  %v14591_v51 = vcombine.high %v2369_v42, %v2369_v42  ;;  %11162 = vmatpush1.bf16.msra.mxu0 %v15518_v61  ;;  %4498 = vst [vmem:[#allocation3 + $0x248] sm:$0xf] %v14606_v7  ;;  %v14622_v15 = vcombine.low %v2385_v52, %v2385_v52  ;;  %v2227_v42 = vld [vmem:[#allocation9 + $0x198] sm:$0xff] }
 0x3a7   :  { %4499 = vst [vmem:[#allocation3 + $0x24c] sm:$0xf] %v14607_v17  ;;  %4530 = vst [vmem:[#allocation3 + $0x2c8] sm:$0xf] %v14638_v58  ;;  %v14623_v13 = vcombine.high %v2385_v52, %v2385_v52  ;;  %v14604_v45 = vcombine.low %v2376_v35, %v2376_v35  ;;  %v14605_v55 = vcombine.high %v2376_v35, %v2376_v35  ;;  %11133 = vmatpush2.bf16.msra.mxu1 %v15326_v31  ;;  %v10817_v31 = vpop.f32.mrf.mxu1  ;;  %v2235_v4 = vld [vmem:[#allocation9 + $0x1d8] sm:$0xff] }
 0x3a8   :  { %4531 = vst [vmem:[#allocation3 + $0x2cc] sm:$0xf] %v14639_v25  ;;  %15838 = vmatprep.subr.msk.bf16.mxu0 %vm9779_vm1, %v15807_v44  ;;  %v15263_v34 = vcombine.high %v815_v30, %v831_v32  ;;  %v15775_v61 = vcombine.high %v1327_v46, %v1343_v12  ;;  %4482 = vst [vmem:[#allocation3 + $0x208] sm:$0xf] %v14590_v8  ;;  %v14636_v47 = vcombine.low %v2392_v40, %v2392_v40  ;;  %v20122_v7 = vld [vmem:[#allocation36_spill] sm:$0xff] }
 0x3a9   :  { %4483 = vst [vmem:[#allocation3 + $0x20c] sm:$0xf] %v14591_v51  ;;  %v2384_v49 = vunpack.c.l.s8.bf16 %v2216_v43  ;;  %11134 = vmatprep.subr.bf16.mxu1 %v19410_v3  ;;  %4514 = vst [vmem:[#allocation3 + $0x288] sm:$0xf] %v14622_v15  ;;  %v14637_v44 = vcombine.high %v2392_v40, %v2392_v40  ;;  %v14588_v35 = vcombine.low %v2368_v14, %v2368_v14  ;;  %v2415_v52 = vunpack.c.h.s8.bf16 %v2231_v16  ;;  %v19460_v8 = vld [vmem:[#allocation9 + $0x1b0] sm:$0xff]  ;;  %v16523_v51 = vld [vmem:[#allocation3 + $0x38] sm:$0xff]  }
 0x3aa   :  { %4515 = vst [vmem:[#allocation3 + $0x28c] sm:$0xf] %v14623_v13  ;;  %4496 = vst [vmem:[#allocation3 + $0x240] sm:$0xf] %v14604_v45  ;;  %v14589_v62 = vcombine.high %v2368_v14, %v2368_v14  ;;  %v19449_v17 = vmul.f32 %v11219_v48, %v20122_v7  ;;  %v15774_v3 = vcombine.low %v1327_v46, %v1343_v12  ;;  %11176 = vmatpush2.bf16.msra.mxu0 %v9871_v57  ;;  %v16522_v46 = vld [vmem:[#allocation3 + $0xf8] sm:$0xff]   ;;  %v19462_v13 = vld [vmem:[#allocation9 + $0x1f0] sm:$0xff] }
 0x3ab   :  { %4497 = vst [vmem:[#allocation3 + $0x244] sm:$0xf] %v14605_v55  ;;  %4528 = vst [vmem:[#allocation3 + $0x2c0] sm:$0xf] %v14636_v47  ;;  %v14620_v43 = vcombine.low %v2384_v49, %v2384_v49  ;;  %v14621_v58 = vcombine.high %v2384_v49, %v2384_v49  ;;  %v14682_v40 = vcombine.low %v2415_v52, %v2415_v52  ;;  %v2431_v25 = vunpack.c.h.s8.bf16 %v2239_v33  ;;  %v16526_v31 = vld [vmem:[#allocation3 + $0xf0] sm:$0xff]  }
 0x3ac   :  { %4529 = vst [vmem:[#allocation3 + $0x2c4] sm:$0xf] %v14637_v44  ;;  %4480 = vst [vmem:[#allocation3 + $0x200] sm:$0xf] %v14588_v35  ;;  %v14683_v14 = vcombine.high %v2415_v52, %v2415_v52  ;;  %v2407_v28 = vunpack.c.h.s8.bf16 %v2227_v42  ;;  %11135 = vmatpush2.bf16.msra.mxu1 %v19414_v21  ;;  %11177 = vmatprep.subr.bf16.mxu0 %v15775_v61  ;;  %v15262_v48 = vcombine.low %v815_v30, %v831_v32  ;;  %v19466_v30 = vld [vmem:[#allocation9 + $0x1d0] sm:$0xff]  ;;  %v16524_v32 = vld [vmem:[#allocation3 + $0xb8] sm:$0xff]  }
 0x3ad   :  { %4481 = vst [vmem:[#allocation3 + $0x204] sm:$0xf] %v14589_v62  ;;  %4512 = vst [vmem:[#allocation3 + $0x280] sm:$0xf] %v14620_v43  ;;  %v2423_v23 = vunpack.c.h.s8.bf16 %v2235_v4  ;;  %v2414_v12 = vunpack.c.l.s8.bf16 %v2231_v16  ;;  %v2430_v57 = vunpack.c.l.s8.bf16 %v2239_v33  ;;  %11136 = vmatprep.subr.bf16.mxu1 %v15263_v34  ;;  %v14714_v21 = vcombine.low %v2431_v25, %v2431_v25  ;;  %v16525_v34 = vld [vmem:[#allocation3 + $0x70] sm:$0xff]  }
 0x3ae   :  { %4513 = vst [vmem:[#allocation3 + $0x284] sm:$0xf] %v14621_v58  ;;  %4574 = vst [vmem:[#allocation3 + $0x378] sm:$0xf] %v14682_v40  ;;  %v14715_v1 = vcombine.high %v2431_v25, %v2431_v25  ;;  %v14666_v15 = vcombine.low %v2407_v28, %v2407_v28  ;;  %v14667_v38 = vcombine.high %v2407_v28, %v2407_v28  ;;  %11178 = vmatpush2.bf16.msra.mxu0 %v15774_v3  ;;  %v16527_v7 = vld [vmem:[#allocation3 + $0x30] sm:$0xff]   ;;  %v19472_v58 = vld [vmem:[#allocation9 + $0x1a8] sm:$0xff] }
 0x3af   :  { %4575 = vst [vmem:[#allocation3 + $0x37c] sm:$0xf] %v14683_v14  ;;  %v14698_v45 = vcombine.low %v2423_v23, %v2423_v23  ;;  %v14699_v16 = vcombine.high %v2423_v23, %v2423_v23  ;;  %v14680_v55 = vcombine.low %v2414_v12, %v2414_v12  ;;  %v14681_v59 = vcombine.high %v2414_v12, %v2414_v12  ;;  %v16528_v40 = vld [vmem:[#allocation3 + $0xb0] sm:$0xff]   ;;  %v16529_v14 = vld [vmem:[#allocation3 + $0x68] sm:$0xff]  }
 0x3b0   :  { %4606 = vst [vmem:[#allocation3 + $0x3f8] sm:$0xf] %v14714_v21  ;;  %4607 = vst [vmem:[#allocation3 + $0x3fc] sm:$0xf] %v14715_v1  ;;  %v14712_v61 = vcombine.low %v2430_v57, %v2430_v57  ;;  %v14713_v47 = vcombine.high %v2430_v57, %v2430_v57  ;;  %v2406_v49 = vunpack.c.l.s8.bf16 %v2227_v42  ;;  %v2422_v33 = vunpack.c.l.s8.bf16 %v2235_v4  ;;  %11137 = vmatpush2.bf16.msra.mxu1 %v15262_v48  ;;  %v19475_v23 = vld [vmem:[#allocation9 + $0x1e8] sm:$0xff] }
 0x3b1   :  { %4558 = vst [vmem:[#allocation3 + $0x338] sm:$0xf] %v14666_v15  ;;  %4559 = vst [vmem:[#allocation3 + $0x33c] sm:$0xf] %v14667_v38  ;;  %16099 = vmatprep.subr.bf16.mxu0 %v16521_v0  ;;  %v2413_v44 = vunpack.c.h.s8.bf16 %v19460_v8  ;;  %v2429_v35 = vunpack.c.h.s8.bf16 %v19462_v13  ;;  %v2405_v62 = vunpack.c.h.s8.bf16 %v19464_v2  ;;  %v2421_v52 = vunpack.c.h.s8.bf16 %v19466_v30  ;;  %16121 = vmatprep.subr.bf16.mxu1 %v16522_v46  ;;  %v16530_v46 = vld [vmem:[#allocation3 + $0xe8] sm:$0xff]  }
 0x3b2   :  { %4590 = vst [vmem:[#allocation3 + $0x3b8] sm:$0xf] %v14698_v45  ;;  %4591 = vst [vmem:[#allocation3 + $0x3bc] sm:$0xf] %v14699_v16  ;;  %v14664_v42 = vcombine.low %v2406_v49, %v2406_v49  ;;  %v14665_v4 = vcombine.high %v2406_v49, %v2406_v49  ;;  %v14696_v3 = vcombine.low %v2422_v33, %v2422_v33  ;;  %11180 = vmatmul.mubr.bf16.vlgmr.msra.gmra.mxu0 %v20102_v63  ;;  %v2225_v38 = vld [vmem:[#allocation9 + $0x188] sm:$0xff] }
 0x3b3   :  { %4572 = vst [vmem:[#allocation3 + $0x370] sm:$0xf] %v14680_v55  ;;  %4573 = vst [vmem:[#allocation3 + $0x374] sm:$0xf] %v14681_v59  ;;  %v14697_v43 = vcombine.high %v2422_v33, %v2422_v33  ;;  %v14678_v25 = vcombine.low %v2413_v44, %v2413_v44  ;;  %v14679_v28 = vcombine.high %v2413_v44, %v2413_v44  ;;  %11139 = vmatmul.mubr.bf16.vlgmr.msra.gmra.mxu1 %v20107_v18  ;;  %v16531_v45 = vld [vmem:[#allocation3 + $0x28] sm:$0xff]  }
 0x3b4   :  { %4604 = vst [vmem:[#allocation3 + $0x3f0] sm:$0xf] %v14712_v61  ;;  %4605 = vst [vmem:[#allocation3 + $0x3f4] sm:$0xf] %v14713_v47  ;;  %v14710_v48 = vcombine.low %v2429_v35, %v2429_v35  ;;  %v14711_v0 = vcombine.high %v2429_v35, %v2429_v35  ;;  %16100 = vmatpush3.bf16.msra.mxu0 %v16523_v51  ;;  %v14662_v12 = vcombine.low %v2405_v62, %v2405_v62  ;;  %v2233_v55 = vld [vmem:[#allocation9 + $0x1c8] sm:$0xff]  ;;  %v19486_v35 = vld [vmem:[#allocation9 + $0x1a0] sm:$0xff] }
 0x3b5   :  { %4556 = vst [vmem:[#allocation3 + $0x330] sm:$0xf] %v14664_v42  ;;  %4557 = vst [vmem:[#allocation3 + $0x334] sm:$0xf] %v14665_v4  ;;  %v14663_v57 = vcombine.high %v2405_v62, %v2405_v62  ;;  %v14694_v21 = vcombine.low %v2421_v52, %v2421_v52  ;;  %v2412_v63 = vunpack.c.l.s8.bf16 %v19460_v8  ;;  %13734 = vmatprep.mubr.bf16.mxu0 %v19403_v6  ;;  %16122 = vmatpush3.bf16.msra.mxu1 %v16524_v32  ;;  %v16535_v4 = vld [vmem:[#allocation3 + $0x20] sm:$0xff]  }
 0x3b6   :  { %4588 = vst [vmem:[#allocation3 + $0x3b0] sm:$0xf] %v14696_v3  ;;  %4589 = vst [vmem:[#allocation3 + $0x3b4] sm:$0xf] %v14697_v43  ;;  %v14695_v1 = vcombine.high %v2421_v52, %v2421_v52  ;;  %v2428_v18 = vunpack.c.l.s8.bf16 %v19462_v13  ;;  %v2404_v51 = vunpack.c.l.s8.bf16 %v19464_v2  ;;  %v2420_v15 = vunpack.c.l.s8.bf16 %v19466_v30  ;;  %13774 = vmatprep.mubr.bf16.mxu1 %v19405_v60  ;;  %16101 = vmatprep.subr.bf16.mxu0 %v16525_v34  ;;  %v16532_v13 = vld [vmem:[#allocation3 + $0xa8] sm:$0xff]   ;;  %v16533_v2 = vld [vmem:[#allocation3 + $0x60] sm:$0xff]  }
 0x3b7   :  { %4570 = vst [vmem:[#allocation3 + $0x368] sm:$0xf] %v14678_v25  ;;  %4571 = vst [vmem:[#allocation3 + $0x36c] sm:$0xf] %v14679_v28  ;;  %v14676_v6 = vcombine.low %v2412_v63, %v2412_v63  ;;  %v14677_v8 = vcombine.high %v2412_v63, %v2412_v63  ;;  %v2411_v32 = vunpack.c.h.s8.bf16 %v19472_v58  ;;  %v2427_v16 = vunpack.c.h.s8.bf16 %v19475_v23  ;;  %16123 = vmatprep.subr.bf16.mxu1 %v16526_v31  ;;  %v16534_v34 = vld [vmem:[#allocation3 + $0xe0] sm:$0xff]  }
 0x3b8   :  { %4602 = vst [vmem:[#allocation3 + $0x3e8] sm:$0xf] %v14710_v48  ;;  %4603 = vst [vmem:[#allocation3 + $0x3ec] sm:$0xf] %v14711_v0  ;;  %v14708_v30 = vcombine.low %v2428_v18, %v2428_v18  ;;  %v14709_v59 = vcombine.high %v2428_v18, %v2428_v18  ;;  %v14660_v61 = vcombine.low %v2404_v51, %v2404_v51  ;;  %16102 = vmatpush3.bf16.msra.mxu0 %v16527_v7  ;;  %v2236_v7 = vld [vmem:[#allocation9 + $0x1e0] sm:$0xff] }
 0x3b9   :  { %4554 = vst [vmem:[#allocation3 + $0x328] sm:$0xf] %v14662_v12  ;;  %4555 = vst [vmem:[#allocation3 + $0x32c] sm:$0xf] %v14663_v57  ;;  %v14661_v60 = vcombine.high %v2404_v51, %v2404_v51  ;;  %v14692_v47 = vcombine.low %v2420_v15, %v2420_v15  ;;  %v14693_v49 = vcombine.high %v2420_v15, %v2420_v15  ;;  %16124 = vmatpush3.bf16.msra.mxu1 %v16528_v40  ;;  %v2224_v25 = vld [vmem:[#allocation9 + $0x180] sm:$0xff] }
 0x3ba   :  { %4586 = vst [vmem:[#allocation3 + $0x3a8] sm:$0xf] %v14694_v21  ;;  %4587 = vst [vmem:[#allocation3 + $0x3ac] sm:$0xf] %v14695_v1  ;;  %v14674_v33 = vcombine.low %v2411_v32, %v2411_v32  ;;  %v14675_v44 = vcombine.high %v2411_v32, %v2411_v32  ;;  %16103 = vmatprep.subr.bf16.mxu0 %v16529_v14  ;;  %v14706_v31 = vcombine.low %v2427_v16, %v2427_v16  ;;  %v16536_v28 = vld [vmem:[#allocation3 + $0xa0] sm:$0xff]   ;;  %v16537_v21 = vld [vmem:[#allocation3 + $0x58] sm:$0xff]  }
 0x3bb   :  { %4568 = vst [vmem:[#allocation3 + $0x360] sm:$0xf] %v14676_v6  ;;  %4569 = vst [vmem:[#allocation3 + $0x364] sm:$0xf] %v14677_v8  ;;  %v14707_v62 = vcombine.high %v2427_v16, %v2427_v16  ;;  %v2403_v52 = vunpack.c.h.s8.bf16 %v2225_v38  ;;  %v2419_v42 = vunpack.c.h.s8.bf16 %v2233_v55  ;;  %16125 = vmatprep.subr.bf16.mxu1 %v16530_v46  ;;  %v2410_v3 = vunpack.c.l.s8.bf16 %v19472_v58  ;;  %v19490_v46 = vld [vmem:[#allocation9 + $0x1c0] sm:$0xff]  ;;  %v16539_v8 = vld [vmem:[#allocation3 + $0x18] sm:$0xff]  }
 0x3bc   :  { %4600 = vst [vmem:[#allocation3 + $0x3e0] sm:$0xf] %v14708_v30  ;;  %4601 = vst [vmem:[#allocation3 + $0x3e4] sm:$0xf] %v14709_v59  ;;  %v2426_v43 = vunpack.c.l.s8.bf16 %v19475_v23  ;;  %v2402_v40 = vunpack.c.l.s8.bf16 %v2225_v38  ;;  %v2418_v14 = vunpack.c.l.s8.bf16 %v2233_v55  ;;  %16104 = vmatpush3.bf16.msra.mxu0 %v16531_v45  ;;  %v16538_v23 = vld [vmem:[#allocation3 + $0xd8] sm:$0xff]   ;;  %v2409_v6 = vunpack.c.h.s8.bf16 %v19486_v35  ;;  %v16541_v30 = vld [vmem:[#allocation3 + $0x50] sm:$0xff]  }
 0x3bd   :  { %4552 = vst [vmem:[#allocation3 + $0x320] sm:$0xf] %v14660_v61  ;;  %4553 = vst [vmem:[#allocation3 + $0x324] sm:$0xf] %v14661_v60  ;;  %v14658_v48 = vcombine.low %v2403_v52, %v2403_v52  ;;  %v14659_v0 = vcombine.high %v2403_v52, %v2403_v52  ;;  %v14690_v12 = vcombine.low %v2419_v42, %v2419_v42  ;;  %16126 = vmatpush3.bf16.msra.mxu1 %v16532_v13  ;;  %v2247_v13 = vld [vmem:[#allocation9 + $0x238] sm:$0xff] }
 0x3be   :  { %4584 = vst [vmem:[#allocation3 + $0x3a0] sm:$0xf] %v14692_v47  ;;  %4585 = vst [vmem:[#allocation3 + $0x3a4] sm:$0xf] %v14693_v49  ;;  %v14691_v57 = vcombine.high %v2419_v42, %v2419_v42  ;;  %v14672_v63 = vcombine.low %v2410_v3, %v2410_v3  ;;  %v14673_v1 = vcombine.high %v2410_v3, %v2410_v3  ;;  %16105 = vmatprep.subr.bf16.mxu0 %v16533_v2  ;;  %v16540_v2 = vld [vmem:[#allocation3 + $0x98] sm:$0xff]  }
 0x3bf   :  { %4566 = vst [vmem:[#allocation3 + $0x358] sm:$0xf] %v14674_v33  ;;  %4567 = vst [vmem:[#allocation3 + $0x35c] sm:$0xf] %v14675_v44  ;;  %v14704_v18 = vcombine.low %v2426_v43, %v2426_v43  ;;  %v14705_v58 = vcombine.high %v2426_v43, %v2426_v43  ;;  %v14656_v51 = vcombine.low %v2402_v40, %v2402_v40  ;;  %16127 = vmatprep.subr.bf16.mxu1 %v16534_v34  ;;  %v19495_v47 = vld [vmem:[#allocation9 + $0x278] sm:$0xff] }
 0x3c0   :  { %4598 = vst [vmem:[#allocation3 + $0x3d8] sm:$0xf] %v14706_v31  ;;  %4599 = vst [vmem:[#allocation3 + $0x3dc] sm:$0xf] %v14707_v62  ;;  %v14657_v15 = vcombine.high %v2402_v40, %v2402_v40  ;;  %v14688_v38 = vcombine.low %v2418_v14, %v2418_v14  ;;  %v14689_v45 = vcombine.high %v2418_v14, %v2418_v14  ;;  %v2425_v32 = vunpack.c.h.s8.bf16 %v2236_v7  ;;  %v19497_v62 = vld [vmem:[#allocation9 + $0x218] sm:$0xff] }
 0x3c1   :  { %4550 = vst [vmem:[#allocation3 + $0x318] sm:$0xf] %v14658_v48  ;;  %4551 = vst [vmem:[#allocation3 + $0x31c] sm:$0xf] %v14659_v0  ;;  %v2401_v16 = vunpack.c.h.s8.bf16 %v2224_v25  ;;  %v2417_v55 = vunpack.c.h.s8.bf16 %v19490_v46  ;;  %v14670_v59 = vcombine.low %v2409_v6, %v2409_v6  ;;  %v14671_v61 = vcombine.high %v2409_v6, %v2409_v6  ;;  %16106 = vmatpush3.bf16.msra.mxu0 %v16535_v4  ;;  %v16546_v6 = vld [vmem:[#allocation3 + $0xc8] sm:$0xff]  }
 0x3c2   :  { %4582 = vst [vmem:[#allocation3 + $0x398] sm:$0xf] %v14690_v12  ;;  %4583 = vst [vmem:[#allocation3 + $0x39c] sm:$0xf] %v14691_v57  ;;  %v2408_v60 = vunpack.c.l.s8.bf16 %v19486_v35  ;;  %v2424_v34 = vunpack.c.l.s8.bf16 %v2236_v7  ;;  %v14702_v49 = vcombine.low %v2425_v32, %v2425_v32  ;;  %v14703_v33 = vcombine.high %v2425_v32, %v2425_v32  ;;  %16128 = vmatpush3.bf16.msra.mxu1 %v16536_v28  ;;  %v2251_v35 = vld [vmem:[#allocation9 + $0x258] sm:$0xff]  ;;  %v16542_v7 = vld [vmem:[#allocation3 + $0xd0] sm:$0xff]  }
 0x3c3   :  { %4564 = vst [vmem:[#allocation3 + $0x350] sm:$0xf] %v14672_v63  ;;  %4565 = vst [vmem:[#allocation3 + $0x354] sm:$0xf] %v14673_v1  ;;  %v14654_v44 = vcombine.low %v2401_v16, %v2401_v16  ;;  %v14655_v31 = vcombine.high %v2401_v16, %v2401_v16  ;;  %16107 = vmatprep.subr.bf16.mxu0 %v16537_v21  ;;  %v14686_v52 = vcombine.low %v2417_v55, %v2417_v55  ;;  %v16543_v28 = vld [vmem:[#allocation3 + $0x10] sm:$0xff]  }
 0x3c4   :  { %4596 = vst [vmem:[#allocation3 + $0x3d0] sm:$0xf] %v14704_v18  ;;  %4597 = vst [vmem:[#allocation3 + $0x3d4] sm:$0xf] %v14705_v58  ;;  %v14687_v42 = vcombine.high %v2417_v55, %v2417_v55  ;;  %v14668_v3 = vcombine.low %v2408_v60, %v2408_v60  ;;  %v2400_v43 = vunpack.c.l.s8.bf16 %v2224_v25  ;;  %16129 = vmatprep.subr.bf16.mxu1 %v16538_v23  ;;  %v2416_v48 = vunpack.c.l.s8.bf16 %v19490_v46  ;;  %v16544_v21 = vld [vmem:[#allocation3 + $0x90] sm:$0xff]   ;;  %v16545_v46 = vld [vmem:[#allocation3 + $0x48] sm:$0xff]  }
 0x3c5   :  { %4548 = vst [vmem:[#allocation3 + $0x310] sm:$0xf] %v14656_v51  ;;  %4549 = vst [vmem:[#allocation3 + $0x314] sm:$0xf] %v14657_v15  ;;  %v14669_v4 = vcombine.high %v2408_v60, %v2408_v60  ;;  %v14700_v40 = vcombine.low %v2424_v34, %v2424_v34  ;;  %v14701_v14 = vcombine.high %v2424_v34, %v2424_v34  ;;  %v2447_v57 = vunpack.c.h.s8.bf16 %v2247_v13  ;;  %v16547_v55 = vld [vmem:[#allocation3 + $0x8] sm:$0xff]   ;;  %v20123_v60 = vld [vmem:[#allocation29_spill] sm:$0xff] }
 0x3c6   :  { %4580 = vst [vmem:[#allocation3 + $0x390] sm:$0xf] %v14688_v38  ;;  %4581 = vst [vmem:[#allocation3 + $0x394] sm:$0xf] %v14689_v45  ;;  %v14652_v0 = vcombine.low %v2400_v43, %v2400_v43  ;;  %v14653_v12 = vcombine.high %v2400_v43, %v2400_v43  ;;  %v2463_v25 = vunpack.c.h.s8.bf16 %v19495_v47  ;;  %16108 = vmatpush3.bf16.msra.mxu0 %v16539_v8  ;;  %v2439_v18 = vunpack.c.h.s8.bf16 %v19497_v62 }
 0x3c7   :  { %4562 = vst [vmem:[#allocation3 + $0x348] sm:$0xf] %v14670_v59  ;;  %4563 = vst [vmem:[#allocation3 + $0x34c] sm:$0xf] %v14671_v61  ;;  %v14684_v63 = vcombine.low %v2416_v48, %v2416_v48  ;;  %v14685_v1 = vcombine.high %v2416_v48, %v2416_v48  ;;  %v2455_v58 = vunpack.c.h.s8.bf16 %v2251_v35  ;;  %16130 = vmatpush3.bf16.msra.mxu1 %v16540_v2  ;;  %16109 = vmatprep.subr.bf16.mxu0 %v16541_v30  ;;  %v16814_v48 = vld [vmem:[#allocation6] sm:$0xff] }
 0x3c8   :  { %4594 = vst [vmem:[#allocation3 + $0x3c8] sm:$0xf] %v14702_v49  ;;  %4595 = vst [vmem:[#allocation3 + $0x3cc] sm:$0xf] %v14703_v33  ;;  %v14746_v23 = vcombine.low %v2447_v57, %v2447_v57  ;;  %v14747_v51 = vcombine.high %v2447_v57, %v2447_v57  ;;  %v14778_v15 = vcombine.low %v2463_v25, %v2463_v25  ;;  %v2446_v38 = vunpack.c.l.s8.bf16 %v2247_v13  ;;  %v16548_v49 = vld [vmem:[#allocation3 + $0x88] sm:$0xff]  }
 0x3c9   :  { %4546 = vst [vmem:[#allocation3 + $0x308] sm:$0xf] %v14654_v44  ;;  %4547 = vst [vmem:[#allocation3 + $0x30c] sm:$0xf] %v14655_v31  ;;  %16131 = vmatprep.subr.bf16.mxu1 %v16542_v7  ;;  %v14779_v8 = vcombine.high %v2463_v25, %v2463_v25  ;;  %v14730_v45 = vcombine.low %v2439_v18, %v2439_v18  ;;  %v14731_v32 = vcombine.high %v2439_v18, %v2439_v18  ;;  %v19521_v7 = vld [vmem:[#allocation6 + $0x8] sm:$0xff]  ;;  %v16555_v25 = vld [vmem:[#allocation3 + $0x138] sm:$0xff]  }
 0x3ca   :  { %4578 = vst [vmem:[#allocation3 + $0x388] sm:$0xf] %v14686_v52  ;;  %4579 = vst [vmem:[#allocation3 + $0x38c] sm:$0xf] %v14687_v42  ;;  %v14762_v16 = vcombine.low %v2455_v58, %v2455_v58  ;;  %v14763_v2 = vcombine.high %v2455_v58, %v2455_v58  ;;  %v14744_v30 = vcombine.low %v2446_v38, %v2446_v38  ;;  %v2462_v61 = vunpack.c.l.s8.bf16 %v19495_v47  ;;  %v16550_v42 = vld [vmem:[#allocation3 + $0xc0] sm:$0xff]  }
 0x3cb   :  { %4560 = vst [vmem:[#allocation3 + $0x340] sm:$0xf] %v14668_v3  ;;  %4561 = vst [vmem:[#allocation3 + $0x344] sm:$0xf] %v14669_v4  ;;  %v14745_v59 = vcombine.high %v2446_v38, %v2446_v38  ;;  %v11363_v13 = vmul.f32 %v11227_v24, %v20123_v60  ;;  %v11427_v34 = vrot.slane %v19336_v50, %v19390_v53  ;;  %16110 = vmatpush3.bf16.msra.mxu0 %v16543_v28  ;;  %v16549_v24 = vld [vmem:[#allocation3 + $0x40] sm:$0xff]   ;;  %v19523_v4 = vpop.f32.mrf.mxu1  ;;  %v16557_v38 = vld [vmem:[#allocation3 + $0x170] sm:$0xff]  }
 0x3cc   :  { %4592 = vst [vmem:[#allocation3 + $0x3c0] sm:$0xf] %v14700_v40  ;;  %4593 = vst [vmem:[#allocation3 + $0x3c4] sm:$0xf] %v14701_v14  ;;  %v2438_v33 = vunpack.c.l.s8.bf16 %v19497_v62  ;;  %v2454_v44 = vunpack.c.l.s8.bf16 %v2251_v35  ;;  %v11558_v47 = vadd.f32 %v11407_v56, %v19399_v41  ;;  %v19515_v37 = vsub.s32 6, %v20111_v5  ;;  %16132 = vmatpush3.bf16.msra.mxu1 %v16544_v21  ;;  %16111 = vmatprep.subr.bf16.mxu0 %v16545_v46  ;;  %v16551_v56 = vld [vmem:[#allocation3] sm:$0xff]  }
 0x3cd   :  { %4544 = vst [vmem:[#allocation3 + $0x300] sm:$0xf] %v14652_v0  ;;  %4545 = vst [vmem:[#allocation3 + $0x304] sm:$0xf] %v14653_v12  ;;  %v14776_v31 = vcombine.low %v2462_v61, %v2462_v61  ;;  %v14777_v52 = vcombine.high %v2462_v61, %v2462_v61  ;;  %16133 = vmatprep.subr.bf16.mxu1 %v16546_v6  ;;  %v11561_v5 = vadd.f32 %v11419_v19, %v19449_v17  ;;  %v16552_v40 = vld [vmem:[#allocation3 + $0x80] sm:$0xff]   ;;  %v16553_v19 = vld [vmem:[#allocation3 + $0x178] sm:$0xff]   ;;  %v19528_v0 = vpop.f32.mrf.mxu1 }
 0x3ce   :  { %4576 = vst [vmem:[#allocation3 + $0x380] sm:$0xf] %v14684_v63  ;;  %4577 = vst [vmem:[#allocation3 + $0x384] sm:$0xf] %v14685_v1  ;;  %v14728_v62 = vcombine.low %v2438_v33, %v2438_v33  ;;  %v14729_v3 = vcombine.high %v2438_v33, %v2438_v33  ;;  %v14760_v43 = vcombine.low %v2454_v44, %v2454_v44  ;;  %v11588_v14 = vmax.f32 %v19396_v26, 0.0  ;;  %v16554_v12 = vld [vmem:[#allocation3 + $0x1f8] sm:$0xff]  }
 0x3cf   :  { %4638 = vst [vmem:[#allocation3 + $0x478] sm:$0xf] %v14746_v23  ;;  %4639 = vst [vmem:[#allocation3 + $0x47c] sm:$0xf] %v14747_v51  ;;  %v14761_v35 = vcombine.high %v2454_v44, %v2454_v44  ;;  %v11563_v41 = vadd.f32 %v11427_v34, %v11363_v13  ;;  %16112 = vmatpush3.bf16.msra.mxu0 %v16547_v55  ;;  %v11215_v50 = vrot.slane %v16814_v48, %v19408_v54  ;;  %v19532_v63 = vld [vmem:[#allocation8 + $0x8] sm:$0xff]  ;;  %v10939_v26 = vpop.f32.mrf.mxu1  ;;  %v16556_v1 = vld [vmem:[#allocation3 + $0x1b8] sm:$0xff]  }
 0x3d0   :  { %4670 = vst [vmem:[#allocation3 + $0x4f8] sm:$0xf] %v14778_v15  ;;  %4671 = vst [vmem:[#allocation3 + $0x4fc] sm:$0xf] %v14779_v8  ;;  %16134 = vmatpush3.bf16.msra.mxu1 %v16548_v49  ;;  %16113 = vmatprep.subr.bf16.mxu0 %v16549_v24  ;;  %v11590_v17 = vmax.f32 %v11558_v47, 0.0  ;;  %v11223_v28 = vrot.slane %v16814_v48, %v19515_v37  ;;  %v11235_v57 = vrot.slane %v19521_v7, %v20114_v10  ;;  %v20124_v46 = vld [vmem:[#allocation35_spill] sm:$0xff] }
 0x3d1   :  { %4622 = vst [vmem:[#allocation3 + $0x438] sm:$0xf] %v14730_v45  ;;  %4623 = vst [vmem:[#allocation3 + $0x43c] sm:$0xf] %v14731_v32  ;;  %16135 = vmatprep.subr.bf16.mxu1 %v16550_v42  ;;  %v11593_v21 = vmax.f32 %v11561_v5, 0.0  ;;  %v11595_v18 = vmax.f32 %v11563_v41, 0.0  ;;  %v11620_v58 = vpack.c.bf16 %v11588_v14, %v11588_v14  ;;  %v11360_v23 = vmul.f32 %v11215_v50, %v20124_v46 }
 0x3d2   :  { %4654 = vst [vmem:[#allocation3 + $0x4b8] sm:$0xf] %v14762_v16  ;;  %4655 = vst [vmem:[#allocation3 + $0x4bc] sm:$0xf] %v14763_v2  ;;  %v16815_v51 = vld [vmem:[#allocation8] sm:$0xff]  ;;  %v11622_v6 = vpack.c.bf16 %v11590_v17, %v11590_v17  ;;  %v10940_v16 = vpop.f32.mrf.mxu1  ;;  %v16558_v55 = vld [vmem:[#allocation3 + $0x1f0] sm:$0xff]   ;;  %v11231_v5 = vrot.slane %v19521_v7, %v19345_v39  ;;  %v11431_v17 = vrot.slane %v19532_v63, %v19345_v39 }
 0x3d3   :  { %4636 = vst [vmem:[#allocation3 + $0x470] sm:$0xf] %v14744_v30  ;;  %4637 = vst [vmem:[#allocation3 + $0x474] sm:$0xf] %v14745_v59  ;;  %16114 = vmatpush3.bf16.msra.mxu0 %v16551_v56  ;;  %v11415_v15 = vrot.slane %v16815_v51, %v19408_v54  ;;  %v20125_v8 = vld [vmem:[#allocation25_spill] sm:$0xff]  ;;  %v11423_v32 = vrot.slane %v16815_v51, %v19515_v37  ;;  %v20126_v2 = vld [vmem:[#allocation40_spill] sm:$0xff]  ;;  %v11435_v59 = vrot.slane %v19532_v63, %v20114_v10 }
 0x3d4   :  { %4668 = vst [vmem:[#allocation3 + $0x4f0] sm:$0xf] %v14776_v31  ;;  %4669 = vst [vmem:[#allocation3 + $0x4f4] sm:$0xf] %v14777_v52  ;;  %16136 = vmatpush3.bf16.msra.mxu1 %v16552_v40  ;;  %16143 = vmatprep.subr.bf16.mxu0 %v16553_v19  ;;  %v11362_v45 = vmul.f32 %v11223_v28, %v20125_v8  ;;  %v11365_v30 = vmul.f32 %v11235_v57, %v20126_v2  ;;  %v16559_v60 = vld [vmem:[#allocation3 + $0x130] sm:$0xff]   ;;  %v16561_v33 = vld [vmem:[#allocation3 + $0x168] sm:$0xff]  }
 0x3d5   :  { %4620 = vst [vmem:[#allocation3 + $0x430] sm:$0xf] %v14728_v62  ;;  %4621 = vst [vmem:[#allocation3 + $0x434] sm:$0xf] %v14729_v3  ;;  %16165 = vmatprep.subr.bf16.mxu1 %v16554_v12  ;;  %v11625_v61 = vpack.c.bf16 %v11593_v21, %v11593_v21  ;;  %v11627_v13 = vpack.c.bf16 %v11595_v18, %v11595_v18  ;;  %v16560_v34 = vld [vmem:[#allocation3 + $0x1b0] sm:$0xff]   ;;  %v11560_v49 = vadd.f32 %v11415_v15, %v11360_v23  ;;  %v16562_v47 = vld [vmem:[#allocation3 + $0x1e8] sm:$0xff]  }
 0x3d6   :  { %4652 = vst [vmem:[#allocation3 + $0x4b0] sm:$0xf] %v14760_v43  ;;  %4653 = vst [vmem:[#allocation3 + $0x4b4] sm:$0xf] %v14761_v35  ;;  %13735 = vmatmul.mubr.bf16.vlgmr.msra.gmra.mxu0 %v11620_v58  ;;  %v11562_v44 = vadd.f32 %v11423_v32, %v11362_v45  ;;  %v11565_v24 = vadd.f32 %v11435_v59, %v11365_v30  ;;  %v11243_v31 = vrot.slane %v19521_v7, %v20117_v20  ;;  %v16563_v52 = vld [vmem:[#allocation3 + $0x128] sm:$0xff]   ;;  %v16565_v3 = vld [vmem:[#allocation3 + $0x160] sm:$0xff]  }
 0x3d7   :  { %13775 = vmatmul.mubr.bf16.vlgmr.msra.gmra.mxu1 %v11622_v6  ;;  %16144 = vmatpush3.bf16.msra.mxu0 %v16555_v25  ;;  %v16564_v42 = vld [vmem:[#allocation3 + $0x1a8] sm:$0xff]   ;;  %v11592_v62 = vmax.f32 %v11560_v49, 0.0  ;;  %v16566_v35 = vld [vmem:[#allocation3 + $0x1e0] sm:$0xff]   ;;  %v11443_v40 = vrot.slane %v19532_v63, %v20117_v20  ;;  %v11239_v28 = vrot.slane %v19521_v7, %v19354_v36  ;;  %v16569_v12 = vld [vmem:[#allocation3 + $0x158] sm:$0xff]   ;;  %v11439_v25 = vrot.slane %v19532_v63, %v19354_v36 }
 0x3d8   :  { %13814 = vmatprep.mubr.bf16.mxu0 %v11625_v61  ;;  %16166 = vmatpush3.bf16.msra.mxu1 %v16556_v1  ;;  %v11594_v43 = vmax.f32 %v11562_v44, 0.0  ;;  %v20127_v56 = vld [vmem:[#allocation33_spill] sm:$0xff]  ;;  %v11597_v48 = vmax.f32 %v11565_v24, 0.0  ;;  %v11251_v21 = vrot.slane %v19521_v7, %v19372_v9  ;;  %v11451_v26 = vrot.slane %v19532_v63, %v19372_v9  ;;  %v20128_v18 = vld [vmem:[#allocation39_spill] sm:$0xff] }
 0x3d9   :  { %13854 = vmatprep.mubr.bf16.mxu1 %v11627_v13  ;;  %16145 = vmatprep.subr.bf16.mxu0 %v16557_v38  ;;  %v11367_v41 = vmul.f32 %v11243_v31, %v20127_v56  ;;  %v16567_v14 = vld [vmem:[#allocation3 + $0x120] sm:$0xff]   ;;  %v19548_v19 = vpack.c.bf16 %v11592_v62, %v11592_v62  ;;  %v16570_v1 = vld [vmem:[#allocation3 + $0x1d8] sm:$0xff]   ;;  %v19563_v58 = vmul.f32 %v11231_v5, %v20128_v18  ;;  %v2246_v15 = vld [vmem:[#allocation9 + $0x230] sm:$0xff] }
 0x3da   :  { %16167 = vmatprep.subr.bf16.mxu1 %v16558_v55  ;;  %v16568_v50 = vld [vmem:[#allocation3 + $0x1a0] sm:$0xff]   ;;  %v19554_v57 = vpack.c.bf16 %v11594_v43, %v11594_v43  ;;  %v11259_v23 = vrot.slane %v19521_v7, %v19390_v53  ;;  %v19569_v51 = vpack.c.bf16 %v11597_v48, %v11597_v48  ;;  %v2254_v38 = vld [vmem:[#allocation9 + $0x270] sm:$0xff]  ;;  %v16571_v8 = vld [vmem:[#allocation3 + $0x118] sm:$0xff]   ;;  %v2445_v45 = vunpack.c.h.s8.bf16 %v2246_v15 }
 0x3db   :  { %16146 = vmatpush3.bf16.msra.mxu0 %v16559_v60  ;;  %v19565_v46 = vadd.f32 %v11443_v40, %v11367_v41  ;;  %v2242_v6 = vld [vmem:[#allocation9 + $0x210] sm:$0xff]  ;;  %v2461_v32 = vunpack.c.h.s8.bf16 %v2254_v38  ;;  %v2444_v2 = vunpack.c.l.s8.bf16 %v2246_v15  ;;  %v16572_v30 = vld [vmem:[#allocation3 + $0x198] sm:$0xff]   ;;  %v2460_v60 = vunpack.c.l.s8.bf16 %v2254_v38  ;;  %v2245_v31 = vld [vmem:[#allocation9 + $0x228] sm:$0xff] }
 0x3dc   :  { %16168 = vmatpush3.bf16.msra.mxu1 %v16560_v34  ;;  %16147 = vmatprep.subr.bf16.mxu0 %v16561_v33  ;;  %v2437_v16 = vunpack.c.h.s8.bf16 %v2242_v6  ;;  %v2250_v55 = vld [vmem:[#allocation9 + $0x250] sm:$0xff]  ;;  %v2436_v13 = vunpack.c.l.s8.bf16 %v2242_v6  ;;  %v14742_v33 = vcombine.low %v2445_v45, %v2445_v45  ;;  %v14743_v44 = vcombine.high %v2445_v45, %v2445_v45  ;;  %v19574_v48 = vld [vmem:[#allocation9 + $0x208] sm:$0xff] }
 0x3dd   :  { %16169 = vmatprep.subr.bf16.mxu1 %v16562_v47  ;;  %v16573_v59 = vld [vmem:[#allocation3 + $0x150] sm:$0xff]   ;;  %v2453_v61 = vunpack.c.h.s8.bf16 %v2250_v55  ;;  %v2452_v34 = vunpack.c.l.s8.bf16 %v2250_v55  ;;  %v14774_v47 = vcombine.low %v2461_v32, %v2461_v32  ;;  %v14775_v24 = vcombine.high %v2461_v32, %v2461_v32  ;;  %v19576_v6 = vld [vmem:[#allocation9 + $0x248] sm:$0xff] }
 0x3de   :  { %v16574_v49 = vld [vmem:[#allocation3 + $0x1d0] sm:$0xff]   ;;  %v14727_v62 = vcombine.high %v2437_v16, %v2437_v16  ;;  %4634 = vst [vmem:[#allocation3 + $0x468] sm:$0xf] %v14742_v33  ;;  %4635 = vst [vmem:[#allocation3 + $0x46c] sm:$0xf] %v14743_v44  ;;  %v14740_v56 = vcombine.low %v2444_v2, %v2444_v2  ;;  %v14741_v41 = vcombine.high %v2444_v2, %v2444_v2  ;;  %v2443_v38 = vunpack.c.h.s8.bf16 %v2245_v31  ;;  %v16578_v45 = vld [vmem:[#allocation3 + $0x1c8] sm:$0xff]  }
 0x3df   :  { %16148 = vmatpush3.bf16.msra.mxu0 %v16563_v52  ;;  %v10894_v52 = vpop.f32.mrf.mxu0  ;;  %v14759_v43 = vcombine.high %v2453_v61, %v2453_v61  ;;  %v16575_v5 = vld [vmem:[#allocation3 + $0x110] sm:$0xff]   ;;  %4666 = vst [vmem:[#allocation3 + $0x4e8] sm:$0xf] %v14774_v47  ;;  %4667 = vst [vmem:[#allocation3 + $0x4ec] sm:$0xf] %v14775_v24  ;;  %v14772_v40 = vcombine.low %v2460_v60, %v2460_v60  ;;  %v14724_v18 = vcombine.low %v2436_v13, %v2436_v13  ;;  %v16581_v24 = vld [vmem:[#allocation3 + $0x140] sm:$0xff]  }
 0x3e0   :  { %16170 = vmatpush3.bf16.msra.mxu1 %v16564_v42  ;;  %16149 = vmatprep.subr.bf16.mxu0 %v16565_v3  ;;  %v14726_v42 = vcombine.low %v2437_v16, %v2437_v16  ;;  %v14758_v3 = vcombine.low %v2453_v61, %v2453_v61  ;;  %4619 = vst [vmem:[#allocation3 + $0x42c] sm:$0xf] %v14727_v62  ;;  %v11599_v32 = vmax.f32 %v19565_v46, 0.0  ;;  %4632 = vst [vmem:[#allocation3 + $0x460] sm:$0xf] %v14740_v56 }
 0x3e1   :  { %16171 = vmatprep.subr.bf16.mxu1 %v16566_v35  ;;  %v19572_v35 = vadd.f32 %v19523_v4, %v10894_v52  ;;  %4651 = vst [vmem:[#allocation3 + $0x4ac] sm:$0xf] %v14759_v43  ;;  %v14773_v4 = vcombine.high %v2460_v60, %v2460_v60  ;;  %v14725_v15 = vcombine.high %v2436_v13, %v2436_v13  ;;  %4633 = vst [vmem:[#allocation3 + $0x464] sm:$0xf] %v14741_v41  ;;  %v16582_v52 = vld [vmem:[#allocation3 + $0x1c0] sm:$0xff]  }
 0x3e2   :  { %4618 = vst [vmem:[#allocation3 + $0x428] sm:$0xf] %v14726_v42  ;;  %4650 = vst [vmem:[#allocation3 + $0x4a8] sm:$0xf] %v14758_v3  ;;  %v14756_v16 = vcombine.low %v2452_v34, %v2452_v34  ;;  %v14757_v55 = vcombine.high %v2452_v34, %v2452_v34  ;;  %v2435_v60 = vunpack.c.h.s8.bf16 %v19574_v48  ;;  %v11459_v46 = vrot.slane %v19532_v63, %v19390_v53  ;;  %v16579_v34 = vld [vmem:[#allocation3 + $0x108] sm:$0xff]   ;;  %v19592_v43 = vld [vmem:[#allocation9 + $0x220] sm:$0xff] }
 0x3e3   :  { %16150 = vmatpush3.bf16.msra.mxu0 %v16567_v14  ;;  %v2253_v14 = vld [vmem:[#allocation9 + $0x268] sm:$0xff]  ;;  %4664 = vst [vmem:[#allocation3 + $0x4e0] sm:$0xf] %v14772_v40  ;;  %4665 = vst [vmem:[#allocation3 + $0x4e4] sm:$0xf] %v14773_v4  ;;  %v2451_v33 = vunpack.c.h.s8.bf16 %v19576_v6  ;;  %v2442_v44 = vunpack.c.l.s8.bf16 %v2245_v31  ;;  %v16583_v31 = vld [vmem:[#allocation3 + $0x100] sm:$0xff]   ;;  %v19600_v41 = vpack.c.bf16 %v11599_v32, %v11599_v32 }
 0x3e4   :  { %16172 = vmatpush3.bf16.msra.mxu1 %v16568_v50  ;;  %16151 = vmatprep.subr.bf16.mxu0 %v16569_v12  ;;  %v10896_v50 = vpop.f32.mrf.mxu0  ;;  %v16576_v12 = vld [vmem:[#allocation3 + $0x190] sm:$0xff]   ;;  %4616 = vst [vmem:[#allocation3 + $0x420] sm:$0xf] %v14724_v18  ;;  %4617 = vst [vmem:[#allocation3 + $0x424] sm:$0xf] %v14725_v15  ;;  %v2459_v61 = vunpack.c.h.s8.bf16 %v2253_v14  ;;  %v14722_v62 = vcombine.low %v2435_v60, %v2435_v60  ;;  %v2458_v3 = vunpack.c.l.s8.bf16 %v2253_v14  ;;  %v19606_v4 = vld [vmem:[#allocation9 + $0x240] sm:$0xff] }
 0x3e5   :  { %16173 = vmatprep.subr.bf16.mxu1 %v16570_v1  ;;  %v16577_v1 = vld [vmem:[#allocation3 + $0x148] sm:$0xff]   ;;  %4648 = vst [vmem:[#allocation3 + $0x4a0] sm:$0xf] %v14756_v16  ;;  %4649 = vst [vmem:[#allocation3 + $0x4a4] sm:$0xf] %v14757_v55  ;;  %v14723_v40 = vcombine.high %v2435_v60, %v2435_v60  ;;  %v16584_v14 = vld [vmem:[#allocation3 + $0x180] sm:$0xff]   ;;  %v14755_v15 = vcombine.high %v2451_v33, %v2451_v33  ;;  %v2449_v60 = vunpack.c.h.s8.bf16 %v19606_v4 }
 0x3e6   :  { %v10898_v2 = vpop.f32.mrf.mxu0  ;;  %v14771_v42 = vcombine.high %v2459_v61, %v2459_v61  ;;  %v16585_v18 = vld [vmem:[#allocation3 + $0x278] sm:$0xff]   ;;  %4614 = vst [vmem:[#allocation3 + $0x418] sm:$0xf] %v14722_v62 }
 0x3e7   :  { %16152 = vmatpush3.bf16.msra.mxu0 %v16571_v8  ;;  %v19579_v8 = vadd.f32 %v19528_v0, %v10896_v50  ;;  %v20129_v0 = vld [vmem:[#allocation30_spill] sm:$0xff]  ;;  %v14754_v50 = vcombine.low %v2451_v33, %v2451_v33  ;;  %v20131_v16 = vld [vmem:[#allocation37_spill] sm:$0xff]  ;;  %4615 = vst [vmem:[#allocation3 + $0x41c] sm:$0xf] %v14723_v40  ;;  %v14769_v2 = vcombine.high %v2458_v3, %v2458_v3  ;;  %4647 = vst [vmem:[#allocation3 + $0x49c] sm:$0xf] %v14755_v15 }
 0x3e8   :  { %16174 = vmatpush3.bf16.msra.mxu1 %v16572_v30  ;;  %16153 = vmatprep.subr.bf16.mxu0 %v16573_v59  ;;  %v14738_v30 = vcombine.low %v2443_v38, %v2443_v38  ;;  %v14739_v59 = vcombine.high %v2443_v38, %v2443_v38  ;;  %v19587_v13 = vmul.f32 %v11239_v28, %v20129_v0  ;;  %v10899_v47 = vpop.f32.mrf.mxu0  ;;  %v16586_v55 = vld [vmem:[#allocation3 + $0x2f8] sm:$0xff]   ;;  %v16589_v40 = vld [vmem:[#allocation3 + $0x270] sm:$0xff]  }
 0x3e9   :  { %16175 = vmatprep.subr.bf16.mxu1 %v16574_v49  ;;  %v16580_v49 = vld [vmem:[#allocation3 + $0x188] sm:$0xff]   ;;  %v14770_v28 = vcombine.low %v2459_v61, %v2459_v61  ;;  %4663 = vst [vmem:[#allocation3 + $0x4dc] sm:$0xf] %v14771_v42  ;;  %v14737_v38 = vcombine.high %v2442_v44, %v2442_v44  ;;  %v19612_v32 = vmul.f32 %v11259_v23, %v20131_v16  ;;  %4646 = vst [vmem:[#allocation3 + $0x498] sm:$0xf] %v14754_v50  ;;  %v2263_v0 = vld [vmem:[#allocation9 + $0x2b8] sm:$0xff] }
 0x3ea   :  { %4630 = vst [vmem:[#allocation3 + $0x458] sm:$0xf] %v14738_v30  ;;  %4631 = vst [vmem:[#allocation3 + $0x45c] sm:$0xf] %v14739_v59  ;;  %v2434_v30 = vunpack.c.l.s8.bf16 %v19574_v48  ;;  %v2450_v59 = vunpack.c.l.s8.bf16 %v19576_v6  ;;  %v2441_v61 = vunpack.c.h.s8.bf16 %v19592_v43  ;;  %v16587_v48 = vld [vmem:[#allocation3 + $0x238] sm:$0xff]   ;;  %v14750_v15 = vcombine.low %v2449_v60, %v2449_v60 }
 0x3eb   :  { %16154 = vmatpush3.bf16.msra.mxu0 %v16575_v5  ;;  %v20130_v5 = vld [vmem:[#allocation44_spill] sm:$0xff]  ;;  %4662 = vst [vmem:[#allocation3 + $0x4d8] sm:$0xf] %v14770_v28  ;;  %4629 = vst [vmem:[#allocation3 + $0x454] sm:$0xf] %v14737_v38 }
 0x3ec   :  { %16176 = vmatpush3.bf16.msra.mxu1 %v16576_v12  ;;  %16155 = vmatprep.subr.bf16.mxu0 %v16577_v1  ;;  %v19598_v56 = vmul.f32 %v11251_v21, %v20130_v5  ;;  %v19602_v12 = vld [vmem:[#allocation9 + $0x260] sm:$0xff]  ;;  %v14736_v21 = vcombine.low %v2442_v44, %v2442_v44  ;;  %4661 = vst [vmem:[#allocation3 + $0x4d4] sm:$0xf] %v14769_v2  ;;  %v19622_v47 = vld [vmem:[#allocation9 + $0x298] sm:$0xff]  ;;  %v16590_v38 = vld [vmem:[#allocation3 + $0x2f0] sm:$0xff]   ;;  %v2448_v2 = vunpack.c.l.s8.bf16 %v19606_v4 }
 0x3ed   :  { %16177 = vmatprep.subr.bf16.mxu1 %v16578_v45  ;;  %v19604_v1 = vld [vmem:[#allocation9 + $0x200] sm:$0xff]  ;;  %v14768_v45 = vcombine.low %v2458_v3, %v2458_v3  ;;  %v2457_v7 = vunpack.c.h.s8.bf16 %v19602_v12  ;;  %v14720_v6 = vcombine.low %v2434_v30, %v2434_v30  ;;  %v14752_v33 = vcombine.low %v2450_v59, %v2450_v59  ;;  %v19624_v5 = vld [vmem:[#allocation9 + $0x2d8] sm:$0xff]  ;;  %4642 = vst [vmem:[#allocation3 + $0x488] sm:$0xf] %v14750_v15 }
 0x3ee   :  { %4628 = vst [vmem:[#allocation3 + $0x450] sm:$0xf] %v14736_v21  ;;  %v2433_v23 = vunpack.c.h.s8.bf16 %v19604_v1  ;;  %v14753_v44 = vcombine.high %v2450_v59, %v2450_v59  ;;  %v14734_v28 = vcombine.low %v2441_v61, %v2441_v61  ;;  %v14735_v42 = vcombine.high %v2441_v61, %v2441_v61 }
 0x3ef   :  { %16156 = vmatpush3.bf16.msra.mxu0 %v16579_v34  ;;  %4660 = vst [vmem:[#allocation3 + $0x4d0] sm:$0xf] %v14768_v45  ;;  %v19620_v34 = vld [vmem:[#allocation9 + $0x2f8] sm:$0xff]  ;;  %v14766_v62 = vcombine.low %v2457_v7, %v2457_v7  ;;  %v14767_v3 = vcombine.high %v2457_v7, %v2457_v7  ;;  %4612 = vst [vmem:[#allocation3 + $0x410] sm:$0xf] %v14720_v6  ;;  %v14751_v21 = vcombine.high %v2449_v60, %v2449_v60 }
 0x3f0   :  { %16178 = vmatpush3.bf16.msra.mxu1 %v16580_v49  ;;  %16157 = vmatprep.subr.bf16.mxu0 %v16581_v24  ;;  %v14721_v49 = vcombine.high %v2434_v30, %v2434_v30  ;;  %v16588_v24 = vld [vmem:[#allocation3 + $0x2b8] sm:$0xff]   ;;  %4644 = vst [vmem:[#allocation3 + $0x490] sm:$0xf] %v14752_v33  ;;  %4645 = vst [vmem:[#allocation3 + $0x494] sm:$0xf] %v14753_v44  ;;  %v14719_v50 = vcombine.high %v2433_v23, %v2433_v23  ;;  %v2440_v45 = vunpack.c.l.s8.bf16 %v19592_v43  ;;  %v16591_v30 = vld [vmem:[#allocation3 + $0x230] sm:$0xff]  }
 0x3f1   :  { %16179 = vmatprep.subr.bf16.mxu1 %v16582_v52  ;;  %v14718_v52 = vcombine.low %v2433_v23, %v2433_v23  ;;  %4626 = vst [vmem:[#allocation3 + $0x448] sm:$0xf] %v14734_v28  ;;  %4627 = vst [vmem:[#allocation3 + $0x44c] sm:$0xf] %v14735_v42  ;;  %v2432_v16 = vunpack.c.l.s8.bf16 %v19604_v1  ;;  %v2471_v59 = vunpack.c.h.s8.bf16 %v19622_v47  ;;  %v2487_v61 = vunpack.c.h.s8.bf16 %v19624_v5  ;;  %v16592_v43 = vld [vmem:[#allocation3 + $0x2b0] sm:$0xff]   ;;  %v16594_v23 = vld [vmem:[#allocation3 + $0x2e8] sm:$0xff]  }
 0x3f2   :  { %4613 = vst [vmem:[#allocation3 + $0x414] sm:$0xf] %v14721_v49  ;;  %4658 = vst [vmem:[#allocation3 + $0x4c8] sm:$0xf] %v14766_v62  ;;  %v14732_v1 = vcombine.low %v2440_v45, %v2440_v45  ;;  %v14733_v7 = vcombine.high %v2440_v45, %v2440_v45  ;;  %v14748_v49 = vcombine.low %v2448_v2, %v2448_v2  ;;  %v2478_v33 = vunpack.c.l.s8.bf16 %v2263_v0  ;;  %v2262_v44 = vld [vmem:[#allocation9 + $0x2b0] sm:$0xff]  ;;  %v16597_v45 = vld [vmem:[#allocation3 + $0x260] sm:$0xff]  }
 0x3f3   :  { %16158 = vmatpush3.bf16.msra.mxu0 %v16583_v31  ;;  %4659 = vst [vmem:[#allocation3 + $0x4cc] sm:$0xf] %v14767_v3  ;;  %v2456_v31 = vunpack.c.l.s8.bf16 %v19602_v12  ;;  %4610 = vst [vmem:[#allocation3 + $0x408] sm:$0xf] %v14718_v52  ;;  %v16593_v12 = vld [vmem:[#allocation3 + $0x268] sm:$0xff]   ;;  %v14716_v60 = vcombine.low %v2432_v16, %v2432_v16  ;;  %v14717_v6 = vcombine.high %v2432_v16, %v2432_v16  ;;  %v2494_v62 = vunpack.c.l.s8.bf16 %v19620_v34  ;;  %v19639_v52 = vld [vmem:[#allocation9 + $0x290] sm:$0xff] }
 0x3f4   :  { %16180 = vmatpush3.bf16.msra.mxu1 %v16584_v14  ;;  %16187 = vmatprep.subr.bf16.mxu0 %v16585_v18  ;;  %4611 = vst [vmem:[#allocation3 + $0x40c] sm:$0xf] %v14719_v50  ;;  %4643 = vst [vmem:[#allocation3 + $0x48c] sm:$0xf] %v14751_v21  ;;  %v2479_v14 = vunpack.c.h.s8.bf16 %v2263_v0  ;;  %v2495_v18 = vunpack.c.h.s8.bf16 %v19620_v34  ;;  %v2470_v3 = vunpack.c.l.s8.bf16 %v19622_v47  ;;  %v16596_v50 = vld [vmem:[#allocation3 + $0x2a8] sm:$0xff]   ;;  %v14795_v34 = vcombine.high %v2471_v59, %v2471_v59  ;;  %v19641_v21 = vld [vmem:[#allocation9 + $0x2d0] sm:$0xff] }
 0x3f5   :  { %16209 = vmatprep.subr.bf16.mxu1 %v16586_v55  ;;  %v14764_v4 = vcombine.low %v2456_v31, %v2456_v31  ;;  %v14765_v55 = vcombine.high %v2456_v31, %v2456_v31  ;;  %4624 = vst [vmem:[#allocation3 + $0x440] sm:$0xf] %v14732_v1  ;;  %4625 = vst [vmem:[#allocation3 + $0x444] sm:$0xf] %v14733_v7  ;;  %v14826_v15 = vcombine.low %v2487_v61, %v2487_v61 }
 0x3f6   :  { %13815 = vmatmul.mubr.bf16.vlgmr.msra.gmra.mxu0 %v19548_v19  ;;  %v14749_v19 = vcombine.high %v2448_v2, %v2448_v2  ;;  %v14810_v28 = vcombine.low %v2479_v14, %v2479_v14  ;;  %v14811_v42 = vcombine.high %v2479_v14, %v2479_v14  ;;  %4608 = vst [vmem:[#allocation3 + $0x400] sm:$0xf] %v14716_v60  ;;  %4609 = vst [vmem:[#allocation3 + $0x404] sm:$0xf] %v14717_v6  ;;  %v16601_v60 = vld [vmem:[#allocation3 + $0x258] sm:$0xff]  }
 0x3f7   :  { %13855 = vmatmul.mubr.bf16.vlgmr.msra.gmra.mxu1 %v19554_v57  ;;  %16188 = vmatpush3.bf16.msra.mxu0 %v16587_v48  ;;  %4656 = vst [vmem:[#allocation3 + $0x4c0] sm:$0xf] %v14764_v4  ;;  %4657 = vst [vmem:[#allocation3 + $0x4c4] sm:$0xf] %v14765_v55  ;;  %v2270_v57 = vld [vmem:[#allocation9 + $0x2f0] sm:$0xff]  ;;  %v16595_v48 = vld [vmem:[#allocation3 + $0x228] sm:$0xff]   ;;  %v14842_v0 = vcombine.low %v2495_v18, %v2495_v18  ;;  %v14809_v31 = vcombine.high %v2478_v33, %v2478_v33  ;;  %v2469_v1 = vunpack.c.h.s8.bf16 %v19639_v52 }
 0x3f8   :  { %13894 = vmatprep.mubr.bf16.mxu0 %v19569_v51  ;;  %16210 = vmatpush3.bf16.msra.mxu1 %v16588_v24  ;;  %4640 = vst [vmem:[#allocation3 + $0x480] sm:$0xf] %v14748_v49  ;;  %v14843_v51 = vcombine.high %v2495_v18, %v2495_v18  ;;  %v14794_v24 = vcombine.low %v2471_v59, %v2471_v59  ;;  %4641 = vst [vmem:[#allocation3 + $0x484] sm:$0xf] %v14749_v19  ;;  %v2486_v18 = vunpack.c.l.s8.bf16 %v19624_v5  ;;  %v19646_v4 = vld [vmem:[#allocation9 + $0x2a8] sm:$0xff]  ;;  %v16600_v55 = vld [vmem:[#allocation3 + $0x2a0] sm:$0xff]  }
 0x3f9   :  { %13934 = vmatprep.mubr.bf16.mxu1 %v19600_v41  ;;  %16189 = vmatprep.subr.bf16.mxu0 %v16589_v40  ;;  %4702 = vst [vmem:[#allocation3 + $0x578] sm:$0xf] %v14810_v28  ;;  %4703 = vst [vmem:[#allocation3 + $0x57c] sm:$0xf] %v14811_v42  ;;  %v14827_v41 = vcombine.high %v2487_v61, %v2487_v61  ;;  %v14808_v40 = vcombine.low %v2478_v33, %v2478_v33  ;;  %v2477_v59 = vunpack.c.h.s8.bf16 %v2262_v44  ;;  %v16599_v61 = vld [vmem:[#allocation3 + $0x220] sm:$0xff]   ;;  %v19648_v33 = vld [vmem:[#allocation9 + $0x2e8] sm:$0xff] }
 0x3fa   :  { %16211 = vmatprep.subr.bf16.mxu1 %v16590_v38  ;;  %4734 = vst [vmem:[#allocation3 + $0x5f8] sm:$0xf] %v14842_v0  ;;  %4735 = vst [vmem:[#allocation3 + $0x5fc] sm:$0xf] %v14843_v51  ;;  %v14840_v47 = vcombine.low %v2494_v62, %v2494_v62  ;;  %v14841_v16 = vcombine.high %v2494_v62, %v2494_v62  ;;  %v14792_v2 = vcombine.low %v2470_v3, %v2470_v3  ;;  %v16598_v38 = vld [vmem:[#allocation3 + $0x2e0] sm:$0xff]   ;;  %v16602_v19 = vld [vmem:[#allocation3 + $0x2d8] sm:$0xff]  }
 0x3fb   :  { %16190 = vmatpush3.bf16.msra.mxu0 %v16591_v30  ;;  %4686 = vst [vmem:[#allocation3 + $0x538] sm:$0xf] %v14794_v24  ;;  %4687 = vst [vmem:[#allocation3 + $0x53c] sm:$0xf] %v14795_v34  ;;  %v14793_v14 = vcombine.high %v2470_v3, %v2470_v3  ;;  %v2493_v30 = vunpack.c.h.s8.bf16 %v2270_v57  ;;  %v2492_v7 = vunpack.c.l.s8.bf16 %v2270_v57  ;;  %v14824_v5 = vcombine.low %v2486_v18, %v2486_v18  ;;  %v19650_v51 = vld [vmem:[#allocation9 + $0x288] sm:$0xff] }
 0x3fc   :  { %16212 = vmatpush3.bf16.msra.mxu1 %v16592_v43  ;;  %16191 = vmatprep.subr.bf16.mxu0 %v16593_v12  ;;  %4718 = vst [vmem:[#allocation3 + $0x5b8] sm:$0xf] %v14826_v15  ;;  %4719 = vst [vmem:[#allocation3 + $0x5bc] sm:$0xf] %v14827_v41  ;;  %v2485_v43 = vunpack.c.h.s8.bf16 %v19641_v21  ;;  %v2476_v12 = vunpack.c.l.s8.bf16 %v2262_v44  ;;  %v14825_v6 = vcombine.high %v2486_v18, %v2486_v18  ;;  %v2468_v3 = vunpack.c.l.s8.bf16 %v19639_v52  ;;  %v2265_v34 = vld [vmem:[#allocation9 + $0x2c8] sm:$0xff] }
 0x3fd   :  { %4700 = vst [vmem:[#allocation3 + $0x570] sm:$0xf] %v14808_v40  ;;  %16213 = vmatprep.subr.bf16.mxu1 %v16594_v23  ;;  %4701 = vst [vmem:[#allocation3 + $0x574] sm:$0xf] %v14809_v31  ;;  %v14806_v49 = vcombine.low %v2477_v59, %v2477_v59  ;;  %v14807_v23 = vcombine.high %v2477_v59, %v2477_v59  ;;  %v14838_v28 = vcombine.low %v2493_v30, %v2493_v30  ;;  %v16605_v31 = vld [vmem:[#allocation3 + $0x250] sm:$0xff]  }
 0x3fe   :  { %4732 = vst [vmem:[#allocation3 + $0x5f0] sm:$0xf] %v14840_v47  ;;  %4733 = vst [vmem:[#allocation3 + $0x5f4] sm:$0xf] %v14841_v16  ;;  %v14839_v42 = vcombine.high %v2493_v30, %v2493_v30  ;;  %v14790_v62 = vcombine.low %v2469_v1, %v2469_v1  ;;  %v14791_v0 = vcombine.high %v2469_v1, %v2469_v1  ;;  %v2484_v40 = vunpack.c.l.s8.bf16 %v19641_v21  ;;  %v2260_v30 = vld [vmem:[#allocation9 + $0x2a0] sm:$0xff] }
 0x3ff   :  { %4684 = vst [vmem:[#allocation3 + $0x530] sm:$0xf] %v14792_v2  ;;  %4685 = vst [vmem:[#allocation3 + $0x534] sm:$0xf] %v14793_v14  ;;  %16192 = vmatpush3.bf16.msra.mxu0 %v16595_v48  ;;  %v14822_v44 = vcombine.low %v2485_v43, %v2485_v43  ;;  %v14823_v57 = vcombine.high %v2485_v43, %v2485_v43  ;;  %v14804_v24 = vcombine.low %v2476_v12, %v2476_v12  ;;  %v16603_v48 = vld [vmem:[#allocation3 + $0x218] sm:$0xff]  }
 0x400   :  { %16214 = vmatpush3.bf16.msra.mxu1 %v16596_v50  ;;  %16193 = vmatprep.subr.bf16.mxu0 %v16597_v45  ;;  %4716 = vst [vmem:[#allocation3 + $0x5b0] sm:$0xf] %v14824_v5  ;;  %4717 = vst [vmem:[#allocation3 + $0x5b4] sm:$0xf] %v14825_v6  ;;  %v14805_v15 = vcombine.high %v2476_v12, %v2476_v12  ;;  %v14836_v41 = vcombine.low %v2492_v7, %v2492_v7  ;;  %v16604_v45 = vld [vmem:[#allocation3 + $0x298] sm:$0xff]   ;;  %v2475_v52 = vunpack.c.h.s8.bf16 %v19646_v4  ;;  %v16607_v5 = vld [vmem:[#allocation3 + $0x210] sm:$0xff]  }
 0x401   :  { %4698 = vst [vmem:[#allocation3 + $0x568] sm:$0xf] %v14806_v49  ;;  %4699 = vst [vmem:[#allocation3 + $0x56c] sm:$0xf] %v14807_v23  ;;  %16215 = vmatprep.subr.bf16.mxu1 %v16598_v38  ;;  %v14837_v50 = vcombine.high %v2492_v7, %v2492_v7  ;;  %v14788_v47 = vcombine.low %v2468_v3, %v2468_v3  ;;  %v14789_v16 = vcombine.high %v2468_v3, %v2468_v3  ;;  %v16606_v38 = vld [vmem:[#allocation3 + $0x2d0] sm:$0xff]  }
 0x402   :  { %4730 = vst [vmem:[#allocation3 + $0x5e8] sm:$0xf] %v14838_v28  ;;  %4731 = vst [vmem:[#allocation3 + $0x5ec] sm:$0xf] %v14839_v42  ;;  %v2491_v2 = vunpack.c.h.s8.bf16 %v19648_v33  ;;  %v14820_v14 = vcombine.low %v2484_v40, %v2484_v40  ;;  %v14821_v18 = vcombine.high %v2484_v40, %v2484_v40  ;;  %v2467_v21 = vunpack.c.h.s8.bf16 %v19650_v51  ;;  %v2256_v42 = vld [vmem:[#allocation9 + $0x280] sm:$0xff]  ;;  %v16611_v40 = vld [vmem:[#allocation3 + $0x208] sm:$0xff]  }
 0x403   :  { %4682 = vst [vmem:[#allocation3 + $0x528] sm:$0xf] %v14790_v62  ;;  %4683 = vst [vmem:[#allocation3 + $0x52c] sm:$0xf] %v14791_v0  ;;  %16194 = vmatpush3.bf16.msra.mxu0 %v16599_v61  ;;  %v2483_v59 = vunpack.c.h.s8.bf16 %v2265_v34  ;;  %v14802_v1 = vcombine.low %v2475_v52, %v2475_v52  ;;  %v14803_v43 = vcombine.high %v2475_v52, %v2475_v52  ;;  %v2474_v7 = vunpack.c.l.s8.bf16 %v19646_v4  ;;  %v19658_v61 = vld [vmem:[#allocation9 + $0x2e0] sm:$0xff] }
 0x404   :  { %4714 = vst [vmem:[#allocation3 + $0x5a8] sm:$0xf] %v14822_v44  ;;  %4715 = vst [vmem:[#allocation3 + $0x5ac] sm:$0xf] %v14823_v57  ;;  %16216 = vmatpush3.bf16.msra.mxu1 %v16600_v55  ;;  %16195 = vmatprep.subr.bf16.mxu0 %v16601_v60  ;;  %v14834_v12 = vcombine.low %v2491_v2, %v2491_v2  ;;  %v14835_v6 = vcombine.high %v2491_v2, %v2491_v2  ;;  %v16608_v55 = vld [vmem:[#allocation3 + $0x290] sm:$0xff]   ;;  %v2490_v4 = vunpack.c.l.s8.bf16 %v19648_v33  ;;  %v16609_v44 = vld [vmem:[#allocation3 + $0x248] sm:$0xff]  }
 0x405   :  { %4696 = vst [vmem:[#allocation3 + $0x560] sm:$0xf] %v14804_v24  ;;  %4697 = vst [vmem:[#allocation3 + $0x564] sm:$0xf] %v14805_v15  ;;  %16217 = vmatprep.subr.bf16.mxu1 %v16602_v19  ;;  %v14786_v49 = vcombine.low %v2467_v21, %v2467_v21  ;;  %v14787_v23 = vcombine.high %v2467_v21, %v2467_v21  ;;  %v14818_v28 = vcombine.low %v2483_v59, %v2483_v59  ;;  %v16610_v15 = vld [vmem:[#allocation3 + $0x2c8] sm:$0xff]  }
 0x406   :  { %4728 = vst [vmem:[#allocation3 + $0x5e0] sm:$0xf] %v14836_v41  ;;  %4729 = vst [vmem:[#allocation3 + $0x5e4] sm:$0xf] %v14837_v50  ;;  %v14819_v60 = vcombine.high %v2483_v59, %v2483_v59  ;;  %v14800_v62 = vcombine.low %v2474_v7, %v2474_v7  ;;  %v14801_v0 = vcombine.high %v2474_v7, %v2474_v7  ;;  %v2466_v19 = vunpack.c.l.s8.bf16 %v19650_v51 }
 0x407   :  { %4680 = vst [vmem:[#allocation3 + $0x520] sm:$0xf] %v14788_v47  ;;  %4681 = vst [vmem:[#allocation3 + $0x524] sm:$0xf] %v14789_v16  ;;  %16196 = vmatpush3.bf16.msra.mxu0 %v16603_v48  ;;  %v2482_v57 = vunpack.c.l.s8.bf16 %v2265_v34  ;;  %v2473_v24 = vunpack.c.h.s8.bf16 %v2260_v30  ;;  %v2489_v3 = vunpack.c.h.s8.bf16 %v19658_v61  ;;  %v14832_v41 = vcombine.low %v2490_v4, %v2490_v4  ;;  %v16612_v34 = vld [vmem:[#allocation3 + $0x288] sm:$0xff]  }
 0x408   :  { %4712 = vst [vmem:[#allocation3 + $0x5a0] sm:$0xf] %v14820_v14  ;;  %4713 = vst [vmem:[#allocation3 + $0x5a4] sm:$0xf] %v14821_v18  ;;  %16218 = vmatpush3.bf16.msra.mxu1 %v16604_v45  ;;  %16197 = vmatprep.subr.bf16.mxu0 %v16605_v31  ;;  %v14833_v33 = vcombine.high %v2490_v4, %v2490_v4  ;;  %v2465_v48 = vunpack.c.h.s8.bf16 %v2256_v42  ;;  %v2472_v50 = vunpack.c.l.s8.bf16 %v2260_v30  ;;  %v16613_v18 = vld [vmem:[#allocation3 + $0x240] sm:$0xff]   ;;  %v2464_v7 = vunpack.c.l.s8.bf16 %v2256_v42 }
 0x409   :  { %4694 = vst [vmem:[#allocation3 + $0x558] sm:$0xf] %v14802_v1  ;;  %4695 = vst [vmem:[#allocation3 + $0x55c] sm:$0xf] %v14803_v43  ;;  %16219 = vmatprep.subr.bf16.mxu1 %v16606_v38  ;;  %v14784_v47 = vcombine.low %v2466_v19, %v2466_v19  ;;  %v14785_v16 = vcombine.high %v2466_v19, %v2466_v19  ;;  %v14816_v52 = vcombine.low %v2482_v57, %v2482_v57  ;;  %v16614_v43 = vld [vmem:[#allocation3 + $0x2c0] sm:$0xff]   ;;  %v16619_v19 = vld [vmem:[#allocation3 + $0x338] sm:$0xff]  }
 0x40a   :  { %4726 = vst [vmem:[#allocation3 + $0x5d8] sm:$0xf] %v14834_v12  ;;  %4727 = vst [vmem:[#allocation3 + $0x5dc] sm:$0xf] %v14835_v6  ;;  %v14817_v51 = vcombine.high %v2482_v57, %v2482_v57  ;;  %v14798_v2 = vcombine.low %v2473_v24, %v2473_v24  ;;  %v14799_v45 = vcombine.high %v2473_v24, %v2473_v24  ;;  %v2488_v12 = vunpack.c.l.s8.bf16 %v19658_v61  ;;  %v11017_v6 = vpop.f32.mrf.mxu0  ;;  %v16616_v61 = vld [vmem:[#allocation3 + $0x280] sm:$0xff]  }
 0x40b   :  { %4678 = vst [vmem:[#allocation3 + $0x518] sm:$0xf] %v14786_v49  ;;  %4679 = vst [vmem:[#allocation3 + $0x51c] sm:$0xf] %v14787_v23  ;;  %v14830_v31 = vcombine.low %v2489_v3, %v2489_v3  ;;  %v14831_v14 = vcombine.high %v2489_v3, %v2489_v3  ;;  %16198 = vmatpush3.bf16.msra.mxu0 %v16607_v5  ;;  %v14782_v21 = vcombine.low %v2465_v48, %v2465_v48 }
 0x40c   :  { %4710 = vst [vmem:[#allocation3 + $0x598] sm:$0xf] %v14818_v28  ;;  %4711 = vst [vmem:[#allocation3 + $0x59c] sm:$0xf] %v14819_v60  ;;  %v14783_v38 = vcombine.high %v2465_v48, %v2465_v48  ;;  %v14796_v59 = vcombine.low %v2472_v50, %v2472_v50  ;;  %v14797_v30 = vcombine.high %v2472_v50, %v2472_v50  ;;  %16220 = vmatpush3.bf16.msra.mxu1 %v16608_v55  ;;  %v16816_v60 = vld [vmem:[#allocation6 + $0x8] sm:$0xff]  ;;  %v11019_v4 = vpop.f32.mrf.mxu0 }
 0x40d   :  { %4692 = vst [vmem:[#allocation3 + $0x550] sm:$0xf] %v14800_v62  ;;  %4693 = vst [vmem:[#allocation3 + $0x554] sm:$0xf] %v14801_v0  ;;  %v11564_v1 = vadd.f32 %v11431_v17, %v19563_v58  ;;  %16199 = vmatprep.subr.bf16.mxu0 %v16609_v44  ;;  %v11566_v5 = vadd.f32 %v11439_v25, %v19587_v13  ;;  %v19676_v17 = vadd.f32 %v11451_v26, %v19598_v56  ;;  %v16615_v58 = vld [vmem:[#allocation3 + $0x200] sm:$0xff]   ;;  %v19682_v13 = vld [vmem:[#allocation6 + $0x10] sm:$0xff]  ;;  %v10976_v26 = vpop.f32.mrf.mxu1 }
 0x40e   :  { %4724 = vst [vmem:[#allocation3 + $0x5d0] sm:$0xf] %v14832_v41  ;;  %4725 = vst [vmem:[#allocation3 + $0x5d4] sm:$0xf] %v14833_v33  ;;  %16221 = vmatprep.subr.bf16.mxu1 %v16610_v15  ;;  %v14828_v49 = vcombine.low %v2488_v12, %v2488_v12  ;;  %v14829_v23 = vcombine.high %v2488_v12, %v2488_v12  ;;  %v14780_v28 = vcombine.low %v2464_v7, %v2464_v7  ;;  %v16617_v56 = vld [vmem:[#allocation3 + $0x378] sm:$0xff]   ;;  %v11021_v3 = vpop.f32.mrf.mxu0  ;;  %v19693_v33 = vld [vmem:[#allocation8 + $0x10] sm:$0xff] }
 0x40f   :  { %4676 = vst [vmem:[#allocation3 + $0x510] sm:$0xf] %v14784_v47  ;;  %4677 = vst [vmem:[#allocation3 + $0x514] sm:$0xf] %v14785_v16  ;;  %v14781_v42 = vcombine.high %v2464_v7, %v2464_v7  ;;  %v11571_v25 = vadd.f32 %v11459_v46, %v19612_v32  ;;  %16200 = vmatpush3.bf16.msra.mxu0 %v16611_v40  ;;  %v11596_v55 = vmax.f32 %v11564_v1, 0.0  ;;  %v16618_v44 = vld [vmem:[#allocation3 + $0x3f8] sm:$0xff]   ;;  %v10978_v32 = vpop.f32.mrf.mxu1 }
 0x410   :  { %4708 = vst [vmem:[#allocation3 + $0x590] sm:$0xf] %v14816_v52  ;;  %4709 = vst [vmem:[#allocation3 + $0x594] sm:$0xf] %v14817_v51  ;;  %v11247_v62 = vrot.slane %v16816_v60, %v19408_v54  ;;  %v19685_v0 = vadd.f32 %v11017_v6, %v10976_v26  ;;  %16222 = vmatpush3.bf16.msra.mxu1 %v16612_v34  ;;  %16201 = vmatprep.subr.bf16.mxu0 %v16613_v18  ;;  %v11598_v63 = vmax.f32 %v11566_v5, 0.0  ;;  %v16620_v41 = vld [vmem:[#allocation3 + $0x3b8] sm:$0xff]  }
 0x411   :  { %4690 = vst [vmem:[#allocation3 + $0x548] sm:$0xf] %v14798_v2  ;;  %4691 = vst [vmem:[#allocation3 + $0x54c] sm:$0xf] %v14799_v45  ;;  %v11255_v46 = vrot.slane %v16816_v60, %v19515_v37  ;;  %16223 = vmatprep.subr.bf16.mxu1 %v16614_v43  ;;  %v11267_v57 = vrot.slane %v19682_v13, %v20114_v10  ;;  %v19690_v24 = vadd.f32 %v11019_v4, %v10978_v32  ;;  %v10980_v50 = vpop.f32.mrf.mxu1  ;;  %v16621_v47 = vld [vmem:[#allocation3 + $0x370] sm:$0xff]   ;;  %v16817_v34 = vld [vmem:[#allocation8 + $0x8] sm:$0xff]  ;;  %v11022_v45 = vpop.f32.mrf.mxu0 }
 0x412   :  { %4722 = vst [vmem:[#allocation3 + $0x5c8] sm:$0xf] %v14830_v31  ;;  %4723 = vst [vmem:[#allocation3 + $0x5cc] sm:$0xf] %v14831_v14  ;;  %v11601_v15 = vmax.f32 %v19676_v17, 0.0  ;;  %v11275_v48 = vrot.slane %v19682_v13, %v20117_v20  ;;  %v11603_v40 = vmax.f32 %v11571_v25, 0.0  ;;  %v11628_v16 = vpack.c.bf16 %v11596_v55, %v11596_v55 }
 0x413   :  { %4674 = vst [vmem:[#allocation3 + $0x508] sm:$0xf] %v14782_v21  ;;  %4675 = vst [vmem:[#allocation3 + $0x50c] sm:$0xf] %v14783_v38  ;;  %16202 = vmatpush3.bf16.msra.mxu0 %v16615_v58  ;;  %v20132_v52 = vld [vmem:[#allocation43_spill] sm:$0xff]  ;;  %v11447_v2 = vrot.slane %v16817_v34, %v19408_v54  ;;  %v11630_v14 = vpack.c.bf16 %v11598_v63, %v11598_v63  ;;  %v20133_v18 = vld [vmem:[#allocation34_spill] sm:$0xff]  ;;  %v11455_v38 = vrot.slane %v16817_v34, %v19515_v37 }
 0x414   :  { %4688 = vst [vmem:[#allocation3 + $0x540] sm:$0xf] %v14796_v59  ;;  %4689 = vst [vmem:[#allocation3 + $0x544] sm:$0xf] %v14797_v30  ;;  %v11368_v51 = vmul.f32 %v11247_v62, %v20132_v52  ;;  %16224 = vmatpush3.bf16.msra.mxu1 %v16616_v61  ;;  %16231 = vmatprep.subr.bf16.mxu0 %v16617_v56  ;;  %v16622_v31 = vld [vmem:[#allocation3 + $0x3f0] sm:$0xff]   ;;  %v11370_v21 = vmul.f32 %v11255_v46, %v20133_v18  ;;  %v10981_v59 = vpop.f32.mrf.mxu1  ;;  %v20135_v17 = vld [vmem:[#allocation46_spill] sm:$0xff] }
 0x415   :  { %4720 = vst [vmem:[#allocation3 + $0x5c0] sm:$0xf] %v14828_v49  ;;  %4721 = vst [vmem:[#allocation3 + $0x5c4] sm:$0xf] %v14829_v23  ;;  %16253 = vmatprep.subr.bf16.mxu1 %v16618_v44  ;;  %v16623_v30 = vld [vmem:[#allocation3 + $0x330] sm:$0xff]   ;;  %v11467_v12 = vrot.slane %v19693_v33, %v20114_v10  ;;  %v11633_v7 = vpack.c.bf16 %v11601_v15, %v11601_v15  ;;  %v11375_v58 = vmul.f32 %v11275_v48, %v20135_v17  ;;  %v16625_v49 = vld [vmem:[#allocation3 + $0x368] sm:$0xff]  }
 0x416   :  { %4672 = vst [vmem:[#allocation3 + $0x500] sm:$0xf] %v14780_v28  ;;  %4673 = vst [vmem:[#allocation3 + $0x504] sm:$0xf] %v14781_v42  ;;  %v20134_v1 = vld [vmem:[#allocation56_spill] sm:$0xff]  ;;  %13895 = vmatmul.mubr.bf16.vlgmr.msra.gmra.mxu0 %v11628_v16  ;;  %v11475_v6 = vrot.slane %v19693_v33, %v20117_v20  ;;  %v11635_v61 = vpack.c.bf16 %v11603_v40, %v11603_v40  ;;  %v11568_v23 = vadd.f32 %v11447_v2, %v11368_v51  ;;  %v16626_v28 = vld [vmem:[#allocation3 + $0x3e8] sm:$0xff]  }
 0x417   :  { %v11373_v43 = vmul.f32 %v11267_v57, %v20134_v1  ;;  %v16624_v5 = vld [vmem:[#allocation3 + $0x3b0] sm:$0xff]   ;;  %13935 = vmatmul.mubr.bf16.vlgmr.msra.gmra.mxu1 %v11630_v14  ;;  %16232 = vmatpush3.bf16.msra.mxu0 %v16619_v19  ;;  %v11570_v42 = vadd.f32 %v11455_v38, %v11370_v21  ;;  %v16627_v25 = vld [vmem:[#allocation3 + $0x328] sm:$0xff]   ;;  %v11263_v26 = vrot.slane %v19682_v13, %v19345_v39  ;;  %v16629_v63 = vld [vmem:[#allocation3 + $0x360] sm:$0xff]  }
 0x418   :  { %13974 = vmatprep.mubr.bf16.mxu0 %v11633_v7  ;;  %16254 = vmatpush3.bf16.msra.mxu1 %v16620_v41  ;;  %v16628_v55 = vld [vmem:[#allocation3 + $0x3a8] sm:$0xff]   ;;  %v11271_v60 = vrot.slane %v19682_v13, %v19354_v36  ;;  %v11575_v62 = vadd.f32 %v11475_v6, %v11375_v58  ;;  %v11283_v4 = vrot.slane %v19682_v13, %v19372_v9  ;;  %v11600_v46 = vmax.f32 %v11568_v23, 0.0  ;;  %v16630_v32 = vld [vmem:[#allocation3 + $0x3e0] sm:$0xff]   ;;  %v16633_v2 = vld [vmem:[#allocation3 + $0x358] sm:$0xff]  }
 0x419   :  { %14014 = vmatprep.mubr.bf16.mxu1 %v11635_v61  ;;  %16233 = vmatprep.subr.bf16.mxu0 %v16621_v47  ;;  %v11573_v56 = vadd.f32 %v11467_v12, %v11373_v43  ;;  %v11291_v44 = vrot.slane %v19682_v13, %v19390_v53  ;;  %v11602_v19 = vmax.f32 %v11570_v42, 0.0  ;;  %v11463_v57 = vrot.slane %v19693_v33, %v19345_v39  ;;  %v16631_v15 = vld [vmem:[#allocation3 + $0x320] sm:$0xff]   ;;  %v20136_v41 = vld [vmem:[#allocation55_spill] sm:$0xff]  ;;  %v16635_v38 = vld [vmem:[#allocation3 + $0x318] sm:$0xff]  }
 0x41a   :  { %16255 = vmatprep.subr.bf16.mxu1 %v16622_v31  ;;  %v11471_v3 = vrot.slane %v19693_v33, %v19354_v36  ;;  %v11372_v48 = vmul.f32 %v11263_v26, %v20136_v41  ;;  %v11483_v13 = vrot.slane %v19693_v33, %v19372_v9  ;;  %v11491_v50 = vrot.slane %v19693_v33, %v19390_v53  ;;  %v16632_v40 = vld [vmem:[#allocation3 + $0x3a0] sm:$0xff]   ;;  %v16634_v31 = vld [vmem:[#allocation3 + $0x3d8] sm:$0xff]   ;;  %v16638_v23 = vld [vmem:[#allocation3 + $0x3d0] sm:$0xff]  }
 0x41b   :  { %16234 = vmatpush3.bf16.msra.mxu0 %v16623_v30  ;;  %v11605_v47 = vmax.f32 %v11573_v56, 0.0  ;;  %v20137_v16 = vld [vmem:[#allocation38_spill] sm:$0xff]  ;;  %v11377_v51 = vmul.f32 %v11283_v4, %v19273_v11  ;;  %v11379_v34 = vmul.f32 %v11291_v44, %v19432_v29  ;;  %v11607_v45 = vmax.f32 %v11575_v62, 0.0  ;;  %v16636_v12 = vld [vmem:[#allocation3 + $0x398] sm:$0xff]  }
 0x41c   :  { %16256 = vmatpush3.bf16.msra.mxu1 %v16624_v5  ;;  %16235 = vmatprep.subr.bf16.mxu0 %v16625_v49  ;;  %v11374_v52 = vmul.f32 %v11271_v60, %v20137_v16  ;;  %v19727_v14 = vpack.c.bf16 %v11600_v46, %v11600_v46  ;;  %v19729_v18 = vpack.c.bf16 %v11602_v19, %v11602_v19  ;;  %v2264_v33 = vld [vmem:[#allocation9 + $0x2c0] sm:$0xff]  ;;  %v16637_v5 = vld [vmem:[#allocation3 + $0x350] sm:$0xff]   ;;  %v2279_v61 = vld [vmem:[#allocation9 + $0x338] sm:$0xff] }
 0x41d   :  { %16257 = vmatprep.subr.bf16.mxu1 %v16626_v28  ;;  %v19731_v21 = vadd.f32 %v11463_v57, %v11372_v48  ;;  %v19733_v59 = vpack.c.bf16 %v11605_v47, %v11605_v47  ;;  %v2481_v11 = vunpack.c.h.s8.bf16 %v2264_v33  ;;  %v2480_v30 = vunpack.c.l.s8.bf16 %v2264_v33  ;;  %v2287_v49 = vld [vmem:[#allocation9 + $0x378] sm:$0xff]  ;;  %v16640_v46 = vld [vmem:[#allocation3 + $0x390] sm:$0xff]  }
 0x41e   :  { %v19735_v29 = vadd.f32 %v11471_v3, %v11374_v52  ;;  %v19737_v1 = vadd.f32 %v11483_v13, %v11377_v51  ;;  %v19739_v43 = vadd.f32 %v11491_v50, %v11379_v34  ;;  %v19741_v7 = vpack.c.bf16 %v11607_v45, %v11607_v45  ;;  %v2275_v26 = vld [vmem:[#allocation9 + $0x318] sm:$0xff]  ;;  %v2286_v47 = vld [vmem:[#allocation9 + $0x370] sm:$0xff]  ;;  %v16642_v52 = vld [vmem:[#allocation3 + $0x3c8] sm:$0xff]  }
 0x41f   :  { %16236 = vmatpush3.bf16.msra.mxu0 %v16627_v25  ;;  %v14814_v17 = vcombine.low %v2481_v11, %v2481_v11  ;;  %v14815_v58 = vcombine.high %v2481_v11, %v2481_v11  ;;  %v14812_v6 = vcombine.low %v2480_v30, %v2480_v30  ;;  %v14813_v28 = vcombine.high %v2480_v30, %v2480_v30  ;;  %v2283_v56 = vld [vmem:[#allocation9 + $0x358] sm:$0xff]  ;;  %v2274_v16 = vld [vmem:[#allocation9 + $0x310] sm:$0xff] }
 0x420   :  { %16258 = vmatpush3.bf16.msra.mxu1 %v16628_v55  ;;  %16237 = vmatprep.subr.bf16.mxu0 %v16629_v63  ;;  %v2511_v42 = vunpack.c.h.s8.bf16 %v2279_v61  ;;  %v2527_v25 = vunpack.c.h.s8.bf16 %v2287_v49  ;;  %v2510_v55 = vunpack.c.l.s8.bf16 %v2279_v61  ;;  %v2503_v60 = vunpack.c.h.s8.bf16 %v2275_v26  ;;  %v16639_v63 = vld [vmem:[#allocation3 + $0x310] sm:$0xff]  }
 0x421   :  { %16259 = vmatprep.subr.bf16.mxu1 %v16630_v32  ;;  %4706 = vst [vmem:[#allocation3 + $0x588] sm:$0xf] %v14814_v17  ;;  %4707 = vst [vmem:[#allocation3 + $0x58c] sm:$0xf] %v14815_v58  ;;  %v2519_v62 = vunpack.c.h.s8.bf16 %v2283_v56  ;;  %v2526_v4 = vunpack.c.l.s8.bf16 %v2287_v49  ;;  %v2502_v44 = vunpack.c.l.s8.bf16 %v2275_v26  ;;  %v16641_v32 = vld [vmem:[#allocation3 + $0x348] sm:$0xff]   ;;  %v2518_v50 = vunpack.c.l.s8.bf16 %v2283_v56  ;;  %v16645_v17 = vld [vmem:[#allocation3 + $0x340] sm:$0xff]  }
 0x422   :  { %4704 = vst [vmem:[#allocation3 + $0x580] sm:$0xf] %v14812_v6  ;;  %4705 = vst [vmem:[#allocation3 + $0x584] sm:$0xf] %v14813_v28  ;;  %v14874_v19 = vcombine.low %v2511_v42, %v2511_v42  ;;  %v14875_v57 = vcombine.high %v2511_v42, %v2511_v42  ;;  %v14906_v3 = vcombine.low %v2527_v25, %v2527_v25  ;;  %v2525_v61 = vunpack.c.h.s8.bf16 %v2286_v47  ;;  %v2277_v56 = vld [vmem:[#allocation9 + $0x328] sm:$0xff] }
 0x423   :  { %16238 = vmatpush3.bf16.msra.mxu0 %v16631_v15  ;;  %v14907_v15 = vcombine.high %v2527_v25, %v2527_v25  ;;  %v14858_v41 = vcombine.low %v2503_v60, %v2503_v60  ;;  %v14859_v48 = vcombine.high %v2503_v60, %v2503_v60  ;;  %v14890_v13 = vcombine.low %v2519_v62, %v2519_v62 }
 0x424   :  { %16260 = vmatpush3.bf16.msra.mxu1 %v16632_v40  ;;  %16239 = vmatprep.subr.bf16.mxu0 %v16633_v2  ;;  %v2278_v40 = vld [vmem:[#allocation9 + $0x330] sm:$0xff]  ;;  %4766 = vst [vmem:[#allocation3 + $0x678] sm:$0xf] %v14874_v19  ;;  %4767 = vst [vmem:[#allocation3 + $0x67c] sm:$0xf] %v14875_v57  ;;  %v14891_v51 = vcombine.high %v2519_v62, %v2519_v62  ;;  %v14872_v34 = vcombine.low %v2510_v55, %v2510_v55  ;;  %v2501_v49 = vunpack.c.h.s8.bf16 %v2274_v16 }
 0x425   :  { %16261 = vmatprep.subr.bf16.mxu1 %v16634_v31  ;;  %4798 = vst [vmem:[#allocation3 + $0x6f8] sm:$0xf] %v14906_v3  ;;  %4799 = vst [vmem:[#allocation3 + $0x6fc] sm:$0xf] %v14907_v15  ;;  %v14873_v2 = vcombine.high %v2510_v55, %v2510_v55  ;;  %v14904_v45 = vcombine.low %v2526_v4, %v2526_v4  ;;  %v19743_v31 = vld [vmem:[#allocation9 + $0x350] sm:$0xff]  ;;  %v14905_v33 = vcombine.high %v2526_v4, %v2526_v4  ;;  %v19746_v55 = vld [vmem:[#allocation9 + $0x368] sm:$0xff] }
 0x426   :  { %4750 = vst [vmem:[#allocation3 + $0x638] sm:$0xf] %v14858_v41  ;;  %4751 = vst [vmem:[#allocation3 + $0x63c] sm:$0xf] %v14859_v48  ;;  %v14857_v11 = vcombine.high %v2502_v44, %v2502_v44  ;;  %v14888_v30 = vcombine.low %v2518_v50, %v2518_v50  ;;  %v14889_v58 = vcombine.high %v2518_v50, %v2518_v50  ;;  %v2509_v6 = vunpack.c.h.s8.bf16 %v2278_v40  ;;  %v19750_v3 = vld [vmem:[#allocation9 + $0x348] sm:$0xff]  ;;  %v16647_v15 = vld [vmem:[#allocation3 + $0x300] sm:$0xff]  }
 0x427   :  { %16240 = vmatpush3.bf16.msra.mxu0 %v16635_v38  ;;  %4782 = vst [vmem:[#allocation3 + $0x6b8] sm:$0xf] %v14890_v13  ;;  %v14856_v38 = vcombine.low %v2502_v44, %v2502_v44  ;;  %4783 = vst [vmem:[#allocation3 + $0x6bc] sm:$0xf] %v14891_v51  ;;  %v2517_v28 = vunpack.c.h.s8.bf16 %v19743_v31  ;;  %v2508_v42 = vunpack.c.l.s8.bf16 %v2278_v40  ;;  %v2524_v25 = vunpack.c.l.s8.bf16 %v2286_v47  ;;  %v16648_v41 = vld [vmem:[#allocation3 + $0x380] sm:$0xff]   ;;  %v16649_v48 = vld [vmem:[#allocation3 + $0x478] sm:$0xff]  }
 0x428   :  { %16262 = vmatpush3.bf16.msra.mxu1 %v16636_v12  ;;  %16241 = vmatprep.subr.bf16.mxu0 %v16637_v5  ;;  %v16643_v12 = vld [vmem:[#allocation3 + $0x308] sm:$0xff]   ;;  %4764 = vst [vmem:[#allocation3 + $0x670] sm:$0xf] %v14872_v34  ;;  %4765 = vst [vmem:[#allocation3 + $0x674] sm:$0xf] %v14873_v2  ;;  %v2500_v26 = vunpack.c.l.s8.bf16 %v2274_v16  ;;  %v14870_v60 = vcombine.low %v2509_v6, %v2509_v6  ;;  %v14871_v62 = vcombine.high %v2509_v6, %v2509_v6  ;;  %v16650_v16 = vld [vmem:[#allocation3 + $0x4f8] sm:$0xff]  }
 0x429   :  { %16263 = vmatprep.subr.bf16.mxu1 %v16638_v23  ;;  %v16644_v5 = vld [vmem:[#allocation3 + $0x388] sm:$0xff]   ;;  %4796 = vst [vmem:[#allocation3 + $0x6f0] sm:$0xf] %v14904_v45  ;;  %v16646_v23 = vld [vmem:[#allocation3 + $0x3c0] sm:$0xff]   ;;  %4797 = vst [vmem:[#allocation3 + $0x6f4] sm:$0xf] %v14905_v33  ;;  %v14902_v4 = vcombine.low %v2525_v61, %v2525_v61  ;;  %v14903_v44 = vcombine.high %v2525_v61, %v2525_v61  ;;  %v14886_v19 = vcombine.low %v2517_v28, %v2517_v28 }
 0x42a   :  { %4748 = vst [vmem:[#allocation3 + $0x630] sm:$0xf] %v14856_v38  ;;  %4749 = vst [vmem:[#allocation3 + $0x634] sm:$0xf] %v14857_v11  ;;  %v14887_v57 = vcombine.high %v2517_v28, %v2517_v28  ;;  %v14868_v13 = vcombine.low %v2508_v42, %v2508_v42  ;;  %v14869_v50 = vcombine.high %v2508_v42, %v2508_v42  ;;  %v2516_v34 = vunpack.c.l.s8.bf16 %v19743_v31  ;;  %v16651_v45 = vld [vmem:[#allocation3 + $0x438] sm:$0xff]   ;;  %v19758_v61 = vld [vmem:[#allocation9 + $0x360] sm:$0xff] }
 0x42b   :  { %16242 = vmatpush3.bf16.msra.mxu0 %v16639_v63  ;;  %4780 = vst [vmem:[#allocation3 + $0x6b0] sm:$0xf] %v14888_v30  ;;  %4781 = vst [vmem:[#allocation3 + $0x6b4] sm:$0xf] %v14889_v58  ;;  %v19748_v63 = vld [vmem:[#allocation9 + $0x308] sm:$0xff]  ;;  %v14900_v40 = vcombine.low %v2524_v25, %v2524_v25  ;;  %v14901_v47 = vcombine.high %v2524_v25, %v2524_v25  ;;  %v14853_v51 = vcombine.high %v2500_v26, %v2500_v26 }
 0x42c   :  { %16264 = vmatpush3.bf16.msra.mxu1 %v16640_v46  ;;  %16243 = vmatprep.subr.bf16.mxu0 %v16641_v32  ;;  %v14854_v46 = vcombine.low %v2501_v49, %v2501_v49  ;;  %v14855_v32 = vcombine.high %v2501_v49, %v2501_v49  ;;  %4762 = vst [vmem:[#allocation3 + $0x668] sm:$0xf] %v14870_v60  ;;  %4763 = vst [vmem:[#allocation3 + $0x66c] sm:$0xf] %v14871_v62  ;;  %v2507_v2 = vunpack.c.h.s8.bf16 %v2277_v56  ;;  %v16653_v49 = vld [vmem:[#allocation3 + $0x470] sm:$0xff]  }
 0x42d   :  { %16265 = vmatprep.subr.bf16.mxu1 %v16642_v52  ;;  %4794 = vst [vmem:[#allocation3 + $0x6e8] sm:$0xf] %v14902_v4  ;;  %4795 = vst [vmem:[#allocation3 + $0x6ec] sm:$0xf] %v14903_v44  ;;  %v14852_v52 = vcombine.low %v2500_v26, %v2500_v26  ;;  %v2523_v33 = vunpack.c.h.s8.bf16 %v19746_v55  ;;  %v2499_v38 = vunpack.c.h.s8.bf16 %v19748_v63  ;;  %v2515_v11 = vunpack.c.h.s8.bf16 %v19750_v3  ;;  %v19760_v26 = vld [vmem:[#allocation9 + $0x300] sm:$0xff] }
 0x42e   :  { %4746 = vst [vmem:[#allocation3 + $0x628] sm:$0xf] %v14854_v46  ;;  %4747 = vst [vmem:[#allocation3 + $0x62c] sm:$0xf] %v14855_v32  ;;  %v2506_v30 = vunpack.c.l.s8.bf16 %v2277_v56  ;;  %v14884_v31 = vcombine.low %v2516_v34, %v2516_v34  ;;  %v14866_v58 = vcombine.low %v2507_v2, %v2507_v2  ;;  %v14867_v6 = vcombine.high %v2507_v2, %v2507_v2  ;;  %v16654_v56 = vld [vmem:[#allocation3 + $0x4f0] sm:$0xff]   ;;  %v19763_v46 = vld [vmem:[#allocation9 + $0x340] sm:$0xff] }
 0x42f   :  { %16244 = vmatpush3.bf16.msra.mxu0 %v16643_v12  ;;  %4778 = vst [vmem:[#allocation3 + $0x6a8] sm:$0xf] %v14886_v19  ;;  %4779 = vst [vmem:[#allocation3 + $0x6ac] sm:$0xf] %v14887_v57  ;;  %v19756_v12 = vld [vmem:[#allocation9 + $0x320] sm:$0xff]  ;;  %v14899_v28 = vcombine.high %v2523_v33, %v2523_v33  ;;  %v14850_v42 = vcombine.low %v2499_v38, %v2499_v38  ;;  %v14851_v25 = vcombine.high %v2499_v38, %v2499_v38  ;;  %v16655_v32 = vld [vmem:[#allocation3 + $0x430] sm:$0xff]  }
 0x430   :  { %16266 = vmatpush3.bf16.msra.mxu1 %v16644_v5  ;;  %16245 = vmatprep.subr.bf16.mxu0 %v16645_v17  ;;  %4760 = vst [vmem:[#allocation3 + $0x660] sm:$0xf] %v14868_v13  ;;  %4761 = vst [vmem:[#allocation3 + $0x664] sm:$0xf] %v14869_v50  ;;  %v16652_v5 = vld [vmem:[#allocation3 + $0x4b8] sm:$0xff]   ;;  %v14885_v17 = vcombine.high %v2516_v34, %v2516_v34  ;;  %v14882_v60 = vcombine.low %v2515_v11, %v2515_v11  ;;  %v2522_v44 = vunpack.c.l.s8.bf16 %v19746_v55  ;;  %v16657_v13 = vld [vmem:[#allocation3 + $0x468] sm:$0xff]  }
 0x431   :  { %16267 = vmatprep.subr.bf16.mxu1 %v16646_v23  ;;  %4792 = vst [vmem:[#allocation3 + $0x6e0] sm:$0xf] %v14900_v40  ;;  %4793 = vst [vmem:[#allocation3 + $0x6e4] sm:$0xf] %v14901_v47  ;;  %v14898_v23 = vcombine.low %v2523_v33, %v2523_v33  ;;  %v14883_v62 = vcombine.high %v2515_v11, %v2515_v11  ;;  %v14864_v4 = vcombine.low %v2506_v30, %v2506_v30  ;;  %v2295_v34 = vld [vmem:[#allocation9 + $0x3b8] sm:$0xff] }
 0x432   :  { %4744 = vst [vmem:[#allocation3 + $0x620] sm:$0xf] %v14852_v52  ;;  %4745 = vst [vmem:[#allocation3 + $0x624] sm:$0xf] %v14853_v51  ;;  %v14865_v19 = vcombine.high %v2506_v30, %v2506_v30  ;;  %v2498_v57 = vunpack.c.l.s8.bf16 %v19748_v63  ;;  %v14896_v55 = vcombine.low %v2522_v44, %v2522_v44  ;;  %v14897_v50 = vcombine.high %v2522_v44, %v2522_v44  ;;  %v16658_v63 = vld [vmem:[#allocation3 + $0x4e8] sm:$0xff]  }
 0x433   :  { %16246 = vmatpush3.bf16.msra.mxu0 %v16647_v15  ;;  %4776 = vst [vmem:[#allocation3 + $0x6a0] sm:$0xf] %v14884_v31  ;;  %4777 = vst [vmem:[#allocation3 + $0x6a4] sm:$0xf] %v14885_v17  ;;  %v2514_v15 = vunpack.c.l.s8.bf16 %v19750_v3  ;;  %v2521_v40 = vunpack.c.h.s8.bf16 %v19758_v61  ;;  %v2497_v47 = vunpack.c.h.s8.bf16 %v19760_v26  ;;  %v2513_v51 = vunpack.c.h.s8.bf16 %v19763_v46  ;;  %v16659_v30 = vld [vmem:[#allocation3 + $0x428] sm:$0xff]  }
 0x434   :  { %16268 = vmatpush3.bf16.msra.mxu1 %v16648_v41  ;;  %16275 = vmatprep.subr.bf16.mxu0 %v16649_v48  ;;  %4758 = vst [vmem:[#allocation3 + $0x658] sm:$0xf] %v14866_v58  ;;  %4759 = vst [vmem:[#allocation3 + $0x65c] sm:$0xf] %v14867_v6  ;;  %v2505_v41 = vunpack.c.h.s8.bf16 %v19756_v12  ;;  %v16656_v48 = vld [vmem:[#allocation3 + $0x4b0] sm:$0xff]   ;;  %v14848_v3 = vcombine.low %v2498_v57, %v2498_v57  ;;  %v2504_v11 = vunpack.c.l.s8.bf16 %v19756_v12  ;;  %v2520_v17 = vunpack.c.l.s8.bf16 %v19758_v61  ;;  %v19783_v58 = vld [vmem:[#allocation9 + $0x398] sm:$0xff] }
 0x435   :  { %16297 = vmatprep.subr.bf16.mxu1 %v16650_v16  ;;  %4790 = vst [vmem:[#allocation3 + $0x6d8] sm:$0xf] %v14898_v23  ;;  %4791 = vst [vmem:[#allocation3 + $0x6dc] sm:$0xf] %v14899_v28  ;;  %v19771_v16 = vpop.f32.mrf.mxu1  ;;  %v14880_v52 = vcombine.low %v2514_v15, %v2514_v15  ;;  %v14881_v2 = vcombine.high %v2514_v15, %v2514_v15  ;;  %v14846_v31 = vcombine.low %v2497_v47, %v2497_v47  ;;  %v16660_v12 = vld [vmem:[#allocation3 + $0x4a8] sm:$0xff]   ;;  %v19785_v28 = vld [vmem:[#allocation9 + $0x3d8] sm:$0xff] }
 0x436   :  { %4742 = vst [vmem:[#allocation3 + $0x618] sm:$0xf] %v14850_v42  ;;  %4743 = vst [vmem:[#allocation3 + $0x61c] sm:$0xf] %v14851_v25  ;;  %13975 = vmatmul.mubr.bf16.vlgmr.msra.gmra.mxu0 %v19727_v14  ;;  %v14849_v14 = vcombine.high %v2498_v57, %v2498_v57  ;;  %v14862_v33 = vcombine.low %v2505_v41, %v2505_v41  ;;  %v14863_v38 = vcombine.high %v2505_v41, %v2505_v41  ;;  %v16661_v25 = vld [vmem:[#allocation3 + $0x460] sm:$0xff]  }
 0x437   :  { %4774 = vst [vmem:[#allocation3 + $0x698] sm:$0xf] %v14882_v60  ;;  %4775 = vst [vmem:[#allocation3 + $0x69c] sm:$0xf] %v14883_v62  ;;  %14015 = vmatmul.mubr.bf16.vlgmr.msra.gmra.mxu1 %v19729_v18  ;;  %16276 = vmatpush3.bf16.msra.mxu0 %v16651_v45  ;;  %v19777_v18 = vld [vmem:[#allocation9 + $0x3f8] sm:$0xff]  ;;  %v19780_v45 = vpop.f32.mrf.mxu1  ;;  %v14878_v6 = vcombine.low %v2513_v51, %v2513_v51  ;;  %v14879_v23 = vcombine.high %v2513_v51, %v2513_v51  ;;  %v2512_v44 = vunpack.c.l.s8.bf16 %v19763_v46  ;;  %v16663_v41 = vld [vmem:[#allocation3 + $0x420] sm:$0xff]  }
 0x438   :  { %4756 = vst [vmem:[#allocation3 + $0x650] sm:$0xf] %v14864_v4  ;;  %4757 = vst [vmem:[#allocation3 + $0x654] sm:$0xf] %v14865_v19  ;;  %14054 = vmatprep.mubr.bf16.mxu0 %v19733_v59  ;;  %16298 = vmatpush3.bf16.msra.mxu1 %v16652_v5  ;;  %v14894_v59 = vcombine.low %v2521_v40, %v2521_v40  ;;  %v14895_v5 = vcombine.high %v2521_v40, %v2521_v40  ;;  %v16662_v4 = vld [vmem:[#allocation3 + $0x4e0] sm:$0xff]   ;;  %v2543_v19 = vunpack.c.h.s8.bf16 %v2295_v34  ;;  %v16665_v46 = vld [vmem:[#allocation3 + $0x458] sm:$0xff]  }
 0x439   :  { %4788 = vst [vmem:[#allocation3 + $0x6d0] sm:$0xf] %v14896_v55  ;;  %4789 = vst [vmem:[#allocation3 + $0x6d4] sm:$0xf] %v14897_v50  ;;  %14094 = vmatprep.mubr.bf16.mxu1 %v19741_v7  ;;  %16277 = vmatprep.subr.bf16.mxu0 %v16653_v49  ;;  %v14847_v7 = vcombine.high %v2497_v47, %v2497_v47  ;;  %v14860_v49 = vcombine.low %v2504_v11, %v2504_v11  ;;  %v11103_v42 = vpop.f32.mrf.mxu1  ;;  %v2535_v57 = vunpack.c.h.s8.bf16 %v19783_v58  ;;  %v19792_v50 = vld [vmem:[#allocation9 + $0x3b0] sm:$0xff]  ;;  %v16664_v40 = vld [vmem:[#allocation3 + $0x4a0] sm:$0xff]  }
 0x43a   :  { %4740 = vst [vmem:[#allocation3 + $0x610] sm:$0xf] %v14848_v3  ;;  %4741 = vst [vmem:[#allocation3 + $0x614] sm:$0xf] %v14849_v14  ;;  %16299 = vmatprep.subr.bf16.mxu1 %v16654_v56  ;;  %v14861_v61 = vcombine.high %v2504_v11, %v2504_v11  ;;  %v14892_v60 = vcombine.low %v2520_v17, %v2520_v17  ;;  %v14893_v62 = vcombine.high %v2520_v17, %v2520_v17  ;;  %v19794_v51 = vld [vmem:[#allocation9 + $0x3f0] sm:$0xff]  ;;  %v16667_v17 = vld [vmem:[#allocation3 + $0x418] sm:$0xff]  }
 0x43b   :  { %4772 = vst [vmem:[#allocation3 + $0x690] sm:$0xf] %v14880_v52  ;;  %4773 = vst [vmem:[#allocation3 + $0x694] sm:$0xf] %v14881_v2  ;;  %16278 = vmatpush3.bf16.msra.mxu0 %v16655_v32  ;;  %v2496_v56 = vunpack.c.l.s8.bf16 %v19760_v26  ;;  %v2559_v32 = vunpack.c.h.s8.bf16 %v19777_v18  ;;  %v11104_v15 = vpop.f32.mrf.mxu1  ;;  %v2542_v55 = vunpack.c.l.s8.bf16 %v2295_v34  ;;  %v14876_v47 = vcombine.low %v2512_v44, %v2512_v44  ;;  %v19796_v11 = vld [vmem:[#allocation9 + $0x390] sm:$0xff]  ;;  %v16666_v34 = vld [vmem:[#allocation3 + $0x4d8] sm:$0xff]  }
 0x43c   :  { %4754 = vst [vmem:[#allocation3 + $0x648] sm:$0xf] %v14862_v33  ;;  %4755 = vst [vmem:[#allocation3 + $0x64c] sm:$0xf] %v14863_v38  ;;  %16300 = vmatpush3.bf16.msra.mxu1 %v16656_v48  ;;  %16279 = vmatprep.subr.bf16.mxu0 %v16657_v13  ;;  %v2551_v13 = vunpack.c.h.s8.bf16 %v19785_v28  ;;  %v14877_v3 = vcombine.high %v2512_v44, %v2512_v44  ;;  %v14938_v14 = vcombine.low %v2543_v19, %v2543_v19  ;;  %v16668_v42 = vld [vmem:[#allocation3 + $0x498] sm:$0xff]  }
 0x43d   :  { %4786 = vst [vmem:[#allocation3 + $0x6c8] sm:$0xf] %v14894_v59  ;;  %4787 = vst [vmem:[#allocation3 + $0x6cc] sm:$0xf] %v14895_v5  ;;  %16301 = vmatprep.subr.bf16.mxu1 %v16658_v63  ;;  %v14844_v26 = vcombine.low %v2496_v56, %v2496_v56  ;;  %v14845_v48 = vcombine.high %v2496_v56, %v2496_v56  ;;  %v14939_v52 = vcombine.high %v2543_v19, %v2543_v19  ;;  %v16670_v56 = vld [vmem:[#allocation3 + $0x4d0] sm:$0xff]  }
 0x43e   :  { %4738 = vst [vmem:[#allocation3 + $0x608] sm:$0xf] %v14846_v31  ;;  %4739 = vst [vmem:[#allocation3 + $0x60c] sm:$0xf] %v14847_v7  ;;  %v14970_v63 = vcombine.low %v2559_v32, %v2559_v32  ;;  %v14971_v2 = vcombine.high %v2559_v32, %v2559_v32  ;;  %v14922_v33 = vcombine.low %v2535_v57, %v2535_v57 }
 0x43f   :  { %4770 = vst [vmem:[#allocation3 + $0x688] sm:$0xf] %v14878_v6  ;;  %4771 = vst [vmem:[#allocation3 + $0x68c] sm:$0xf] %v14879_v23  ;;  %16280 = vmatpush3.bf16.msra.mxu0 %v16659_v30  ;;  %v14923_v38 = vcombine.high %v2535_v57, %v2535_v57  ;;  %v14954_v59 = vcombine.low %v2551_v13, %v2551_v13  ;;  %v14955_v5 = vcombine.high %v2551_v13, %v2551_v13 }
 0x440   :  { %4752 = vst [vmem:[#allocation3 + $0x640] sm:$0xf] %v14860_v49  ;;  %4753 = vst [vmem:[#allocation3 + $0x644] sm:$0xf] %v14861_v61  ;;  %16302 = vmatpush3.bf16.msra.mxu1 %v16660_v12  ;;  %16281 = vmatprep.subr.bf16.mxu0 %v16661_v25  ;;  %v14936_v31 = vcombine.low %v2542_v55, %v2542_v55  ;;  %v2558_v30 = vunpack.c.l.s8.bf16 %v19777_v18  ;;  %v14937_v7 = vcombine.high %v2542_v55, %v2542_v55  ;;  %v2298_v49 = vld [vmem:[#allocation9 + $0x3d0] sm:$0xff] }
 0x441   :  { %4784 = vst [vmem:[#allocation3 + $0x6c0] sm:$0xf] %v14892_v60  ;;  %4785 = vst [vmem:[#allocation3 + $0x6c4] sm:$0xf] %v14893_v62  ;;  %16303 = vmatprep.subr.bf16.mxu1 %v16662_v4  ;;  %v2534_v12 = vunpack.c.l.s8.bf16 %v19783_v58  ;;  %v2550_v6 = vunpack.c.l.s8.bf16 %v19785_v28  ;;  %v2541_v23 = vunpack.c.h.s8.bf16 %v19792_v50  ;;  %v16669_v25 = vld [vmem:[#allocation3 + $0x450] sm:$0xff]   ;;  %v2557_v60 = vunpack.c.h.s8.bf16 %v19794_v51 }
 0x442   :  { %4736 = vst [vmem:[#allocation3 + $0x600] sm:$0xf] %v14844_v26  ;;  %4737 = vst [vmem:[#allocation3 + $0x604] sm:$0xf] %v14845_v48  ;;  %v14968_v18 = vcombine.low %v2558_v30, %v2558_v30  ;;  %v14969_v61 = vcombine.high %v2558_v30, %v2558_v30  ;;  %v2533_v62 = vunpack.c.h.s8.bf16 %v19796_v11  ;;  %v2549_v15 = vunpack.c.h.s8.bf16 %v2298_v49  ;;  %v19804_v26 = vld [vmem:[#allocation9 + $0x3a8] sm:$0xff]  ;;  %v16671_v48 = vld [vmem:[#allocation3 + $0x410] sm:$0xff]  }
 0x443   :  { %4768 = vst [vmem:[#allocation3 + $0x680] sm:$0xf] %v14876_v47  ;;  %4769 = vst [vmem:[#allocation3 + $0x684] sm:$0xf] %v14877_v3  ;;  %16282 = vmatpush3.bf16.msra.mxu0 %v16663_v41  ;;  %v14920_v58 = vcombine.low %v2534_v12, %v2534_v12  ;;  %v14921_v4 = vcombine.high %v2534_v12, %v2534_v12  ;;  %v14952_v28 = vcombine.low %v2550_v6, %v2550_v6  ;;  %v16672_v47 = vld [vmem:[#allocation3 + $0x490] sm:$0xff]   ;;  %v16673_v3 = vld [vmem:[#allocation3 + $0x448] sm:$0xff]  }
 0x444   :  { %4830 = vst [vmem:[#allocation3 + $0x778] sm:$0xf] %v14938_v14  ;;  %4831 = vst [vmem:[#allocation3 + $0x77c] sm:$0xf] %v14939_v52  ;;  %v14953_v44 = vcombine.high %v2550_v6, %v2550_v6  ;;  %16304 = vmatpush3.bf16.msra.mxu1 %v16664_v40  ;;  %16283 = vmatprep.subr.bf16.mxu0 %v16665_v46  ;;  %v14934_v19 = vcombine.low %v2541_v23, %v2541_v23  ;;  %v2540_v40 = vunpack.c.l.s8.bf16 %v19792_v50  ;;  %v2301_v46 = vld [vmem:[#allocation9 + $0x3e8] sm:$0xff] }
 0x445   :  { %4862 = vst [vmem:[#allocation3 + $0x7f8] sm:$0xf] %v14970_v63  ;;  %4863 = vst [vmem:[#allocation3 + $0x7fc] sm:$0xf] %v14971_v2  ;;  %v14935_v32 = vcombine.high %v2541_v23, %v2541_v23  ;;  %v14966_v57 = vcombine.low %v2557_v60, %v2557_v60  ;;  %16305 = vmatprep.subr.bf16.mxu1 %v16666_v34  ;;  %v14967_v41 = vcombine.high %v2557_v60, %v2557_v60 }
 0x446   :  { %4814 = vst [vmem:[#allocation3 + $0x738] sm:$0xf] %v14922_v33  ;;  %4815 = vst [vmem:[#allocation3 + $0x73c] sm:$0xf] %v14923_v38  ;;  %v14918_v13 = vcombine.low %v2533_v62, %v2533_v62  ;;  %v14919_v55 = vcombine.high %v2533_v62, %v2533_v62  ;;  %v14950_v14 = vcombine.low %v2549_v15, %v2549_v15  ;;  %v2556_v63 = vunpack.c.l.s8.bf16 %v19794_v51  ;;  %v16674_v33 = vld [vmem:[#allocation3 + $0x4c8] sm:$0xff]  }
 0x447   :  { %4846 = vst [vmem:[#allocation3 + $0x7b8] sm:$0xf] %v14954_v59  ;;  %4847 = vst [vmem:[#allocation3 + $0x7bc] sm:$0xf] %v14955_v5  ;;  %v14951_v52 = vcombine.high %v2549_v15, %v2549_v15  ;;  %v2532_v2 = vunpack.c.l.s8.bf16 %v19796_v11  ;;  %16284 = vmatpush3.bf16.msra.mxu0 %v16667_v17  ;;  %v14932_v38 = vcombine.low %v2540_v40, %v2540_v40  ;;  %v2548_v50 = vunpack.c.l.s8.bf16 %v2298_v49  ;;  %v2289_v5 = vld [vmem:[#allocation9 + $0x388] sm:$0xff] }
 0x448   :  { %4828 = vst [vmem:[#allocation3 + $0x770] sm:$0xf] %v14936_v31  ;;  %4829 = vst [vmem:[#allocation3 + $0x774] sm:$0xf] %v14937_v7  ;;  %v14933_v34 = vcombine.high %v2540_v40, %v2540_v40  ;;  %v2539_v59 = vunpack.c.h.s8.bf16 %v19804_v26  ;;  %16306 = vmatpush3.bf16.msra.mxu1 %v16668_v42  ;;  %16285 = vmatprep.subr.bf16.mxu0 %v16669_v25  ;;  %v14964_v31 = vcombine.low %v2556_v63, %v2556_v63  ;;  %v2297_v11 = vld [vmem:[#allocation9 + $0x3c8] sm:$0xff] }
 0x449   :  { %4860 = vst [vmem:[#allocation3 + $0x7f0] sm:$0xf] %v14968_v18  ;;  %4861 = vst [vmem:[#allocation3 + $0x7f4] sm:$0xf] %v14969_v61  ;;  %v14965_v30 = vcombine.high %v2556_v63, %v2556_v63  ;;  %v14916_v51 = vcombine.low %v2532_v2, %v2532_v2  ;;  %v2555_v7 = vunpack.c.h.s8.bf16 %v2301_v46  ;;  %16307 = vmatprep.subr.bf16.mxu1 %v16670_v56  ;;  %v16675_v17 = vld [vmem:[#allocation3 + $0x408] sm:$0xff]   ;;  %v19810_v18 = vld [vmem:[#allocation9 + $0x3a0] sm:$0xff]  ;;  %v2531_v62 = vunpack.c.h.s8.bf16 %v2289_v5 }
 0x44a   :  { %4812 = vst [vmem:[#allocation3 + $0x730] sm:$0xf] %v14920_v58  ;;  %4813 = vst [vmem:[#allocation3 + $0x734] sm:$0xf] %v14921_v4  ;;  %v14917_v12 = vcombine.high %v2532_v2, %v2532_v2  ;;  %v14948_v6 = vcombine.low %v2548_v50, %v2548_v50  ;;  %v14949_v23 = vcombine.high %v2548_v50, %v2548_v50  ;;  %v16676_v61 = vld [vmem:[#allocation3 + $0x488] sm:$0xff]   ;;  %v16677_v58 = vld [vmem:[#allocation3 + $0x440] sm:$0xff]   ;;  %v2547_v56 = vunpack.c.h.s8.bf16 %v2297_v11 }
 0x44b   :  { %4844 = vst [vmem:[#allocation3 + $0x7b0] sm:$0xf] %v14952_v28  ;;  %4845 = vst [vmem:[#allocation3 + $0x7b4] sm:$0xf] %v14953_v44  ;;  %v14930_v49 = vcombine.low %v2539_v59, %v2539_v59  ;;  %v14931_v42 = vcombine.high %v2539_v59, %v2539_v59  ;;  %v14962_v25 = vcombine.low %v2555_v7, %v2555_v7  ;;  %16286 = vmatpush3.bf16.msra.mxu0 %v16671_v48 }
 0x44c   :  { %4826 = vst [vmem:[#allocation3 + $0x768] sm:$0xf] %v14934_v19  ;;  %4827 = vst [vmem:[#allocation3 + $0x76c] sm:$0xf] %v14935_v32  ;;  %v14963_v60 = vcombine.high %v2555_v7, %v2555_v7  ;;  %v2538_v4 = vunpack.c.l.s8.bf16 %v19804_v26  ;;  %v2554_v28 = vunpack.c.l.s8.bf16 %v2301_v46  ;;  %v2530_v44 = vunpack.c.l.s8.bf16 %v2289_v5  ;;  %16308 = vmatpush3.bf16.msra.mxu1 %v16672_v47  ;;  %16287 = vmatprep.subr.bf16.mxu0 %v16673_v3  ;;  %v16678_v19 = vld [vmem:[#allocation3 + $0x4c0] sm:$0xff]   ;;  %v11058_v26 = vpop.f32.mrf.mxu0  ;;  %v16683_v7 = vld [vmem:[#allocation3 + $0x538] sm:$0xff]  }
 0x44d   :  { %4858 = vst [vmem:[#allocation3 + $0x7e8] sm:$0xf] %v14966_v57  ;;  %4859 = vst [vmem:[#allocation3 + $0x7ec] sm:$0xf] %v14967_v41  ;;  %v14914_v32 = vcombine.low %v2531_v62, %v2531_v62  ;;  %v14915_v57 = vcombine.high %v2531_v62, %v2531_v62  ;;  %v2546_v15 = vunpack.c.l.s8.bf16 %v2297_v11  ;;  %v2537_v48 = vunpack.c.h.s8.bf16 %v19810_v18  ;;  %16309 = vmatprep.subr.bf16.mxu1 %v16674_v33  ;;  %v16679_v41 = vld [vmem:[#allocation3 + $0x400] sm:$0xff]  }
 0x44e   :  { %4810 = vst [vmem:[#allocation3 + $0x728] sm:$0xf] %v14918_v13  ;;  %4811 = vst [vmem:[#allocation3 + $0x72c] sm:$0xf] %v14919_v55  ;;  %v14946_v13 = vcombine.low %v2547_v56, %v2547_v56  ;;  %v14947_v55 = vcombine.high %v2547_v56, %v2547_v56  ;;  %v14928_v40 = vcombine.low %v2538_v4, %v2538_v4  ;;  %v16680_v46 = vld [vmem:[#allocation3 + $0x480] sm:$0xff]   ;;  %v11604_v59 = vmax.f32 %v19731_v21, 0.0  ;;  %v19818_v5 = vpop.f32.mrf.mxu0 }
 0x44f   :  { %4842 = vst [vmem:[#allocation3 + $0x7a8] sm:$0xf] %v14950_v14  ;;  %4843 = vst [vmem:[#allocation3 + $0x7ac] sm:$0xf] %v14951_v52  ;;  %v14929_v14 = vcombine.high %v2538_v4, %v2538_v4  ;;  %v14960_v47 = vcombine.low %v2554_v28, %v2554_v28  ;;  %v14961_v3 = vcombine.high %v2554_v28, %v2554_v28  ;;  %16288 = vmatpush3.bf16.msra.mxu0 %v16675_v17  ;;  %v16684_v17 = vld [vmem:[#allocation3 + $0x5b8] sm:$0xff]   ;;  %v16691_v56 = vld [vmem:[#allocation3 + $0x528] sm:$0xff]  }
 0x450   :  { %4824 = vst [vmem:[#allocation3 + $0x760] sm:$0xf] %v14932_v38  ;;  %4825 = vst [vmem:[#allocation3 + $0x764] sm:$0xf] %v14933_v34  ;;  %v14912_v52 = vcombine.low %v2530_v44, %v2530_v44  ;;  %v14913_v63 = vcombine.high %v2530_v44, %v2530_v44  ;;  %v19815_v2 = vadd.f32 %v19771_v16, %v11058_v26  ;;  %v16681_v38 = vld [vmem:[#allocation3 + $0x578] sm:$0xff]   ;;  %16310 = vmatpush3.bf16.msra.mxu1 %v16676_v61  ;;  %v11062_v21 = vpop.f32.mrf.mxu0  ;;  %v16692_v4 = vld [vmem:[#allocation3 + $0x5a8] sm:$0xff]  }
 0x451   :  { %4856 = vst [vmem:[#allocation3 + $0x7e0] sm:$0xf] %v14964_v31  ;;  %4857 = vst [vmem:[#allocation3 + $0x7e4] sm:$0xf] %v14965_v30  ;;  %v14944_v33 = vcombine.low %v2546_v15, %v2546_v15  ;;  %v14945_v34 = vcombine.high %v2546_v15, %v2546_v15  ;;  %v14926_v50 = vcombine.low %v2537_v48, %v2537_v48  ;;  %16289 = vmatprep.subr.bf16.mxu0 %v16677_v58  ;;  %v16682_v31 = vld [vmem:[#allocation3 + $0x5f8] sm:$0xff]   ;;  %v16689_v58 = vld [vmem:[#allocation3 + $0x568] sm:$0xff]  }
 0x452   :  { %4808 = vst [vmem:[#allocation3 + $0x720] sm:$0xf] %v14916_v51  ;;  %4809 = vst [vmem:[#allocation3 + $0x724] sm:$0xf] %v14917_v12  ;;  %v14927_v16 = vcombine.high %v2537_v48, %v2537_v48  ;;  %v2536_v30 = vunpack.c.l.s8.bf16 %v19810_v18  ;;  %v11606_v51 = vmax.f32 %v19735_v29, 0.0  ;;  %16311 = vmatprep.subr.bf16.mxu1 %v16678_v19  ;;  %v11609_v11 = vmax.f32 %v19737_v1, 0.0  ;;  %v11063_v18 = vpop.f32.mrf.mxu0 }
 0x453   :  { %4840 = vst [vmem:[#allocation3 + $0x7a0] sm:$0xf] %v14948_v6  ;;  %4841 = vst [vmem:[#allocation3 + $0x7a4] sm:$0xf] %v14949_v23  ;;  %16290 = vmatpush3.bf16.msra.mxu0 %v16679_v41  ;;  %v11611_v23 = vmax.f32 %v19739_v43, 0.0  ;;  %v11636_v61 = vpack.c.bf16 %v11604_v59, %v11604_v59  ;;  %v16686_v29 = vld [vmem:[#allocation3 + $0x5f0] sm:$0xff]  }
 0x454   :  { %4822 = vst [vmem:[#allocation3 + $0x758] sm:$0xf] %v14930_v49  ;;  %4823 = vst [vmem:[#allocation3 + $0x75c] sm:$0xf] %v14931_v42  ;;  %v14924_v12 = vcombine.low %v2536_v30, %v2536_v30  ;;  %v14925_v6 = vcombine.high %v2536_v30, %v2536_v30  ;;  %v16685_v49 = vld [vmem:[#allocation3 + $0x570] sm:$0xff]   ;;  %16312 = vmatpush3.bf16.msra.mxu1 %v16680_v46  ;;  %16319 = vmatprep.subr.bf16.mxu0 %v16681_v38  ;;  %v16690_v43 = vld [vmem:[#allocation3 + $0x5e8] sm:$0xff]  }
 0x455   :  { %4854 = vst [vmem:[#allocation3 + $0x7d8] sm:$0xf] %v14962_v25  ;;  %4855 = vst [vmem:[#allocation3 + $0x7dc] sm:$0xf] %v14963_v60  ;;  %v11638_v42 = vpack.c.bf16 %v11606_v51, %v11606_v51  ;;  %16341 = vmatprep.subr.bf16.mxu1 %v16682_v31  ;;  %v16687_v25 = vld [vmem:[#allocation3 + $0x530] sm:$0xff]   ;;  %v11641_v1 = vpack.c.bf16 %v11609_v11, %v11609_v11  ;;  %v11643_v62 = vpack.c.bf16 %v11611_v23, %v11611_v23  ;;  %v16693_v28 = vld [vmem:[#allocation3 + $0x560] sm:$0xff]  }
 0x456   :  { %4806 = vst [vmem:[#allocation3 + $0x718] sm:$0xf] %v14914_v32  ;;  %4807 = vst [vmem:[#allocation3 + $0x71c] sm:$0xf] %v14915_v57  ;;  %14055 = vmatmul.mubr.bf16.vlgmr.msra.gmra.mxu0 %v11636_v61  ;;  %v16688_v60 = vld [vmem:[#allocation3 + $0x5b0] sm:$0xff]   ;;  %v16694_v44 = vld [vmem:[#allocation3 + $0x5e0] sm:$0xff]  }
 0x457   :  { %4838 = vst [vmem:[#allocation3 + $0x798] sm:$0xf] %v14946_v13  ;;  %4839 = vst [vmem:[#allocation3 + $0x79c] sm:$0xf] %v14947_v55  ;;  %14095 = vmatmul.mubr.bf16.vlgmr.msra.gmra.mxu1 %v11638_v42  ;;  %16320 = vmatpush3.bf16.msra.mxu0 %v16683_v7  ;;  %v16695_v19 = vld [vmem:[#allocation3 + $0x520] sm:$0xff]   ;;  %v16697_v57 = vld [vmem:[#allocation3 + $0x558] sm:$0xff]  }
 0x458   :  { %4820 = vst [vmem:[#allocation3 + $0x750] sm:$0xf] %v14928_v40  ;;  %4821 = vst [vmem:[#allocation3 + $0x754] sm:$0xf] %v14929_v14  ;;  %14134 = vmatprep.mubr.bf16.mxu0 %v11641_v1  ;;  %16342 = vmatpush3.bf16.msra.mxu1 %v16684_v17  ;;  %v16696_v32 = vld [vmem:[#allocation3 + $0x5a0] sm:$0xff]   ;;  %v19824_v15 = vld [vmem:[#allocation6 + $0x18] sm:$0xff] }
 0x459   :  { %4852 = vst [vmem:[#allocation3 + $0x7d0] sm:$0xf] %v14960_v47  ;;  %4853 = vst [vmem:[#allocation3 + $0x7d4] sm:$0xf] %v14961_v3  ;;  %14174 = vmatprep.mubr.bf16.mxu1 %v11643_v62  ;;  %16321 = vmatprep.subr.bf16.mxu0 %v16685_v49  ;;  %v16698_v48 = vld [vmem:[#allocation3 + $0x5d8] sm:$0xff]   ;;  %v16818_v41 = vld [vmem:[#allocation6 + $0x10] sm:$0xff]  ;;  %v11299_v26 = vrot.slane %v19824_v15, %v20114_v10  ;;  %v11307_v30 = vrot.slane %v19824_v15, %v20117_v20 }
 0x45a   :  { %4804 = vst [vmem:[#allocation3 + $0x710] sm:$0xf] %v14912_v52  ;;  %4805 = vst [vmem:[#allocation3 + $0x714] sm:$0xf] %v14913_v63  ;;  %16343 = vmatprep.subr.bf16.mxu1 %v16686_v29  ;;  %v11279_v13 = vrot.slane %v16818_v41, %v19408_v54  ;;  %v11287_v55 = vrot.slane %v16818_v41, %v19515_v37  ;;  %v16699_v40 = vld [vmem:[#allocation3 + $0x518] sm:$0xff]   ;;  %v16701_v46 = vld [vmem:[#allocation3 + $0x550] sm:$0xff]  }
 0x45b   :  { %4836 = vst [vmem:[#allocation3 + $0x790] sm:$0xf] %v14944_v33  ;;  %4837 = vst [vmem:[#allocation3 + $0x794] sm:$0xf] %v14945_v34  ;;  %16322 = vmatpush3.bf16.msra.mxu0 %v16687_v25  ;;  %v16700_v14 = vld [vmem:[#allocation3 + $0x598] sm:$0xff]   ;;  %v16702_v3 = vld [vmem:[#allocation3 + $0x5d0] sm:$0xff]   ;;  %v11381_v31 = vmul.f32 %v11299_v26, %v19579_v8  ;;  %v11383_v61 = vmul.f32 %v11307_v30, %v19690_v24 }
 0x45c   :  { %4818 = vst [vmem:[#allocation3 + $0x748] sm:$0xf] %v14926_v50  ;;  %4819 = vst [vmem:[#allocation3 + $0x74c] sm:$0xf] %v14927_v16  ;;  %16344 = vmatpush3.bf16.msra.mxu1 %v16688_v60  ;;  %16323 = vmatprep.subr.bf16.mxu0 %v16689_v58  ;;  %v19830_v47 = vld [vmem:[#allocation8 + $0x18] sm:$0xff]  ;;  %v11376_v52 = vmul.f32 %v11279_v13, %v19267_v27  ;;  %v16819_v63 = vld [vmem:[#allocation8 + $0x10] sm:$0xff]  ;;  %v11378_v33 = vmul.f32 %v11287_v55, %v19430_v22 }
 0x45d   :  { %4816 = vst [vmem:[#allocation3 + $0x740] sm:$0xf] %v14924_v12  ;;  %4817 = vst [vmem:[#allocation3 + $0x744] sm:$0xf] %v14925_v6  ;;  %16345 = vmatprep.subr.bf16.mxu1 %v16690_v43  ;;  %v11479_v38 = vrot.slane %v16819_v63, %v19408_v54  ;;  %v11487_v34 = vrot.slane %v16819_v63, %v19515_v37  ;;  %v16703_v50 = vld [vmem:[#allocation3 + $0x510] sm:$0xff]   ;;  %v11499_v16 = vrot.slane %v19830_v47, %v20114_v10  ;;  %v16705_v27 = vld [vmem:[#allocation3 + $0x548] sm:$0xff]  }
 0x45e   :  { %v16704_v59 = vld [vmem:[#allocation3 + $0x590] sm:$0xff]   ;;  %v16706_v51 = vld [vmem:[#allocation3 + $0x5c8] sm:$0xff]   ;;  %v11507_v21 = vrot.slane %v19830_v47, %v20117_v20  ;;  %v2300_v8 = vld [vmem:[#allocation9 + $0x3e0] sm:$0xff] }
 0x45f   :  { %16324 = vmatpush3.bf16.msra.mxu0 %v16691_v56  ;;  %v19841_v7 = vadd.f32 %v11479_v38, %v11376_v52  ;;  %v19843_v22 = vadd.f32 %v11487_v34, %v11378_v33  ;;  %v2288_v11 = vld [vmem:[#allocation9 + $0x380] sm:$0xff]  ;;  %v2553_v10 = vunpack.c.h.s8.bf16 %v2300_v8  ;;  %v2552_v23 = vunpack.c.l.s8.bf16 %v2300_v8  ;;  %v16707_v18 = vld [vmem:[#allocation3 + $0x508] sm:$0xff]   ;;  %v16714_v26 = vld [vmem:[#allocation3 + $0x6f8] sm:$0xff]  }
 0x460   :  { %16346 = vmatpush3.bf16.msra.mxu1 %v16692_v4  ;;  %16325 = vmatprep.subr.bf16.mxu0 %v16693_v28  ;;  %v2296_v17 = vld [vmem:[#allocation9 + $0x3c0] sm:$0xff]  ;;  %v2529_v12 = vunpack.c.h.s8.bf16 %v2288_v11  ;;  %v11581_v49 = vadd.f32 %v11499_v16, %v11381_v31  ;;  %v2528_v29 = vunpack.c.l.s8.bf16 %v2288_v11  ;;  %v16708_v25 = vld [vmem:[#allocation3 + $0x588] sm:$0xff]   ;;  %v16716_v38 = vld [vmem:[#allocation3 + $0x6b8] sm:$0xff]  }
 0x461   :  { %16347 = vmatprep.subr.bf16.mxu1 %v16694_v44  ;;  %v2545_v6 = vunpack.c.h.s8.bf16 %v2296_v17  ;;  %v2544_v42 = vunpack.c.l.s8.bf16 %v2296_v17  ;;  %v16709_v1 = vld [vmem:[#allocation3 + $0x540] sm:$0xff]   ;;  %v14958_v20 = vcombine.low %v2553_v10, %v2553_v10  ;;  %v14959_v60 = vcombine.high %v2553_v10, %v2553_v10  ;;  %v16717_v33 = vld [vmem:[#allocation3 + $0x670] sm:$0xff]   ;;  %v16722_v8 = vld [vmem:[#allocation3 + $0x6e8] sm:$0xff]  }
 0x462   :  { %v14910_v62 = vcombine.low %v2529_v12, %v2529_v12  ;;  %v16710_v58 = vld [vmem:[#allocation3 + $0x5c0] sm:$0xff]   ;;  %v14911_v43 = vcombine.high %v2529_v12, %v2529_v12  ;;  %v14956_v28 = vcombine.low %v2552_v23, %v2552_v23  ;;  %v14957_v24 = vcombine.high %v2552_v23, %v2552_v23  ;;  %v16719_v16 = vld [vmem:[#allocation3 + $0x630] sm:$0xff]   ;;  %v16723_v10 = vld [vmem:[#allocation3 + $0x628] sm:$0xff]  }
 0x463   :  { %16326 = vmatpush3.bf16.msra.mxu0 %v16695_v19  ;;  %v14942_v56 = vcombine.low %v2545_v6, %v2545_v6  ;;  %v14943_v4 = vcombine.high %v2545_v6, %v2545_v6  ;;  %4850 = vst [vmem:[#allocation3 + $0x7c8] sm:$0xf] %v14958_v20  ;;  %4851 = vst [vmem:[#allocation3 + $0x7cc] sm:$0xf] %v14959_v60  ;;  %v14908_v44 = vcombine.low %v2528_v29, %v2528_v29  ;;  %v16712_v55 = vld [vmem:[#allocation3 + $0x580] sm:$0xff]   ;;  %v16724_v6 = vld [vmem:[#allocation3 + $0x6a8] sm:$0xff]  }
 0x464   :  { %16348 = vmatpush3.bf16.msra.mxu1 %v16696_v32  ;;  %16327 = vmatprep.subr.bf16.mxu0 %v16697_v57  ;;  %4802 = vst [vmem:[#allocation3 + $0x708] sm:$0xf] %v14910_v62  ;;  %v14909_v19 = vcombine.high %v2528_v29, %v2528_v29  ;;  %v14940_v32 = vcombine.low %v2544_v42, %v2544_v42  ;;  %4803 = vst [vmem:[#allocation3 + $0x70c] sm:$0xf] %v14911_v43  ;;  %v11608_v13 = vmax.f32 %v19841_v7, 0.0  ;;  %v16725_v23 = vld [vmem:[#allocation3 + $0x660] sm:$0xff]  }
 0x465   :  { %16349 = vmatprep.subr.bf16.mxu1 %v16698_v48  ;;  %v11583_v57 = vadd.f32 %v11507_v21, %v11383_v61  ;;  %v16711_v48 = vld [vmem:[#allocation3 + $0x500] sm:$0xff]   ;;  %4834 = vst [vmem:[#allocation3 + $0x788] sm:$0xf] %v14942_v56  ;;  %4835 = vst [vmem:[#allocation3 + $0x78c] sm:$0xf] %v14943_v4  ;;  %v14941_v41 = vcombine.high %v2544_v42, %v2544_v42  ;;  %v16729_v42 = vld [vmem:[#allocation3 + $0x658] sm:$0xff]   ;;  %v11295_v20 = vrot.slane %v19824_v15, %v19345_v39 }
 0x466   :  { %4848 = vst [vmem:[#allocation3 + $0x7c0] sm:$0xf] %v14956_v28  ;;  %4849 = vst [vmem:[#allocation3 + $0x7c4] sm:$0xf] %v14957_v24  ;;  %v11640_v63 = vpack.c.bf16 %v11608_v13, %v11608_v13  ;;  %v16726_v61 = vld [vmem:[#allocation3 + $0x6e0] sm:$0xff]   ;;  %v16732_v60 = vld [vmem:[#allocation3 + $0x698] sm:$0xff]   ;;  %v11102_v56 = vadd.f32 %v19780_v45, %v19818_v5  ;;  %v11315_v4 = vrot.slane %v19824_v15, %v19372_v9 }
 0x467   :  { %16328 = vmatpush3.bf16.msra.mxu0 %v16699_v40  ;;  %v16713_v40 = vld [vmem:[#allocation3 + $0x678] sm:$0xff]   ;;  %4800 = vst [vmem:[#allocation3 + $0x700] sm:$0xf] %v14908_v44  ;;  %4801 = vst [vmem:[#allocation3 + $0x704] sm:$0xf] %v14909_v19  ;;  %v11615_v52 = vmax.f32 %v11583_v57, 0.0  ;;  %v11323_v24 = vrot.slane %v19824_v15, %v19390_v53  ;;  %v11380_v19 = vmul.f32 %v11295_v20, %v19572_v35 }
 0x468   :  { %16350 = vmatpush3.bf16.msra.mxu1 %v16700_v14  ;;  %16329 = vmatprep.subr.bf16.mxu0 %v16701_v46  ;;  %4832 = vst [vmem:[#allocation3 + $0x780] sm:$0xf] %v14940_v32  ;;  %v11610_v14 = vmax.f32 %v19843_v22, 0.0  ;;  %4833 = vst [vmem:[#allocation3 + $0x784] sm:$0xf] %v14941_v41  ;;  %v11613_v46 = vmax.f32 %v11581_v49, 0.0  ;;  %v11495_v32 = vrot.slane %v19830_v47, %v19345_v39 }
 0x469   :  { %16351 = vmatprep.subr.bf16.mxu1 %v16702_v3  ;;  %v16715_v3 = vld [vmem:[#allocation3 + $0x638] sm:$0xff]   ;;  %v16721_v22 = vld [vmem:[#allocation3 + $0x668] sm:$0xff]   ;;  %v16728_v29 = vld [vmem:[#allocation3 + $0x6a0] sm:$0xff]   ;;  %v11503_v5 = vrot.slane %v19830_v47, %v19354_v36  ;;  %v11385_v13 = vmul.f32 %v11315_v4, %v11102_v56  ;;  %v11523_v35 = vrot.slane %v19830_v47, %v19390_v53 }
 0x46a   :  { %v11642_v34 = vpack.c.bf16 %v11610_v14, %v11610_v14  ;;  %v11645_v31 = vpack.c.bf16 %v11613_v46, %v11613_v46  ;;  %v16733_v62 = vld [vmem:[#allocation3 + $0x650] sm:$0xff]   ;;  %v16738_v41 = vld [vmem:[#allocation3 + $0x6c8] sm:$0xff]   ;;  %v11580_v14 = vadd.f32 %v11495_v32, %v11380_v19  ;;  %v16758_v4 = vld [vmem:[#allocation3 + $0x7e0] sm:$0xff]  }
 0x46b   :  { %16330 = vmatpush3.bf16.msra.mxu0 %v16703_v50  ;;  %v16718_v50 = vld [vmem:[#allocation3 + $0x6f0] sm:$0xff]   ;;  %v16739_v39 = vld [vmem:[#allocation3 + $0x608] sm:$0xff]   ;;  %v16762_v19 = vld [vmem:[#allocation3 + $0x7d8] sm:$0xff]  }
 0x46c   :  { %16352 = vmatpush3.bf16.msra.mxu1 %v16704_v59  ;;  %16331 = vmatprep.subr.bf16.mxu0 %v16705_v27  ;;  %v11647_v27 = vpack.c.bf16 %v11615_v52, %v11615_v52  ;;  %v16734_v43 = vld [vmem:[#allocation3 + $0x6d0] sm:$0xff]   ;;  %v16755_v20 = vld [vmem:[#allocation3 + $0x728] sm:$0xff]   ;;  %v16763_v32 = vld [vmem:[#allocation3 + $0x718] sm:$0xff]  }
 0x46d   :  { %16353 = vmatprep.subr.bf16.mxu1 %v16706_v51  ;;  %v16720_v51 = vld [vmem:[#allocation3 + $0x6b0] sm:$0xff]  }
 0x46e   :  { %v16735_v44 = vld [vmem:[#allocation3 + $0x610] sm:$0xff]  }
 0x46f   :  { %16332 = vmatpush3.bf16.msra.mxu0 %v16707_v18  ;;  %v16727_v18 = vld [vmem:[#allocation3 + $0x620] sm:$0xff]   ;;  %v16736_v57 = vld [vmem:[#allocation3 + $0x690] sm:$0xff]  }
 0x470   :  { %16354 = vmatpush3.bf16.msra.mxu1 %v16708_v25  ;;  %16333 = vmatprep.subr.bf16.mxu0 %v16709_v1  ;;  %v16730_v25 = vld [vmem:[#allocation3 + $0x6d8] sm:$0xff]  }
 0x471   :  { %16355 = vmatprep.subr.bf16.mxu1 %v16710_v58  ;;  %v16731_v1 = vld [vmem:[#allocation3 + $0x618] sm:$0xff]   ;;  %v11303_v58 = vrot.slane %v19824_v15, %v19354_v36  ;;  %v16742_v36 = vld [vmem:[#allocation3 + $0x6c0] sm:$0xff]  }
 0x472   :  { %v19850_v59 = vpop.f32.mrf.mxu0 }
 0x473   :  { %16334 = vmatpush3.bf16.msra.mxu0 %v16711_v48  ;;  %v19852_v30 = vpop.f32.mrf.mxu1  ;;  %v16737_v48 = vld [vmem:[#allocation3 + $0x648] sm:$0xff]   ;;  %v11382_v45 = vmul.f32 %v11303_v58, %v19685_v0  ;;  %v16741_v0 = vld [vmem:[#allocation3 + $0x640] sm:$0xff]  }
 0x474   :  { %16356 = vmatpush3.bf16.msra.mxu1 %v16712_v55  ;;  %16363 = vmatprep.subr.bf16.mxu0 %v16713_v40  ;;  %v11183_v7 = vpop.f32.mrf.mxu0  ;;  %v11515_v55 = vrot.slane %v19830_v47, %v19372_v9  ;;  %v16744_v9 = vld [vmem:[#allocation3 + $0x680] sm:$0xff]   ;;  %v16756_v58 = vld [vmem:[#allocation3 + $0x7a8] sm:$0xff]  }
 0x475   :  { %16385 = vmatprep.subr.bf16.mxu1 %v16714_v26  ;;  %v11142_v21 = vpop.f32.mrf.mxu1  ;;  %v16740_v26 = vld [vmem:[#allocation3 + $0x688] sm:$0xff]   ;;  %v11582_v46 = vadd.f32 %v11503_v5, %v11382_v45  ;;  %v16765_v45 = vld [vmem:[#allocation3 + $0x750] sm:$0xff]   ;;  %v11182_v5 = vadd.f32 %v19850_v59, %v19852_v30  ;;  %v11519_v59 = vrot.slane %v19830_v47, %v19515_v37 }
 0x476   :  { %14135 = vmatmul.mubr.bf16.vlgmr.msra.gmra.mxu0 %v11640_v63  ;;  %v11185_v11 = vpop.f32.mrf.mxu0  ;;  %v11184_v28 = vadd.f32 %v11183_v7, %v11142_v21  ;;  %v16743_v63 = vld [vmem:[#allocation3 + $0x600] sm:$0xff]   ;;  %v16770_v30 = vld [vmem:[#allocation3 + $0x7c8] sm:$0xff]  }
 0x477   :  { %14175 = vmatmul.mubr.bf16.vlgmr.msra.gmra.mxu1 %v11642_v34  ;;  %16364 = vmatpush3.bf16.msra.mxu0 %v16715_v3  ;;  %v11144_v17 = vpop.f32.mrf.mxu1  ;;  %v11585_v3 = vadd.f32 %v11515_v55, %v11385_v13  ;;  %v11614_v53 = vmax.f32 %v11582_v46, 0.0  ;;  %v16746_v34 = vld [vmem:[#allocation3 + $0x7f8] sm:$0xff]   ;;  %v16750_v11 = vld [vmem:[#allocation3 + $0x7f0] sm:$0xff]   ;;  %v16772_v46 = vld [vmem:[#allocation3 + $0x788] sm:$0xff]  }
 0x478   :  { %14214 = vmatprep.mubr.bf16.mxu0 %v11645_v31  ;;  %16386 = vmatpush3.bf16.msra.mxu1 %v16716_v38  ;;  %v11186_v12 = vpop.f32.mrf.mxu0  ;;  %v11387_v40 = vmul.f32 %v11323_v24, %v11184_v28  ;;  %v11612_v38 = vmax.f32 %v11580_v14, 0.0  ;;  %v16747_v31 = vld [vmem:[#allocation3 + $0x738] sm:$0xff]   ;;  %v16759_v28 = vld [vmem:[#allocation3 + $0x720] sm:$0xff]   ;;  %v16766_v13 = vld [vmem:[#allocation3 + $0x7d0] sm:$0xff]  }
 0x479   :  { %14254 = vmatprep.mubr.bf16.mxu1 %v11647_v27  ;;  %16365 = vmatprep.subr.bf16.mxu0 %v16717_v33  ;;  %v11145_v49 = vpop.f32.mrf.mxu1  ;;  %v16745_v33 = vld [vmem:[#allocation3 + $0x778] sm:$0xff]   ;;  %v11646_v7 = vpack.c.bf16 %v11614_v53, %v11614_v53  ;;  %v16751_v12 = vld [vmem:[#allocation3 + $0x730] sm:$0xff]   ;;  %v16760_v24 = vld [vmem:[#allocation3 + $0x7a0] sm:$0xff]  }
 0x47a   :  { %16387 = vmatprep.subr.bf16.mxu1 %v16718_v50  ;;  %v11587_v52 = vadd.f32 %v11523_v35, %v11387_v40  ;;  %v11617_v50 = vmax.f32 %v11585_v3, 0.0  ;;  %v11644_v27 = vpack.c.bf16 %v11612_v38, %v11612_v38  ;;  %v16753_v49 = vld [vmem:[#allocation3 + $0x768] sm:$0xff]   ;;  %v16767_v55 = vld [vmem:[#allocation3 + $0x710] sm:$0xff]   ;;  %v11511_v35 = vrot.slane %v19830_v47, %v19408_v54  ;;  %v16775_v3 = vld [vmem:[#allocation3 + $0x700] sm:$0xff]  }
 0x47b   :  { %16366 = vmatpush3.bf16.msra.mxu0 %v16719_v16  ;;  %v16769_v14 = vld [vmem:[#allocation3 + $0x748] sm:$0xff]  }
 0x47c   :  { %16388 = vmatpush3.bf16.msra.mxu1 %v16720_v51  ;;  %16367 = vmatprep.subr.bf16.mxu0 %v16721_v22  ;;  %v11619_v16 = vmax.f32 %v11587_v52, 0.0  ;;  %v16748_v51 = vld [vmem:[#allocation3 + $0x7b8] sm:$0xff]   ;;  %v16749_v22 = vld [vmem:[#allocation3 + $0x770] sm:$0xff]  }
 0x47d   :  { %16389 = vmatprep.subr.bf16.mxu1 %v16722_v8  ;;  %v11649_v8 = vpack.c.bf16 %v11617_v50, %v11617_v50 }
 0x47f   :  { %16368 = vmatpush3.bf16.msra.mxu0 %v16723_v10  ;;  %v11651_v10 = vpack.c.bf16 %v11619_v16, %v11619_v16 }
 0x480   :  { %16390 = vmatpush3.bf16.msra.mxu1 %v16724_v6  ;;  %16369 = vmatprep.subr.bf16.mxu0 %v16725_v23  ;;  %v16752_v23 = vld [vmem:[#allocation3 + $0x7b0] sm:$0xff]  }
 0x481   :  { %16391 = vmatprep.subr.bf16.mxu1 %v16726_v61 }
 0x483   :  { %16370 = vmatpush3.bf16.msra.mxu0 %v16727_v18 }
 0x484   :  { %16392 = vmatpush3.bf16.msra.mxu1 %v16728_v29  ;;  %16371 = vmatprep.subr.bf16.mxu0 %v16729_v42  ;;  %v16754_v29 = vld [vmem:[#allocation3 + $0x7e8] sm:$0xff]  }
 0x485   :  { %16393 = vmatprep.subr.bf16.mxu1 %v16730_v25 }
 0x487   :  { %16372 = vmatpush3.bf16.msra.mxu0 %v16731_v1 }
 0x488   :  { %16394 = vmatpush3.bf16.msra.mxu1 %v16732_v60  ;;  %16373 = vmatprep.subr.bf16.mxu0 %v16733_v62 }
 0x489   :  { %16395 = vmatprep.subr.bf16.mxu1 %v16734_v43  ;;  %v16757_v43 = vld [vmem:[#allocation3 + $0x760] sm:$0xff]  }
 0x48b   :  { %16374 = vmatpush3.bf16.msra.mxu0 %v16735_v44  ;;  %v16761_v44 = vld [vmem:[#allocation3 + $0x758] sm:$0xff]  }
 0x48c   :  { %16396 = vmatpush3.bf16.msra.mxu1 %v16736_v57  ;;  %16375 = vmatprep.subr.bf16.mxu0 %v16737_v48  ;;  %v11311_v57 = vrot.slane %v19824_v15, %v19408_v54  ;;  %v16764_v48 = vld [vmem:[#allocation3 + $0x798] sm:$0xff]   ;;  %v16774_v54 = vld [vmem:[#allocation3 + $0x7c0] sm:$0xff]  }
 0x48d   :  { %16397 = vmatprep.subr.bf16.mxu1 %v16738_v41  ;;  %v11319_v41 = vrot.slane %v19824_v15, %v19515_v37  ;;  %v16771_v15 = vld [vmem:[#allocation3 + $0x708] sm:$0xff]  }
 0x48e   :  { %v11384_v40 = vmul.f32 %v11311_v57, %v19815_v2  ;;  %v16773_v2 = vld [vmem:[#allocation3 + $0x740] sm:$0xff]  }
 0x48f   :  { %16376 = vmatpush3.bf16.msra.mxu0 %v16739_v39  ;;  %v16768_v39 = vld [vmem:[#allocation3 + $0x790] sm:$0xff]  }
 0x490   :  { %16398 = vmatpush3.bf16.msra.mxu1 %v16740_v26  ;;  %16377 = vmatprep.subr.bf16.mxu0 %v16741_v0  ;;  %v11386_v26 = vmul.f32 %v11319_v41, %v11182_v5  ;;  %v11584_v0 = vadd.f32 %v11511_v35, %v11384_v40  ;;  %v14363_v35 = vld [vmem:[#allocation14 + $0x30] sm:$0xff] }
 0x491   :  { %16399 = vmatprep.subr.bf16.mxu1 %v16742_v36 }
 0x492   :  { %v11586_v36 = vadd.f32 %v11519_v59, %v11386_v26  ;;  %v11616_v52 = vmax.f32 %v11584_v0, 0.0  ;;  %v14360_v26 = vld [vmem:[#allocation14 + $0x18] sm:$0xff]  ;;  %v14359_v59 = vld [vmem:[#allocation14 + $0x10] sm:$0xff] }
 0x493   :  { %16378 = vmatpush3.bf16.msra.mxu0 %v16743_v63  ;;  %v16776_v63 = vld [vmem:[#allocation3 + $0x780] sm:$0xff]  }
 0x494   :  { %16400 = vmatpush3.bf16.msra.mxu1 %v16744_v9  ;;  %16407 = vmatprep.subr.bf16.mxu0 %v16745_v33  ;;  %v11618_v38 = vmax.f32 %v11586_v36, 0.0  ;;  %v11648_v37 = vpack.c.bf16 %v11616_v52, %v11616_v52 }
 0x495   :  { %16429 = vmatprep.subr.bf16.mxu1 %v16746_v34 }
 0x496   :  { %v16115_v21 = vpop.f32.mrf.mxu0  ;;  %14215 = vmatmul.mubr.bf16.vlgmr.msra.gmra.mxu0 %v11644_v27  ;;  %v11650_v47 = vpack.c.bf16 %v11618_v38, %v11618_v38 }
 0x497   :  { %v16137_v17 = vpop.f32.mrf.mxu1  ;;  %14255 = vmatmul.mubr.bf16.vlgmr.msra.gmra.mxu1 %v11646_v7  ;;  %16408 = vmatpush3.bf16.msra.mxu0 %v16747_v31 }
 0x498   :  { %14294 = vmatprep.mubr.bf16.mxu0 %v11649_v8  ;;  %16430 = vmatpush3.bf16.msra.mxu1 %v16748_v51  ;;  %v16116_v6 = vpop.f32.mrf.mxu0 }
 0x499   :  { %14334 = vmatprep.mubr.bf16.mxu1 %v11651_v10  ;;  %v16117_v61 = vadd.f32 %v16116_v6, %v16115_v21  ;;  %v16138_v18 = vpop.f32.mrf.mxu1  ;;  %16409 = vmatprep.subr.bf16.mxu0 %v16749_v22 }
 0x49a   :  { %v16139_v42 = vadd.f32 %v16138_v18, %v16137_v17  ;;  %v16118_v25 = vpop.f32.mrf.mxu0  ;;  %16431 = vmatprep.subr.bf16.mxu1 %v16750_v11 }
 0x49b   :  { %v16140_v1 = vpop.f32.mrf.mxu1  ;;  %16410 = vmatpush3.bf16.msra.mxu0 %v16751_v12  ;;  %v14372_v25 = vld [vmem:[#allocation14 + $0x78] sm:$0xff] }
 0x49c   :  { %v19874_v60 = vadd.f32 %v16139_v42, %v16117_v61  ;;  %16432 = vmatpush3.bf16.msra.mxu1 %v16752_v23  ;;  %v16119_v62 = vpop.f32.mrf.mxu0  ;;  %16411 = vmatprep.subr.bf16.mxu0 %v16753_v49  ;;  %v17002_v1 = vmov 0.0  }
 0x49d   :  { %v16141_v56 = vpop.f32.mrf.mxu1  ;;  %16433 = vmatprep.subr.bf16.mxu1 %v16754_v29  ;;  %v14369_v62 = vld [vmem:[#allocation14 + $0x60] sm:$0xff] }
 0x49e   :  { %v14366_v56 = vld [vmem:[#allocation14 + $0x48] sm:$0xff] }
 0x49f   :  { %16412 = vmatpush3.bf16.msra.mxu0 %v16755_v20  ;;  %v14371_v20 = vld [vmem:[#allocation14 + $0x70] sm:$0xff] }
 0x4a0   :  { %16434 = vmatpush3.bf16.msra.mxu1 %v16756_v58  ;;  %16413 = vmatprep.subr.bf16.mxu0 %v16757_v43  ;;  %v14368_v58 = vld [vmem:[#allocation14 + $0x58] sm:$0xff]  ;;  %v14367_v43 = vld [vmem:[#allocation14 + $0x50] sm:$0xff] }
 0x4a1   :  { %16435 = vmatprep.subr.bf16.mxu1 %v16758_v4  ;;  %v14365_v4 = vld [vmem:[#allocation14 + $0x40] sm:$0xff] }
 0x4a3   :  { %16414 = vmatpush3.bf16.msra.mxu0 %v16759_v28 }
 0x4a4   :  { %16436 = vmatpush3.bf16.msra.mxu1 %v16760_v24  ;;  %16415 = vmatprep.subr.bf16.mxu0 %v16761_v44  ;;  %v14364_v44 = vld [vmem:[#allocation14 + $0x38] sm:$0xff] }
 0x4a5   :  { %16437 = vmatprep.subr.bf16.mxu1 %v16762_v19 }
 0x4a7   :  { %16416 = vmatpush3.bf16.msra.mxu0 %v16763_v32 }
 0x4a8   :  { %16438 = vmatpush3.bf16.msra.mxu1 %v16764_v48  ;;  %16417 = vmatprep.subr.bf16.mxu0 %v16765_v45 }
 0x4a9   :  { %16439 = vmatprep.subr.bf16.mxu1 %v16766_v13 }
 0x4ab   :  { %16418 = vmatpush3.bf16.msra.mxu0 %v16767_v55 }
 0x4ac   :  { %16440 = vmatpush3.bf16.msra.mxu1 %v16768_v39  ;;  %16419 = vmatprep.subr.bf16.mxu0 %v16769_v14  ;;  %v14362_v39 = vld [vmem:[#allocation14 + $0x28] sm:$0xff]  ;;  %v14361_v14 = vld [vmem:[#allocation14 + $0x20] sm:$0xff] }
 0x4ad   :  { %16441 = vmatprep.subr.bf16.mxu1 %v16770_v30  ;;  %v14358_v30 = vld [vmem:[#allocation14 + $0x8] sm:$0xff] }
 0x4af   :  { %16420 = vmatpush3.bf16.msra.mxu0 %v16771_v15  ;;  %v14357_v15 = vld [vmem:[#allocation14] sm:$0xff] }
 0x4b0   :  { %16442 = vmatpush3.bf16.msra.mxu1 %v16772_v46  ;;  %16421 = vmatprep.subr.bf16.mxu0 %v16773_v2 }
 0x4b1   :  { %16443 = vmatprep.subr.bf16.mxu1 %v16774_v54 }
 0x4b3   :  { %16422 = vmatpush3.bf16.msra.mxu0 %v16775_v3 }
 0x4b4   :  { %16444 = vmatpush3.bf16.msra.mxu1 %v16776_v63  ;;  %16468 = vmatprep.subr.mxu0 %v17002_v1 }
 0x4b6   :  { %v16159_v9 = vpop.f32.mrf.mxu0  ;;  %14295 = vmatmul.mubr.bf16.vlgmr.msra.gmra.mxu0 %v11648_v37 }
 0x4b7   :  { %v16181_v33 = vpop.f32.mrf.mxu1  ;;  %14335 = vmatmul.mubr.bf16.vlgmr.msra.gmra.mxu1 %v11650_v47  ;;  %16469 = vmatpush3.msra.mxu0 %v14372_v25 }
 0x4b8   :  { %v16160_v53 = vpop.f32.mrf.mxu0  ;;  %16470 = vmatprep.subr.mxu0 %v17002_v1  ;;  %16500 = vmatprep.mubr.msk.f32.mxu0 %vm17003_vm2, %v17002_v1 }
 0x4b9   :  { %v16161_v34 = vadd.f32 %v16160_v53, %v16159_v9  ;;  %v16182_v50 = vpop.f32.mrf.mxu1  ;;  %16471 = vmatpush3.msra.mxu0 %v14371_v20 }
 0x4ba   :  { %v16183_v31 = vadd.f32 %v16182_v50, %v16181_v33  ;;  %v16162_v16 = vpop.f32.mrf.mxu0  ;;  %16472 = vmatprep.subr.mxu0 %v17002_v1 }
 0x4bb   :  { %v13817_v27 = vadd.f32 %v16161_v34, %v19874_v60  ;;  %v16184_v51 = vpop.f32.mrf.mxu1  ;;  %v14370_v60 = vld [vmem:[#allocation14 + $0x68] sm:$0xff] }
 0x4bc   :  { %v16163_v7 = vpop.f32.mrf.mxu0  ;;  %16473 = vmatpush3.msra.mxu0 %v14370_v60 }
 0x4bd   :  { %v13857_v22 = vadd.f32 %v16183_v31, %v13817_v27  ;;  %v16185_v21 = vpop.f32.mrf.mxu1  ;;  %16474 = vmatprep.subr.mxu0 %v17002_v1 }
 0x4be   :  { %16475 = vmatpush3.msra.mxu0 %v14369_v62 }
 0x4bf   :  { %16476 = vmatprep.subr.mxu0 %v17002_v1 }
 0x4c0   :  { %16477 = vmatpush3.msra.mxu0 %v14368_v58 }
 0x4c1   :  { %16478 = vmatprep.subr.mxu0 %v17002_v1 }
 0x4c2   :  { %16479 = vmatpush3.msra.mxu0 %v14367_v43 }
 0x4c3   :  { %16480 = vmatprep.subr.mxu0 %v17002_v1 }
 0x4c4   :  { %16481 = vmatpush3.msra.mxu0 %v14366_v56 }
 0x4c5   :  { %16482 = vmatprep.subr.mxu0 %v17002_v1 }
 0x4c6   :  { %16483 = vmatpush3.msra.mxu0 %v14365_v4 }
 0x4c7   :  { %16484 = vmatprep.subr.mxu0 %v17002_v1 }
 0x4c8   :  { %16485 = vmatpush3.msra.mxu0 %v14364_v44 }
 0x4c9   :  { %16486 = vmatprep.subr.mxu0 %v17002_v1 }
 0x4ca   :  { %16487 = vmatpush3.msra.mxu0 %v14363_v35 }
 0x4cb   :  { %16488 = vmatprep.subr.mxu0 %v17002_v1 }
 0x4cc   :  { %16489 = vmatpush3.msra.mxu0 %v14362_v39 }
 0x4cd   :  { %16490 = vmatprep.subr.mxu0 %v17002_v1 }
 0x4ce   :  { %16491 = vmatpush3.msra.mxu0 %v14361_v14 }
 0x4cf   :  { %16492 = vmatprep.subr.mxu0 %v17002_v1 }
 0x4d0   :  { %16493 = vmatpush3.msra.mxu0 %v14360_v26 }
 0x4d1   :  { %16494 = vmatprep.subr.mxu0 %v17002_v1 }
 0x4d2   :  { %16495 = vmatpush3.msra.mxu0 %v14359_v59 }
 0x4d3   :  { %16496 = vmatprep.subr.mxu0 %v17002_v1 }
 0x4d4   :  { %16497 = vmatpush3.msra.mxu0 %v14358_v30 }
 0x4d5   :  { %16498 = vmatprep.subr.mxu0 %v17002_v1 }
 0x4d6   :  { %v16203_v8 = vpop.f32.mrf.mxu0  ;;  %16499 = vmatpush3.msra.mxu0 %v14357_v15 }
 0x4d7   :  { %v16225_v11 = vpop.f32.mrf.mxu1 }
 0x4d8   :  { %v16204_v17 = vpop.f32.mrf.mxu0 }
 0x4d9   :  { %v16205_v10 = vadd.f32 %v16204_v17, %v16203_v8  ;;  %v16226_v12 = vpop.f32.mrf.mxu1 }
 0x4da   :  { %v16227_v6 = vadd.f32 %v16226_v12, %v16225_v11  ;;  %v16206_v23 = vpop.f32.mrf.mxu0 }
 0x4db   :  { %v13897_v49 = vadd.f32 %v16205_v10, %v13857_v22  ;;  %v16228_v61 = vpop.f32.mrf.mxu1 }
 0x4dc   :  { %v16207_v18 = vpop.f32.mrf.mxu0 }
 0x4dd   :  { %v13937_v29 = vadd.f32 %v16227_v6, %v13897_v49  ;;  %v16229_v42 = vpop.f32.mrf.mxu1 }
 0x4f6   :  { %v16247_v28 = vpop.f32.mrf.mxu0 }
 0x4f7   :  { %v16269_v24 = vpop.f32.mrf.mxu1 }
 0x4f8   :  { %v16248_v19 = vpop.f32.mrf.mxu0 }
 0x4f9   :  { %v16249_v32 = vadd.f32 %v16248_v19, %v16247_v28  ;;  %v16270_v57 = vpop.f32.mrf.mxu1 }
 0x4fa   :  { %v16271_v48 = vadd.f32 %v16270_v57, %v16269_v24  ;;  %v16250_v45 = vpop.f32.mrf.mxu0  ;;  %v16096_v24 = vld [vmem:[#allocation11] ss:$0 sm:$0xff]  ;;  %v16097_v57 = vld [vmem:[#allocation12] ss:$0 sm:$0xff] }
 0x4fb   :  { %v13977_v5 = vadd.f32 %v16249_v32, %v13937_v29  ;;  %v16272_v41 = vpop.f32.mrf.mxu1 }
 0x4fc   :  { %v16251_v13 = vpop.f32.mrf.mxu0  ;;  %v16098_v41 = vld [vmem:[#allocation15] ss:$0 sm:$0xff] }
 0x4fd   :  { %v14017_v55 = vadd.f32 %v16271_v48, %v13977_v5  ;;  %v16273_v40 = vpop.f32.mrf.mxu1 }
 0x516   :  { %v16291_v0 = vpop.f32.mrf.mxu0 }
 0x517   :  { %v16313_v46 = vpop.f32.mrf.mxu1 }
 0x518   :  { %v16292_v2 = vpop.f32.mrf.mxu0 }
 0x519   :  { %v16293_v36 = vadd.f32 %v16292_v2, %v16291_v0  ;;  %v16314_v54 = vpop.f32.mrf.mxu1 }
 0x51a   :  { %v16315_v3 = vadd.f32 %v16314_v54, %v16313_v46  ;;  %v16294_v52 = vpop.f32.mrf.mxu0 }
 0x51b   :  { %v14057_v63 = vadd.f32 %v16293_v36, %v14017_v55  ;;  %v16316_v38 = vpop.f32.mrf.mxu1 }
 0x51c   :  { %v16295_v37 = vpop.f32.mrf.mxu0 }
 0x51d   :  { %v14097_v47 = vadd.f32 %v16315_v3, %v14057_v63  ;;  %v16317_v9 = vpop.f32.mrf.mxu1 }
 0x536   :  { %v16335_v33 = vpop.f32.mrf.mxu0 }
 0x537   :  { %v16357_v53 = vpop.f32.mrf.mxu1 }
 0x538   :  { %v16336_v34 = vpop.f32.mrf.mxu0 }
 0x539   :  { %v16358_v50 = vpop.f32.mrf.mxu1  ;;  %v16337_v6 = vadd.f32 %v16336_v34, %v16335_v33 }
 0x53a   :  { %v16338_v31 = vpop.f32.mrf.mxu0  ;;  %v16359_v49 = vadd.f32 %v16358_v50, %v16357_v53 }
 0x53b   :  { %v16360_v16 = vpop.f32.mrf.mxu1  ;;  %v14137_v23 = vadd.f32 %v16337_v6, %v14097_v47 }
 0x53c   :  { %v16339_v27 = vpop.f32.mrf.mxu0 }
 0x53d   :  { %v16361_v51 = vpop.f32.mrf.mxu1  ;;  %v14177_v18 = vadd.f32 %v16359_v49, %v14137_v23 }
 0x556   :  { %v16379_v7 = vpop.f32.mrf.mxu0 }
 0x557   :  { %v16401_v22 = vpop.f32.mrf.mxu1 }
 0x558   :  { %v16380_v21 = vpop.f32.mrf.mxu0 }
 0x559   :  { %v16402_v8 = vpop.f32.mrf.mxu1  ;;  %v16381_v61 = vadd.f32 %v16380_v21, %v16379_v7 }
 0x55a   :  { %v16382_v11 = vpop.f32.mrf.mxu0  ;;  %v16403_v25 = vadd.f32 %v16402_v8, %v16401_v22 }
 0x55b   :  { %v16404_v17 = vpop.f32.mrf.mxu1  ;;  %v14217_v29 = vadd.f32 %v16381_v61, %v14177_v18 }
 0x55c   :  { %v16383_v10 = vpop.f32.mrf.mxu0 }
 0x55d   :  { %v16405_v12 = vpop.f32.mrf.mxu1  ;;  %v14257_v60 = vadd.f32 %v16403_v25, %v14217_v29 }
 0x576   :  { %v16423_v42 = vpop.f32.mrf.mxu0 }
 0x577   :  { %v16445_v1 = vpop.f32.mrf.mxu1 }
 0x578   :  { %v16424_v20 = vpop.f32.mrf.mxu0 }
 0x579   :  { %v16425_v62 = vadd.f32 %v16424_v20, %v16423_v42  ;;  %v16446_v58 = vpop.f32.mrf.mxu1 }
 0x57a   :  { %v16426_v43 = vpop.f32.mrf.mxu0  ;;  %v16447_v4 = vadd.f32 %v16446_v58, %v16445_v1 }
 0x57b   :  { %v14297_v56 = vadd.f32 %v16425_v62, %v14257_v60  ;;  %v16448_v28 = vpop.f32.mrf.mxu1 }
 0x57c   :  { %v16427_v44 = vpop.f32.mrf.mxu0 }
 0x57d   :  { %v14337_v19 = vadd.f32 %v16447_v4, %v14297_v56  ;;  %v16449_v32 = vpop.f32.mrf.mxu1 }
 0x57f   :  { %v14348_v48 = vmul.f32 %v16096_v24, %v14337_v19 }
 0x581   :  { %v14355_v45 = vadd.f32 %v16097_v57, %v14348_v48 }
 0x583   :  { %v14356_v5 = vmax.f32 %v14355_v45, 0.0 }
 0x585   :  { %16501 = vmatmul.mubr.f32.vlgmr.msra.gmra.mxu0 %v14356_v5 }
 0x645   :  { %v14446_v13 = vpop.f32.mrf.mxu0 }
 0x646   :  { %v14447_v55 = vadd.f32 %v16098_v41, %v14446_v13 }
 0x647   :  { %v16502_v40 = vpop.f32.mrf.mxu0 }
 0x648   :  { %14450 = vst [vmem:[%s19900_s9] sm:$0xff] %v14447_v55 }
 0x649   :  { %14455 = vsyncpa [#allocation5], 1 }
 0x64a   :  { %14456 = vsyncpa [#allocation7], 1 }
 0x64b   :  { %14457 = vsyncpa [#allocation10], 1 }
 0x64c   :  { %14458 = vsyncpa [#allocation13], 1 }
 0x64d   :  { %14459 = vsyncpa [#allocation16], 1 }

</bundles_post_ra>
